<compile_context>
chip_gen: v7x
topology: tpu7x:2x2x1
jax: 0.10.0
libtpu: 0.0.40
codegen_flags: <defaults>
</compile_context>

<pallas_src>
import functools

import jax
import jax.numpy as jnp
from jax import lax
from jax.experimental import pallas as pl
from jax.experimental.pallas import tpu as pltpu

GROWTH = 32
EPS = 1e-5

TILE_M = 256          # cap on the M tile
MAX_TK = 2048         # above this, fall back to a multi-step K reduction
VMEM_LIMIT = 32 * 1024 * 1024


def _round_up(x, m):
    return (x + m - 1) // m * m


def _pad2(x, rows, cols):
    r, c = x.shape
    if r == rows and c == cols:
        return x
    return jnp.pad(x, ((0, rows - r), (0, cols - c)))


def _prep_row(v, width):
    v = jnp.asarray(v, jnp.float32).reshape(1, -1)
    return _pad2(v, 1, width)


# ----------------------------- Pallas kernels ------------------------------

def _mm_kernel_1k(*refs, in_affine, out_mode, relu):
    """Single-K-step matmul with fused BN/ReLU prologue & epilogue (no scratch)."""
    a_ref, w_ref = refs[0], refs[1]
    idx = 2
    if in_affine:
        is_ref, ib_ref = refs[idx], refs[idx + 1]
        idx += 2
    if out_mode == "affine":
        os_ref, ob_ref = refs[idx], refs[idx + 1]
        idx += 2
    elif out_mode == "bias":
        ob_ref = refs[idx]
        idx += 1
    o_ref = refs[idx]

    a = a_ref[...]
    if in_affine:
        # Fused pre-activation BN + ReLU (per input channel / K column).
        a = jnp.maximum(a.astype(jnp.float32) * is_ref[...] + ib_ref[...], 0.0)
        a = a.astype(jnp.bfloat16)
    out = jnp.dot(a, w_ref[...], preferred_element_type=jnp.float32)
    if out_mode == "affine":
        out = out * os_ref[...] + ob_ref[...]
    elif out_mode == "bias":
        out = out + ob_ref[...]
    if relu:
        out = jnp.maximum(out, 0.0)
    o_ref[...] = out.astype(o_ref.dtype)


def _mm_kernel_acc(*refs, in_affine, out_mode, relu):
    """Multi-K-step matmul with an f32 VMEM accumulator (fallback for huge K)."""
    acc_ref = refs[-1]
    o_ref = refs[-2]
    a_ref, w_ref = refs[0], refs[1]
    idx = 2
    if in_affine:
        is_ref, ib_ref = refs[idx], refs[idx + 1]
        idx += 2
    if out_mode == "affine":
        os_ref, ob_ref = refs[idx], refs[idx + 1]
        idx += 2
    elif out_mode == "bias":
        ob_ref = refs[idx]
        idx += 1

    k = pl.program_id(2)

    @pl.when(k == 0)
    def _init():
        acc_ref[...] = jnp.zeros_like(acc_ref)

    a = a_ref[...]
    if in_affine:
        a = jnp.maximum(a.astype(jnp.float32) * is_ref[...] + ib_ref[...], 0.0)
        a = a.astype(jnp.bfloat16)
    acc_ref[...] += jnp.dot(a, w_ref[...], preferred_element_type=jnp.float32)

    @pl.when(k == pl.num_programs(2) - 1)
    def _finalize():
        out = acc_ref[...]
        if out_mode == "affine":
            out = out * os_ref[...] + ob_ref[...]
        elif out_mode == "bias":
            out = out + ob_ref[...]
        if relu:
            out = jnp.maximum(out, 0.0)
        o_ref[...] = out.astype(o_ref.dtype)


def matmul_fused(a, w, *, in_scale=None, in_bias=None,
                 out_scale=None, out_bias=None, relu=False,
                 out_dtype=jnp.bfloat16, n_valid=None):
    """C = epilogue( prologue(a) @ w ) on a tiled MXU grid.

    `w` must already be padded to (kp, np_) with kp, np_ multiples of 128
    (weights/BN rows are pre-padded at init time).  `a` (M, K<=kp) is padded
    here on M (and K, if needed).  Output is (M, n_valid) in `out_dtype`.
    """
    M, K = a.shape
    kp, np_ = w.shape
    assert kp % 128 == 0 and np_ % 128 == 0 and K <= kp, (a.shape, w.shape)
    if n_valid is None:
        n_valid = np_
    in_affine = in_scale is not None
    if out_scale is not None:
        out_mode = "affine"
    elif out_bias is not None:
        out_mode = "bias"
    else:
        out_mode = "none"

    # --- tile selection -----------------------------------------------------
    tn = 256 if (np_ >= 256 and np_ % 256 == 0) else 128    # fill 256x256 MXU
    tk = kp if kp <= MAX_TK else (256 if kp % 256 == 0 else 128)
    if M > 64:
        # split M into >=2 blocks so both v7x TensorCores get work
        tm = min(TILE_M, max(64, _round_up((M + 1) // 2, 8)))
    else:
        tm = _round_up(max(M, 1), 8)
    mp = _round_up(M, tm)
    kk = kp // tk

    a_p = _pad2(a.astype(jnp.bfloat16), mp, kp)
    w_p = w.astype(jnp.bfloat16)

    operands = [a_p, w_p]
    if kk == 1:
        grid = (mp // tm, np_ // tn)
        in_specs = [
            pl.BlockSpec((tm, kp), lambda i, j: (i, 0)),
            pl.BlockSpec((kp, tn), lambda i, j: (0, j)),
        ]
        col_k_spec = pl.BlockSpec((1, kp), lambda i, j: (0, 0))
        col_n_spec = pl.BlockSpec((1, tn), lambda i, j: (0, j))
        out_spec = pl.BlockSpec((tm, tn), lambda i, j: (i, j))
        kernel = functools.partial(_mm_kernel_1k, in_affine=in_affine,
                                   out_mode=out_mode, relu=relu)
        scratch = []
        dims = ("parallel", "parallel")
    else:
        grid = (mp // tm, np_ // tn, kk)
        in_specs = [
            pl.BlockSpec((tm, tk), lambda i, j, k: (i, k)),
            pl.BlockSpec((tk, tn), lambda i, j, k: (k, j)),
        ]
        col_k_spec = pl.BlockSpec((1, tk), lambda i, j, k: (0, k))
        col_n_spec = pl.BlockSpec((1, tn), lambda i, j, k: (0, j))
        out_spec = pl.BlockSpec((tm, tn), lambda i, j, k: (i, j))
        kernel = functools.partial(_mm_kernel_acc, in_affine=in_affine,
                                   out_mode=out_mode, relu=relu)
        scratch = [pltpu.VMEM((tm, tn), jnp.float32)]
        dims = ("parallel", "parallel", "arbitrary")

    if in_affine:
        operands += [_prep_row(in_scale, kp), _prep_row(in_bias, kp)]
        in_specs += [col_k_spec, col_k_spec]
    if out_mode == "affine":
        operands += [_prep_row(out_scale, np_), _prep_row(out_bias, np_)]
        in_specs += [col_n_spec, col_n_spec]
    elif out_mode == "bias":
        operands += [_prep_row(out_bias, np_)]
        in_specs += [col_n_spec]

    out = pl.pallas_call(
        kernel,
        grid=grid,
        in_specs=in_specs,
        out_specs=out_spec,
        out_shape=jax.ShapeDtypeStruct((mp, np_), out_dtype),
        scratch_shapes=scratch,
        compiler_params=pltpu.CompilerParams(
            dimension_semantics=dims,
            vmem_limit_bytes=VMEM_LIMIT),
    )(*operands)
    if mp == M and np_ == n_valid:
        return out
    return out[:M, :n_valid]


def _maxpool_kernel(x_ref, o_ref):
    # Reduce the window axis (axis=1) of a (tm, kk, C) patch tile.
    o_ref[...] = jnp.max(x_ref[...], axis=1)


def maxpool_2d(x, k, stride, pad):
    """Max pool via a Pallas window-reduce kernel.  C must be a 128-multiple
    (lane-dense output)."""
    B, H, W, C = x.shape
    patches, Ho, Wo = extract_pool_patches(x, k, stride, pad, -jnp.inf)
    M = B * Ho * Wo
    tm = min(512, _round_up(M, 8))
    mp = _round_up(M, tm)
    pp = jnp.pad(patches, ((0, mp - M), (0, 0), (0, 0)))
    out = pl.pallas_call(
        _maxpool_kernel,
        grid=(mp // tm,),
        in_specs=[pl.BlockSpec((tm, k * k, C), lambda i: (i, 0, 0))],
        out_specs=pl.BlockSpec((tm, C), lambda i: (i, 0)),
        out_shape=jax.ShapeDtypeStruct((mp, C), x.dtype),
        compiler_params=pltpu.CompilerParams(
            dimension_semantics=("parallel",),
            vmem_limit_bytes=VMEM_LIMIT),
    )(pp)
    return out[:M].reshape(B, Ho, Wo, C)


# ------------------------------ JAX glue ops --------------------------------

def extract_conv_patches(x, kh, kw, stride, pad):
    """NHWC -> (B*Ho*Wo, kh*kw*C) im2col patches (zero padding), keeps dtype."""
    B, H, W, C = x.shape
    xp = jnp.pad(x, ((0, 0), (pad, pad), (pad, pad), (0, 0)))
    Ho = (H + 2 * pad - kh) // stride + 1
    Wo = (W + 2 * pad - kw) // stride + 1
    cols = []
    for i in range(kh):
        for j in range(kw):
            cols.append(xp[:, i:i + stride * Ho:stride, j:j + stride * Wo:stride, :])
    p = jnp.stack(cols, axis=3)                     # (B, Ho, Wo, kh*kw, C)
    return p.reshape(B * Ho * Wo, kh * kw * C), Ho, Wo


def extract_pool_patches(x, k, stride, pad, pad_value):
    """NHWC -> (B*Ho*Wo, k*k, C) pooling windows."""
    B, H, W, C = x.shape
    xp = jnp.pad(x, ((0, 0), (pad, pad), (pad, pad), (0, 0)),
                 constant_values=pad_value)
    Ho = (H + 2 * pad - k) // stride + 1
    Wo = (W + 2 * pad - k) // stride + 1
    cols = []
    for i in range(k):
        for j in range(k):
            cols.append(xp[:, i:i + stride * Ho:stride, j:j + stride * Wo:stride, :])
    p = jnp.stack(cols, axis=3)                     # (B, Ho, Wo, k*k, C)
    return p.reshape(B * Ho * Wo, k * k, C), Ho, Wo


def avgpool_2x2(x):
    """AvgPool2d(kernel=2, stride=2) as an XLA reshape + mean (no Pallas call)."""
    B, H, W, C = x.shape
    x = x[:, : H // 2 * 2, : W // 2 * 2, :]
    x = x.reshape(B, H // 2, 2, W // 2, 2, C).astype(jnp.float32)
    return x.mean(axis=(2, 4)).astype(jnp.bfloat16)


# ------------------------------- Parameters ---------------------------------

def init_densenet_params(key, expansions, num_classes):
    """All weights / BN rows are pre-padded to their tiled shapes (bf16 weights,
    128-multiple K and N; f32 (1, width) scale/bias rows) so the jitted forward
    emits no per-layer pad/convert HLOs."""
    # The reference hard-codes 256/512 transition widths -> expansions[0:2] fixed.
    assert expansions[0] == 6 and expansions[1] == 12, \
        "reference transition widths (256/512) require expansions[:2] == [6, 12]"
    t3_in = 256 + expansions[2] * GROWTH
    cls_in = t3_in // 2 + expansions[3] * GROWTH
    kit = iter(jax.random.split(key, 1024))

    def nk():
        return next(kit)

    def conv_w(cin, cout, kh, kw, kp, npad):
        # PyTorch layout (Cout, Cin, kh, kw) -> matmul form (kh*kw*Cin, Cout),
        # matching the im2col column ordering ((i*kw + j)*Cin + c); zero-padded
        # to (kp, npad) and stored bf16 (MXU operand dtype).
        w = jax.random.normal(nk(), (cout, cin, kh, kw), jnp.float32)
        w = w * (2.0 / (cin * kh * kw)) ** 0.5
        w = jnp.transpose(w, (2, 3, 1, 0)).reshape(kh * kw * cin, cout)
        return _pad2(w, kp, npad).astype(jnp.bfloat16)

    def bn_affine(c, cp):
        gamma = 1.0 + 0.1 * jax.random.normal(nk(), (c,), jnp.float32)
        beta = 0.1 * jax.random.normal(nk(), (c,), jnp.float32)
        run_mean = jnp.zeros((c,), jnp.float32)
        run_var = jnp.ones((c,), jnp.float32)
        scale = gamma / jnp.sqrt(run_var + EPS)
        bias = beta - run_mean * scale
        # Zero padding keeps padded slab channels / padded output columns inert.
        return (_pad2(scale.reshape(1, c), 1, cp),
                _pad2(bias.reshape(1, c), 1, cp))

    def dense_block_params(cin, n_layers):
        c_pad = _round_up(cin + n_layers * GROWTH, 128)   # slab (padded) width
        layers = []
        c = cin
        for _ in range(n_layers):
            layers.append(dict(
                bn1=bn_affine(c, c_pad),
                w1=conv_w(c, 4 * GROWTH, 1, 1, c_pad, 128),
                bn2=bn_affine(4 * GROWTH, 128),
                w2=conv_w(4 * GROWTH, GROWTH, 3, 3, 9 * 4 * GROWTH, 128),
            ))
            c += GROWTH
        return layers, c, c_pad

    params = {}
    params["stem_w"] = conv_w(3, 64, 7, 7, _round_up(7 * 7 * 3, 128), 128)
    params["stem_bn"] = bn_affine(64, 128)

    params["dense1"], c1, c1p = dense_block_params(64, expansions[0])        # 256
    params["t1_w"] = conv_w(c1, 128, 1, 1, c1p, 128)
    params["t1_bn"] = bn_affine(128, 128)

    params["dense2"], c2, c2p = dense_block_params(128, expansions[1])       # 512
    params["t2_w"] = conv_w(c2, 256, 1, 1, c2p, 256)
    params["t2_bn"] = bn_affine(256, 256)

    params["dense3"], c3, c3p = dense_block_params(256, expansions[2])       # t3_in
    t3_out = t3_in // 2
    params["t3_w"] = conv_w(c3, t3_out, 1, 1, c3p, _round_up(t3_out, 128))
    params["t3_bn"] = bn_affine(t3_out, _round_up(t3_out, 128))

    params["dense4"], c4, c4p = dense_block_params(t3_out, expansions[3])    # cls_in

    fc_w = (jax.random.normal(nk(), (cls_in, num_classes), jnp.float32)
            / cls_in ** 0.5)
    params["fc_w"] = _pad2(fc_w, c4p, _round_up(num_classes, 128)).astype(jnp.bfloat16)
    fc_b = 0.01 * jax.random.normal(nk(), (num_classes,), jnp.float32)
    params["fc_b"] = _pad2(fc_b.reshape(1, -1), 1, _round_up(num_classes, 128))
    return params


# -------------------------------- Forward -----------------------------------

def dense_layer(slab, p):
    # BN1 -> ReLU -> Conv1x1(4k) -> BN2 -> ReLU fused into ONE matmul kernel
    # (BN1+ReLU as the per-K prologue, BN2+ReLU as the per-N epilogue); the 1x1
    # conv reads the whole padded slab — weight rows / BN scales for channels
    # not yet written are zero, so those columns contribute nothing.
    B, H, W, Cp = slab.shape
    M = B * H * W
    h = matmul_fused(slab.reshape(M, Cp), p["w1"],
                     in_scale=p["bn1"][0], in_bias=p["bn1"][1],
                     out_scale=p["bn2"][0], out_bias=p["bn2"][1], relu=True)
    # Conv3x3(k, pad=1): bf16 im2col (XLA glue, fused under jit) + tiled matmul.
    patches, Ho, Wo = extract_conv_patches(
        h.reshape(B, H, W, 4 * GROWTH), 3, 3, 1, 1)
    y = matmul_fused(patches, p["w2"], n_valid=GROWTH)
    return y.reshape(B, Ho, Wo, GROWTH)


def dense_block_fwd(x, layers, c_in):
    """Channel-slab dense block: pre-allocated lane-padded slab, each layer
    writes only its GROWTH new channels via dynamic_update_slice."""
    B, H, W, Cx = x.shape
    c_pad = _round_up(c_in + len(layers) * GROWTH, 128)
    slab = jnp.zeros((B, H, W, c_pad), jnp.bfloat16)
    slab = lax.dynamic_update_slice(slab, x.astype(jnp.bfloat16), (0, 0, 0, 0))
    c = c_in
    for p in layers:
        y = dense_layer(slab, p)
        slab = lax.dynamic_update_slice(slab, y, (0, 0, 0, c))
        c += GROWTH
    return slab          # padded width c_pad; first `c` channels are valid


def transition_fwd(x, w, bn):
    # Conv1x1 with fused BN+ReLU epilogue, then AvgPool 2x2/s2 via XLA mean.
    # The padded output columns (zero weights / zero BN) stay exactly zero and
    # flow harmlessly into the next block's slab.
    B, H, W, Cp = x.shape
    n_pad = w.shape[1]
    h = matmul_fused(x.reshape(B * H * W, Cp), w,
                     out_scale=bn[0], out_bias=bn[1], relu=True)
    return avgpool_2x2(h.reshape(B, H, W, n_pad))


def make_forward(expansions, num_classes):
    t3_in = 256 + expansions[2] * GROWTH
    cins = (64, 128, 256, t3_in // 2)

    def forward(x_nchw, params):
        x = jnp.transpose(x_nchw, (0, 2, 3, 1)).astype(jnp.bfloat16)  # -> NHWC
        B = x.shape[0]

        # Stem: Conv7x7 s2 p2 with fused BN+ReLU epilogue; channels kept at the
        # padded width 128 (cols 64..127 are exactly zero) so the max pool is
        # lane-dense and no N-slice is needed.
        patches, Ho, Wo = extract_conv_patches(x, 7, 7, 2, 2)
        h = matmul_fused(patches, params["stem_w"],
                         out_scale=params["stem_bn"][0],
                         out_bias=params["stem_bn"][1], relu=True)
        h = h.reshape(B, Ho, Wo, -1)
        h = maxpool_2d(h, 3, 2, 1)                    # MaxPool 3x3 s2 p1 (Pallas)

        h = dense_block_fwd(h, params["dense1"], cins[0])
        h = transition_fwd(h, params["t1_w"], params["t1_bn"])
        h = dense_block_fwd(h, params["dense2"], cins[1])
        h = transition_fwd(h, params["t2_w"], params["t2_bn"])
        h = dense_block_fwd(h, params["dense3"], cins[2])
        h = transition_fwd(h, params["t3_w"], params["t3_bn"])
        h = dense_block_fwd(h, params["dense4"], cins[3])

        # Global average pool (XLA mean) + Linear classifier (bias epilogue,
        # f32 logits).  Padded slab channels are zero and hit zero FC rows.
        g = h.astype(jnp.float32).mean(axis=(1, 2)).astype(jnp.bfloat16)
        logits = matmul_fused(g, params["fc_w"], out_bias=params["fc_b"],
                              out_dtype=jnp.float32, n_valid=num_classes)
        return logits

    return jax.jit(forward)


# --------------------------------- Main --------------------------------------

if __name__ == "__main__":
    # expansions[0]=6 and expansions[1]=12 are forced by the hard-coded 256/512
    # transition widths in the reference; [2]/[3] kept small for a quick run.
    expansions = [6, 12, 4, 4]
    num_classes = 10

    key = jax.random.PRNGKey(0)
    pkey, xkey = jax.random.split(key)
    params = init_densenet_params(pkey, expansions, num_classes)
    x = jax.random.normal(xkey, (2, 3, 32, 32), jnp.float32)      # NCHW input

    forward = make_forward(expansions, num_classes)
    out = forward(x, params)
    out = jax.block_until_ready(out)

    assert out.shape == (2, num_classes), out.shape
    assert bool(jnp.all(jnp.isfinite(out)))
    print("KERNEL_OK")
</pallas_src>

<mosaic_0001>
module attributes {stable_mosaic.version = 11 : i64} {
  func.func @_mm_kernel_1k(%arg0: i32, %arg1: i32, %arg2: memref<232x256xbf16, #tpu.memory_space<vmem>>, %arg3: memref<256x128xbf16, #tpu.memory_space<vmem>>, %arg4: memref<1x128xf32, #tpu.memory_space<vmem>>, %arg5: memref<1x128xf32, #tpu.memory_space<vmem>>, %arg6: memref<232x128xbf16, #tpu.memory_space<vmem>>) attributes {dimension_semantics = [#tpu.dimension_semantics<parallel>, #tpu.dimension_semantics<parallel>], iteration_bounds = array<i64: 2, 1>, scalar_prefetch = 0 : i64, scratch_operands = 0 : i64, tpu.core_type = #tpu.core_type<tc>, window_params = [{transform_indices = @transform_0, window_bounds = array<i64: 232, 256>}, {transform_indices = @transform_1, window_bounds = array<i64: 256, 128>}, {transform_indices = @transform_2, window_bounds = array<i64: 1, 128>}, {transform_indices = @transform_3, window_bounds = array<i64: 1, 128>}, {transform_indices = @transform_4, window_bounds = array<i64: 232, 128>}]} {
    %c0 = arith.constant 0 : index
    %c0_0 = arith.constant 0 : index
    %0 = vector.load %arg2[%c0, %c0_0] : memref<232x256xbf16, #tpu.memory_space<vmem>>, vector<232x256xbf16>
    %c0_1 = arith.constant 0 : index
    %c0_2 = arith.constant 0 : index
    %1 = vector.load %arg3[%c0_1, %c0_2] : memref<256x128xbf16, #tpu.memory_space<vmem>>, vector<256x128xbf16>
    %cst = arith.constant dense<0.000000e+00> : vector<232x128xf32>
    %2 = tpu.matmul %0, %1, %cst {dimension_numbers = #tpu.dot_dimension_numbers<[1], [0], [0], [1], [0, 0, 1, 1], [], []>} : vector<232x256xbf16>, vector<256x128xbf16>, vector<232x128xf32> -> vector<232x128xf32>
    %c0_3 = arith.constant 0 : index
    %c0_4 = arith.constant 0 : index
    %3 = vector.load %arg4[%c0_3, %c0_4] : memref<1x128xf32, #tpu.memory_space<vmem>>, vector<1x128xf32>
    %4 = vector.broadcast %3 : vector<1x128xf32> to vector<232x128xf32>
    %5 = arith.mulf %2, %4 : vector<232x128xf32>
    %c0_5 = arith.constant 0 : index
    %c0_6 = arith.constant 0 : index
    %6 = vector.load %arg5[%c0_5, %c0_6] : memref<1x128xf32, #tpu.memory_space<vmem>>, vector<1x128xf32>
    %7 = vector.broadcast %6 : vector<1x128xf32> to vector<232x128xf32>
    %8 = arith.addf %5, %7 : vector<232x128xf32>
    %cst_7 = arith.constant 0.000000e+00 : f32
    %9 = vector.broadcast %cst_7 : f32 to vector<232x128xf32>
    %10 = arith.maximumf %8, %9 : vector<232x128xf32>
    %11 = arith.truncf %10 : vector<232x128xf32> to vector<232x128xbf16>
    %c0_8 = arith.constant 0 : index
    %c0_9 = arith.constant 0 : index
    %12 = vector.load %arg6[%c0_8, %c0_9] : memref<232x128xbf16, #tpu.memory_space<vmem>>, vector<232x128xbf16>
    tpu.vector_store %arg6[%c0_8, %c0_9], %11 {strides = array<i32>} : memref<232x128xbf16, #tpu.memory_space<vmem>>, vector<232x128xbf16>,
    return
  }
  func.func @transform_0(%arg0: i32, %arg1: i32) -> (i32, i32) {
    %c0_i32 = arith.constant 0 : i32
    %c0_i32_0 = arith.constant 0 : i32
    return %arg0, %c0_i32 : i32, i32
  }
  func.func @transform_1(%arg0: i32, %arg1: i32) -> (i32, i32) {
    %c0_i32 = arith.constant 0 : i32
    %c0_i32_0 = arith.constant 0 : i32
    return %c0_i32, %arg1 : i32, i32
  }
  func.func @transform_2(%arg0: i32, %arg1: i32) -> (i32, i32) {
    %c0_i32 = arith.constant 0 : i32
    %c0_i32_0 = arith.constant 0 : i32
    return %c0_i32, %arg1 : i32, i32
  }
  func.func @transform_3(%arg0: i32, %arg1: i32) -> (i32, i32) {
    %c0_i32 = arith.constant 0 : i32
    %c0_i32_0 = arith.constant 0 : i32
    return %c0_i32, %arg1 : i32, i32
  }
  func.func @transform_4(%arg0: i32, %arg1: i32) -> (i32, i32) {
    %c0_i32 = arith.constant 0 : i32
    return %arg0, %arg1 : i32, i32
  }
}

module attributes {stable_mosaic.version = 11 : i64} {
  func.func @_mm_kernel_1k(%arg0: i32, %arg1: i32, %arg2: memref<64x256xbf16, #tpu.memory_space<vmem>>, %arg3: memref<256x128xbf16, #tpu.memory_space<vmem>>, %arg4: memref<1x256xf32, #tpu.memory_space<vmem>>, %arg5: memref<1x256xf32, #tpu.memory_space<vmem>>, %arg6: memref<1x128xf32, #tpu.memory_space<vmem>>, %arg7: memref<1x128xf32, #tpu.memory_space<vmem>>, %arg8: memref<64x128xbf16, #tpu.memory_space<vmem>>) attributes {dimension_semantics = [#tpu.dimension_semantics<parallel>, #tpu.dimension_semantics<parallel>], iteration_bounds = array<i64: 2, 1>, scalar_prefetch = 0 : i64, scratch_operands = 0 : i64, tpu.core_type = #tpu.core_type<tc>, window_params = [{transform_indices = @transform_0, window_bounds = array<i64: 64, 256>}, {transform_indices = @transform_1, window_bounds = array<i64: 256, 128>}, {pipeline_mode = #tpu.pipeline_mode<synchronous>, transform_indices = @transform_2, window_bounds = array<i64: 1, 256>}, {pipeline_mode = #tpu.pipeline_mode<synchronous>, transform_indices = @transform_3, window_bounds = array<i64: 1, 256>}, {transform_indices = @transform_4, window_bounds = array<i64: 1, 128>}, {transform_indices = @transform_5, window_bounds = array<i64: 1, 128>}, {transform_indices = @transform_6, window_bounds = array<i64: 64, 128>}]} {
    %c0 = arith.constant 0 : index
    %c0_0 = arith.constant 0 : index
    %0 = vector.load %arg2[%c0, %c0_0] : memref<64x256xbf16, #tpu.memory_space<vmem>>, vector<64x256xbf16>
    %1 = arith.extf %0 : vector<64x256xbf16> to vector<64x256xf32>
    %c0_1 = arith.constant 0 : index
    %c0_2 = arith.constant 0 : index
    %2 = vector.load %arg4[%c0_1, %c0_2] : memref<1x256xf32, #tpu.memory_space<vmem>>, vector<1x256xf32>
    %3 = vector.broadcast %2 : vector<1x256xf32> to vector<64x256xf32>
    %4 = arith.mulf %1, %3 : vector<64x256xf32>
    %c0_3 = arith.constant 0 : index
    %c0_4 = arith.constant 0 : index
    %5 = vector.load %arg5[%c0_3, %c0_4] : memref<1x256xf32, #tpu.memory_space<vmem>>, vector<1x256xf32>
    %6 = vector.broadcast %5 : vector<1x256xf32> to vector<64x256xf32>
    %7 = arith.addf %4, %6 : vector<64x256xf32>
    %cst = arith.constant 0.000000e+00 : f32
    %8 = vector.broadcast %cst : f32 to vector<64x256xf32>
    %9 = arith.maximumf %7, %8 : vector<64x256xf32>
    %10 = arith.truncf %9 : vector<64x256xf32> to vector<64x256xbf16>
    %c0_5 = arith.constant 0 : index
    %c0_6 = arith.constant 0 : index
    %11 = vector.load %arg3[%c0_5, %c0_6] : memref<256x128xbf16, #tpu.memory_space<vmem>>, vector<256x128xbf16>
    %cst_7 = arith.constant dense<0.000000e+00> : vector<64x128xf32>
    %12 = tpu.matmul %10, %11, %cst_7 {dimension_numbers = #tpu.dot_dimension_numbers<[1], [0], [0], [1], [0, 0, 1, 1], [], []>} : vector<64x256xbf16>, vector<256x128xbf16>, vector<64x128xf32> -> vector<64x128xf32>
    %c0_8 = arith.constant 0 : index
    %c0_9 = arith.constant 0 : index
    %13 = vector.load %arg6[%c0_8, %c0_9] : memref<1x128xf32, #tpu.memory_space<vmem>>, vector<1x128xf32>
    %14 = vector.broadcast %13 : vector<1x128xf32> to vector<64x128xf32>
    %15 = arith.mulf %12, %14 : vector<64x128xf32>
    %c0_10 = arith.constant 0 : index
    %c0_11 = arith.constant 0 : index
    %16 = vector.load %arg7[%c0_10, %c0_11] : memref<1x128xf32, #tpu.memory_space<vmem>>, vector<1x128xf32>
    %17 = vector.broadcast %16 : vector<1x128xf32> to vector<64x128xf32>
    %18 = arith.addf %15, %17 : vector<64x128xf32>
    %cst_12 = arith.constant 0.000000e+00 : f32
    %19 = vector.broadcast %cst_12 : f32 to vector<64x128xf32>
    %20 = arith.maximumf %18, %19 : vector<64x128xf32>
    %21 = arith.truncf %20 : vector<64x128xf32> to vector<64x128xbf16>
    %c0_13 = arith.constant 0 : index
    %c0_14 = arith.constant 0 : index
    %22 = vector.load %arg8[%c0_13, %c0_14] : memref<64x128xbf16, #tpu.memory_space<vmem>>, vector<64x128xbf16>
    tpu.vector_store %arg8[%c0_13, %c0_14], %21 {strides = array<i32>} : memref<64x128xbf16, #tpu.memory_space<vmem>>, vector<64x128xbf16>,
    return
  }
  func.func @transform_0(%arg0: i32, %arg1: i32) -> (i32, i32) {
    %c0_i32 = arith.constant 0 : i32
    %c0_i32_0 = arith.constant 0 : i32
    return %arg0, %c0_i32 : i32, i32
  }
  func.func @transform_1(%arg0: i32, %arg1: i32) -> (i32, i32) {
    %c0_i32 = arith.constant 0 : i32
    %c0_i32_0 = arith.constant 0 : i32
    return %c0_i32, %arg1 : i32, i32
  }
  func.func @transform_2(%arg0: i32, %arg1: i32) -> (i32, i32) {
    %c0_i32 = arith.constant 0 : i32
    %c0_i32_0 = arith.constant 0 : i32
    %c0_i32_1 = arith.constant 0 : i32
    return %c0_i32, %c0_i32_0 : i32, i32
  }
  func.func @transform_3(%arg0: i32, %arg1: i32) -> (i32, i32) {
    %c0_i32 = arith.constant 0 : i32
    %c0_i32_0 = arith.constant 0 : i32
    %c0_i32_1 = arith.constant 0 : i32
    return %c0_i32, %c0_i32_0 : i32, i32
  }
  func.func @transform_4(%arg0: i32, %arg1: i32) -> (i32, i32) {
    %c0_i32 = arith.constant 0 : i32
    %c0_i32_0 = arith.constant 0 : i32
    return %c0_i32, %arg1 : i32, i32
  }
  func.func @transform_5(%arg0: i32, %arg1: i32) -> (i32, i32) {
    %c0_i32 = arith.constant 0 : i32
    %c0_i32_0 = arith.constant 0 : i32
    return %c0_i32, %arg1 : i32, i32
  }
  func.func @transform_6(%arg0: i32, %arg1: i32) -> (i32, i32) {
    %c0_i32 = arith.constant 0 : i32
    return %arg0, %arg1 : i32, i32
  }
}

module attributes {stable_mosaic.version = 11 : i64} {
  func.func @_maxpool_kernel(%arg0: i32, %arg1: memref<128x9x128xbf16, #tpu.memory_space<vmem>>, %arg2: memref<128x128xbf16, #tpu.memory_space<vmem>>) attributes {dimension_semantics = [#tpu.dimension_semantics<parallel>], iteration_bounds = array<i64: 1>, scalar_prefetch = 0 : i64, scratch_operands = 0 : i64, tpu.core_type = #tpu.core_type<tc>, window_params = [{transform_indices = @transform_0, window_bounds = array<i64: 128, 9, 128>}, {transform_indices = @transform_1, window_bounds = array<i64: 128, 128>}]} {
    %c0 = arith.constant 0 : index
    %c0_0 = arith.constant 0 : index
    %c0_1 = arith.constant 0 : index
    %0 = vector.load %arg1[%c0, %c0_0, %c0_1] : memref<128x9x128xbf16, #tpu.memory_space<vmem>>, vector<128x9x128xbf16>
    %cst = arith.constant dense<0xFF80> : vector<128x128xbf16>
    %1 = vector.multi_reduction <maximumf>, %0, %cst [1] : vector<128x9x128xbf16> to vector<128x128xbf16>
    %c0_2 = arith.constant 0 : index
    %c0_3 = arith.constant 0 : index
    %2 = vector.load %arg2[%c0_2, %c0_3] : memref<128x128xbf16, #tpu.memory_space<vmem>>, vector<128x128xbf16>
    tpu.vector_store %arg2[%c0_2, %c0_3], %1 {strides = array<i32>} : memref<128x128xbf16, #tpu.memory_space<vmem>>, vector<128x128xbf16>,
    return
  }
  func.func @transform_0(%arg0: i32) -> (i32, i32, i32) {
    %c0_i32 = arith.constant 0 : i32
    %c0_i32_0 = arith.constant 0 : i32
    %c0_i32_1 = arith.constant 0 : i32
    return %arg0, %c0_i32, %c0_i32_0 : i32, i32, i32
  }
  func.func @transform_1(%arg0: i32) -> (i32, i32) {
    %c0_i32 = arith.constant 0 : i32
    %c0_i32_0 = arith.constant 0 : i32
    return %arg0, %c0_i32 : i32, i32
  }
}

module attributes {stable_mosaic.version = 11 : i64} {
  func.func @_mm_kernel_1k(%arg0: i32, %arg1: i32, %arg2: memref<64x1152xbf16, #tpu.memory_space<vmem>>, %arg3: memref<1152x128xbf16, #tpu.memory_space<vmem>>, %arg4: memref<64x128xbf16, #tpu.memory_space<vmem>>) attributes {dimension_semantics = [#tpu.dimension_semantics<parallel>, #tpu.dimension_semantics<parallel>], iteration_bounds = array<i64: 2, 1>, scalar_prefetch = 0 : i64, scratch_operands = 0 : i64, tpu.core_type = #tpu.core_type<tc>, window_params = [{transform_indices = @transform_0, window_bounds = array<i64: 64, 1152>}, {transform_indices = @transform_1, window_bounds = array<i64: 1152, 128>}, {transform_indices = @transform_2, window_bounds = array<i64: 64, 128>}]} {
    %c0 = arith.constant 0 : index
    %c0_0 = arith.constant 0 : index
    %0 = vector.load %arg2[%c0, %c0_0] : memref<64x1152xbf16, #tpu.memory_space<vmem>>, vector<64x1152xbf16>
    %c0_1 = arith.constant 0 : index
    %c0_2 = arith.constant 0 : index
    %1 = vector.load %arg3[%c0_1, %c0_2] : memref<1152x128xbf16, #tpu.memory_space<vmem>>, vector<1152x128xbf16>
    %cst = arith.constant dense<0.000000e+00> : vector<64x128xf32>
    %2 = tpu.matmul %0, %1, %cst {dimension_numbers = #tpu.dot_dimension_numbers<[1], [0], [0], [1], [0, 0, 1, 1], [], []>} : vector<64x1152xbf16>, vector<1152x128xbf16>, vector<64x128xf32> -> vector<64x128xf32>
    %3 = arith.truncf %2 : vector<64x128xf32> to vector<64x128xbf16>
    %c0_3 = arith.constant 0 : index
    %c0_4 = arith.constant 0 : index
    %4 = vector.load %arg4[%c0_3, %c0_4] : memref<64x128xbf16, #tpu.memory_space<vmem>>, vector<64x128xbf16>
    tpu.vector_store %arg4[%c0_3, %c0_4], %3 {strides = array<i32>} : memref<64x128xbf16, #tpu.memory_space<vmem>>, vector<64x128xbf16>,
    return
  }
  func.func @transform_0(%arg0: i32, %arg1: i32) -> (i32, i32) {
    %c0_i32 = arith.constant 0 : i32
    %c0_i32_0 = arith.constant 0 : i32
    return %arg0, %c0_i32 : i32, i32
  }
  func.func @transform_1(%arg0: i32, %arg1: i32) -> (i32, i32) {
    %c0_i32 = arith.constant 0 : i32
    %c0_i32_0 = arith.constant 0 : i32
    return %c0_i32, %arg1 : i32, i32
  }
  func.func @transform_2(%arg0: i32, %arg1: i32) -> (i32, i32) {
    %c0_i32 = arith.constant 0 : i32
    return %arg0, %arg1 : i32, i32
  }
}

module attributes {stable_mosaic.version = 11 : i64} {
  func.func @_mm_kernel_1k(%arg0: i32, %arg1: i32, %arg2: memref<64x256xbf16, #tpu.memory_space<vmem>>, %arg3: memref<256x128xbf16, #tpu.memory_space<vmem>>, %arg4: memref<1x128xf32, #tpu.memory_space<vmem>>, %arg5: memref<1x128xf32, #tpu.memory_space<vmem>>, %arg6: memref<64x128xbf16, #tpu.memory_space<vmem>>) attributes {dimension_semantics = [#tpu.dimension_semantics<parallel>, #tpu.dimension_semantics<parallel>], iteration_bounds = array<i64: 2, 1>, scalar_prefetch = 0 : i64, scratch_operands = 0 : i64, tpu.core_type = #tpu.core_type<tc>, window_params = [{transform_indices = @transform_0, window_bounds = array<i64: 64, 256>}, {transform_indices = @transform_1, window_bounds = array<i64: 256, 128>}, {transform_indices = @transform_2, window_bounds = array<i64: 1, 128>}, {transform_indices = @transform_3, window_bounds = array<i64: 1, 128>}, {transform_indices = @transform_4, window_bounds = array<i64: 64, 128>}]} {
    %c0 = arith.constant 0 : index
    %c0_0 = arith.constant 0 : index
    %0 = vector.load %arg2[%c0, %c0_0] : memref<64x256xbf16, #tpu.memory_space<vmem>>, vector<64x256xbf16>
    %c0_1 = arith.constant 0 : index
    %c0_2 = arith.constant 0 : index
    %1 = vector.load %arg3[%c0_1, %c0_2] : memref<256x128xbf16, #tpu.memory_space<vmem>>, vector<256x128xbf16>
    %cst = arith.constant dense<0.000000e+00> : vector<64x128xf32>
    %2 = tpu.matmul %0, %1, %cst {dimension_numbers = #tpu.dot_dimension_numbers<[1], [0], [0], [1], [0, 0, 1, 1], [], []>} : vector<64x256xbf16>, vector<256x128xbf16>, vector<64x128xf32> -> vector<64x128xf32>
    %c0_3 = arith.constant 0 : index
    %c0_4 = arith.constant 0 : index
    %3 = vector.load %arg4[%c0_3, %c0_4] : memref<1x128xf32, #tpu.memory_space<vmem>>, vector<1x128xf32>
    %4 = vector.broadcast %3 : vector<1x128xf32> to vector<64x128xf32>
    %5 = arith.mulf %2, %4 : vector<64x128xf32>
    %c0_5 = arith.constant 0 : index
    %c0_6 = arith.constant 0 : index
    %6 = vector.load %arg5[%c0_5, %c0_6] : memref<1x128xf32, #tpu.memory_space<vmem>>, vector<1x128xf32>
    %7 = vector.broadcast %6 : vector<1x128xf32> to vector<64x128xf32>
    %8 = arith.addf %5, %7 : vector<64x128xf32>
    %cst_7 = arith.constant 0.000000e+00 : f32
    %9 = vector.broadcast %cst_7 : f32 to vector<64x128xf32>
    %10 = arith.maximumf %8, %9 : vector<64x128xf32>
    %11 = arith.truncf %10 : vector<64x128xf32> to vector<64x128xbf16>
    %c0_8 = arith.constant 0 : index
    %c0_9 = arith.constant 0 : index
    %12 = vector.load %arg6[%c0_8, %c0_9] : memref<64x128xbf16, #tpu.memory_space<vmem>>, vector<64x128xbf16>
    tpu.vector_store %arg6[%c0_8, %c0_9], %11 {strides = array<i32>} : memref<64x128xbf16, #tpu.memory_space<vmem>>, vector<64x128xbf16>,
    return
  }
  func.func @transform_0(%arg0: i32, %arg1: i32) -> (i32, i32) {
    %c0_i32 = arith.constant 0 : i32
    %c0_i32_0 = arith.constant 0 : i32
    return %arg0, %c0_i32 : i32, i32
  }
  func.func @transform_1(%arg0: i32, %arg1: i32) -> (i32, i32) {
    %c0_i32 = arith.constant 0 : i32
    %c0_i32_0 = arith.constant 0 : i32
    return %c0_i32, %arg1 : i32, i32
  }
  func.func @transform_2(%arg0: i32, %arg1: i32) -> (i32, i32) {
    %c0_i32 = arith.constant 0 : i32
    %c0_i32_0 = arith.constant 0 : i32
    return %c0_i32, %arg1 : i32, i32
  }
  func.func @transform_3(%arg0: i32, %arg1: i32) -> (i32, i32) {
    %c0_i32 = arith.constant 0 : i32
    %c0_i32_0 = arith.constant 0 : i32
    return %c0_i32, %arg1 : i32, i32
  }
  func.func @transform_4(%arg0: i32, %arg1: i32) -> (i32, i32) {
    %c0_i32 = arith.constant 0 : i32
    return %arg0, %arg1 : i32, i32
  }
}

module attributes {stable_mosaic.version = 11 : i64} {
  func.func @_mm_kernel_1k(%arg0: i32, %arg1: i32, %arg2: memref<32x512xbf16, #tpu.memory_space<vmem>>, %arg3: memref<512x128xbf16, #tpu.memory_space<vmem>>, %arg4: memref<1x512xf32, #tpu.memory_space<vmem>>, %arg5: memref<1x512xf32, #tpu.memory_space<vmem>>, %arg6: memref<1x128xf32, #tpu.memory_space<vmem>>, %arg7: memref<1x128xf32, #tpu.memory_space<vmem>>, %arg8: memref<32x128xbf16, #tpu.memory_space<vmem>>) attributes {dimension_semantics = [#tpu.dimension_semantics<parallel>, #tpu.dimension_semantics<parallel>], iteration_bounds = array<i64: 1, 1>, scalar_prefetch = 0 : i64, scratch_operands = 0 : i64, tpu.core_type = #tpu.core_type<tc>, window_params = [{transform_indices = @transform_0, window_bounds = array<i64: 32, 512>}, {transform_indices = @transform_1, window_bounds = array<i64: 512, 128>}, {pipeline_mode = #tpu.pipeline_mode<synchronous>, transform_indices = @transform_2, window_bounds = array<i64: 1, 512>}, {pipeline_mode = #tpu.pipeline_mode<synchronous>, transform_indices = @transform_3, window_bounds = array<i64: 1, 512>}, {transform_indices = @transform_4, window_bounds = array<i64: 1, 128>}, {transform_indices = @transform_5, window_bounds = array<i64: 1, 128>}, {transform_indices = @transform_6, window_bounds = array<i64: 32, 128>}]} {
    %c0 = arith.constant 0 : index
    %c0_0 = arith.constant 0 : index
    %0 = vector.load %arg2[%c0, %c0_0] : memref<32x512xbf16, #tpu.memory_space<vmem>>, vector<32x512xbf16>
    %1 = arith.extf %0 : vector<32x512xbf16> to vector<32x512xf32>
    %c0_1 = arith.constant 0 : index
    %c0_2 = arith.constant 0 : index
    %2 = vector.load %arg4[%c0_1, %c0_2] : memref<1x512xf32, #tpu.memory_space<vmem>>, vector<1x512xf32>
    %3 = vector.broadcast %2 : vector<1x512xf32> to vector<32x512xf32>
    %4 = arith.mulf %1, %3 : vector<32x512xf32>
    %c0_3 = arith.constant 0 : index
    %c0_4 = arith.constant 0 : index
    %5 = vector.load %arg5[%c0_3, %c0_4] : memref<1x512xf32, #tpu.memory_space<vmem>>, vector<1x512xf32>
    %6 = vector.broadcast %5 : vector<1x512xf32> to vector<32x512xf32>
    %7 = arith.addf %4, %6 : vector<32x512xf32>
    %cst = arith.constant 0.000000e+00 : f32
    %8 = vector.broadcast %cst : f32 to vector<32x512xf32>
    %9 = arith.maximumf %7, %8 : vector<32x512xf32>
    %10 = arith.truncf %9 : vector<32x512xf32> to vector<32x512xbf16>
    %c0_5 = arith.constant 0 : index
    %c0_6 = arith.constant 0 : index
    %11 = vector.load %arg3[%c0_5, %c0_6] : memref<512x128xbf16, #tpu.memory_space<vmem>>, vector<512x128xbf16>
    %cst_7 = arith.constant dense<0.000000e+00> : vector<32x128xf32>
    %12 = tpu.matmul %10, %11, %cst_7 {dimension_numbers = #tpu.dot_dimension_numbers<[1], [0], [0], [1], [0, 0, 1, 1], [], []>} : vector<32x512xbf16>, vector<512x128xbf16>, vector<32x128xf32> -> vector<32x128xf32>
    %c0_8 = arith.constant 0 : index
    %c0_9 = arith.constant 0 : index
    %13 = vector.load %arg6[%c0_8, %c0_9] : memref<1x128xf32, #tpu.memory_space<vmem>>, vector<1x128xf32>
    %14 = vector.broadcast %13 : vector<1x128xf32> to vector<32x128xf32>
    %15 = arith.mulf %12, %14 : vector<32x128xf32>
    %c0_10 = arith.constant 0 : index
    %c0_11 = arith.constant 0 : index
    %16 = vector.load %arg7[%c0_10, %c0_11] : memref<1x128xf32, #tpu.memory_space<vmem>>, vector<1x128xf32>
    %17 = vector.broadcast %16 : vector<1x128xf32> to vector<32x128xf32>
    %18 = arith.addf %15, %17 : vector<32x128xf32>
    %cst_12 = arith.constant 0.000000e+00 : f32
    %19 = vector.broadcast %cst_12 : f32 to vector<32x128xf32>
    %20 = arith.maximumf %18, %19 : vector<32x128xf32>
    %21 = arith.truncf %20 : vector<32x128xf32> to vector<32x128xbf16>
    %c0_13 = arith.constant 0 : index
    %c0_14 = arith.constant 0 : index
    %22 = vector.load %arg8[%c0_13, %c0_14] : memref<32x128xbf16, #tpu.memory_space<vmem>>, vector<32x128xbf16>
    tpu.vector_store %arg8[%c0_13, %c0_14], %21 {strides = array<i32>} : memref<32x128xbf16, #tpu.memory_space<vmem>>, vector<32x128xbf16>,
    return
  }
  func.func @transform_0(%arg0: i32, %arg1: i32) -> (i32, i32) {
    %c0_i32 = arith.constant 0 : i32
    %c0_i32_0 = arith.constant 0 : i32
    return %arg0, %c0_i32 : i32, i32
  }
  func.func @transform_1(%arg0: i32, %arg1: i32) -> (i32, i32) {
    %c0_i32 = arith.constant 0 : i32
    %c0_i32_0 = arith.constant 0 : i32
    return %c0_i32, %arg1 : i32, i32
  }
  func.func @transform_2(%arg0: i32, %arg1: i32) -> (i32, i32) {
    %c0_i32 = arith.constant 0 : i32
    %c0_i32_0 = arith.constant 0 : i32
    %c0_i32_1 = arith.constant 0 : i32
    return %c0_i32, %c0_i32_0 : i32, i32
  }
  func.func @transform_3(%arg0: i32, %arg1: i32) -> (i32, i32) {
    %c0_i32 = arith.constant 0 : i32
    %c0_i32_0 = arith.constant 0 : i32
    %c0_i32_1 = arith.constant 0 : i32
    return %c0_i32, %c0_i32_0 : i32, i32
  }
  func.func @transform_4(%arg0: i32, %arg1: i32) -> (i32, i32) {
    %c0_i32 = arith.constant 0 : i32
    %c0_i32_0 = arith.constant 0 : i32
    return %c0_i32, %arg1 : i32, i32
  }
  func.func @transform_5(%arg0: i32, %arg1: i32) -> (i32, i32) {
    %c0_i32 = arith.constant 0 : i32
    %c0_i32_0 = arith.constant 0 : i32
    return %c0_i32, %arg1 : i32, i32
  }
  func.func @transform_6(%arg0: i32, %arg1: i32) -> (i32, i32) {
    %c0_i32 = arith.constant 0 : i32
    return %arg0, %arg1 : i32, i32
  }
}

module attributes {stable_mosaic.version = 11 : i64} {
  func.func @_mm_kernel_1k(%arg0: i32, %arg1: i32, %arg2: memref<32x1152xbf16, #tpu.memory_space<vmem>>, %arg3: memref<1152x128xbf16, #tpu.memory_space<vmem>>, %arg4: memref<32x128xbf16, #tpu.memory_space<vmem>>) attributes {dimension_semantics = [#tpu.dimension_semantics<parallel>, #tpu.dimension_semantics<parallel>], iteration_bounds = array<i64: 1, 1>, scalar_prefetch = 0 : i64, scratch_operands = 0 : i64, tpu.core_type = #tpu.core_type<tc>, window_params = [{transform_indices = @transform_0, window_bounds = array<i64: 32, 1152>}, {transform_indices = @transform_1, window_bounds = array<i64: 1152, 128>}, {transform_indices = @transform_2, window_bounds = array<i64: 32, 128>}]} {
    %c0 = arith.constant 0 : index
    %c0_0 = arith.constant 0 : index
    %0 = vector.load %arg2[%c0, %c0_0] : memref<32x1152xbf16, #tpu.memory_space<vmem>>, vector<32x1152xbf16>
    %c0_1 = arith.constant 0 : index
    %c0_2 = arith.constant 0 : index
    %1 = vector.load %arg3[%c0_1, %c0_2] : memref<1152x128xbf16, #tpu.memory_space<vmem>>, vector<1152x128xbf16>
    %cst = arith.constant dense<0.000000e+00> : vector<32x128xf32>
    %2 = tpu.matmul %0, %1, %cst {dimension_numbers = #tpu.dot_dimension_numbers<[1], [0], [0], [1], [0, 0, 1, 1], [], []>} : vector<32x1152xbf16>, vector<1152x128xbf16>, vector<32x128xf32> -> vector<32x128xf32>
    %3 = arith.truncf %2 : vector<32x128xf32> to vector<32x128xbf16>
    %c0_3 = arith.constant 0 : index
    %c0_4 = arith.constant 0 : index
    %4 = vector.load %arg4[%c0_3, %c0_4] : memref<32x128xbf16, #tpu.memory_space<vmem>>, vector<32x128xbf16>
    tpu.vector_store %arg4[%c0_3, %c0_4], %3 {strides = array<i32>} : memref<32x128xbf16, #tpu.memory_space<vmem>>, vector<32x128xbf16>,
    return
  }
  func.func @transform_0(%arg0: i32, %arg1: i32) -> (i32, i32) {
    %c0_i32 = arith.constant 0 : i32
    %c0_i32_0 = arith.constant 0 : i32
    return %arg0, %c0_i32 : i32, i32
  }
  func.func @transform_1(%arg0: i32, %arg1: i32) -> (i32, i32) {
    %c0_i32 = arith.constant 0 : i32
    %c0_i32_0 = arith.constant 0 : i32
    return %c0_i32, %arg1 : i32, i32
  }
  func.func @transform_2(%arg0: i32, %arg1: i32) -> (i32, i32) {
    %c0_i32 = arith.constant 0 : i32
    return %arg0, %arg1 : i32, i32
  }
}

module attributes {stable_mosaic.version = 11 : i64} {
  func.func @_mm_kernel_1k(%arg0: i32, %arg1: i32, %arg2: memref<32x512xbf16, #tpu.memory_space<vmem>>, %arg3: memref<512x256xbf16, #tpu.memory_space<vmem>>, %arg4: memref<1x256xf32, #tpu.memory_space<vmem>>, %arg5: memref<1x256xf32, #tpu.memory_space<vmem>>, %arg6: memref<32x256xbf16, #tpu.memory_space<vmem>>) attributes {dimension_semantics = [#tpu.dimension_semantics<parallel>, #tpu.dimension_semantics<parallel>], iteration_bounds = array<i64: 1, 1>, scalar_prefetch = 0 : i64, scratch_operands = 0 : i64, tpu.core_type = #tpu.core_type<tc>, window_params = [{transform_indices = @transform_0, window_bounds = array<i64: 32, 512>}, {transform_indices = @transform_1, window_bounds = array<i64: 512, 256>}, {transform_indices = @transform_2, window_bounds = array<i64: 1, 256>}, {transform_indices = @transform_3, window_bounds = array<i64: 1, 256>}, {transform_indices = @transform_4, window_bounds = array<i64: 32, 256>}]} {
    %c0 = arith.constant 0 : index
    %c0_0 = arith.constant 0 : index
    %0 = vector.load %arg2[%c0, %c0_0] : memref<32x512xbf16, #tpu.memory_space<vmem>>, vector<32x512xbf16>
    %c0_1 = arith.constant 0 : index
    %c0_2 = arith.constant 0 : index
    %1 = vector.load %arg3[%c0_1, %c0_2] : memref<512x256xbf16, #tpu.memory_space<vmem>>, vector<512x256xbf16>
    %cst = arith.constant dense<0.000000e+00> : vector<32x256xf32>
    %2 = tpu.matmul %0, %1, %cst {dimension_numbers = #tpu.dot_dimension_numbers<[1], [0], [0], [1], [0, 0, 1, 1], [], []>} : vector<32x512xbf16>, vector<512x256xbf16>, vector<32x256xf32> -> vector<32x256xf32>
    %c0_3 = arith.constant 0 : index
    %c0_4 = arith.constant 0 : index
    %3 = vector.load %arg4[%c0_3, %c0_4] : memref<1x256xf32, #tpu.memory_space<vmem>>, vector<1x256xf32>
    %4 = vector.broadcast %3 : vector<1x256xf32> to vector<32x256xf32>
    %5 = arith.mulf %2, %4 : vector<32x256xf32>
    %c0_5 = arith.constant 0 : index
    %c0_6 = arith.constant 0 : index
    %6 = vector.load %arg5[%c0_5, %c0_6] : memref<1x256xf32, #tpu.memory_space<vmem>>, vector<1x256xf32>
    %7 = vector.broadcast %6 : vector<1x256xf32> to vector<32x256xf32>
    %8 = arith.addf %5, %7 : vector<32x256xf32>
    %cst_7 = arith.constant 0.000000e+00 : f32
    %9 = vector.broadcast %cst_7 : f32 to vector<32x256xf32>
    %10 = arith.maximumf %8, %9 : vector<32x256xf32>
    %11 = arith.truncf %10 : vector<32x256xf32> to vector<32x256xbf16>
    %c0_8 = arith.constant 0 : index
    %c0_9 = arith.constant 0 : index
    %12 = vector.load %arg6[%c0_8, %c0_9] : memref<32x256xbf16, #tpu.memory_space<vmem>>, vector<32x256xbf16>
    tpu.vector_store %arg6[%c0_8, %c0_9], %11 {strides = array<i32>} : memref<32x256xbf16, #tpu.memory_space<vmem>>, vector<32x256xbf16>,
    return
  }
  func.func @transform_0(%arg0: i32, %arg1: i32) -> (i32, i32) {
    %c0_i32 = arith.constant 0 : i32
    %c0_i32_0 = arith.constant 0 : i32
    return %arg0, %c0_i32 : i32, i32
  }
  func.func @transform_1(%arg0: i32, %arg1: i32) -> (i32, i32) {
    %c0_i32 = arith.constant 0 : i32
    %c0_i32_0 = arith.constant 0 : i32
    return %c0_i32, %arg1 : i32, i32
  }
  func.func @transform_2(%arg0: i32, %arg1: i32) -> (i32, i32) {
    %c0_i32 = arith.constant 0 : i32
    %c0_i32_0 = arith.constant 0 : i32
    return %c0_i32, %arg1 : i32, i32
  }
  func.func @transform_3(%arg0: i32, %arg1: i32) -> (i32, i32) {
    %c0_i32 = arith.constant 0 : i32
    %c0_i32_0 = arith.constant 0 : i32
    return %c0_i32, %arg1 : i32, i32
  }
  func.func @transform_4(%arg0: i32, %arg1: i32) -> (i32, i32) {
    %c0_i32 = arith.constant 0 : i32
    return %arg0, %arg1 : i32, i32
  }
}

module attributes {stable_mosaic.version = 11 : i64} {
  func.func @_mm_kernel_1k(%arg0: i32, %arg1: i32, %arg2: memref<8x384xbf16, #tpu.memory_space<vmem>>, %arg3: memref<384x128xbf16, #tpu.memory_space<vmem>>, %arg4: memref<1x384xf32, #tpu.memory_space<vmem>>, %arg5: memref<1x384xf32, #tpu.memory_space<vmem>>, %arg6: memref<1x128xf32, #tpu.memory_space<vmem>>, %arg7: memref<1x128xf32, #tpu.memory_space<vmem>>, %arg8: memref<8x128xbf16, #tpu.memory_space<vmem>>) attributes {dimension_semantics = [#tpu.dimension_semantics<parallel>, #tpu.dimension_semantics<parallel>], iteration_bounds = array<i64: 1, 1>, scalar_prefetch = 0 : i64, scratch_operands = 0 : i64, tpu.core_type = #tpu.core_type<tc>, window_params = [{transform_indices = @transform_0, window_bounds = array<i64: 8, 384>}, {transform_indices = @transform_1, window_bounds = array<i64: 384, 128>}, {pipeline_mode = #tpu.pipeline_mode<synchronous>, transform_indices = @transform_2, window_bounds = array<i64: 1, 384>}, {pipeline_mode = #tpu.pipeline_mode<synchronous>, transform_indices = @transform_3, window_bounds = array<i64: 1, 384>}, {transform_indices = @transform_4, window_bounds = array<i64: 1, 128>}, {transform_indices = @transform_5, window_bounds = array<i64: 1, 128>}, {transform_indices = @transform_6, window_bounds = array<i64: 8, 128>}]} {
    %c0 = arith.constant 0 : index
    %c0_0 = arith.constant 0 : index
    %0 = vector.load %arg2[%c0, %c0_0] : memref<8x384xbf16, #tpu.memory_space<vmem>>, vector<8x384xbf16>
    %1 = arith.extf %0 : vector<8x384xbf16> to vector<8x384xf32>
    %c0_1 = arith.constant 0 : index
    %c0_2 = arith.constant 0 : index
    %2 = vector.load %arg4[%c0_1, %c0_2] : memref<1x384xf32, #tpu.memory_space<vmem>>, vector<1x384xf32>
    %3 = vector.broadcast %2 : vector<1x384xf32> to vector<8x384xf32>
    %4 = arith.mulf %1, %3 : vector<8x384xf32>
    %c0_3 = arith.constant 0 : index
    %c0_4 = arith.constant 0 : index
    %5 = vector.load %arg5[%c0_3, %c0_4] : memref<1x384xf32, #tpu.memory_space<vmem>>, vector<1x384xf32>
    %6 = vector.broadcast %5 : vector<1x384xf32> to vector<8x384xf32>
    %7 = arith.addf %4, %6 : vector<8x384xf32>
    %cst = arith.constant 0.000000e+00 : f32
    %8 = vector.broadcast %cst : f32 to vector<8x384xf32>
    %9 = arith.maximumf %7, %8 : vector<8x384xf32>
    %10 = arith.truncf %9 : vector<8x384xf32> to vector<8x384xbf16>
    %c0_5 = arith.constant 0 : index
    %c0_6 = arith.constant 0 : index
    %11 = vector.load %arg3[%c0_5, %c0_6] : memref<384x128xbf16, #tpu.memory_space<vmem>>, vector<384x128xbf16>
    %cst_7 = arith.constant dense<0.000000e+00> : vector<8x128xf32>
    %12 = tpu.matmul %10, %11, %cst_7 {dimension_numbers = #tpu.dot_dimension_numbers<[1], [0], [0], [1], [0, 0, 1, 1], [], []>} : vector<8x384xbf16>, vector<384x128xbf16>, vector<8x128xf32> -> vector<8x128xf32>
    %c0_8 = arith.constant 0 : index
    %c0_9 = arith.constant 0 : index
    %13 = vector.load %arg6[%c0_8, %c0_9] : memref<1x128xf32, #tpu.memory_space<vmem>>, vector<1x128xf32>
    %14 = vector.broadcast %13 : vector<1x128xf32> to vector<8x128xf32>
    %15 = arith.mulf %12, %14 : vector<8x128xf32>
    %c0_10 = arith.constant 0 : index
    %c0_11 = arith.constant 0 : index
    %16 = vector.load %arg7[%c0_10, %c0_11] : memref<1x128xf32, #tpu.memory_space<vmem>>, vector<1x128xf32>
    %17 = vector.broadcast %16 : vector<1x128xf32> to vector<8x128xf32>
    %18 = arith.addf %15, %17 : vector<8x128xf32>
    %cst_12 = arith.constant 0.000000e+00 : f32
    %19 = vector.broadcast %cst_12 : f32 to vector<8x128xf32>
    %20 = arith.maximumf %18, %19 : vector<8x128xf32>
    %21 = arith.truncf %20 : vector<8x128xf32> to vector<8x128xbf16>
    %c0_13 = arith.constant 0 : index
    %c0_14 = arith.constant 0 : index
    %22 = vector.load %arg8[%c0_13, %c0_14] : memref<8x128xbf16, #tpu.memory_space<vmem>>, vector<8x128xbf16>
    tpu.vector_store %arg8[%c0_13, %c0_14], %21 {strides = array<i32>} : memref<8x128xbf16, #tpu.memory_space<vmem>>, vector<8x128xbf16>,
    return
  }
  func.func @transform_0(%arg0: i32, %arg1: i32) -> (i32, i32) {
    %c0_i32 = arith.constant 0 : i32
    %c0_i32_0 = arith.constant 0 : i32
    return %arg0, %c0_i32 : i32, i32
  }
  func.func @transform_1(%arg0: i32, %arg1: i32) -> (i32, i32) {
    %c0_i32 = arith.constant 0 : i32
    %c0_i32_0 = arith.constant 0 : i32
    return %c0_i32, %arg1 : i32, i32
  }
  func.func @transform_2(%arg0: i32, %arg1: i32) -> (i32, i32) {
    %c0_i32 = arith.constant 0 : i32
    %c0_i32_0 = arith.constant 0 : i32
    %c0_i32_1 = arith.constant 0 : i32
    return %c0_i32, %c0_i32_0 : i32, i32
  }
  func.func @transform_3(%arg0: i32, %arg1: i32) -> (i32, i32) {
    %c0_i32 = arith.constant 0 : i32
    %c0_i32_0 = arith.constant 0 : i32
    %c0_i32_1 = arith.constant 0 : i32
    return %c0_i32, %c0_i32_0 : i32, i32
  }
  func.func @transform_4(%arg0: i32, %arg1: i32) -> (i32, i32) {
    %c0_i32 = arith.constant 0 : i32
    %c0_i32_0 = arith.constant 0 : i32
    return %c0_i32, %arg1 : i32, i32
  }
  func.func @transform_5(%arg0: i32, %arg1: i32) -> (i32, i32) {
    %c0_i32 = arith.constant 0 : i32
    %c0_i32_0 = arith.constant 0 : i32
    return %c0_i32, %arg1 : i32, i32
  }
  func.func @transform_6(%arg0: i32, %arg1: i32) -> (i32, i32) {
    %c0_i32 = arith.constant 0 : i32
    return %arg0, %arg1 : i32, i32
  }
}

module attributes {stable_mosaic.version = 11 : i64} {
  func.func @_mm_kernel_1k(%arg0: i32, %arg1: i32, %arg2: memref<8x1152xbf16, #tpu.memory_space<vmem>>, %arg3: memref<1152x128xbf16, #tpu.memory_space<vmem>>, %arg4: memref<8x128xbf16, #tpu.memory_space<vmem>>) attributes {dimension_semantics = [#tpu.dimension_semantics<parallel>, #tpu.dimension_semantics<parallel>], iteration_bounds = array<i64: 1, 1>, scalar_prefetch = 0 : i64, scratch_operands = 0 : i64, tpu.core_type = #tpu.core_type<tc>, window_params = [{transform_indices = @transform_0, window_bounds = array<i64: 8, 1152>}, {transform_indices = @transform_1, window_bounds = array<i64: 1152, 128>}, {transform_indices = @transform_2, window_bounds = array<i64: 8, 128>}]} {
    %c0 = arith.constant 0 : index
    %c0_0 = arith.constant 0 : index
    %0 = vector.load %arg2[%c0, %c0_0] : memref<8x1152xbf16, #tpu.memory_space<vmem>>, vector<8x1152xbf16>
    %c0_1 = arith.constant 0 : index
    %c0_2 = arith.constant 0 : index
    %1 = vector.load %arg3[%c0_1, %c0_2] : memref<1152x128xbf16, #tpu.memory_space<vmem>>, vector<1152x128xbf16>
    %cst = arith.constant dense<0.000000e+00> : vector<8x128xf32>
    %2 = tpu.matmul %0, %1, %cst {dimension_numbers = #tpu.dot_dimension_numbers<[1], [0], [0], [1], [0, 0, 1, 1], [], []>} : vector<8x1152xbf16>, vector<1152x128xbf16>, vector<8x128xf32> -> vector<8x128xf32>
    %3 = arith.truncf %2 : vector<8x128xf32> to vector<8x128xbf16>
    %c0_3 = arith.constant 0 : index
    %c0_4 = arith.constant 0 : index
    %4 = vector.load %arg4[%c0_3, %c0_4] : memref<8x128xbf16, #tpu.memory_space<vmem>>, vector<8x128xbf16>
    tpu.vector_store %arg4[%c0_3, %c0_4], %3 {strides = array<i32>} : memref<8x128xbf16, #tpu.memory_space<vmem>>, vector<8x128xbf16>,
    return
  }
  func.func @transform_0(%arg0: i32, %arg1: i32) -> (i32, i32) {
    %c0_i32 = arith.constant 0 : i32
    %c0_i32_0 = arith.constant 0 : i32
    return %arg0, %c0_i32 : i32, i32
  }
  func.func @transform_1(%arg0: i32, %arg1: i32) -> (i32, i32) {
    %c0_i32 = arith.constant 0 : i32
    %c0_i32_0 = arith.constant 0 : i32
    return %c0_i32, %arg1 : i32, i32
  }
  func.func @transform_2(%arg0: i32, %arg1: i32) -> (i32, i32) {
    %c0_i32 = arith.constant 0 : i32
    return %arg0, %arg1 : i32, i32
  }
}

module attributes {stable_mosaic.version = 11 : i64} {
  func.func @_mm_kernel_1k(%arg0: i32, %arg1: i32, %arg2: memref<8x384xbf16, #tpu.memory_space<vmem>>, %arg3: memref<384x256xbf16, #tpu.memory_space<vmem>>, %arg4: memref<1x256xf32, #tpu.memory_space<vmem>>, %arg5: memref<1x256xf32, #tpu.memory_space<vmem>>, %arg6: memref<8x256xbf16, #tpu.memory_space<vmem>>) attributes {dimension_semantics = [#tpu.dimension_semantics<parallel>, #tpu.dimension_semantics<parallel>], iteration_bounds = array<i64: 1, 1>, scalar_prefetch = 0 : i64, scratch_operands = 0 : i64, tpu.core_type = #tpu.core_type<tc>, window_params = [{transform_indices = @transform_0, window_bounds = array<i64: 8, 384>}, {transform_indices = @transform_1, window_bounds = array<i64: 384, 256>}, {transform_indices = @transform_2, window_bounds = array<i64: 1, 256>}, {transform_indices = @transform_3, window_bounds = array<i64: 1, 256>}, {transform_indices = @transform_4, window_bounds = array<i64: 8, 256>}]} {
    %c0 = arith.constant 0 : index
    %c0_0 = arith.constant 0 : index
    %0 = vector.load %arg2[%c0, %c0_0] : memref<8x384xbf16, #tpu.memory_space<vmem>>, vector<8x384xbf16>
    %c0_1 = arith.constant 0 : index
    %c0_2 = arith.constant 0 : index
    %1 = vector.load %arg3[%c0_1, %c0_2] : memref<384x256xbf16, #tpu.memory_space<vmem>>, vector<384x256xbf16>
    %cst = arith.constant dense<0.000000e+00> : vector<8x256xf32>
    %2 = tpu.matmul %0, %1, %cst {dimension_numbers = #tpu.dot_dimension_numbers<[1], [0], [0], [1], [0, 0, 1, 1], [], []>} : vector<8x384xbf16>, vector<384x256xbf16>, vector<8x256xf32> -> vector<8x256xf32>
    %c0_3 = arith.constant 0 : index
    %c0_4 = arith.constant 0 : index
    %3 = vector.load %arg4[%c0_3, %c0_4] : memref<1x256xf32, #tpu.memory_space<vmem>>, vector<1x256xf32>
    %4 = vector.broadcast %3 : vector<1x256xf32> to vector<8x256xf32>
    %5 = arith.mulf %2, %4 : vector<8x256xf32>
    %c0_5 = arith.constant 0 : index
    %c0_6 = arith.constant 0 : index
    %6 = vector.load %arg5[%c0_5, %c0_6] : memref<1x256xf32, #tpu.memory_space<vmem>>, vector<1x256xf32>
    %7 = vector.broadcast %6 : vector<1x256xf32> to vector<8x256xf32>
    %8 = arith.addf %5, %7 : vector<8x256xf32>
    %cst_7 = arith.constant 0.000000e+00 : f32
    %9 = vector.broadcast %cst_7 : f32 to vector<8x256xf32>
    %10 = arith.maximumf %8, %9 : vector<8x256xf32>
    %11 = arith.truncf %10 : vector<8x256xf32> to vector<8x256xbf16>
    %c0_8 = arith.constant 0 : index
    %c0_9 = arith.constant 0 : index
    %12 = vector.load %arg6[%c0_8, %c0_9] : memref<8x256xbf16, #tpu.memory_space<vmem>>, vector<8x256xbf16>
    tpu.vector_store %arg6[%c0_8, %c0_9], %11 {strides = array<i32>} : memref<8x256xbf16, #tpu.memory_space<vmem>>, vector<8x256xbf16>,
    return
  }
  func.func @transform_0(%arg0: i32, %arg1: i32) -> (i32, i32) {
    %c0_i32 = arith.constant 0 : i32
    %c0_i32_0 = arith.constant 0 : i32
    return %arg0, %c0_i32 : i32, i32
  }
  func.func @transform_1(%arg0: i32, %arg1: i32) -> (i32, i32) {
    %c0_i32 = arith.constant 0 : i32
    %c0_i32_0 = arith.constant 0 : i32
    return %c0_i32, %arg1 : i32, i32
  }
  func.func @transform_2(%arg0: i32, %arg1: i32) -> (i32, i32) {
    %c0_i32 = arith.constant 0 : i32
    %c0_i32_0 = arith.constant 0 : i32
    return %c0_i32, %arg1 : i32, i32
  }
  func.func @transform_3(%arg0: i32, %arg1: i32) -> (i32, i32) {
    %c0_i32 = arith.constant 0 : i32
    %c0_i32_0 = arith.constant 0 : i32
    return %c0_i32, %arg1 : i32, i32
  }
  func.func @transform_4(%arg0: i32, %arg1: i32) -> (i32, i32) {
    %c0_i32 = arith.constant 0 : i32
    return %arg0, %arg1 : i32, i32
  }
}

module attributes {stable_mosaic.version = 11 : i64} {
  func.func @_mm_kernel_1k(%arg0: i32, %arg1: i32, %arg2: memref<8x384xbf16, #tpu.memory_space<vmem>>, %arg3: memref<384x128xbf16, #tpu.memory_space<vmem>>, %arg4: memref<1x128xf32, #tpu.memory_space<vmem>>, %arg5: memref<8x128xf32, #tpu.memory_space<vmem>>) attributes {dimension_semantics = [#tpu.dimension_semantics<parallel>, #tpu.dimension_semantics<parallel>], iteration_bounds = array<i64: 1, 1>, scalar_prefetch = 0 : i64, scratch_operands = 0 : i64, tpu.core_type = #tpu.core_type<tc>, window_params = [{transform_indices = @transform_0, window_bounds = array<i64: 8, 384>}, {transform_indices = @transform_1, window_bounds = array<i64: 384, 128>}, {transform_indices = @transform_2, window_bounds = array<i64: 1, 128>}, {transform_indices = @transform_3, window_bounds = array<i64: 8, 128>}]} {
    %c0 = arith.constant 0 : index
    %c0_0 = arith.constant 0 : index
    %0 = vector.load %arg2[%c0, %c0_0] : memref<8x384xbf16, #tpu.memory_space<vmem>>, vector<8x384xbf16>
    %c0_1 = arith.constant 0 : index
    %c0_2 = arith.constant 0 : index
    %1 = vector.load %arg3[%c0_1, %c0_2] : memref<384x128xbf16, #tpu.memory_space<vmem>>, vector<384x128xbf16>
    %cst = arith.constant dense<0.000000e+00> : vector<8x128xf32>
    %2 = tpu.matmul %0, %1, %cst {dimension_numbers = #tpu.dot_dimension_numbers<[1], [0], [0], [1], [0, 0, 1, 1], [], []>} : vector<8x384xbf16>, vector<384x128xbf16>, vector<8x128xf32> -> vector<8x128xf32>
    %c0_3 = arith.constant 0 : index
    %c0_4 = arith.constant 0 : index
    %3 = vector.load %arg4[%c0_3, %c0_4] : memref<1x128xf32, #tpu.memory_space<vmem>>, vector<1x128xf32>
    %4 = vector.broadcast %3 : vector<1x128xf32> to vector<8x128xf32>
    %5 = arith.addf %2, %4 : vector<8x128xf32>
    %c0_5 = arith.constant 0 : index
    %c0_6 = arith.constant 0 : index
    %6 = vector.load %arg5[%c0_5, %c0_6] : memref<8x128xf32, #tpu.memory_space<vmem>>, vector<8x128xf32>
    tpu.vector_store %arg5[%c0_5, %c0_6], %5 {strides = array<i32>} : memref<8x128xf32, #tpu.memory_space<vmem>>, vector<8x128xf32>,
    return
  }
  func.func @transform_0(%arg0: i32, %arg1: i32) -> (i32, i32) {
    %c0_i32 = arith.constant 0 : i32
    %c0_i32_0 = arith.constant 0 : i32
    return %arg0, %c0_i32 : i32, i32
  }
  func.func @transform_1(%arg0: i32, %arg1: i32) -> (i32, i32) {
    %c0_i32 = arith.constant 0 : i32
    %c0_i32_0 = arith.constant 0 : i32
    return %c0_i32, %arg1 : i32, i32
  }
  func.func @transform_2(%arg0: i32, %arg1: i32) -> (i32, i32) {
    %c0_i32 = arith.constant 0 : i32
    %c0_i32_0 = arith.constant 0 : i32
    return %c0_i32, %arg1 : i32, i32
  }
  func.func @transform_3(%arg0: i32, %arg1: i32) -> (i32, i32) {
    %c0_i32 = arith.constant 0 : i32
    return %arg0, %arg1 : i32, i32
  }
}

</mosaic_0001>

<bundles_post_ra>
// kernel: forward.58
= control target key start
LH: loop header
LB: loop body
LE: loop exit
PB: predicated region body
PF: predicated region fallthrough
CT: control target
= control target key end

     0   :  { %s1545_s15 = smov 0   ;;  %s1547_s16 = smov 0   ;;  %s1746_s0 = inlined_call_operand.vmem [shape: bf16[464,256], index: 0, kind: input, shape index: {}]   ;;  %s1747_s1 = inlined_call_operand.vmem [shape: bf16[256,128], index: 1, kind: input, shape index: {}]   ;;  %s1748_s2 = inlined_call_operand.vmem [shape: f32[1,128], index: 2, kind: input, shape index: {}]   ;;  %s1749_s3 = inlined_call_operand.vmem [shape: f32[1,128], index: 3, kind: input, shape index: {}]   ;;  %s1750_s4 = inlined_call_operand.vmem [shape: bf16[464,128], index: 4, kind: output, shape index: {}]  }
   0x1   :  { %s1549_s17 = smov 0  }
   0x2 LB: > { %s26_s18 = sadd.s32 1, %s1514_s16  ;;  %p1094_p0 = scmp.ge.s32.totalorder %s1518_s17, 1  ;;  %s1518_s17 = sphi %s1549_s17, %s14_s17   ;;  %s1514_s16 = sphi %s1547_s16, %s1752_s16   ;;  %s1510_s15 = sphi %s1545_s15, %s1751_s15  }
   0x3   : > { %p28_p1 = scmp.ge.s32.totalorder %s26_s18, 2  ;;  %p203_p2 = scmp.lt.s32.totalorder %s1518_s17, 3 }
   0x5   : > { %s1754_s18 = smov (%p28_p1, %s26_s18), 0  ;;  %p204_p3 = pnand %p1094_p0, %p203_p2 }
   0x6   : > { %v1436_v0 = vld [vmem:[%s1747_s1 + $0x40] sm:$0xff] (!%p204_p3)   ;;  %s243_s21 = smul.u32 (!%p204_p3), 29, %s1510_s15  ;;  %v1438_v2 = vld [vmem:[%s1747_s1 + $0x48] sm:$0xff] (!%p204_p3)   ;;  %v1440_v4 = vld [vmem:[%s1747_s1 + $0x50] sm:$0xff] (!%p204_p3)  }
   0x7   : > { %207 = sbr.rel (%p204_p3) target bundleno = 321 (0x141), region = 36  ;;  %v1437_v1 = vld [vmem:[%s1747_s1] sm:$0xff] (!%p204_p3)   ;;  %1290 = vmatprep.subr.bf16.mxu0 (!%p204_p3), %v1436_v0  ;;  %1396 = vmatprep.subr.bf16.mxu1 (!%p204_p3), %v1436_v0  ;;  %v1439_v3 = vld [vmem:[%s1747_s1 + $0x8] sm:$0xff] (!%p204_p3)   ;;  %v1441_v5 = vld [vmem:[%s1747_s1 + $0x10] sm:$0xff] (!%p204_p3)  }
   0x8   : > { %1291 = vmatpush3.bf16.msra.mxu0 (!%p204_p3), %v1437_v1  ;;  %1404 = vmatpush3.bf16.msra.mxu1 (!%p204_p3), %v1437_v1  ;;  %p244_p4 = scmp.lt.s32.totalorder (!%p204_p3), %s243_s21, 57  ;;  %v1442_v6 = vld [vmem:[%s1747_s1 + $0x58] sm:$0xff] (!%p204_p3)   ;;  %v1444_v8 = vld [vmem:[%s1747_s1 + $0x60] sm:$0xff] (!%p204_p3)   ;;  %v1446_v10 = vld [vmem:[%s1747_s1 + $0x68] sm:$0xff] (!%p204_p3)  }
   0x9   : > { %1292 = vmatprep.subr.bf16.mxu0 (!%p204_p3), %v1438_v2  ;;  %1397 = vmatprep.subr.bf16.mxu1 (!%p204_p3), %v1438_v2  ;;  %v1443_v7 = vld [vmem:[%s1747_s1 + $0x18] sm:$0xff] (!%p204_p3)   ;;  %v1445_v9 = vld [vmem:[%s1747_s1 + $0x20] sm:$0xff] (!%p204_p3)   ;;  %v1447_v13 = vld [vmem:[%s1747_s1 + $0x28] sm:$0xff] (!%p204_p3)  }
   0xa   : > { %v1448_v14 = vld [vmem:[%s1747_s1 + $0x70] sm:$0xff] (!%p204_p3)   ;;  %v1450_v16 = vld [vmem:[%s1747_s1 + $0x78] sm:$0xff] (!%p204_p3)   ;;  %v1651_v50 = vld [vmem:[%s1748_s2] ss:$0 sm:$0xff] (!%p204_p3) }
   0xb   : > { %v1449_v15 = vld [vmem:[%s1747_s1 + $0x30] sm:$0xff] (!%p204_p3)   ;;  %v1451_v17 = vld [vmem:[%s1747_s1 + $0x38] sm:$0xff] (!%p204_p3)   ;;  %v1656_v56 = vld [vmem:[%s1749_s3] ss:$0 sm:$0xff] (!%p204_p3) }
   0xc   : > { %1293 = vmatpush3.bf16.msra.mxu0 (!%p204_p3), %v1439_v3  ;;  %1405 = vmatpush3.bf16.msra.mxu1 (!%p204_p3), %v1439_v3 }
   0xd   : > { %1294 = vmatprep.subr.bf16.mxu0 (!%p204_p3), %v1440_v4  ;;  %1398 = vmatprep.subr.bf16.mxu1 (!%p204_p3), %v1440_v4 }
   0xe   : > { %s1756_s21 = smov (!%p244_p4, %s243_s21), 57 }
   0xf   : > { %s1177_s10 = sshll.u32 %s1756_s21, 3  ;;  %s1097_s12 = sshll.u32 %s1756_s21, 2 }
  0x10   : > { %1295 = vmatpush3.bf16.msra.mxu0 %v1441_v5  ;;  %1406 = vmatpush3.bf16.msra.mxu1 %v1441_v5  ;;  %s1596_s15 = scalar_lea.vmem %s1746_s0, %s1177_s10  ;;  %s1670_s21 = scalar_lea.vmem %s1750_s4, %s1097_s12 }
  0x11   : > { %1296 = vmatprep.subr.bf16.mxu0 %v1442_v6  ;;  %1399 = vmatprep.subr.bf16.mxu1 %v1442_v6  ;;  %v1454_v11 = vld [vmem:[%s1596_s15 + $0x4] ss:$8 sps:$4 sm:$0xff]   ;;  %v1452_v18 = vld [vmem:[%s1596_s15] ss:$8 sps:$4 sm:$0xff]   ;;  %v1458_v20 = vld [vmem:[%s1596_s15 + $0x14] ss:$8 sps:$4 sm:$0xff]  }
  0x12   : > { %v1457_v12 = vld [vmem:[%s1596_s15 + $0x84] ss:$8 sps:$4 sm:$0xff]   ;;  %606 = vmatprep.mubr.bf16.mxu0 %v1454_v11  ;;  %v1455_v19 = vld [vmem:[%s1596_s15 + $0x80] ss:$8 sps:$4 sm:$0xff]   ;;  %v1461_v21 = vld [vmem:[%s1596_s15 + $0x94] ss:$8 sps:$4 sm:$0xff]  }
  0x13   : > { %670 = vmatprep.mubr.bf16.mxu1 %v1457_v12  ;;  %v1460_v22 = vld [vmem:[%s1596_s15 + $0x10] ss:$8 sps:$4 sm:$0xff]   ;;  %v1463_v24 = vld [vmem:[%s1596_s15 + $0x24] ss:$8 sps:$4 sm:$0xff]   ;;  %v1466_v26 = vld [vmem:[%s1596_s15 + $0x20] ss:$8 sps:$4 sm:$0xff]  }
  0x14   : > { %1297 = vmatpush3.bf16.msra.mxu0 %v1443_v7  ;;  %1407 = vmatpush3.bf16.msra.mxu1 %v1443_v7  ;;  %v1465_v23 = vld [vmem:[%s1596_s15 + $0x90] ss:$8 sps:$4 sm:$0xff]   ;;  %v1467_v25 = vld [vmem:[%s1596_s15 + $0xa4] ss:$8 sps:$4 sm:$0xff]   ;;  %v1471_v27 = vld [vmem:[%s1596_s15 + $0xa0] ss:$8 sps:$4 sm:$0xff]  }
  0x15   : > { %1298 = vmatprep.subr.bf16.mxu0 %v1444_v8  ;;  %1400 = vmatprep.subr.bf16.mxu1 %v1444_v8  ;;  %v1469_v28 = vld [vmem:[%s1596_s15 + $0x34] ss:$8 sps:$4 sm:$0xff]   ;;  %v1472_v30 = vld [vmem:[%s1596_s15 + $0x30] ss:$8 sps:$4 sm:$0xff]   ;;  %v1475_v32 = vld [vmem:[%s1596_s15 + $0x44] ss:$8 sps:$4 sm:$0xff]  }
  0x16   : > { %v1473_v29 = vld [vmem:[%s1596_s15 + $0xb4] ss:$8 sps:$4 sm:$0xff]   ;;  %v1477_v31 = vld [vmem:[%s1596_s15 + $0xb0] ss:$8 sps:$4 sm:$0xff]   ;;  %v1479_v33 = vld [vmem:[%s1596_s15 + $0xc4] ss:$8 sps:$4 sm:$0xff]  }
  0x17   : > { %v1478_v34 = vld [vmem:[%s1596_s15 + $0x40] ss:$8 sps:$4 sm:$0xff]   ;;  %v1481_v36 = vld [vmem:[%s1596_s15 + $0x54] ss:$8 sps:$4 sm:$0xff]   ;;  %v1484_v39 = vld [vmem:[%s1596_s15 + $0x50] ss:$8 sps:$4 sm:$0xff]  }
  0x18   : > { %1299 = vmatpush3.bf16.msra.mxu0 %v1445_v9  ;;  %1408 = vmatpush3.bf16.msra.mxu1 %v1445_v9  ;;  %v1483_v35 = vld [vmem:[%s1596_s15 + $0xc0] ss:$8 sps:$4 sm:$0xff]   ;;  %v1485_v37 = vld [vmem:[%s1596_s15 + $0xd4] ss:$8 sps:$4 sm:$0xff]   ;;  %v1489_v40 = vld [vmem:[%s1596_s15 + $0xd0] ss:$8 sps:$4 sm:$0xff]  }
  0x19   : > { %1300 = vmatprep.subr.bf16.mxu0 %v1446_v10  ;;  %1401 = vmatprep.subr.bf16.mxu1 %v1446_v10  ;;  %v298_v38 = vld [vmem:[%s1596_s15 + $0xe0] sm:$0xff]  ;;  %v1492_v45 = vld [vmem:[%s1596_s15 + $0x74] ss:$8 sps:$4 sm:$0xff]   ;;  %v1495_v46 = vld [vmem:[%s1596_s15 + $0x70] ss:$8 sps:$4 sm:$0xff]  }
  0x1a   : > { %v1487_v41 = vld [vmem:[%s1596_s15 + $0x64] ss:$8 sps:$4 sm:$0xff]   ;;  %v1127_v42 = vcombine.high %v298_v38, %v298_v38  ;;  %v1490_v43 = vld [vmem:[%s1596_s15 + $0x60] ss:$8 sps:$4 sm:$0xff]   ;;  %v1126_v44 = vcombine.low %v298_v38, %v298_v38 }
  0x1c   : > { %1301 = vmatpush3.bf16.msra.mxu0 %v1447_v13  ;;  %1409 = vmatpush3.bf16.msra.mxu1 %v1447_v13 }
  0x1d   : > { %1302 = vmatprep.subr.bf16.mxu0 %v1448_v14  ;;  %1402 = vmatprep.subr.bf16.mxu1 %v1448_v14 }
  0x20   : > { %1303 = vmatpush3.bf16.msra.mxu0 %v1449_v15  ;;  %1410 = vmatpush3.bf16.msra.mxu1 %v1449_v15 }
  0x21   : > { %1304 = vmatprep.subr.bf16.mxu0 %v1450_v16  ;;  %1403 = vmatprep.subr.bf16.mxu1 %v1450_v16 }
  0x24   : > { %1305 = vmatpush3.bf16.msra.mxu0 %v1451_v17  ;;  %1411 = vmatpush3.bf16.msra.mxu1 %v1451_v17 }
  0x27   : > { %607 = vmatmul.mubr.bf16.vlgmr.msra.gmra.mrb[0].mxu0 %v1452_v18  ;;  %671 = vmatmul.mubr.bf16.vlgmr.msra.gmra.mrb[0].mxu1 %v1455_v19 }
  0x28   : > { %614 = vmatprep.mubr.bf16.mxu0 %v1458_v20  ;;  %678 = vmatprep.mubr.bf16.mxu1 %v1461_v21 }
  0x2f   : > { %615 = vmatmul.mubr.bf16.gmra.mrb[4].mxu0 %v1460_v22  ;;  %679 = vmatmul.mubr.bf16.gmra.mrb[4].mxu1 %v1465_v23 }
  0x30   : > { %622 = vmatprep.mubr.bf16.mxu0 %v1463_v24  ;;  %686 = vmatprep.mubr.bf16.mxu1 %v1467_v25 }
  0x37   : > { %623 = vmatmul.mubr.bf16.gmra.mrb[8].mxu0 %v1466_v26  ;;  %687 = vmatmul.mubr.bf16.gmra.mrb[8].mxu1 %v1471_v27 }
  0x38   : > { %630 = vmatprep.mubr.bf16.mxu0 %v1469_v28  ;;  %694 = vmatprep.mubr.bf16.mxu1 %v1473_v29 }
  0x3f   : > { %631 = vmatmul.mubr.bf16.gmra.mrb[12].mxu0 %v1472_v30  ;;  %695 = vmatmul.mubr.bf16.gmra.mrb[12].mxu1 %v1477_v31 }
  0x40   : > { %638 = vmatprep.mubr.bf16.mxu0 %v1475_v32  ;;  %702 = vmatprep.mubr.bf16.mxu1 %v1479_v33 }
  0x47   : > { %639 = vmatmul.mubr.bf16.gmra.mrb[16].mxu0 %v1478_v34  ;;  %703 = vmatmul.mubr.bf16.gmra.mrb[16].mxu1 %v1483_v35 }
  0x48   : > { %646 = vmatprep.mubr.bf16.mxu0 %v1481_v36  ;;  %710 = vmatprep.mubr.bf16.mxu1 %v1485_v37 }
  0x4f   : > { %647 = vmatmul.mubr.bf16.gmra.mrb[20].mxu0 %v1484_v39  ;;  %711 = vmatmul.mubr.bf16.gmra.mrb[20].mxu1 %v1489_v40 }
  0x50   : > { %654 = vmatprep.mubr.bf16.mxu0 %v1487_v41  ;;  %718 = vmatprep.mubr.bf16.mxu1 %v1127_v42 }
  0x57   : > { %655 = vmatmul.mubr.bf16.gmra.mrb[24].mxu0 %v1490_v43  ;;  %719 = vmatmul.mubr.bf16.gmra.mrb[24].mxu1 %v1126_v44 }
  0x58   : > { %662 = vmatprep.mubr.bf16.mxu0 %v1492_v45 }
  0x5f   : > { %663 = vmatmul.mubr.bf16.gmra.mrb[28].mxu0 %v1495_v46 }
  0xfa   : > { %v1306_v47 = vpop.f32.mrb[0].mxu0  ;;  %v1354_v48 = vpop.f32.mrb[0].mxu1 }
  0xfb   : > { %v1307_v49 = vpop.f32.mrb[1].mxu0  ;;  %v1355_v51 = vpop.f32.mrb[1].mxu1 }
  0xfc   : > { %v1308_v52 = vadd.f32 %v1307_v49, %v1306_v47  ;;  %v1309_v53 = vpop.f32.mrb[2].mxu0  ;;  %v1356_v54 = vadd.f32 %v1355_v51, %v1354_v48  ;;  %v1357_v55 = vpop.f32.mrb[2].mxu1 }
  0xfd   : > { %v1310_v57 = vpop.f32.mrb[3].mxu0  ;;  %v1358_v58 = vpop.f32.mrb[3].mxu1 }
  0xfe   : > { %v733_v59 = vmul.f32 %v1308_v52, %v1651_v50  ;;  %v1311_v60 = vadd.f32 %v1310_v57, %v1309_v53  ;;  %v749_v61 = vmul.f32 %v1356_v54, %v1651_v50  ;;  %v1359_v62 = vadd.f32 %v1358_v58, %v1357_v55 }
 0x100   : > { %v769_v63 = vadd.f32 %v1656_v56, %v733_v59  ;;  %v734_v0 = vmul.f32 %v1311_v60, %v1651_v50  ;;  %v785_v1 = vadd.f32 %v1656_v56, %v749_v61  ;;  %v750_v2 = vmul.f32 %v1359_v62, %v1651_v50 }
 0x102   : > { %v770_v3 = vadd.f32 %v1656_v56, %v734_v0  ;;  %v1312_v4 = vpop.f32.mrb[4].mxu0  ;;  %v814_v5 = vmax.f32 %v785_v1, 0.0  ;;  %v786_v6 = vadd.f32 %v1656_v56, %v750_v2  ;;  %v1360_v7 = vpop.f32.mrb[4].mxu1  ;;  %v798_v8 = vmax.f32 %v769_v63, 0.0 }
 0x103   : > { %v1313_v9 = vpop.f32.mrb[5].mxu0  ;;  %v1361_v10 = vpop.f32.mrb[5].mxu1 }
 0x104   : > { %v799_v11 = vmax.f32 %v770_v3, 0.0  ;;  %v1314_v12 = vadd.f32 %v1313_v9, %v1312_v4  ;;  %v1315_v13 = vpop.f32.mrb[6].mxu0  ;;  %v815_v14 = vmax.f32 %v786_v6, 0.0  ;;  %v1362_v15 = vadd.f32 %v1361_v10, %v1360_v7  ;;  %v1363_v16 = vpop.f32.mrb[6].mxu1 }
 0x105   : > { %v1316_v17 = vpop.f32.mrb[7].mxu0  ;;  %v1364_v18 = vpop.f32.mrb[7].mxu1 }
 0x106   : > { %v1210_v19 = vpack.c.bf16 %v799_v11, %v798_v8  ;;  %v735_v20 = vmul.f32 %v1314_v12, %v1651_v50  ;;  %v1250_v21 = vpack.c.bf16 %v815_v14, %v814_v5  ;;  %v1317_v22 = vadd.f32 %v1316_v17, %v1315_v13 }
 0x107   : > { %v751_v23 = vmul.f32 %v1362_v15, %v1651_v50  ;;  %v1365_v24 = vadd.f32 %v1364_v18, %v1363_v16 }
 0x108   : > { %1211 = vst [vmem:[%s1670_s21] sm:$0xff] %v1210_v19   ;;  %v771_v25 = vadd.f32 %v1656_v56, %v735_v20  ;;  %1284 = vst [vmem:[%s1670_s21 + $0x40] sm:$0xff] %v1250_v21   ;;  %v736_v26 = vmul.f32 %v1317_v22, %v1651_v50 }
 0x109   : > { %v787_v27 = vadd.f32 %v1656_v56, %v751_v23  ;;  %v752_v28 = vmul.f32 %v1365_v24, %v1651_v50 }
 0x10a   : > { %v772_v29 = vadd.f32 %v1656_v56, %v736_v26  ;;  %v1318_v30 = vpop.f32.mrb[8].mxu0  ;;  %v1366_v31 = vpop.f32.mrb[8].mxu1  ;;  %v800_v36 = vmax.f32 %v771_v25, 0.0 }
 0x10b   : > { %v816_v32 = vmax.f32 %v787_v27, 0.0  ;;  %v1319_v33 = vpop.f32.mrb[9].mxu0  ;;  %v788_v34 = vadd.f32 %v1656_v56, %v752_v28  ;;  %v1367_v35 = vpop.f32.mrb[9].mxu1 }
 0x10c   : > { %v801_v37 = vmax.f32 %v772_v29, 0.0  ;;  %v1320_v38 = vadd.f32 %v1319_v33, %v1318_v30  ;;  %v1321_v39 = vpop.f32.mrb[10].mxu0  ;;  %v1368_v40 = vadd.f32 %v1367_v35, %v1366_v31  ;;  %v1369_v41 = vpop.f32.mrb[10].mxu1 }
 0x10d   : > { %v817_v42 = vmax.f32 %v788_v34, 0.0  ;;  %v1322_v43 = vpop.f32.mrb[11].mxu0  ;;  %v1370_v44 = vpop.f32.mrb[11].mxu1 }
 0x10e   : > { %v1215_v45 = vpack.c.bf16 %v801_v37, %v800_v36  ;;  %v737_v46 = vmul.f32 %v1320_v38, %v1651_v50  ;;  %v1323_v47 = vadd.f32 %v1322_v43, %v1321_v39  ;;  %v753_v48 = vmul.f32 %v1368_v40, %v1651_v50 }
 0x10f   : > { %v1255_v49 = vpack.c.bf16 %v817_v42, %v816_v32  ;;  %v1371_v51 = vadd.f32 %v1370_v44, %v1369_v41 }
 0x110   : > { %1277 = vst [vmem:[%s1670_s21 + $0x8] sm:$0xff] %v1215_v45   ;;  %v773_v52 = vadd.f32 %v1656_v56, %v737_v46  ;;  %v738_v53 = vmul.f32 %v1323_v47, %v1651_v50  ;;  %v789_v54 = vadd.f32 %v1656_v56, %v753_v48 }
 0x111   : > { %1285 = vst [vmem:[%s1670_s21 + $0x48] sm:$0xff] %v1255_v49   ;;  %v754_v55 = vmul.f32 %v1371_v51, %v1651_v50 }
 0x112   : > { %v774_v57 = vadd.f32 %v1656_v56, %v738_v53  ;;  %v1324_v58 = vpop.f32.mrb[12].mxu0  ;;  %v1372_v59 = vpop.f32.mrb[12].mxu1  ;;  %v818_v60 = vmax.f32 %v789_v54, 0.0  ;;  %v802_v0 = vmax.f32 %v773_v52, 0.0 }
 0x113   : > { %v1325_v61 = vpop.f32.mrb[13].mxu0  ;;  %v790_v62 = vadd.f32 %v1656_v56, %v754_v55  ;;  %v1373_v63 = vpop.f32.mrb[13].mxu1 }
 0x114   : > { %v803_v1 = vmax.f32 %v774_v57, 0.0  ;;  %v1326_v2 = vadd.f32 %v1325_v61, %v1324_v58  ;;  %v1327_v3 = vpop.f32.mrb[14].mxu0  ;;  %v1374_v4 = vadd.f32 %v1373_v63, %v1372_v59  ;;  %v1375_v5 = vpop.f32.mrb[14].mxu1 }
 0x115   : > { %v819_v6 = vmax.f32 %v790_v62, 0.0  ;;  %v1328_v7 = vpop.f32.mrb[15].mxu0  ;;  %v1376_v8 = vpop.f32.mrb[15].mxu1 }
 0x116   : > { %v1220_v9 = vpack.c.bf16 %v803_v1, %v802_v0  ;;  %v739_v10 = vmul.f32 %v1326_v2, %v1651_v50  ;;  %v1329_v11 = vadd.f32 %v1328_v7, %v1327_v3  ;;  %v755_v12 = vmul.f32 %v1374_v4, %v1651_v50 }
 0x117   : > { %v1260_v13 = vpack.c.bf16 %v819_v6, %v818_v60  ;;  %v1377_v14 = vadd.f32 %v1376_v8, %v1375_v5 }
 0x118   : > { %1278 = vst [vmem:[%s1670_s21 + $0x10] sm:$0xff] %v1220_v9   ;;  %v775_v15 = vadd.f32 %v1656_v56, %v739_v10  ;;  %v740_v16 = vmul.f32 %v1329_v11, %v1651_v50  ;;  %v791_v17 = vadd.f32 %v1656_v56, %v755_v12 }
 0x119   : > { %1286 = vst [vmem:[%s1670_s21 + $0x50] sm:$0xff] %v1260_v13   ;;  %v756_v18 = vmul.f32 %v1377_v14, %v1651_v50 }
 0x11a   : > { %v776_v19 = vadd.f32 %v1656_v56, %v740_v16  ;;  %v1330_v20 = vpop.f32.mrb[16].mxu0  ;;  %v1378_v21 = vpop.f32.mrb[16].mxu1  ;;  %v820_v22 = vmax.f32 %v791_v17, 0.0  ;;  %v804_v26 = vmax.f32 %v775_v15, 0.0 }
 0x11b   : > { %v1331_v23 = vpop.f32.mrb[17].mxu0  ;;  %v792_v24 = vadd.f32 %v1656_v56, %v756_v18  ;;  %v1379_v25 = vpop.f32.mrb[17].mxu1 }
 0x11c   : > { %v805_v27 = vmax.f32 %v776_v19, 0.0  ;;  %v1332_v28 = vadd.f32 %v1331_v23, %v1330_v20  ;;  %v1333_v29 = vpop.f32.mrb[18].mxu0  ;;  %v1380_v30 = vadd.f32 %v1379_v25, %v1378_v21  ;;  %v1381_v31 = vpop.f32.mrb[18].mxu1 }
 0x11d   : > { %v821_v32 = vmax.f32 %v792_v24, 0.0  ;;  %v1334_v33 = vpop.f32.mrb[19].mxu0  ;;  %v1382_v34 = vpop.f32.mrb[19].mxu1 }
 0x11e   : > { %v1225_v35 = vpack.c.bf16 %v805_v27, %v804_v26  ;;  %v741_v36 = vmul.f32 %v1332_v28, %v1651_v50  ;;  %v1335_v37 = vadd.f32 %v1334_v33, %v1333_v29  ;;  %v757_v38 = vmul.f32 %v1380_v30, %v1651_v50 }
 0x11f   : > { %v1265_v39 = vpack.c.bf16 %v821_v32, %v820_v22  ;;  %v1383_v40 = vadd.f32 %v1382_v34, %v1381_v31 }
 0x120   : > { %1279 = vst [vmem:[%s1670_s21 + $0x18] sm:$0xff] %v1225_v35   ;;  %v777_v41 = vadd.f32 %v1656_v56, %v741_v36  ;;  %v742_v42 = vmul.f32 %v1335_v37, %v1651_v50  ;;  %v793_v43 = vadd.f32 %v1656_v56, %v757_v38 }
 0x121   : > { %1287 = vst [vmem:[%s1670_s21 + $0x58] sm:$0xff] %v1265_v39   ;;  %v758_v44 = vmul.f32 %v1383_v40, %v1651_v50 }
 0x122   : > { %v778_v45 = vadd.f32 %v1656_v56, %v742_v42  ;;  %v1336_v46 = vpop.f32.mrb[20].mxu0  ;;  %v1384_v47 = vpop.f32.mrb[20].mxu1  ;;  %v822_v48 = vmax.f32 %v793_v43, 0.0  ;;  %v806_v53 = vmax.f32 %v777_v41, 0.0 }
 0x123   : > { %v1337_v49 = vpop.f32.mrb[21].mxu0  ;;  %v794_v51 = vadd.f32 %v1656_v56, %v758_v44  ;;  %v1385_v52 = vpop.f32.mrb[21].mxu1 }
 0x124   : > { %v807_v54 = vmax.f32 %v778_v45, 0.0  ;;  %v1338_v55 = vadd.f32 %v1337_v49, %v1336_v46  ;;  %v1339_v57 = vpop.f32.mrb[22].mxu0  ;;  %v1386_v58 = vadd.f32 %v1385_v52, %v1384_v47  ;;  %v1387_v59 = vpop.f32.mrb[22].mxu1 }
 0x125   : > { %v823_v60 = vmax.f32 %v794_v51, 0.0  ;;  %v1340_v61 = vpop.f32.mrb[23].mxu0  ;;  %v1388_v62 = vpop.f32.mrb[23].mxu1 }
 0x126   : > { %v1230_v63 = vpack.c.bf16 %v807_v54, %v806_v53  ;;  %v743_v0 = vmul.f32 %v1338_v55, %v1651_v50  ;;  %v1341_v1 = vadd.f32 %v1340_v61, %v1339_v57  ;;  %v759_v2 = vmul.f32 %v1386_v58, %v1651_v50 }
 0x127   : > { %v1270_v3 = vpack.c.bf16 %v823_v60, %v822_v48  ;;  %v1389_v4 = vadd.f32 %v1388_v62, %v1387_v59 }
 0x128   : > { %1280 = vst [vmem:[%s1670_s21 + $0x20] sm:$0xff] %v1230_v63   ;;  %v779_v5 = vadd.f32 %v1656_v56, %v743_v0  ;;  %v744_v6 = vmul.f32 %v1341_v1, %v1651_v50  ;;  %v795_v7 = vadd.f32 %v1656_v56, %v759_v2 }
 0x129   : > { %1288 = vst [vmem:[%s1670_s21 + $0x60] sm:$0xff] %v1270_v3   ;;  %v760_v8 = vmul.f32 %v1389_v4, %v1651_v50 }
 0x12a   : > { %v780_v9 = vadd.f32 %v1656_v56, %v744_v6  ;;  %v1342_v10 = vpop.f32.mrb[24].mxu0  ;;  %v1390_v11 = vpop.f32.mrb[24].mxu1  ;;  %v824_v12 = vmax.f32 %v795_v7, 0.0  ;;  %v808_v16 = vmax.f32 %v779_v5, 0.0 }
 0x12b   : > { %v1343_v13 = vpop.f32.mrb[25].mxu0  ;;  %v796_v14 = vadd.f32 %v1656_v56, %v760_v8  ;;  %v1391_v15 = vpop.f32.mrb[25].mxu1 }
 0x12c   : > { %v809_v17 = vmax.f32 %v780_v9, 0.0  ;;  %v1344_v18 = vadd.f32 %v1343_v13, %v1342_v10  ;;  %v1345_v19 = vpop.f32.mrb[26].mxu0  ;;  %v1392_v20 = vadd.f32 %v1391_v15, %v1390_v11  ;;  %v1393_v21 = vpop.f32.mrb[26].mxu1 }
 0x12d   : > { %v825_v22 = vmax.f32 %v796_v14, 0.0  ;;  %v1346_v23 = vpop.f32.mrb[27].mxu0  ;;  %v1394_v24 = vpop.f32.mrb[27].mxu1 }
 0x12e   : > { %v1235_v25 = vpack.c.bf16 %v809_v17, %v808_v16  ;;  %v745_v26 = vmul.f32 %v1344_v18, %v1651_v50  ;;  %v1347_v27 = vadd.f32 %v1346_v23, %v1345_v19  ;;  %v761_v28 = vmul.f32 %v1392_v20, %v1651_v50 }
 0x12f   : > { %v1275_v29 = vpack.c.bf16 %v825_v22, %v824_v12 }
 0x130   : > { %1281 = vst [vmem:[%s1670_s21 + $0x28] sm:$0xff] %v1235_v25   ;;  %v781_v30 = vadd.f32 %v1656_v56, %v745_v26  ;;  %v746_v31 = vmul.f32 %v1347_v27, %v1651_v50  ;;  %v797_v32 = vadd.f32 %v1656_v56, %v761_v28 }
 0x131   : > { %1289 = vst [vmem:[%s1670_s21 + $0x68] sm:$0xff] %v1275_v29  }
 0x132   : > { %v782_v33 = vadd.f32 %v1656_v56, %v746_v31  ;;  %v1348_v34 = vpop.f32.mrb[28].mxu0  ;;  %v826_v35 = vmax.f32 %v797_v32, 0.0  ;;  %v810_v37 = vmax.f32 %v781_v30, 0.0 }
 0x133   : > { %v1349_v36 = vpop.f32.mrb[29].mxu0 }
 0x134   : > { %v811_v38 = vmax.f32 %v782_v33, 0.0  ;;  %v1206_v39 = vpack.c.bf16 %v826_v35, %v826_v35  ;;  %v1350_v40 = vadd.f32 %v1349_v36, %v1348_v34  ;;  %v1351_v41 = vpop.f32.mrb[30].mxu0 }
 0x135   : > { %v1352_v42 = vpop.f32.mrb[31].mxu0 }
 0x136   : > { %v1240_v43 = vpack.c.bf16 %v811_v38, %v810_v37  ;;  %972 = vst [vmem:[%s1670_s21 + $0x70] sm:$0xf] %v1206_v39  ;;  %v747_v44 = vmul.f32 %v1350_v40, %v1651_v50  ;;  %v1353_v45 = vadd.f32 %v1352_v42, %v1351_v41 }
 0x138   : > { %1282 = vst [vmem:[%s1670_s21 + $0x30] sm:$0xff] %v1240_v43   ;;  %v783_v46 = vadd.f32 %v1656_v56, %v747_v44  ;;  %v748_v47 = vmul.f32 %v1353_v45, %v1651_v50 }
 0x13a   : > { %v784_v48 = vadd.f32 %v1656_v56, %v748_v47  ;;  %v812_v49 = vmax.f32 %v783_v46, 0.0 }
 0x13c   : > { %v813_v51 = vmax.f32 %v784_v48, 0.0 }
 0x13e   : > { %v1245_v52 = vpack.c.bf16 %v813_v51, %v812_v49 }
 0x140   : > { %1283 = vst [vmem:[%s1670_s21 + $0x38] sm:$0xff] %v1245_v52  }
 0x141 PF: > { %s14_s17 = sadd.s32 1, %s1518_s17   ;;  %s1751_s15 = smov %s1514_s16 }
 0x142   : > { %p11_p5 = scmp.ge.s32.totalorder %s14_s17, 4   ;;  %s1752_s16 = smov %s1754_s18 }
 0x144   :  { %13 = sbr.rel (!%p11_p5) target bundleno = 2 (0x2), region = 75 }

// kernel: forward.60
= control target key start
LH: loop header
LB: loop body
LE: loop exit
PB: predicated region body
PF: predicated region fallthrough
CT: control target
= control target key end

     0   :  { %s1041_s21 = smov 0   ;;  %s1043_s22 = smov 0   ;;  %s1192_s0 = inlined_call_operand.vmem [shape: bf16[128,256], index: 0, kind: input, shape index: {}]   ;;  %s1193_s1 = inlined_call_operand.vmem [shape: bf16[256,128], index: 1, kind: input, shape index: {}]   ;;  %s1194_s2 = inlined_call_operand.vmem [shape: f32[1,256], index: 2, kind: input, shape index: {}]   ;;  %s1195_s3 = inlined_call_operand.vmem [shape: f32[1,256], index: 3, kind: input, shape index: {}]   ;;  %s1196_s4 = inlined_call_operand.vmem [shape: f32[1,128], index: 4, kind: input, shape index: {}]   ;;  %s1197_s5 = inlined_call_operand.vmem [shape: f32[1,128], index: 5, kind: input, shape index: {}]   ;;  %s1198_s6 = inlined_call_operand.vmem [shape: bf16[128,128], index: 6, kind: output, shape index: {}]  }
   0x1   :  { %s1045_s23 = smov 0  }
   0x2 LB: > { %s28_s24 = sadd.s32 1, %s1000_s22  ;;  %p820_p0 = scmp.ge.s32.totalorder %s1004_s23, 1  ;;  %s1004_s23 = sphi %s1045_s23, %s16_s23   ;;  %s1000_s22 = sphi %s1043_s22, %s1200_s22   ;;  %s996_s21 = sphi %s1041_s21, %s1199_s21  }
   0x3   : > { %p30_p1 = scmp.ge.s32.totalorder %s28_s24, 2  ;;  %p253_p2 = scmp.lt.s32.totalorder %s1004_s23, 3 }
   0x5   : > { %s1202_s24 = smov (%p30_p1, %s28_s24), 0  ;;  %p254_p3 = pnand %p820_p0, %p253_p2 }
   0x6   : > { %v966_v0 = vld [vmem:[%s1193_s1 + $0x40] sm:$0xff] (!%p254_p3)   ;;  %s821_s27 = sshll.u32 (!%p254_p3), %s996_s21, 3  ;;  %v968_v2 = vld [vmem:[%s1193_s1 + $0x48] sm:$0xff] (!%p254_p3)   ;;  %v970_v4 = vld [vmem:[%s1193_s1 + $0x50] sm:$0xff] (!%p254_p3)   ;;  %v350_v5 = vlaneseq (!%p254_p3) }
   0x7   : > { %257 = sbr.rel (%p254_p3) target bundleno = 274 (0x112), region = 44  ;;  %v967_v1 = vld [vmem:[%s1193_s1] sm:$0xff] (!%p254_p3)   ;;  %886 = vmatprep.subr.bf16.mxu0 (!%p254_p3), %v966_v0  ;;  %926 = vmatprep.subr.bf16.mxu1 (!%p254_p3), %v966_v0  ;;  %p298_p4 = scmp.lt.s32.totalorder (!%p254_p3), %s821_s27, 15  ;;  %v969_v3 = vld [vmem:[%s1193_s1 + $0x8] sm:$0xff] (!%p254_p3)   ;;  %v971_v6 = vld [vmem:[%s1193_s1 + $0x10] sm:$0xff] (!%p254_p3)  }
   0x8   : > { %887 = vmatpush3.bf16.msra.mxu0 (!%p254_p3), %v967_v1  ;;  %934 = vmatpush3.bf16.msra.mxu1 (!%p254_p3), %v967_v1  ;;  %v972_v7 = vld [vmem:[%s1193_s1 + $0x58] sm:$0xff] (!%p254_p3)   ;;  %v351_v8 = vshrl.u32 (!%p254_p3), %v350_v5, 7  ;;  %v974_v10 = vld [vmem:[%s1193_s1 + $0x60] sm:$0xff] (!%p254_p3)   ;;  %v976_v14 = vld [vmem:[%s1193_s1 + $0x68] sm:$0xff] (!%p254_p3)  }
   0x9   : > { %888 = vmatprep.subr.bf16.mxu0 (!%p254_p3), %v968_v2  ;;  %927 = vmatprep.subr.bf16.mxu1 (!%p254_p3), %v968_v2  ;;  %v973_v9 = vld [vmem:[%s1193_s1 + $0x18] sm:$0xff] (!%p254_p3)   ;;  %v975_v12 = vld [vmem:[%s1193_s1 + $0x20] sm:$0xff] (!%p254_p3)   ;;  %v977_v30 = vld [vmem:[%s1193_s1 + $0x28] sm:$0xff] (!%p254_p3)  }
   0xa   : > { %v352_v11 = vsub.s32 (!%p254_p3), 0, %v351_v8  ;;  %v356_v13 = vsub.s32 (!%p254_p3), 1, %v351_v8  ;;  %v348_v17 = vld [vmem:[%s1194_s2] sm:$0x3] (!%p254_p3)  ;;  %v978_v35 = vld [vmem:[%s1193_s1 + $0x70] sm:$0xff] (!%p254_p3)   ;;  %v980_v54 = vld [vmem:[%s1193_s1 + $0x78] sm:$0xff] (!%p254_p3)  }
   0xb   : > { %v376_v22 = vld [vmem:[%s1195_s3] sm:$0x3] (!%p254_p3)  ;;  %v979_v49 = vld [vmem:[%s1193_s1 + $0x30] sm:$0xff] (!%p254_p3)   ;;  %v981_v5 = vld [vmem:[%s1193_s1 + $0x38] sm:$0xff] (!%p254_p3)  }
   0xc   : > { %889 = vmatpush3.bf16.msra.mxu0 (!%p254_p3), %v969_v3  ;;  %935 = vmatpush3.bf16.msra.mxu1 (!%p254_p3), %v969_v3  ;;  %v1110_v25 = vrot.slane (!%p254_p3), %v348_v17, %v352_v11  ;;  %v1112_v26 = vrot.slane (!%p254_p3), %v348_v17, %v356_v13  ;;  %v1114_v27 = vrot.slane (!%p254_p3), %v376_v22, %v352_v11 }
   0xd   : > { %890 = vmatprep.subr.bf16.mxu0 (!%p254_p3), %v970_v4  ;;  %928 = vmatprep.subr.bf16.mxu1 (!%p254_p3), %v970_v4  ;;  %v1116_v28 = vrot.slane (!%p254_p3), %v376_v22, %v356_v13 }
   0xe   : > { %s1204_s27 = smov (!%p298_p4, %s821_s27), 15 }
   0xf   : > { %s854_s16 = sshll.u32 %s1204_s27, 3  ;;  %s825_s30 = sshll.u32 %s1204_s27, 2 }
  0x10   : > { %891 = vmatpush3.bf16.msra.mxu0 %v971_v6  ;;  %936 = vmatpush3.bf16.msra.mxu1 %v971_v6  ;;  %s1092_s26 = scalar_lea.vmem %s1192_s0, %s854_s16  ;;  %s321_s9 = scalar_lea.vmem %s1198_s6, %s825_s30 }
  0x11   : > { %892 = vmatprep.subr.bf16.mxu0 %v972_v7  ;;  %929 = vmatprep.subr.bf16.mxu1 %v972_v7  ;;  %v324_v15 = vld [vmem:[%s1092_s26] sm:$0xff]  ;;  %v325_v16 = vld [vmem:[%s1092_s26 + $0x8] sm:$0xff]  ;;  %v1119_v29 = vld [vmem:[%s1092_s26 + $0x10] sm:$0xff] }
  0x12   : > { %v332_v18 = vunpack.c.l.bf16 %v324_v15  ;;  %v333_v19 = vunpack.c.h.bf16 %v324_v15  ;;  %v334_v20 = vunpack.c.l.bf16 %v325_v16  ;;  %v335_v21 = vunpack.c.h.bf16 %v325_v16  ;;  %v328_v23 = vld [vmem:[%s1092_s26 + $0x20] sm:$0xff]  ;;  %v329_v24 = vld [vmem:[%s1092_s26 + $0x28] sm:$0xff]  ;;  %v327_v39 = vld [vmem:[%s1092_s26 + $0x18] sm:$0xff] }
  0x13   : > { %v340_v31 = vunpack.c.l.bf16 %v328_v23  ;;  %v341_v32 = vunpack.c.h.bf16 %v328_v23  ;;  %v342_v33 = vunpack.c.l.bf16 %v329_v24  ;;  %v343_v34 = vunpack.c.h.bf16 %v329_v24  ;;  %v330_v59 = vld [vmem:[%s1092_s26 + $0x30] sm:$0xff]  ;;  %v331_v0 = vld [vmem:[%s1092_s26 + $0x38] sm:$0xff] }
  0x14   : > { %893 = vmatpush3.bf16.msra.mxu0 %v973_v9  ;;  %937 = vmatpush3.bf16.msra.mxu1 %v973_v9  ;;  %v361_v36 = vmul.f32 %v1112_v26, %v333_v19  ;;  %v363_v37 = vmul.f32 %v1112_v26, %v335_v21  ;;  %v360_v38 = vmul.f32 %v1110_v25, %v332_v18  ;;  %v337_v40 = vunpack.c.h.bf16 %v1119_v29 }
  0x15   : > { %894 = vmatprep.subr.bf16.mxu0 %v974_v10  ;;  %930 = vmatprep.subr.bf16.mxu1 %v974_v10  ;;  %v369_v41 = vmul.f32 %v1112_v26, %v341_v32  ;;  %v371_v42 = vmul.f32 %v1112_v26, %v343_v34  ;;  %v362_v43 = vmul.f32 %v1110_v25, %v334_v20  ;;  %v339_v53 = vunpack.c.h.bf16 %v327_v39 }
  0x16   : > { %v368_v44 = vmul.f32 %v1110_v25, %v340_v31  ;;  %v389_v45 = vadd.f32 %v1116_v28, %v361_v36  ;;  %v391_v46 = vadd.f32 %v1116_v28, %v363_v37  ;;  %v388_v47 = vadd.f32 %v1114_v27, %v360_v38 }
  0x17   : > { %v370_v48 = vmul.f32 %v1110_v25, %v342_v33  ;;  %v397_v50 = vadd.f32 %v1116_v28, %v369_v41  ;;  %v399_v51 = vadd.f32 %v1116_v28, %v371_v42  ;;  %v390_v52 = vadd.f32 %v1114_v27, %v362_v43 }
  0x18   : > { %895 = vmatpush3.bf16.msra.mxu0 %v975_v12  ;;  %938 = vmatpush3.bf16.msra.mxu1 %v975_v12  ;;  %v405_v55 = vmax.f32 %v389_v45, 0.0  ;;  %v407_v56 = vmax.f32 %v391_v46, 0.0  ;;  %v404_v57 = vmax.f32 %v388_v47, 0.0  ;;  %v396_v58 = vadd.f32 %v1114_v27, %v368_v44  ;;  %v842_v46 = vld [vmem:[%s1196_s4] ss:$0 sm:$0xff] }
  0x19   : > { %896 = vmatprep.subr.bf16.mxu0 %v976_v14  ;;  %931 = vmatprep.subr.bf16.mxu1 %v976_v14  ;;  %v413_v60 = vmax.f32 %v397_v50, 0.0  ;;  %v415_v61 = vmax.f32 %v399_v51, 0.0  ;;  %v406_v62 = vmax.f32 %v390_v52, 0.0  ;;  %v398_v63 = vadd.f32 %v1114_v27, %v370_v48  ;;  %v843_v51 = vld [vmem:[%s1197_s5] ss:$0 sm:$0xff] }
  0x1a   : > { %v421_v1 = vpack.c.bf16 %v407_v56, %v405_v55  ;;  %v412_v2 = vmax.f32 %v396_v58, 0.0  ;;  %v365_v3 = vmul.f32 %v1112_v26, %v337_v40  ;;  %v367_v4 = vmul.f32 %v1112_v26, %v339_v53 }
  0x1b   : > { %v425_v6 = vpack.c.bf16 %v415_v61, %v413_v60  ;;  %v420_v7 = vpack.c.bf16 %v406_v62, %v404_v57  ;;  %v414_v8 = vmax.f32 %v398_v63, 0.0  ;;  %v345_v9 = vunpack.c.h.bf16 %v330_v59 }
  0x1c   : > { %897 = vmatpush3.bf16.msra.mxu0 %v977_v30  ;;  %939 = vmatpush3.bf16.msra.mxu1 %v977_v30  ;;  %v393_v10 = vadd.f32 %v1116_v28, %v365_v3  ;;  %v395_v11 = vadd.f32 %v1116_v28, %v367_v4  ;;  %v347_v12 = vunpack.c.h.bf16 %v331_v0  ;;  %v336_v13 = vunpack.c.l.bf16 %v1119_v29 }
  0x1d   : > { %898 = vmatprep.subr.bf16.mxu0 %v978_v35  ;;  %932 = vmatprep.subr.bf16.mxu1 %v978_v35  ;;  %v424_v14 = vpack.c.bf16 %v414_v8, %v412_v2  ;;  %v373_v15 = vmul.f32 %v1112_v26, %v345_v9  ;;  %v338_v16 = vunpack.c.l.bf16 %v327_v39  ;;  %v344_v17 = vunpack.c.l.bf16 %v330_v59 }
  0x1e   : > { %588 = vmatprep.mubr.bf16.mxu0 %v421_v1  ;;  %604 = vmatprep.mubr.bf16.mxu1 %v425_v6  ;;  %v409_v18 = vmax.f32 %v393_v10, 0.0  ;;  %v411_v19 = vmax.f32 %v395_v11, 0.0  ;;  %v375_v20 = vmul.f32 %v1112_v26, %v347_v12  ;;  %v364_v21 = vmul.f32 %v1110_v25, %v336_v13 }
  0x1f   : > { %v401_v22 = vadd.f32 %v1116_v28, %v373_v15  ;;  %v366_v23 = vmul.f32 %v1110_v25, %v338_v16  ;;  %v346_v24 = vunpack.c.l.bf16 %v331_v0  ;;  %v372_v29 = vmul.f32 %v1110_v25, %v344_v17 }
  0x20   : > { %899 = vmatpush3.bf16.msra.mxu0 %v979_v49  ;;  %940 = vmatpush3.bf16.msra.mxu1 %v979_v49  ;;  %v423_v30 = vpack.c.bf16 %v411_v19, %v409_v18  ;;  %v403_v31 = vadd.f32 %v1116_v28, %v375_v20  ;;  %v392_v32 = vadd.f32 %v1114_v27, %v364_v21 }
  0x21   : > { %900 = vmatprep.subr.bf16.mxu0 %v980_v54  ;;  %933 = vmatprep.subr.bf16.mxu1 %v980_v54  ;;  %v417_v33 = vmax.f32 %v401_v22, 0.0  ;;  %v394_v34 = vadd.f32 %v1114_v27, %v366_v23  ;;  %v374_v26 = vmul.f32 %v1110_v25, %v346_v24  ;;  %v400_v35 = vadd.f32 %v1114_v27, %v372_v29 }
  0x22   : > { %v419_v36 = vmax.f32 %v403_v31, 0.0  ;;  %v408_v37 = vmax.f32 %v392_v32, 0.0 }
  0x23   : > { %v410_v38 = vmax.f32 %v394_v34, 0.0  ;;  %v402_v39 = vadd.f32 %v1114_v27, %v374_v26  ;;  %v416_v40 = vmax.f32 %v400_v35, 0.0 }
  0x24   : > { %901 = vmatpush3.bf16.msra.mxu0 %v981_v5  ;;  %941 = vmatpush3.bf16.msra.mxu1 %v981_v5  ;;  %v427_v41 = vpack.c.bf16 %v419_v36, %v417_v33 }
  0x25   : > { %v418_v28 = vmax.f32 %v402_v39, 0.0  ;;  %v422_v42 = vpack.c.bf16 %v410_v38, %v408_v37 }
  0x27   : > { %589 = vmatmul.mubr.bf16.vlgmr.msra.gmra.mrb[0].mxu0 %v420_v7  ;;  %605 = vmatmul.mubr.bf16.vlgmr.msra.gmra.mrb[0].mxu1 %v424_v14  ;;  %v426_v43 = vpack.c.bf16 %v418_v28, %v416_v40 }
  0x28   : > { %596 = vmatprep.mubr.bf16.mxu0 %v423_v30  ;;  %612 = vmatprep.mubr.bf16.mxu1 %v427_v41 }
  0x2f   : > { %597 = vmatmul.mubr.bf16.gmra.mrb[4].mxu0 %v422_v42  ;;  %613 = vmatmul.mubr.bf16.gmra.mrb[4].mxu1 %v426_v43 }
  0xfa   : > { %v902_v44 = vpop.f32.mrb[0].mxu0  ;;  %v914_v25 = vpop.f32.mrb[0].mxu1 }
  0xfb   : > { %v903_v45 = vpop.f32.mrb[1].mxu0  ;;  %v915_v47 = vpop.f32.mrb[1].mxu1 }
  0xfc   : > { %v904_v48 = vadd.f32 %v903_v45, %v902_v44  ;;  %v916_v49 = vadd.f32 %v915_v47, %v914_v25  ;;  %v905_v27 = vpop.f32.mrb[2].mxu0  ;;  %v917_v50 = vpop.f32.mrb[2].mxu1 }
  0xfd   : > { %v906_v52 = vpop.f32.mrb[3].mxu0  ;;  %v918_v53 = vpop.f32.mrb[3].mxu1 }
  0xfe   : > { %v628_v54 = vmul.f32 %v904_v48, %v842_v46  ;;  %v632_v55 = vmul.f32 %v916_v49, %v842_v46  ;;  %v907_v56 = vadd.f32 %v906_v52, %v905_v27  ;;  %v919_v57 = vadd.f32 %v918_v53, %v917_v50 }
 0x100   : > { %v643_v58 = vadd.f32 %v843_v51, %v628_v54  ;;  %v647_v59 = vadd.f32 %v843_v51, %v632_v55  ;;  %v629_v60 = vmul.f32 %v907_v56, %v842_v46  ;;  %v633_v61 = vmul.f32 %v919_v57, %v842_v46 }
 0x102   : > { %v644_v62 = vadd.f32 %v843_v51, %v629_v60  ;;  %v648_v63 = vadd.f32 %v843_v51, %v633_v61  ;;  %v908_v0 = vpop.f32.mrb[4].mxu0  ;;  %v920_v1 = vpop.f32.mrb[4].mxu1  ;;  %v651_v2 = vmax.f32 %v643_v58, 0.0  ;;  %v655_v3 = vmax.f32 %v647_v59, 0.0 }
 0x103   : > { %v909_v4 = vpop.f32.mrb[5].mxu0  ;;  %v921_v5 = vpop.f32.mrb[5].mxu1 }
 0x104   : > { %v652_v6 = vmax.f32 %v644_v62, 0.0  ;;  %v656_v7 = vmax.f32 %v648_v63, 0.0  ;;  %v910_v8 = vadd.f32 %v909_v4, %v908_v0  ;;  %v922_v9 = vadd.f32 %v921_v5, %v920_v1  ;;  %v911_v10 = vpop.f32.mrb[6].mxu0  ;;  %v923_v11 = vpop.f32.mrb[6].mxu1 }
 0x105   : > { %v912_v12 = vpop.f32.mrb[7].mxu0  ;;  %v924_v13 = vpop.f32.mrb[7].mxu1 }
 0x106   : > { %v866_v14 = vpack.c.bf16 %v652_v6, %v651_v2  ;;  %v876_v15 = vpack.c.bf16 %v656_v7, %v655_v3  ;;  %v630_v16 = vmul.f32 %v910_v8, %v842_v46  ;;  %v634_v17 = vmul.f32 %v922_v9, %v842_v46 }
 0x107   : > { %v913_v18 = vadd.f32 %v912_v12, %v911_v10  ;;  %v925_v19 = vadd.f32 %v924_v13, %v923_v11 }
 0x108   : > { %867 = vst [vmem:[%s321_s9] sm:$0xff] %v866_v14   ;;  %884 = vst [vmem:[%s321_s9 + $0x10] sm:$0xff] %v876_v15   ;;  %v645_v20 = vadd.f32 %v843_v51, %v630_v16  ;;  %v649_v21 = vadd.f32 %v843_v51, %v634_v17 }
 0x109   : > { %v631_v22 = vmul.f32 %v913_v18, %v842_v46  ;;  %v635_v23 = vmul.f32 %v925_v19, %v842_v46 }
 0x10a   : > { %v653_v30 = vmax.f32 %v645_v20, 0.0  ;;  %v657_v31 = vmax.f32 %v649_v21, 0.0 }
 0x10b   : > { %v646_v24 = vadd.f32 %v843_v51, %v631_v22  ;;  %v650_v29 = vadd.f32 %v843_v51, %v635_v23 }
 0x10d   : > { %v654_v32 = vmax.f32 %v646_v24, 0.0  ;;  %v658_v33 = vmax.f32 %v650_v29, 0.0 }
 0x10f   : > { %v871_v34 = vpack.c.bf16 %v654_v32, %v653_v30  ;;  %v881_v26 = vpack.c.bf16 %v658_v33, %v657_v31 }
 0x111   : > { %883 = vst [vmem:[%s321_s9 + $0x8] sm:$0xff] %v871_v34   ;;  %885 = vst [vmem:[%s321_s9 + $0x18] sm:$0xff] %v881_v26  }
 0x112 PF: > { %s16_s23 = sadd.s32 1, %s1004_s23   ;;  %s1199_s21 = smov %s1000_s22 }
 0x113   : > { %p13_p5 = scmp.ge.s32.totalorder %s16_s23, 4   ;;  %s1200_s22 = smov %s1202_s24 }
 0x115   :  { %15 = sbr.rel (!%p13_p5) target bundleno = 2 (0x2), region = 83 }

// kernel: forward.59
= control target key start
LH: loop header
LB: loop body
LE: loop exit
PB: predicated region body
PF: predicated region fallthrough
CT: control target
= control target key end

     0   :  { %vm1033_vm0 = vcmask 1044480   ;;  %vm1034_vm1 = vsmask.f32 4352  ;;  %vm2956_vm3 = vcmask 1041409   ;;  %vm2958_vm4 = vcmask 1042434   ;;  %s5637_s0 = inlined_call_operand.vmem [shape: bf16[128,9,128], index: 0, kind: input, shape index: {}]   ;;  %s5638_s1 = inlined_call_operand.vmem [shape: bf16[128,128], index: 1, kind: output, shape index: {}]  }
   0x1   :  { %v3383_v0 = vld [vmem:[%s5637_s0] sm:$0x1f]   ;;  %v3384_v1 = vld [vmem:[%s5637_s0 + $0x8] sm:$0x1f]   ;;  %v3385_v2 = vld [vmem:[%s5637_s0 + $0x10] sm:$0x1f]  }
   0x2   :  { %v3386_v3 = vld [vmem:[%s5637_s0 + $0x18] sm:$0x1f]   ;;  %v3387_v4 = vld [vmem:[%s5637_s0 + $0x20] sm:$0x1f]   ;;  %v3388_v5 = vld [vmem:[%s5637_s0 + $0x28] sm:$0x1f]  }
   0x3   :  { %vm3539_vm2 = vmand %vm1033_vm0, %vm1034_vm1  ;;  %v3389_v14 = vld [vmem:[%s5637_s0 + $0x30] sm:$0x1f]   ;;  %v3390_v27 = vld [vmem:[%s5637_s0 + $0x38] sm:$0x1f]   ;;  %vm2960_vm5 = vcmask 1043459   ;;  %vm2962_vm6 = vcmask 1044484  }
   0x4   :  { %v1036_v7 = vsel %vm3539_vm2, %v3383_v0, 4286644096  ;;  %v1047_v8 = vsel %vm3539_vm2, %v3384_v1, 4286644096  ;;  %v1058_v9 = vsel %vm3539_vm2, %v3385_v2, 4286644096 }
   0x5   :  { %v1037_v10 = vunpack.i.l.bf16 %v1036_v7  ;;  %v1038_v11 = vunpack.i.h.bf16 %v1036_v7  ;;  %v1048_v12 = vunpack.i.l.bf16 %v1047_v8  ;;  %v1049_v13 = vunpack.i.h.bf16 %v1047_v8 }
   0x6   :  { %v1059_v15 = vunpack.i.l.bf16 %v1058_v9  ;;  %v1060_v16 = vunpack.i.h.bf16 %v1058_v9  ;;  %v1069_v17 = vsel %vm3539_vm2, %v3386_v3, 4286644096  ;;  %v1080_v18 = vsel %vm3539_vm2, %v3387_v4, 4286644096  ;;  %v3391_v4 = vld [vmem:[%s5637_s0 + $0x40] sm:$0x1f]  }
   0x7   :  { %v1039_v19 = vmax.f32 %v1037_v10, %v1038_v11  ;;  %v1050_v20 = vmax.f32 %v1048_v12, %v1049_v13  ;;  %v1070_v21 = vunpack.i.l.bf16 %v1069_v17  ;;  %v1071_v22 = vunpack.i.h.bf16 %v1069_v17 }
   0x8   :  { %v1061_v23 = vmax.f32 %v1059_v15, %v1060_v16  ;;  %v1081_v24 = vunpack.i.l.bf16 %v1080_v18  ;;  %v1082_v25 = vunpack.i.h.bf16 %v1080_v18  ;;  %v1091_v26 = vsel %vm3539_vm2, %v3388_v5, 4286644096  ;;  %v3392_v5 = vld [vmem:[%s5637_s0 + $0x48] sm:$0x1f]  }
   0x9   :  { %v1040_v28 = vrot.slane %v1039_v19, 4  ;;  %v1051_v29 = vrot.slane %v1050_v20, 4  ;;  %v1072_v30 = vmax.f32 %v1070_v21, %v1071_v22  ;;  %v1092_v31 = vunpack.i.l.bf16 %v1091_v26 }
   0xa   :  { %v1062_v32 = vrot.slane %v1061_v23, 4  ;;  %v1083_v33 = vmax.f32 %v1081_v24, %v1082_v25  ;;  %v1093_v34 = vunpack.i.h.bf16 %v1091_v26  ;;  %v1102_v35 = vsel %vm3539_vm2, %v3389_v14, 4286644096 }
   0xb   :  { %v1041_v36 = vmax.f32 %v1039_v19, %v1040_v28  ;;  %v1052_v37 = vmax.f32 %v1050_v20, %v1051_v29  ;;  %v1073_v38 = vrot.slane %v1072_v30, 4  ;;  %v1103_v39 = vunpack.i.l.bf16 %v1102_v35  ;;  %v3393_v19 = vld [vmem:[%s5637_s0 + $0x50] sm:$0x1f]   ;;  %v3394_v20 = vld [vmem:[%s5637_s0 + $0x58] sm:$0x1f]  }
   0xc   :  { %v1063_v40 = vmax.f32 %v1061_v23, %v1062_v32  ;;  %v1084_v41 = vrot.slane %v1083_v33, 4  ;;  %v1094_v42 = vmax.f32 %v1092_v31, %v1093_v34  ;;  %v1104_v43 = vunpack.i.h.bf16 %v1102_v35 }
   0xd   :  { %v1042_v44 = vrot.slane %v1041_v36, 2  ;;  %v1053_v45 = vrot.slane %v1052_v37, 2  ;;  %v1074_v46 = vmax.f32 %v1072_v30, %v1073_v38  ;;  %v1113_v47 = vsel %vm3539_vm2, %v3390_v27, 4286644096 }
   0xe   :  { %v1064_v48 = vrot.slane %v1063_v40, 2  ;;  %v1085_v49 = vmax.f32 %v1083_v33, %v1084_v41  ;;  %v1095_v50 = vrot.slane %v1094_v42, 4  ;;  %v1105_v51 = vmax.f32 %v1103_v39, %v1104_v43  ;;  %v3395_v33 = vld [vmem:[%s5637_s0 + $0x60] sm:$0x1f]  }
   0xf   :  { %v1043_v52 = vmax.f32 %v1041_v36, %v1042_v44  ;;  %v1054_v53 = vmax.f32 %v1052_v37, %v1053_v45  ;;  %v1075_v54 = vrot.slane %v1074_v46, 2  ;;  %v1114_v55 = vunpack.i.l.bf16 %v1113_v47 }
  0x10   :  { %v1065_v56 = vmax.f32 %v1063_v40, %v1064_v48  ;;  %v1086_v57 = vrot.slane %v1085_v49, 2  ;;  %v1096_v58 = vmax.f32 %v1094_v42, %v1095_v50  ;;  %v1106_v59 = vrot.slane %v1105_v51, 4  ;;  %v3396_v42 = vld [vmem:[%s5637_s0 + $0x68] sm:$0x1f]  }
  0x11   :  { %v1044_v60 = vrot.slane %v1043_v52, 1  ;;  %v1055_v61 = vrot.slane %v1054_v53, 1  ;;  %v1076_v62 = vmax.f32 %v1074_v46, %v1075_v54  ;;  %v1115_v63 = vunpack.i.h.bf16 %v1113_v47 }
  0x12   :  { %v1066_v0 = vrot.slane %v1065_v56, 1  ;;  %v1087_v1 = vmax.f32 %v1085_v49, %v1086_v57  ;;  %v1097_v2 = vrot.slane %v1096_v58, 2  ;;  %v1107_v3 = vmax.f32 %v1105_v51, %v1106_v59 }
  0x13   :  { %v1045_v7 = vmax.f32 %v1043_v52, %v1044_v60  ;;  %v1056_v8 = vmax.f32 %v1054_v53, %v1055_v61  ;;  %v1077_v9 = vrot.slane %v1076_v62, 1  ;;  %v1116_v10 = vmax.f32 %v1114_v55, %v1115_v63  ;;  %v3397_v55 = vld [vmem:[%s5637_s0 + $0x70] sm:$0x1f]  }
  0x14   :  { %v1067_v11 = vmax.f32 %v1065_v56, %v1066_v0  ;;  %v1088_v12 = vrot.slane %v1087_v1, 1  ;;  %v1098_v13 = vmax.f32 %v1096_v58, %v1097_v2  ;;  %v1108_v14 = vrot.slane %v1107_v3, 2 }
  0x15   :  { %v3571_v15 = vpack.i.bf16 %v1045_v7, %v1045_v7  ;;  %v3573_v16 = vpack.i.bf16 %v1056_v8, %v1056_v8  ;;  %v1078_v17 = vmax.f32 %v1076_v62, %v1077_v9  ;;  %v1117_v18 = vrot.slane %v1116_v10, 4 }
  0x16   :  { %v3581_v21 = vpack.i.bf16 %v1067_v11, %v1067_v11  ;;  %v1089_v22 = vmax.f32 %v1087_v1, %v1088_v12  ;;  %v1099_v23 = vrot.slane %v1098_v13, 1  ;;  %v1109_v24 = vmax.f32 %v1107_v3, %v1108_v14 }
  0x17   :  { %v3583_v25 = vpack.i.bf16 %v1078_v17, %v1078_v17  ;;  %v1118_v26 = vmax.f32 %v1116_v10, %v1117_v18  ;;  %v1124_v27 = vsel %vm3539_vm2, %v3391_v4, 4286644096  ;;  %v1135_v28 = vsel %vm3539_vm2, %v3392_v5, 4286644096  ;;  %v3398_v4 = vld [vmem:[%s5637_s0 + $0x78] sm:$0x1f]  }
  0x18   :  { %v3589_v29 = vpack.i.bf16 %v1089_v22, %v1089_v22  ;;  %v1100_v30 = vmax.f32 %v1098_v13, %v1099_v23  ;;  %v1110_v31 = vrot.slane %v1109_v24, 1  ;;  %v1125_v32 = vunpack.i.l.bf16 %v1124_v27 }
  0x19   :  { %v1119_v34 = vrot.slane %v1118_v26, 2  ;;  %v1126_v35 = vunpack.i.h.bf16 %v1124_v27  ;;  %v1136_v36 = vunpack.i.l.bf16 %v1135_v28  ;;  %v1137_v37 = vunpack.i.h.bf16 %v1135_v28 }
  0x1a   :  { %v3594_v38 = vpack.i.bf16 %v1100_v30, %v1100_v30  ;;  %v1111_v39 = vmax.f32 %v1109_v24, %v1110_v31  ;;  %v1146_v40 = vsel %vm3539_vm2, %v3393_v19, 4286644096  ;;  %v1157_v41 = vsel %vm3539_vm2, %v3394_v20, 4286644096 }
  0x1b   :  { %v1120_v43 = vmax.f32 %v1118_v26, %v1119_v34  ;;  %v1127_v44 = vmax.f32 %v1125_v32, %v1126_v35  ;;  %v1138_v45 = vmax.f32 %v1136_v36, %v1137_v37  ;;  %v1147_v46 = vunpack.i.l.bf16 %v1146_v40  ;;  %v3399_v35 = vld [vmem:[%s5637_s0 + $0x80] sm:$0x1f]   ;;  %v3400_v36 = vld [vmem:[%s5637_s0 + $0x88] sm:$0x1f]  }
  0x1c   :  { %v3603_v47 = vpack.i.bf16 %v1111_v39, %v1111_v39  ;;  %v1148_v48 = vunpack.i.h.bf16 %v1146_v40  ;;  %v1158_v49 = vunpack.i.l.bf16 %v1157_v41  ;;  %v1159_v50 = vunpack.i.h.bf16 %v1157_v41 }
  0x1d   :  { %v1121_v51 = vrot.slane %v1120_v43, 1  ;;  %v1128_v52 = vrot.slane %v1127_v44, 4  ;;  %v1139_v53 = vrot.slane %v1138_v45, 4  ;;  %v1168_v54 = vsel %vm3539_vm2, %v3395_v33, 4286644096 }
  0x1e   :  { %v1149_v56 = vmax.f32 %v1147_v46, %v1148_v48  ;;  %v1160_v57 = vmax.f32 %v1158_v49, %v1159_v50  ;;  %v1169_v58 = vunpack.i.l.bf16 %v1168_v54  ;;  %v1170_v59 = vunpack.i.h.bf16 %v1168_v54 }
  0x1f   :  { %v1122_v60 = vmax.f32 %v1120_v43, %v1121_v51  ;;  %v1129_v61 = vmax.f32 %v1127_v44, %v1128_v52  ;;  %v1140_v62 = vmax.f32 %v1138_v45, %v1139_v53  ;;  %v1179_v63 = vsel %vm3539_vm2, %v3396_v42, 4286644096 }
  0x20   :  { %v1150_v0 = vrot.slane %v1149_v56, 4  ;;  %v1161_v1 = vrot.slane %v1160_v57, 4  ;;  %v1171_v2 = vmax.f32 %v1169_v58, %v1170_v59  ;;  %v1180_v3 = vunpack.i.l.bf16 %v1179_v63 }
  0x21   :  { %v3615_v5 = vpack.i.bf16 %v1122_v60, %v1122_v60  ;;  %v1130_v7 = vrot.slane %v1129_v61, 2  ;;  %v1141_v8 = vrot.slane %v1140_v62, 2  ;;  %v1181_v9 = vunpack.i.h.bf16 %v1179_v63 }
  0x22   :  { %v1151_v10 = vmax.f32 %v1149_v56, %v1150_v0  ;;  %v1162_v11 = vmax.f32 %v1160_v57, %v1161_v1  ;;  %v1172_v12 = vrot.slane %v1171_v2, 4  ;;  %v1190_v13 = vsel %vm3539_vm2, %v3397_v55, 4286644096  ;;  %v3401_v55 = vld [vmem:[%s5637_s0 + $0x90] sm:$0x1f]  }
  0x23   :  { %v1131_v14 = vmax.f32 %v1129_v61, %v1130_v7  ;;  %v1142_v17 = vmax.f32 %v1140_v62, %v1141_v8  ;;  %v1182_v18 = vmax.f32 %v1180_v3, %v1181_v9  ;;  %v1191_v19 = vunpack.i.l.bf16 %v1190_v13  ;;  %v3402_v0 = vld [vmem:[%s5637_s0 + $0x98] sm:$0x1f]  }
  0x24   :  { %v1152_v20 = vrot.slane %v1151_v10, 2  ;;  %v1163_v22 = vrot.slane %v1162_v11, 2  ;;  %v1173_v23 = vmax.f32 %v1171_v2, %v1172_v12  ;;  %v1192_v24 = vunpack.i.h.bf16 %v1190_v13 }
  0x25   :  { %v1132_v26 = vrot.slane %v1131_v14, 1  ;;  %v1143_v27 = vrot.slane %v1142_v17, 1  ;;  %v1183_v28 = vrot.slane %v1182_v18, 4  ;;  %v1201_v30 = vsel %vm3539_vm2, %v3398_v4, 4286644096 }
  0x26   :  { %v1153_v31 = vmax.f32 %v1151_v10, %v1152_v20  ;;  %v1164_v32 = vmax.f32 %v1162_v11, %v1163_v22  ;;  %v1174_v33 = vrot.slane %v1173_v23, 2  ;;  %v1193_v34 = vmax.f32 %v1191_v19, %v1192_v24  ;;  %v3403_v11 = vld [vmem:[%s5637_s0 + $0xa0] sm:$0x1f]  }
  0x27   :  { %v1133_v37 = vmax.f32 %v1131_v14, %v1132_v26  ;;  %v1144_v39 = vmax.f32 %v1142_v17, %v1143_v27  ;;  %v1184_v40 = vmax.f32 %v1182_v18, %v1183_v28  ;;  %v1202_v41 = vunpack.i.l.bf16 %v1201_v30  ;;  %v3404_v28 = vld [vmem:[%s5637_s0 + $0xa8] sm:$0x1f]  }
  0x28   :  { %v1154_v42 = vrot.slane %v1153_v31, 1  ;;  %v1165_v43 = vrot.slane %v1164_v32, 1  ;;  %v1175_v44 = vmax.f32 %v1173_v23, %v1174_v33  ;;  %v1194_v45 = vrot.slane %v1193_v34, 4 }
  0x29   :  { %v3627_v46 = vpack.i.bf16 %v1133_v37, %v1133_v37  ;;  %v3629_v48 = vpack.i.bf16 %v1144_v39, %v1144_v39  ;;  %v1185_v49 = vrot.slane %v1184_v40, 2  ;;  %v1203_v50 = vunpack.i.h.bf16 %v1201_v30  ;;  %v3405_v30 = vld [vmem:[%s5637_s0 + $0xb0] sm:$0x1f]  }
  0x2a   :  { %v1155_v51 = vmax.f32 %v1153_v31, %v1154_v42  ;;  %v1166_v52 = vmax.f32 %v1164_v32, %v1165_v43  ;;  %v1176_v53 = vrot.slane %v1175_v44, 1  ;;  %v1195_v54 = vmax.f32 %v1193_v34, %v1194_v45 }
  0x2b   :  { %v1186_v56 = vmax.f32 %v1184_v40, %v1185_v49  ;;  %v1204_v57 = vmax.f32 %v1202_v41, %v1203_v50  ;;  %v1212_v58 = vsel %vm3539_vm2, %v3399_v35, 4286644096  ;;  %v1223_v59 = vsel %vm3539_vm2, %v3400_v36, 4286644096 }
  0x2c   :  { %v3638_v60 = vpack.i.bf16 %v1155_v51, %v1155_v51  ;;  %v3640_v61 = vpack.i.bf16 %v1166_v52, %v1166_v52  ;;  %v1177_v62 = vmax.f32 %v1175_v44, %v1176_v53  ;;  %v1196_v63 = vrot.slane %v1195_v54, 2 }
  0x2d   :  { %v1187_v1 = vrot.slane %v1186_v56, 1  ;;  %v1205_v2 = vrot.slane %v1204_v57, 4  ;;  %v1213_v3 = vunpack.i.l.bf16 %v1212_v58  ;;  %v1214_v4 = vunpack.i.h.bf16 %v1212_v58 }
  0x2e   :  { %v3645_v7 = vpack.i.bf16 %v1177_v62, %v1177_v62  ;;  %v1197_v8 = vmax.f32 %v1195_v54, %v1196_v63  ;;  %v1224_v9 = vunpack.i.l.bf16 %v1223_v59  ;;  %v1225_v10 = vunpack.i.h.bf16 %v1223_v59  ;;  %v3406_v59 = vld [vmem:[%s5637_s0 + $0xb8] sm:$0x1f]  }
  0x2f   :  { %v1188_v12 = vmax.f32 %v1186_v56, %v1187_v1  ;;  %v1206_v13 = vmax.f32 %v1204_v57, %v1205_v2  ;;  %v1215_v14 = vmax.f32 %v1213_v3, %v1214_v4  ;;  %v1234_v17 = vsel %vm3539_vm2, %v3401_v55, 4286644096 }
  0x30   :  { %v1198_v18 = vrot.slane %v1197_v8, 1  ;;  %v1226_v19 = vmax.f32 %v1224_v9, %v1225_v10  ;;  %v1235_v20 = vunpack.i.l.bf16 %v1234_v17  ;;  %v1236_v22 = vunpack.i.h.bf16 %v1234_v17 }
  0x31   :  { %v3652_v23 = vpack.i.bf16 %v1188_v12, %v1188_v12  ;;  %v1207_v24 = vrot.slane %v1206_v13, 2  ;;  %v1216_v26 = vrot.slane %v1215_v14, 4  ;;  %v1245_v27 = vsel %vm3539_vm2, %v3402_v0, 4286644096 }
  0x32   :  { %v1199_v31 = vmax.f32 %v1197_v8, %v1198_v18  ;;  %v1227_v32 = vrot.slane %v1226_v19, 4  ;;  %v1237_v33 = vmax.f32 %v1235_v20, %v1236_v22  ;;  %v1246_v34 = vunpack.i.l.bf16 %v1245_v27  ;;  %v3408_v20 = vld [vmem:[%s5637_s0 + $0xc8] sm:$0x1f]  }
  0x33   :  { %v1208_v35 = vmax.f32 %v1206_v13, %v1207_v24  ;;  %v1217_v36 = vmax.f32 %v1215_v14, %v1216_v26  ;;  %v1247_v37 = vunpack.i.h.bf16 %v1245_v27  ;;  %v1256_v39 = vsel %vm3539_vm2, %v3403_v11, 4286644096  ;;  %v3407_v13 = vld [vmem:[%s5637_s0 + $0xc0] sm:$0x1f]  }
  0x34   :  { %v3664_v40 = vpack.i.bf16 %v1199_v31, %v1199_v31  ;;  %v1228_v41 = vmax.f32 %v1226_v19, %v1227_v32  ;;  %v1238_v42 = vrot.slane %v1237_v33, 4  ;;  %v1257_v43 = vunpack.i.l.bf16 %v1256_v39 }
  0x35   :  { %v1209_v44 = vrot.slane %v1208_v35, 1  ;;  %v1218_v45 = vrot.slane %v1217_v36, 2  ;;  %v1248_v49 = vmax.f32 %v1246_v34, %v1247_v37  ;;  %v1258_v50 = vunpack.i.h.bf16 %v1256_v39  ;;  %v3409_v37 = vld [vmem:[%s5637_s0 + $0xd0] sm:$0x1f]  }
  0x36   :  { %v1229_v51 = vrot.slane %v1228_v41, 2  ;;  %v1239_v52 = vmax.f32 %v1237_v33, %v1238_v42  ;;  %v1267_v53 = vsel %vm3539_vm2, %v3404_v28, 4286644096  ;;  %v1278_v54 = vsel %vm3539_vm2, %v3405_v30, 4286644096 }
  0x37   :  { %v1210_v55 = vmax.f32 %v1208_v35, %v1209_v44  ;;  %v1219_v56 = vmax.f32 %v1217_v36, %v1218_v45  ;;  %v1249_v57 = vrot.slane %v1248_v49, 4  ;;  %v1259_v58 = vmax.f32 %v1257_v43, %v1258_v50 }
  0x38   :  { %v1230_v62 = vmax.f32 %v1228_v41, %v1229_v51  ;;  %v1240_v63 = vrot.slane %v1239_v52, 2  ;;  %v1268_v0 = vunpack.i.l.bf16 %v1267_v53  ;;  %v1269_v1 = vunpack.i.h.bf16 %v1267_v53 }
  0x39   :  { %v3673_v2 = vpack.i.bf16 %v1210_v55, %v1210_v55  ;;  %v1220_v3 = vrot.slane %v1219_v56, 1  ;;  %v1250_v4 = vmax.f32 %v1248_v49, %v1249_v57  ;;  %v1260_v8 = vrot.slane %v1259_v58, 4 }
  0x3a   :  { %v1231_v9 = vrot.slane %v1230_v62, 1  ;;  %v1241_v10 = vmax.f32 %v1239_v52, %v1240_v63  ;;  %v1270_v11 = vmax.f32 %v1268_v0, %v1269_v1  ;;  %v1279_v12 = vunpack.i.l.bf16 %v1278_v54 }
  0x3b   :  { %v1221_v14 = vmax.f32 %v1219_v56, %v1220_v3  ;;  %v1251_v17 = vrot.slane %v1250_v4, 2  ;;  %v1261_v18 = vmax.f32 %v1259_v58, %v1260_v8  ;;  %v1280_v19 = vunpack.i.h.bf16 %v1278_v54 }
  0x3c   :  { %v1232_v22 = vmax.f32 %v1230_v62, %v1231_v9  ;;  %v1242_v24 = vrot.slane %v1241_v10, 1  ;;  %v1271_v26 = vrot.slane %v1270_v11, 4  ;;  %v1289_v27 = vsel %vm3539_vm2, %v3406_v59, 4286644096  ;;  %v3410_v59 = vld [vmem:[%s5637_s0 + $0xd8] sm:$0x1f]  }
  0x3d   :  { %v3683_v28 = vpack.i.bf16 %v1221_v14, %v1221_v14  ;;  %v1252_v30 = vmax.f32 %v1250_v4, %v1251_v17  ;;  %v1262_v31 = vrot.slane %v1261_v18, 2  ;;  %v1281_v32 = vmax.f32 %v1279_v12, %v1280_v19  ;;  %v3411_v62 = vld [vmem:[%s5637_s0 + $0xe0] sm:$0x1f]  }
  0x3e   :  { %v3685_v33 = vpack.i.bf16 %v1232_v22, %v1232_v22  ;;  %v1243_v34 = vmax.f32 %v1241_v10, %v1242_v24  ;;  %v1272_v35 = vmax.f32 %v1270_v11, %v1271_v26  ;;  %v1290_v36 = vunpack.i.l.bf16 %v1289_v27 }
  0x3f   :  { %v1253_v39 = vrot.slane %v1252_v30, 1  ;;  %v1263_v41 = vmax.f32 %v1261_v18, %v1262_v31  ;;  %v1282_v42 = vrot.slane %v1281_v32, 4  ;;  %v1291_v43 = vunpack.i.h.bf16 %v1289_v27 }
  0x40   :  { %v3690_v44 = vpack.i.bf16 %v1243_v34, %v1243_v34  ;;  %v1273_v45 = vrot.slane %v1272_v35, 2  ;;  %v1300_v49 = vsel %vm3539_vm2, %v3407_v13, 4286644096  ;;  %v1311_v50 = vsel %vm3539_vm2, %v3408_v20, 4286644096 }
  0x41   :  { %v1254_v51 = vmax.f32 %v1252_v30, %v1253_v39  ;;  %v1264_v52 = vrot.slane %v1263_v41, 1  ;;  %v1283_v53 = vmax.f32 %v1281_v32, %v1282_v42  ;;  %v1292_v54 = vmax.f32 %v1290_v36, %v1291_v43  ;;  %v3412_v30 = vld [vmem:[%s5637_s0 + $0xe8] sm:$0x1f]  }
  0x42   :  { %v1274_v55 = vmax.f32 %v1272_v35, %v1273_v45  ;;  %v1301_v56 = vunpack.i.l.bf16 %v1300_v49  ;;  %v1302_v57 = vunpack.i.h.bf16 %v1300_v49  ;;  %v1312_v58 = vunpack.i.l.bf16 %v1311_v50 }
  0x43   :  { %v3702_v63 = vpack.i.bf16 %v1254_v51, %v1254_v51  ;;  %v1265_v0 = vmax.f32 %v1263_v41, %v1264_v52  ;;  %v1284_v1 = vrot.slane %v1283_v53, 2  ;;  %v1293_v3 = vrot.slane %v1292_v54, 4 }
  0x44   :  { %v1275_v4 = vrot.slane %v1274_v55, 1  ;;  %v1303_v8 = vmax.f32 %v1301_v56, %v1302_v57  ;;  %v1313_v9 = vunpack.i.h.bf16 %v1311_v50  ;;  %v1322_v10 = vsel %vm3539_vm2, %v3409_v37, 4286644096  ;;  %v3413_v50 = vld [vmem:[%s5637_s0 + $0xf0] sm:$0x1f]  }
  0x45   :  { %v3706_v11 = vpack.i.bf16 %v1265_v0, %v1265_v0  ;;  %v1285_v12 = vmax.f32 %v1283_v53, %v1284_v1  ;;  %v1294_v13 = vmax.f32 %v1292_v54, %v1293_v3  ;;  %v1323_v14 = vunpack.i.l.bf16 %v1322_v10 }
  0x46   :  { %v1276_v17 = vmax.f32 %v1274_v55, %v1275_v4  ;;  %v1304_v18 = vrot.slane %v1303_v8, 4  ;;  %v1314_v19 = vmax.f32 %v1312_v58, %v1313_v9  ;;  %v1324_v20 = vunpack.i.h.bf16 %v1322_v10  ;;  %v3414_v10 = vld [vmem:[%s5637_s0 + $0xf8] sm:$0x1f]  }
  0x47   :  { %v1286_v22 = vrot.slane %v1285_v12, 1  ;;  %v1295_v24 = vrot.slane %v1294_v13, 2  ;;  %v1333_v26 = vsel %vm3539_vm2, %v3410_v59, 4286644096  ;;  %v1344_v27 = vsel %vm3539_vm2, %v3411_v62, 4286644096 }
  0x48   :  { %v3715_v31 = vpack.i.bf16 %v1276_v17, %v1276_v17  ;;  %v1305_v32 = vmax.f32 %v1303_v8, %v1304_v18  ;;  %v1315_v34 = vrot.slane %v1314_v19, 4  ;;  %v1325_v35 = vmax.f32 %v1323_v14, %v1324_v20 }
  0x49   :  { %v1287_v36 = vmax.f32 %v1285_v12, %v1286_v22  ;;  %v1296_v37 = vmax.f32 %v1294_v13, %v1295_v24  ;;  %v1334_v39 = vunpack.i.l.bf16 %v1333_v26  ;;  %v1335_v41 = vunpack.i.h.bf16 %v1333_v26 }
  0x4a   :  { %v1306_v42 = vrot.slane %v1305_v32, 2  ;;  %v1316_v43 = vmax.f32 %v1314_v19, %v1315_v34  ;;  %v1326_v45 = vrot.slane %v1325_v35, 4  ;;  %v1345_v49 = vunpack.i.l.bf16 %v1344_v27  ;;  %v3416_v34 = vld [vmem:[%s5637_s0 + $0x108] sm:$0x1f]  }
  0x4b   :  { %v3720_v51 = vpack.i.bf16 %v1287_v36, %v1287_v36  ;;  %v1297_v52 = vrot.slane %v1296_v37, 1  ;;  %v1336_v53 = vmax.f32 %v1334_v39, %v1335_v41  ;;  %v1346_v54 = vunpack.i.h.bf16 %v1344_v27 }
  0x4c   :  { %v1307_v55 = vmax.f32 %v1305_v32, %v1306_v42  ;;  %v1317_v56 = vrot.slane %v1316_v43, 2  ;;  %v1327_v57 = vmax.f32 %v1325_v35, %v1326_v45  ;;  %v1355_v58 = vsel %vm3539_vm2, %v3412_v30, 4286644096  ;;  %v3415_v32 = vld [vmem:[%s5637_s0 + $0x100] sm:$0x1f]  }
  0x4d   :  { %v1298_v59 = vmax.f32 %v1296_v37, %v1297_v52  ;;  %v1337_v62 = vrot.slane %v1336_v53, 4  ;;  %v1347_v0 = vmax.f32 %v1345_v49, %v1346_v54  ;;  %v1356_v1 = vunpack.i.l.bf16 %v1355_v58  ;;  %v3417_v54 = vld [vmem:[%s5637_s0 + $0x110] sm:$0x1f]  }
  0x4e   :  { %v1308_v3 = vrot.slane %v1307_v55, 1  ;;  %v1318_v4 = vmax.f32 %v1316_v43, %v1317_v56  ;;  %v1328_v8 = vrot.slane %v1327_v57, 2  ;;  %v1357_v9 = vunpack.i.h.bf16 %v1355_v58 }
  0x4f   :  { %v3727_v12 = vpack.i.bf16 %v1298_v59, %v1298_v59  ;;  %v1338_v13 = vmax.f32 %v1336_v53, %v1337_v62  ;;  %v1348_v14 = vrot.slane %v1347_v0, 4  ;;  %v1366_v17 = vsel %vm3539_vm2, %v3413_v50, 4286644096 }
  0x50   :  { %v1309_v18 = vmax.f32 %v1307_v55, %v1308_v3  ;;  %v1319_v19 = vrot.slane %v1318_v4, 1  ;;  %v1329_v20 = vmax.f32 %v1327_v57, %v1328_v8  ;;  %v1358_v22 = vmax.f32 %v1356_v1, %v1357_v9 }
  0x51   :  { %v1339_v24 = vrot.slane %v1338_v13, 2  ;;  %v1349_v26 = vmax.f32 %v1347_v0, %v1348_v14  ;;  %v1367_v27 = vunpack.i.l.bf16 %v1366_v17  ;;  %v1368_v30 = vunpack.i.h.bf16 %v1366_v17 }
  0x52   :  { %v3737_v35 = vpack.i.bf16 %v1309_v18, %v1309_v18  ;;  %v1320_v36 = vmax.f32 %v1318_v4, %v1319_v19  ;;  %v1330_v37 = vrot.slane %v1329_v20, 1  ;;  %v1359_v39 = vrot.slane %v1358_v22, 4  ;;  %v3418_v18 = vld [vmem:[%s5637_s0 + $0x118] sm:$0x1f]   ;;  %v3419_v19 = vld [vmem:[%s5637_s0 + $0x120] sm:$0x1f]  }
  0x53   :  { %v1340_v41 = vmax.f32 %v1338_v13, %v1339_v24  ;;  %v1350_v42 = vrot.slane %v1349_v26, 2  ;;  %v1369_v43 = vmax.f32 %v1367_v27, %v1368_v30  ;;  %v1377_v45 = vsel %vm3539_vm2, %v3414_v10, 4286644096 }
  0x54   :  { %v3741_v49 = vpack.i.bf16 %v1320_v36, %v1320_v36  ;;  %v1331_v50 = vmax.f32 %v1329_v20, %v1330_v37  ;;  %v1360_v52 = vmax.f32 %v1358_v22, %v1359_v39  ;;  %v1378_v53 = vunpack.i.l.bf16 %v1377_v45 }
  0x55   :  { %v1341_v55 = vrot.slane %v1340_v41, 1  ;;  %v1351_v56 = vmax.f32 %v1349_v26, %v1350_v42  ;;  %v1370_v57 = vrot.slane %v1369_v43, 4  ;;  %v1379_v58 = vunpack.i.h.bf16 %v1377_v45 }
  0x56   :  { %v3746_v59 = vpack.i.bf16 %v1331_v50, %v1331_v50  ;;  %v1361_v62 = vrot.slane %v1360_v52, 2  ;;  %v1388_v0 = vsel %vm3539_vm2, %v3415_v32, 4286644096  ;;  %v1399_v1 = vsel %vm3539_vm2, %v3416_v34, 4286644096 }
  0x57   :  { %v1342_v3 = vmax.f32 %v1340_v41, %v1341_v55  ;;  %v1352_v4 = vrot.slane %v1351_v56, 1  ;;  %v1371_v8 = vmax.f32 %v1369_v43, %v1370_v57  ;;  %v1380_v9 = vmax.f32 %v1378_v53, %v1379_v58 }
  0x58   :  { %v1362_v10 = vmax.f32 %v1360_v52, %v1361_v62  ;;  %v1389_v13 = vunpack.i.l.bf16 %v1388_v0  ;;  %v1390_v14 = vunpack.i.h.bf16 %v1388_v0  ;;  %v1400_v17 = vunpack.i.l.bf16 %v1399_v1 }
  0x59   :  { %v3758_v20 = vpack.i.bf16 %v1342_v3, %v1342_v3  ;;  %v1353_v22 = vmax.f32 %v1351_v56, %v1352_v4  ;;  %v1372_v24 = vrot.slane %v1371_v8, 2  ;;  %v1381_v26 = vrot.slane %v1380_v9, 4 }
  0x5a   :  { %v1363_v27 = vrot.slane %v1362_v10, 1  ;;  %v1391_v30 = vmax.f32 %v1389_v13, %v1390_v14  ;;  %v1401_v32 = vunpack.i.h.bf16 %v1399_v1  ;;  %v1410_v34 = vsel %vm3539_vm2, %v3417_v54, 4286644096  ;;  %v3420_v54 = vld [vmem:[%s5637_s0 + $0x128] sm:$0x1f]  }
  0x5b   :  { %v3762_v36 = vpack.i.bf16 %v1353_v22, %v1353_v22  ;;  %v1373_v37 = vmax.f32 %v1371_v8, %v1372_v24  ;;  %v1382_v39 = vmax.f32 %v1380_v9, %v1381_v26  ;;  %v1411_v41 = vunpack.i.l.bf16 %v1410_v34 }
  0x5c   :  { %v1364_v42 = vmax.f32 %v1362_v10, %v1363_v27  ;;  %v1392_v43 = vrot.slane %v1391_v30, 4  ;;  %v1402_v45 = vmax.f32 %v1400_v17, %v1401_v32  ;;  %v1412_v50 = vunpack.i.h.bf16 %v1410_v34  ;;  %v3421_v17 = vld [vmem:[%s5637_s0 + $0x130] sm:$0x1f]  }
  0x5d   :  { %v1374_v52 = vrot.slane %v1373_v37, 1  ;;  %v1383_v53 = vrot.slane %v1382_v39, 2  ;;  %v1421_v55 = vsel %vm3539_vm2, %v3418_v18, 4286644096  ;;  %v1432_v56 = vsel %vm3539_vm2, %v3419_v19, 4286644096 }
  0x5e   :  { %v3771_v57 = vpack.i.bf16 %v1364_v42, %v1364_v42  ;;  %v1393_v58 = vmax.f32 %v1391_v30, %v1392_v43  ;;  %v1403_v62 = vrot.slane %v1402_v45, 4  ;;  %v1413_v0 = vmax.f32 %v1411_v41, %v1412_v50 }
  0x5f   :  { %v1375_v1 = vmax.f32 %v1373_v37, %v1374_v52  ;;  %v1384_v3 = vmax.f32 %v1382_v39, %v1383_v53  ;;  %v1422_v4 = vunpack.i.l.bf16 %v1421_v55  ;;  %v1423_v8 = vunpack.i.h.bf16 %v1421_v55  ;;  %v3422_v52 = vld [vmem:[%s5637_s0 + $0x138] sm:$0x1f]  }
  0x60   :  { %v1394_v9 = vrot.slane %v1393_v58, 2  ;;  %v1404_v10 = vmax.f32 %v1402_v45, %v1403_v62  ;;  %v1414_v13 = vrot.slane %v1413_v0, 4  ;;  %v1433_v14 = vunpack.i.l.bf16 %v1432_v56 }
  0x61   :  { %v3776_v18 = vpack.i.bf16 %v1375_v1, %v1375_v1  ;;  %v1385_v19 = vrot.slane %v1384_v3, 1  ;;  %v1424_v22 = vmax.f32 %v1422_v4, %v1423_v8  ;;  %v1434_v24 = vunpack.i.h.bf16 %v1432_v56 }
  0x62   :  { %v1395_v26 = vmax.f32 %v1393_v58, %v1394_v9  ;;  %v1405_v27 = vrot.slane %v1404_v10, 2  ;;  %v1415_v30 = vmax.f32 %v1413_v0, %v1414_v13  ;;  %v1443_v32 = vsel %vm3539_vm2, %v3420_v54, 4286644096  ;;  %v3424_v13 = vld [vmem:[%s5637_s0 + $0x148] sm:$0x1f]  }
  0x63   :  { %v1386_v34 = vmax.f32 %v1384_v3, %v1385_v19  ;;  %v1425_v37 = vrot.slane %v1424_v22, 4  ;;  %v1435_v39 = vmax.f32 %v1433_v14, %v1434_v24  ;;  %v1444_v41 = vunpack.i.l.bf16 %v1443_v32 }
  0x64   :  { %v1396_v42 = vrot.slane %v1395_v26, 1  ;;  %v1406_v43 = vmax.f32 %v1404_v10, %v1405_v27  ;;  %v1416_v45 = vrot.slane %v1415_v30, 2  ;;  %v1445_v50 = vunpack.i.h.bf16 %v1443_v32  ;;  %v3423_v10 = vld [vmem:[%s5637_s0 + $0x140] sm:$0x1f]  }
  0x65   :  { %v3783_v53 = vpack.i.bf16 %v1386_v34, %v1386_v34  ;;  %v1426_v55 = vmax.f32 %v1424_v22, %v1425_v37  ;;  %v1436_v56 = vrot.slane %v1435_v39, 4  ;;  %v1454_v58 = vsel %vm3539_vm2, %v3421_v17, 4286644096 }
  0x66   :  { %v1397_v54 = vmax.f32 %v1395_v26, %v1396_v42  ;;  %v1407_v62 = vrot.slane %v1406_v43, 1  ;;  %v1417_v0 = vmax.f32 %v1415_v30, %v1416_v45  ;;  %v1446_v1 = vmax.f32 %v1444_v41, %v1445_v50  ;;  %v3425_v41 = vld [vmem:[%s5637_s0 + $0x150] sm:$0x1f]  }
  0x67   :  { %v1427_v3 = vrot.slane %v1426_v55, 2  ;;  %v1437_v4 = vmax.f32 %v1435_v39, %v1436_v56  ;;  %v1455_v8 = vunpack.i.l.bf16 %v1454_v58  ;;  %v1456_v9 = vunpack.i.h.bf16 %v1454_v58 }
  0x68   :  { %v3793_v14 = vpack.i.bf16 %v1397_v54, %v1397_v54  ;;  %v1408_v19 = vmax.f32 %v1406_v43, %v1407_v62  ;;  %v1418_v17 = vrot.slane %v1417_v0, 1  ;;  %v1447_v22 = vrot.slane %v1446_v1, 4 }
  0x69   :  { %v1428_v24 = vmax.f32 %v1426_v55, %v1427_v3  ;;  %v1438_v26 = vrot.slane %v1437_v4, 2  ;;  %v1457_v27 = vmax.f32 %v1455_v8, %v1456_v9  ;;  %v1465_v30 = vsel %vm3539_vm2, %v3422_v52, 4286644096 }
  0x6a   :  { %v3797_v32 = vpack.i.bf16 %v1408_v19, %v1408_v19  ;;  %v1419_v34 = vmax.f32 %v1417_v0, %v1418_v17  ;;  %v1448_v37 = vmax.f32 %v1446_v1, %v1447_v22  ;;  %v1466_v39 = vunpack.i.l.bf16 %v1465_v30  ;;  %v3427_v17 = vld [vmem:[%s5637_s0 + $0x160] sm:$0x1f]  }
  0x6b   :  { %v1429_v42 = vrot.slane %v1428_v24, 1  ;;  %v1439_v45 = vmax.f32 %v1437_v4, %v1438_v26  ;;  %v1458_v43 = vrot.slane %v1457_v27, 4  ;;  %v1467_v50 = vunpack.i.h.bf16 %v1465_v30  ;;  %v3426_v4 = vld [vmem:[%s5637_s0 + $0x158] sm:$0x1f]  }
  0x6c   :  { %v3802_v56 = vpack.i.bf16 %v1419_v34, %v1419_v34  ;;  %v1449_v55 = vrot.slane %v1448_v37, 2  ;;  %v1476_v58 = vsel %vm3539_vm2, %v3423_v10, 4286644096  ;;  %v1487_v52 = vsel %vm3539_vm2, %v3424_v13, 4286644096 }
  0x6d   :  { %v1430_v54 = vmax.f32 %v1428_v24, %v1429_v42  ;;  %v1440_v62 = vrot.slane %v1439_v45, 1  ;;  %v1459_v0 = vmax.f32 %v1457_v27, %v1458_v43  ;;  %v1468_v1 = vmax.f32 %v1466_v39, %v1467_v50 }
  0x6e   :  { %5731 = vst [vmem:[#allocation2_spill] sm:$0xff] %v3802_v56  ;;  %v1450_v3 = vmax.f32 %v1448_v37, %v1449_v55  ;;  %v1477_v8 = vunpack.i.l.bf16 %v1476_v58  ;;  %v1478_v9 = vunpack.i.h.bf16 %v1476_v58  ;;  %v1488_v19 = vunpack.i.l.bf16 %v1487_v52 }
  0x6f   :  { %v3814_v10 = vpack.i.bf16 %v1430_v54, %v1430_v54  ;;  %v1441_v22 = vmax.f32 %v1439_v45, %v1440_v62  ;;  %v1460_v13 = vrot.slane %v1459_v0, 2  ;;  %v1469_v24 = vrot.slane %v1468_v1, 4 }
  0x70   :  { %v1451_v26 = vrot.slane %v1450_v3, 1  ;;  %v1479_v27 = vmax.f32 %v1477_v8, %v1478_v9  ;;  %v1489_v30 = vunpack.i.h.bf16 %v1487_v52  ;;  %v1498_v34 = vsel %vm3539_vm2, %v3425_v41, 4286644096  ;;  %v3428_v41 = vld [vmem:[%s5637_s0 + $0x168] sm:$0x1f]  }
  0x71   :  { %5732 = vst [vmem:[#allocation3_spill] sm:$0xff] %v3814_v10  ;;  %v3818_v37 = vpack.i.bf16 %v1441_v22, %v1441_v22  ;;  %v1461_v39 = vmax.f32 %v1459_v0, %v1460_v13  ;;  %v1470_v42 = vmax.f32 %v1468_v1, %v1469_v24  ;;  %v1499_v43 = vunpack.i.l.bf16 %v1498_v34 }
  0x72   :  { %v1452_v50 = vmax.f32 %v1450_v3, %v1451_v26  ;;  %v1480_v55 = vrot.slane %v1479_v27, 4  ;;  %v1490_v58 = vmax.f32 %v1488_v19, %v1489_v30  ;;  %v1500_v56 = vunpack.i.h.bf16 %v1498_v34 }
  0x73   :  { %5733 = vst [vmem:[#allocation4_spill] sm:$0xff] %v3818_v37  ;;  %v1462_v54 = vrot.slane %v1461_v39, 1  ;;  %v1471_v10 = vrot.slane %v1470_v42, 2  ;;  %v1509_v45 = vsel %vm3539_vm2, %v3426_v4, 4286644096  ;;  %vm2964_vm7 = vcmask 1045509  }
  0x74   :  { %v1520_v52 = vsel %vm3539_vm2, %v3427_v17, 4286644096  ;;  %v3827_v62 = vpack.i.bf16 %v1452_v50, %v1452_v50  ;;  %v1481_v0 = vmax.f32 %v1479_v27, %v1480_v55  ;;  %v1491_v1 = vrot.slane %v1490_v58, 4  ;;  %v3429_v17 = vld [vmem:[%s5637_s0 + $0x170] sm:$0x1f]  }
  0x75   :  { %v1501_v3 = vmax.f32 %v1499_v43, %v1500_v56  ;;  %v1463_v8 = vmax.f32 %v1461_v39, %v1462_v54  ;;  %v1472_v9 = vmax.f32 %v1470_v42, %v1471_v10  ;;  %v1510_v19 = vunpack.i.l.bf16 %v1509_v45 }
  0x76   :  { %5734 = vst [vmem:[#allocation5_spill] sm:$0xff] %v3827_v62  ;;  %v1511_v22 = vunpack.i.h.bf16 %v1509_v45  ;;  %v1482_v13 = vrot.slane %v1481_v0, 2  ;;  %v1492_v24 = vmax.f32 %v1490_v58, %v1491_v1  ;;  %v1521_v4 = vunpack.i.l.bf16 %v1520_v52 }
  0x77   :  { %v1502_v26 = vrot.slane %v1501_v3, 4  ;;  %v3832_v30 = vpack.i.bf16 %v1463_v8, %v1463_v8  ;;  %v1473_v34 = vrot.slane %v1472_v9, 1  ;;  %v1522_v62 = vunpack.i.h.bf16 %v1520_v52  ;;  %v3430_v8 = vld [vmem:[%s5637_s0 + $0x178] sm:$0x1f]  }
  0x78   :  { %v1512_v50 = vmax.f32 %v1510_v19, %v1511_v22  ;;  %v1483_v27 = vmax.f32 %v1481_v0, %v1482_v13  ;;  %v1493_v55 = vrot.slane %v1492_v24, 2  ;;  %v1531_v10 = vsel %vm3539_vm2, %v3428_v41, 4286644096 }
  0x79   :  { %5735 = vst [vmem:[#allocation6_spill] sm:$0xff] %v3832_v30  ;;  %v1503_v56 = vmax.f32 %v1501_v3, %v1502_v26  ;;  %v1474_v39 = vmax.f32 %v1472_v9, %v1473_v34  ;;  %v1523_v43 = vmax.f32 %v1521_v4, %v1522_v62  ;;  %v1532_v58 = vunpack.i.l.bf16 %v1531_v10  ;;  %v3431_v34 = vld [vmem:[%s5637_s0 + $0x180] sm:$0x1f]  }
  0x7a   :  { %v1513_v42 = vrot.slane %v1512_v50, 4  ;;  %v1484_v54 = vrot.slane %v1483_v27, 1  ;;  %v1494_v45 = vmax.f32 %v1492_v24, %v1493_v55  ;;  %v1533_v37 = vunpack.i.h.bf16 %v1531_v10 }
  0x7b   :  { %v1504_v1 = vrot.slane %v1503_v56, 2  ;;  %v3839_v19 = vpack.i.bf16 %v1474_v39, %v1474_v39  ;;  %v1524_v0 = vrot.slane %v1523_v43, 4  ;;  %v1542_v3 = vsel %vm3539_vm2, %v3429_v17, 4286644096 }
  0x7c   :  { %v1514_v52 = vmax.f32 %v1512_v50, %v1513_v42  ;;  %v1485_v41 = vmax.f32 %v1483_v27, %v1484_v54  ;;  %v1495_v9 = vrot.slane %v1494_v45, 1  ;;  %v1534_v62 = vmax.f32 %v1532_v58, %v1533_v37  ;;  %v3432_v50 = vld [vmem:[%s5637_s0 + $0x188] sm:$0x1f]  }
  0x7d   :  { %5736 = vst [vmem:[#allocation7_spill] sm:$0xff] %v3839_v19  ;;  %v1505_v22 = vmax.f32 %v1503_v56, %v1504_v1  ;;  %v1525_v26 = vmax.f32 %v1523_v43, %v1524_v0  ;;  %v1543_v24 = vunpack.i.l.bf16 %v1542_v3  ;;  %v1544_v4 = vunpack.i.h.bf16 %v1542_v3  ;;  %v3433_v0 = vld [vmem:[%s5637_s0 + $0x190] sm:$0x1f]  }
  0x7e   :  { %v1515_v13 = vrot.slane %v1514_v52, 2  ;;  %v3849_v55 = vpack.i.bf16 %v1485_v41, %v1485_v41  ;;  %v1496_v10 = vmax.f32 %v1494_v45, %v1495_v9  ;;  %v1535_v27 = vrot.slane %v1534_v62, 4 }
  0x7f   :  { %v1506_v17 = vrot.slane %v1505_v22, 1  ;;  %v1526_v56 = vrot.slane %v1525_v26, 2  ;;  %v1545_v37 = vmax.f32 %v1543_v24, %v1544_v4  ;;  %v1553_v42 = vsel %vm3539_vm2, %v3430_v8, 4286644096 }
  0x80   :  { %5737 = vst [vmem:[#allocation8_spill] sm:$0xff] %v3849_v55  ;;  %v1516_v39 = vmax.f32 %v1514_v52, %v1515_v13  ;;  %v3853_v43 = vpack.i.bf16 %v1496_v10, %v1496_v10  ;;  %v1536_v54 = vmax.f32 %v1534_v62, %v1535_v27  ;;  %v1554_v1 = vunpack.i.l.bf16 %v1553_v42 }
  0x81   :  { %v1507_v58 = vmax.f32 %v1505_v22, %v1506_v17  ;;  %v1527_v41 = vmax.f32 %v1525_v26, %v1526_v56  ;;  %v1546_v45 = vrot.slane %v1545_v37, 4  ;;  %v1555_v9 = vunpack.i.h.bf16 %v1553_v42  ;;  %v3434_v26 = vld [vmem:[%s5637_s0 + $0x198] sm:$0x1f]   ;;  %v3435_v56 = vld [vmem:[%s5637_s0 + $0x1a0] sm:$0x1f]  }
  0x82   :  { %5738 = vst [vmem:[#allocation9_spill] sm:$0xff] %v3853_v43  ;;  %v1517_v3 = vrot.slane %v1516_v39, 1  ;;  %v1537_v52 = vrot.slane %v1536_v54, 2  ;;  %v1564_v13 = vsel %vm3539_vm2, %v3431_v34, 4286644096  ;;  %vm2966_vm8 = vcmask 1046534  }
  0x83   :  { %v3858_v55 = vpack.i.bf16 %v1507_v58, %v1507_v58  ;;  %v1575_v8 = vsel %vm3539_vm2, %v3432_v50, 4286644096  ;;  %v1528_v62 = vrot.slane %v1527_v41, 1  ;;  %v1547_v24 = vmax.f32 %v1545_v37, %v1546_v45 }
  0x84   :  { %v1518_v22 = vmax.f32 %v1516_v39, %v1517_v3  ;;  %v1556_v4 = vmax.f32 %v1554_v1, %v1555_v9  ;;  %v1538_v10 = vmax.f32 %v1536_v54, %v1537_v52  ;;  %v1565_v17 = vunpack.i.l.bf16 %v1564_v13 }
  0x85   :  { %5739 = vst [vmem:[#allocation10_spill] sm:$0xff] %v3858_v55  ;;  %v1566_v27 = vunpack.i.h.bf16 %v1564_v13  ;;  %v1576_v43 = vunpack.i.l.bf16 %v1575_v8  ;;  %v1529_v42 = vmax.f32 %v1527_v41, %v1528_v62  ;;  %v1548_v50 = vrot.slane %v1547_v24, 2 }
  0x86   :  { %v3870_v34 = vpack.i.bf16 %v1518_v22, %v1518_v22  ;;  %v1557_v39 = vrot.slane %v1556_v4, 4  ;;  %v1539_v58 = vrot.slane %v1538_v10, 1  ;;  %v1577_v1 = vunpack.i.h.bf16 %v1575_v8 }
  0x87   :  { %v1567_v37 = vmax.f32 %v1565_v17, %v1566_v27  ;;  %v1586_v54 = vsel %vm3539_vm2, %v3433_v0, 4286644096  ;;  %v3874_v3 = vpack.i.bf16 %v1529_v42, %v1529_v42  ;;  %v1549_v45 = vmax.f32 %v1547_v24, %v1548_v50  ;;  %v3436_v0 = vld [vmem:[%s5637_s0 + $0x1a8] sm:$0x1f]  }
  0x88   :  { %5740 = vst [vmem:[#allocation11_spill] sm:$0xff] %v3870_v34  ;;  %v1558_v9 = vmax.f32 %v1556_v4, %v1557_v39  ;;  %v1587_v52 = vunpack.i.l.bf16 %v1586_v54  ;;  %v1540_v13 = vmax.f32 %v1538_v10, %v1539_v58  ;;  %v1578_v19 = vmax.f32 %v1576_v43, %v1577_v1 }
  0x89   :  { %5741 = vst [vmem:[#allocation12_spill] sm:$0xff] %v3874_v3  ;;  %v1568_v55 = vrot.slane %v1567_v37, 4  ;;  %v1588_v30 = vunpack.i.h.bf16 %v1586_v54  ;;  %v1550_v22 = vrot.slane %v1549_v45, 1  ;;  %v1597_v41 = vsel %vm3539_vm2, %v3434_v26, 4286644096 }
  0x8a   :  { %v1559_v34 = vrot.slane %v1558_v9, 2  ;;  %v1608_v8 = vsel %vm3539_vm2, %v3435_v56, 4286644096  ;;  %v3883_v62 = vpack.i.bf16 %v1540_v13, %v1540_v13  ;;  %v1579_v4 = vrot.slane %v1578_v19, 4  ;;  %v3437_v56 = vld [vmem:[%s5637_s0 + $0x1b0] sm:$0x1f]  }
  0x8b   :  { %v1569_v24 = vmax.f32 %v1567_v37, %v1568_v55  ;;  %v1589_v10 = vmax.f32 %v1587_v52, %v1588_v30  ;;  %v1551_v17 = vmax.f32 %v1549_v45, %v1550_v22  ;;  %v1598_v27 = vunpack.i.l.bf16 %v1597_v41 }
  0x8c   :  { %5742 = vst [vmem:[#allocation13_spill] sm:$0xff] %v3883_v62  ;;  %v1560_v43 = vmax.f32 %v1558_v9, %v1559_v34  ;;  %v1599_v42 = vunpack.i.h.bf16 %v1597_v41  ;;  %v1580_v39 = vmax.f32 %v1578_v19, %v1579_v4  ;;  %v1609_v26 = vunpack.i.l.bf16 %v1608_v8 }
  0x8d   :  { %v1570_v50 = vrot.slane %v1569_v24, 2  ;;  %v1590_v58 = vrot.slane %v1589_v10, 4  ;;  %v3888_v1 = vpack.i.bf16 %v1551_v17, %v1551_v17  ;;  %v1610_v62 = vunpack.i.h.bf16 %v1608_v8  ;;  %v3438_v17 = vld [vmem:[%s5637_s0 + $0x1b8] sm:$0x1f]  }
  0x8e   :  { %v1561_v54 = vrot.slane %v1560_v43, 1  ;;  %v1600_v13 = vmax.f32 %v1598_v27, %v1599_v42  ;;  %v1581_v37 = vrot.slane %v1580_v39, 2  ;;  %v1619_v34 = vsel %vm3539_vm2, %v3436_v0, 4286644096 }
  0x8f   :  { %5743 = vst [vmem:[#allocation14_spill] sm:$0xff] %v3888_v1  ;;  %v1571_v55 = vmax.f32 %v1569_v24, %v1570_v50  ;;  %v1591_v30 = vmax.f32 %v1589_v10, %v1590_v58  ;;  %v1611_v19 = vmax.f32 %v1609_v26, %v1610_v62  ;;  %v1620_v52 = vunpack.i.l.bf16 %v1619_v34 }
  0x90   :  { %v1562_v45 = vmax.f32 %v1560_v43, %v1561_v54  ;;  %v1601_v9 = vrot.slane %v1600_v13, 4  ;;  %v1582_v41 = vmax.f32 %v1580_v39, %v1581_v37  ;;  %v1621_v3 = vunpack.i.h.bf16 %v1619_v34  ;;  %v3439_v54 = vld [vmem:[%s5637_s0 + $0x1c0] sm:$0x1f]  }
  0x91   :  { %v1572_v22 = vrot.slane %v1571_v55, 1  ;;  %v1592_v4 = vrot.slane %v1591_v30, 2  ;;  %v1612_v24 = vrot.slane %v1611_v19, 4  ;;  %v1630_v10 = vsel %vm3539_vm2, %v3437_v56, 4286644096 }
  0x92   :  { %v3895_v27 = vpack.i.bf16 %v1562_v45, %v1562_v45  ;;  %v1602_v8 = vmax.f32 %v1600_v13, %v1601_v9  ;;  %v1583_v43 = vrot.slane %v1582_v41, 1  ;;  %v1622_v62 = vmax.f32 %v1620_v52, %v1621_v3  ;;  %v3440_v13 = vld [vmem:[%s5637_s0 + $0x1c8] sm:$0x1f]  }
  0x93   :  { %v1573_v0 = vmax.f32 %v1571_v55, %v1572_v22  ;;  %v1593_v42 = vmax.f32 %v1591_v30, %v1592_v4  ;;  %v1613_v58 = vmax.f32 %v1611_v19, %v1612_v24  ;;  %v1631_v39 = vunpack.i.l.bf16 %v1630_v10  ;;  %v3441_v24 = vld [vmem:[%s5637_s0 + $0x1d0] sm:$0x1f]  }
  0x94   :  { %5744 = vst [vmem:[#allocation15_spill] sm:$0xff] %v3895_v27  ;;  %v1603_v50 = vrot.slane %v1602_v8, 2  ;;  %v1632_v26 = vunpack.i.h.bf16 %v1630_v10  ;;  %v1584_v34 = vmax.f32 %v1582_v41, %v1583_v43  ;;  %v1623_v55 = vrot.slane %v1622_v62, 4 }
  0x95   :  { %v3905_v37 = vpack.i.bf16 %v1573_v0, %v1573_v0  ;;  %v1594_v56 = vrot.slane %v1593_v42, 1  ;;  %v1614_v30 = vrot.slane %v1613_v58, 2  ;;  %v1641_v9 = vsel %vm3539_vm2, %v3438_v17, 4286644096 }
  0x96   :  { %v1604_v45 = vmax.f32 %v1602_v8, %v1603_v50  ;;  %v1633_v3 = vmax.f32 %v1631_v39, %v1632_v26  ;;  %v3909_v19 = vpack.i.bf16 %v1584_v34, %v1584_v34  ;;  %v1624_v22 = vmax.f32 %v1622_v62, %v1623_v55 }
  0x97   :  { %5745 = vst [vmem:[#allocation16_spill] sm:$0xff] %v3905_v37  ;;  %v1595_v52 = vmax.f32 %v1593_v42, %v1594_v56  ;;  %v1642_v4 = vunpack.i.l.bf16 %v1641_v9  ;;  %v1615_v0 = vmax.f32 %v1613_v58, %v1614_v30  ;;  %v1643_v43 = vunpack.i.h.bf16 %v1641_v9  ;;  %v3442_v58 = vld [vmem:[%s5637_s0 + $0x1d8] sm:$0x1f]   ;;  %v3443_v30 = vld [vmem:[%s5637_s0 + $0x1e0] sm:$0x1f]  }
  0x98   :  { %5746 = vst [vmem:[#allocation17_spill] sm:$0xff] %v3909_v19  ;;  %v1605_v10 = vrot.slane %v1604_v45, 1  ;;  %v1634_v41 = vrot.slane %v1633_v3, 4  ;;  %v1625_v8 = vrot.slane %v1624_v22, 2  ;;  %v1652_v50 = vsel %vm3539_vm2, %v3439_v54, 4286644096 }
  0x99   :  { %v3914_v37 = vpack.i.bf16 %v1595_v52, %v1595_v52  ;;  %v1663_v17 = vsel %vm3539_vm2, %v3440_v13, 4286644096  ;;  %v1616_v62 = vrot.slane %v1615_v0, 1  ;;  %v1644_v26 = vmax.f32 %v1642_v4, %v1643_v43 }
  0x9a   :  { %v1606_v42 = vmax.f32 %v1604_v45, %v1605_v10  ;;  %v1635_v39 = vmax.f32 %v1633_v3, %v1634_v41  ;;  %v1626_v34 = vmax.f32 %v1624_v22, %v1625_v8  ;;  %v1653_v56 = vunpack.i.l.bf16 %v1652_v50 }
  0x9b   :  { %5747 = vst [vmem:[#allocation18_spill] sm:$0xff] %v3914_v37  ;;  %v1654_v55 = vunpack.i.h.bf16 %v1652_v50  ;;  %v1664_v19 = vunpack.i.l.bf16 %v1663_v17  ;;  %v1617_v9 = vmax.f32 %v1615_v0, %v1616_v62  ;;  %v1645_v45 = vrot.slane %v1644_v26, 4 }
  0x9c   :  { %v3926_v54 = vpack.i.bf16 %v1606_v42, %v1606_v42  ;;  %v1636_v13 = vrot.slane %v1635_v39, 2  ;;  %v1627_v52 = vrot.slane %v1626_v34, 1  ;;  %v1665_v4 = vunpack.i.h.bf16 %v1663_v17 }
  0x9d   :  { %v1655_v3 = vmax.f32 %v1653_v56, %v1654_v55  ;;  %v1674_v22 = vsel %vm3539_vm2, %v3441_v24, 4286644096  ;;  %v3930_v10 = vpack.i.bf16 %v1617_v9, %v1617_v9  ;;  %v1646_v43 = vmax.f32 %v1644_v26, %v1645_v45  ;;  %v3444_v24 = vld [vmem:[%s5637_s0 + $0x1e8] sm:$0x1f]  }
  0x9e   :  { %5748 = vst [vmem:[#allocation19_spill] sm:$0xff] %v3926_v54  ;;  %v1637_v41 = vmax.f32 %v1635_v39, %v1636_v13  ;;  %v1675_v8 = vunpack.i.l.bf16 %v1674_v22  ;;  %v1628_v50 = vmax.f32 %v1626_v34, %v1627_v52  ;;  %v1666_v27 = vmax.f32 %v1664_v19, %v1665_v4 }
  0x9f   :  { %5749 = vst [vmem:[#allocation20_spill] sm:$0xff] %v3930_v10  ;;  %v1656_v37 = vrot.slane %v1655_v3, 4  ;;  %v1676_v1 = vunpack.i.h.bf16 %v1674_v22  ;;  %v1647_v54 = vrot.slane %v1646_v43, 2  ;;  %v1685_v0 = vsel %vm3539_vm2, %v3442_v58, 4286644096 }
  0xa0   :  { %v1638_v42 = vrot.slane %v1637_v41, 1  ;;  %v1696_v17 = vsel %vm3539_vm2, %v3443_v30, 4286644096  ;;  %v3939_v62 = vpack.i.bf16 %v1628_v50, %v1628_v50  ;;  %v1667_v26 = vrot.slane %v1666_v27, 4  ;;  %v3445_v30 = vld [vmem:[%s5637_s0 + $0x1f0] sm:$0x1f]  }
  0xa1   :  { %v1657_v39 = vmax.f32 %v1655_v3, %v1656_v37  ;;  %v1677_v34 = vmax.f32 %v1675_v8, %v1676_v1  ;;  %v1648_v19 = vmax.f32 %v1646_v43, %v1647_v54  ;;  %v1686_v55 = vunpack.i.l.bf16 %v1685_v0 }
  0xa2   :  { %5750 = vst [vmem:[#allocation21_spill] sm:$0xff] %v3939_v62  ;;  %v1639_v56 = vmax.f32 %v1637_v41, %v1638_v42  ;;  %v1687_v9 = vunpack.i.h.bf16 %v1685_v0  ;;  %v1668_v45 = vmax.f32 %v1666_v27, %v1667_v26  ;;  %v1697_v58 = vunpack.i.l.bf16 %v1696_v17 }
  0xa3   :  { %v1658_v13 = vrot.slane %v1657_v39, 2  ;;  %v1678_v52 = vrot.slane %v1677_v34, 4  ;;  %v1649_v22 = vrot.slane %v1648_v19, 1  ;;  %v1698_v62 = vunpack.i.h.bf16 %v1696_v17 }
  0xa4   :  { %v3944_v4 = vpack.i.bf16 %v1639_v56, %v1639_v56  ;;  %v1688_v50 = vmax.f32 %v1686_v55, %v1687_v9  ;;  %v1669_v3 = vrot.slane %v1668_v45, 2  ;;  %v1707_v54 = vsel %vm3539_vm2, %v3444_v24, 4286644096  ;;  %v3446_v56 = vld [vmem:[%s5637_s0 + $0x1f8] sm:$0x1f]  }
  0xa5   :  { %v1659_v37 = vmax.f32 %v1657_v39, %v1658_v13  ;;  %v1679_v1 = vmax.f32 %v1677_v34, %v1678_v52  ;;  %v1650_v41 = vmax.f32 %v1648_v19, %v1649_v22  ;;  %v1699_v27 = vmax.f32 %v1697_v58, %v1698_v62  ;;  %v3447_v22 = vld [vmem:[%s5637_s0 + $0x200] sm:$0x1f]  }
  0xa6   :  { %5751 = vst [vmem:[#allocation22_spill] sm:$0xff] %v3944_v4  ;;  %v1689_v43 = vrot.slane %v1688_v50, 4  ;;  %v1708_v8 = vunpack.i.l.bf16 %v1707_v54  ;;  %v1670_v0 = vmax.f32 %v1668_v45, %v1669_v3  ;;  %v1709_v10 = vunpack.i.h.bf16 %v1707_v54 }
  0xa7   :  { %v1660_v42 = vrot.slane %v1659_v37, 1  ;;  %v1680_v26 = vrot.slane %v1679_v1, 2  ;;  %v3951_v55 = vpack.i.bf16 %v1650_v41, %v1650_v41  ;;  %v1700_v39 = vrot.slane %v1699_v27, 4 }
  0xa8   :  { %v1690_v17 = vmax.f32 %v1688_v50, %v1689_v43  ;;  %v1718_v34 = vsel %vm3539_vm2, %v3445_v30, 4286644096  ;;  %v1671_v19 = vrot.slane %v1670_v0, 1  ;;  %v1710_v62 = vmax.f32 %v1708_v8, %v1709_v10  ;;  %v3448_v50 = vld [vmem:[%s5637_s0 + $0x208] sm:$0x1f]  }
  0xa9   :  { %5752 = vst [vmem:[#allocation23_spill] sm:$0xff] %v3951_v55  ;;  %v1661_v24 = vmax.f32 %v1659_v37, %v1660_v42  ;;  %v1681_v9 = vmax.f32 %v1679_v1, %v1680_v26  ;;  %v1701_v52 = vmax.f32 %v1699_v27, %v1700_v39  ;;  %v1719_v45 = vunpack.i.l.bf16 %v1718_v34  ;;  %v3449_v39 = vld [vmem:[%s5637_s0 + $0x210] sm:$0x1f]  }
  0xaa   :  { %v1691_v13 = vrot.slane %v1690_v17, 2  ;;  %v1720_v58 = vunpack.i.h.bf16 %v1718_v34  ;;  %v1672_v54 = vmax.f32 %v1670_v0, %v1671_v19  ;;  %v1711_v37 = vrot.slane %v1710_v62, 4 }
  0xab   :  { %v3961_v3 = vpack.i.bf16 %v1661_v24, %v1661_v24  ;;  %v1682_v30 = vrot.slane %v1681_v9, 1  ;;  %v1702_v1 = vrot.slane %v1701_v52, 2  ;;  %v1729_v43 = vsel %vm3539_vm2, %v3446_v56, 4286644096 }
  0xac   :  { %v1692_v41 = vmax.f32 %v1690_v17, %v1691_v13  ;;  %v1721_v10 = vmax.f32 %v1719_v45, %v1720_v58  ;;  %v3965_v27 = vpack.i.bf16 %v1672_v54, %v1672_v54  ;;  %v1712_v42 = vmax.f32 %v1710_v62, %v1711_v37 }
  0xad   :  { %5753 = vst [vmem:[#allocation24_spill] sm:$0xff] %v3961_v3  ;;  %v1683_v8 = vmax.f32 %v1681_v9, %v1682_v30  ;;  %v1730_v26 = vunpack.i.l.bf16 %v1729_v43  ;;  %v1703_v24 = vmax.f32 %v1701_v52, %v1702_v1  ;;  %v1731_v19 = vunpack.i.h.bf16 %v1729_v43  ;;  %v3450_v52 = vld [vmem:[%s5637_s0 + $0x218] sm:$0x1f]   ;;  %v3451_v1 = vld [vmem:[%s5637_s0 + $0x220] sm:$0x1f]  }
  0xae   :  { %5754 = vst [vmem:[#allocation25_spill] sm:$0xff] %v3965_v27  ;;  %v1693_v34 = vrot.slane %v1692_v41, 1  ;;  %v1722_v0 = vrot.slane %v1721_v10, 4  ;;  %v1713_v17 = vrot.slane %v1712_v42, 2  ;;  %v1740_v13 = vsel %vm3539_vm2, %v3447_v22, 4286644096 }
  0xaf   :  { %v3970_v3 = vpack.i.bf16 %v1683_v8, %v1683_v8  ;;  %v1751_v56 = vsel %vm3539_vm2, %v3448_v50, 4286644096  ;;  %v1704_v62 = vrot.slane %v1703_v24, 1  ;;  %v1732_v58 = vmax.f32 %v1730_v26, %v1731_v19 }
  0xb0   :  { %v1694_v9 = vmax.f32 %v1692_v41, %v1693_v34  ;;  %v1723_v45 = vmax.f32 %v1721_v10, %v1722_v0  ;;  %v1714_v54 = vmax.f32 %v1712_v42, %v1713_v17  ;;  %v1741_v30 = vunpack.i.l.bf16 %v1740_v13 }
  0xb1   :  { %5755 = vst [vmem:[#allocation26_spill] sm:$0xff] %v3970_v3  ;;  %v1742_v37 = vunpack.i.h.bf16 %v1740_v13  ;;  %v1752_v27 = vunpack.i.l.bf16 %v1751_v56  ;;  %v1705_v43 = vmax.f32 %v1703_v24, %v1704_v62  ;;  %v1733_v41 = vrot.slane %v1732_v58, 4 }
  0xb2   :  { %v3982_v22 = vpack.i.bf16 %v1694_v9, %v1694_v9  ;;  %v1724_v50 = vrot.slane %v1723_v45, 2  ;;  %v1715_v8 = vrot.slane %v1714_v54, 1  ;;  %v1753_v26 = vunpack.i.h.bf16 %v1751_v56 }
  0xb3   :  { %v1743_v10 = vmax.f32 %v1741_v30, %v1742_v37  ;;  %v1762_v42 = vsel %vm3539_vm2, %v3449_v39, 4286644096  ;;  %v3986_v34 = vpack.i.bf16 %v1705_v43, %v1705_v43  ;;  %v1734_v19 = vmax.f32 %v1732_v58, %v1733_v41  ;;  %v3452_v39 = vld [vmem:[%s5637_s0 + $0x228] sm:$0x1f]  }
  0xb4   :  { %5756 = vst [vmem:[#allocation27_spill] sm:$0xff] %v3982_v22  ;;  %v1725_v0 = vmax.f32 %v1723_v45, %v1724_v50  ;;  %v1763_v17 = vunpack.i.l.bf16 %v1762_v42  ;;  %v1716_v13 = vmax.f32 %v1714_v54, %v1715_v8  ;;  %v1754_v55 = vmax.f32 %v1752_v27, %v1753_v26 }
  0xb5   :  { %5757 = vst [vmem:[#allocation28_spill] sm:$0xff] %v3986_v34  ;;  %v1744_v3 = vrot.slane %v1743_v10, 4  ;;  %v1764_v4 = vunpack.i.h.bf16 %v1762_v42  ;;  %v1735_v22 = vrot.slane %v1734_v19, 2  ;;  %v1773_v24 = vsel %vm3539_vm2, %v3450_v52, 4286644096 }
  0xb6   :  { %v1726_v9 = vrot.slane %v1725_v0, 1  ;;  %v1784_v56 = vsel %vm3539_vm2, %v3451_v1, 4286644096  ;;  %v3995_v62 = vpack.i.bf16 %v1716_v13, %v1716_v13  ;;  %v1755_v58 = vrot.slane %v1754_v55, 4  ;;  %v3453_v1 = vld [vmem:[%s5637_s0 + $0x230] sm:$0x1f]  }
  0xb7   :  { %v1745_v45 = vmax.f32 %v1743_v10, %v1744_v3  ;;  %v1765_v54 = vmax.f32 %v1763_v17, %v1764_v4  ;;  %v1736_v27 = vmax.f32 %v1734_v19, %v1735_v22  ;;  %v1774_v37 = vunpack.i.l.bf16 %v1773_v24 }
  0xb8   :  { %5758 = vst [vmem:[#allocation29_spill] sm:$0xff] %v3995_v62  ;;  %v1727_v30 = vmax.f32 %v1725_v0, %v1726_v9  ;;  %v1775_v43 = vunpack.i.h.bf16 %v1773_v24  ;;  %v1756_v41 = vmax.f32 %v1754_v55, %v1755_v58  ;;  %v1785_v52 = vunpack.i.l.bf16 %v1784_v56 }
  0xb9   :  { %v1746_v50 = vrot.slane %v1745_v45, 2  ;;  %v1766_v8 = vrot.slane %v1765_v54, 4  ;;  %v1737_v42 = vrot.slane %v1736_v27, 1  ;;  %v1786_v62 = vunpack.i.h.bf16 %v1784_v56 }
  0xba   :  { %v4000_v26 = vpack.i.bf16 %v1727_v30, %v1727_v30  ;;  %v1776_v13 = vmax.f32 %v1774_v37, %v1775_v43  ;;  %v1757_v10 = vrot.slane %v1756_v41, 2  ;;  %v1795_v22 = vsel %vm3539_vm2, %v3452_v39, 4286644096  ;;  %v3454_v30 = vld [vmem:[%s5637_s0 + $0x238] sm:$0x1f]  }
  0xbb   :  { %v1747_v3 = vmax.f32 %v1745_v45, %v1746_v50  ;;  %v1767_v4 = vmax.f32 %v1765_v54, %v1766_v8  ;;  %v1738_v0 = vmax.f32 %v1736_v27, %v1737_v42  ;;  %v1787_v55 = vmax.f32 %v1785_v52, %v1786_v62  ;;  %v3455_v42 = vld [vmem:[%s5637_s0 + $0x240] sm:$0x1f]  }
  0xbc   :  { %5759 = vst [vmem:[#allocation30_spill] sm:$0xff] %v4000_v26  ;;  %v1777_v19 = vrot.slane %v1776_v13, 4  ;;  %v1796_v17 = vunpack.i.l.bf16 %v1795_v22  ;;  %v1758_v24 = vmax.f32 %v1756_v41, %v1757_v10  ;;  %v1797_v34 = vunpack.i.h.bf16 %v1795_v22 }
  0xbd   :  { %v1748_v9 = vrot.slane %v1747_v3, 1  ;;  %v1768_v58 = vrot.slane %v1767_v4, 2  ;;  %v4007_v37 = vpack.i.bf16 %v1738_v0, %v1738_v0  ;;  %v1788_v45 = vrot.slane %v1787_v55, 4 }
  0xbe   :  { %v1778_v56 = vmax.f32 %v1776_v13, %v1777_v19  ;;  %v1806_v54 = vsel %vm3539_vm2, %v3453_v1, 4286644096  ;;  %v1759_v27 = vrot.slane %v1758_v24, 1  ;;  %v1798_v62 = vmax.f32 %v1796_v17, %v1797_v34  ;;  %v3456_v13 = vld [vmem:[%s5637_s0 + $0x248] sm:$0x1f]  }
  0xbf   :  { %5760 = vst [vmem:[#allocation31_spill] sm:$0xff] %v4007_v37  ;;  %v1749_v39 = vmax.f32 %v1747_v3, %v1748_v9  ;;  %v1769_v43 = vmax.f32 %v1767_v4, %v1768_v58  ;;  %v1789_v8 = vmax.f32 %v1787_v55, %v1788_v45  ;;  %v1807_v41 = vunpack.i.l.bf16 %v1806_v54  ;;  %v3457_v45 = vld [vmem:[%s5637_s0 + $0x250] sm:$0x1f]  }
  0xc0   :  { %v1779_v50 = vrot.slane %v1778_v56, 2  ;;  %v1808_v52 = vunpack.i.h.bf16 %v1806_v54  ;;  %v1760_v22 = vmax.f32 %v1758_v24, %v1759_v27  ;;  %v1799_v3 = vrot.slane %v1798_v62, 4 }
  0xc1   :  { %v4017_v10 = vpack.i.bf16 %v1749_v39, %v1749_v39  ;;  %v1770_v1 = vrot.slane %v1769_v43, 1  ;;  %v1790_v4 = vrot.slane %v1789_v8, 2  ;;  %v1817_v19 = vsel %vm3539_vm2, %v3454_v30, 4286644096 }
  0xc2   :  { %v1780_v0 = vmax.f32 %v1778_v56, %v1779_v50  ;;  %v1809_v34 = vmax.f32 %v1807_v41, %v1808_v52  ;;  %v4021_v55 = vpack.i.bf16 %v1760_v22, %v1760_v22  ;;  %v1800_v9 = vmax.f32 %v1798_v62, %v1799_v3 }
  0xc3   :  { %5761 = vst [vmem:[#allocation32_spill] sm:$0xff] %v4017_v10  ;;  %v1771_v17 = vmax.f32 %v1769_v43, %v1770_v1  ;;  %v1818_v58 = vunpack.i.l.bf16 %v1817_v19  ;;  %v1791_v39 = vmax.f32 %v1789_v8, %v1790_v4  ;;  %v1819_v27 = vunpack.i.h.bf16 %v1817_v19  ;;  %v3458_v8 = vld [vmem:[%s5637_s0 + $0x258] sm:$0x1f]   ;;  %v3459_v4 = vld [vmem:[%s5637_s0 + $0x260] sm:$0x1f]  }
  0xc4   :  { %5762 = vst [vmem:[#allocation33_spill] sm:$0xff] %v4021_v55  ;;  %v1781_v54 = vrot.slane %v1780_v0, 1  ;;  %v1810_v24 = vrot.slane %v1809_v34, 4  ;;  %v1801_v56 = vrot.slane %v1800_v9, 2  ;;  %v1828_v50 = vsel %vm3539_vm2, %v3455_v42, 4286644096 }
  0xc5   :  { %v4026_v10 = vpack.i.bf16 %v1771_v17, %v1771_v17  ;;  %v1839_v30 = vsel %vm3539_vm2, %v3456_v13, 4286644096  ;;  %v1792_v62 = vrot.slane %v1791_v39, 1  ;;  %v1820_v52 = vmax.f32 %v1818_v58, %v1819_v27 }
  0xc6   :  { %v1782_v43 = vmax.f32 %v1780_v0, %v1781_v54  ;;  %v1811_v41 = vmax.f32 %v1809_v34, %v1810_v24  ;;  %v1802_v22 = vmax.f32 %v1800_v9, %v1801_v56  ;;  %v1829_v1 = vunpack.i.l.bf16 %v1828_v50 }
  0xc7   :  { %5763 = vst [vmem:[#allocation34_spill] sm:$0xff] %v4026_v10  ;;  %v1830_v3 = vunpack.i.h.bf16 %v1828_v50  ;;  %v1840_v55 = vunpack.i.l.bf16 %v1839_v30  ;;  %v1793_v19 = vmax.f32 %v1791_v39, %v1792_v62  ;;  %v1821_v0 = vrot.slane %v1820_v52, 4 }
  0xc8   :  { %v4038_v42 = vpack.i.bf16 %v1782_v43, %v1782_v43  ;;  %v1812_v13 = vrot.slane %v1811_v41, 2  ;;  %v1803_v17 = vrot.slane %v1802_v22, 1  ;;  %v1841_v58 = vunpack.i.h.bf16 %v1839_v30 }
  0xc9   :  { %v1831_v34 = vmax.f32 %v1829_v1, %v1830_v3  ;;  %v1850_v9 = vsel %vm3539_vm2, %v3457_v45, 4286644096  ;;  %v4042_v54 = vpack.i.bf16 %v1793_v19, %v1793_v19  ;;  %v1822_v27 = vmax.f32 %v1820_v52, %v1821_v0  ;;  %v3460_v45 = vld [vmem:[%s5637_s0 + $0x268] sm:$0x1f]  }
  0xca   :  { %5764 = vst [vmem:[#allocation35_spill] sm:$0xff] %v4038_v42  ;;  %v1813_v24 = vmax.f32 %v1811_v41, %v1812_v13  ;;  %v1851_v56 = vunpack.i.l.bf16 %v1850_v9  ;;  %v1804_v50 = vmax.f32 %v1802_v22, %v1803_v17  ;;  %v1842_v37 = vmax.f32 %v1840_v55, %v1841_v58 }
  0xcb   :  { %5765 = vst [vmem:[#allocation36_spill] sm:$0xff] %v4042_v54  ;;  %v1832_v10 = vrot.slane %v1831_v34, 4  ;;  %v1852_v26 = vunpack.i.h.bf16 %v1850_v9  ;;  %v1823_v42 = vrot.slane %v1822_v27, 2  ;;  %v1861_v39 = vsel %vm3539_vm2, %v3458_v8, 4286644096 }
  0xcc   :  { %v1814_v43 = vrot.slane %v1813_v24, 1  ;;  %v1872_v30 = vsel %vm3539_vm2, %v3459_v4, 4286644096  ;;  %v4051_v62 = vpack.i.bf16 %v1804_v50, %v1804_v50  ;;  %v1843_v52 = vrot.slane %v1842_v37, 4  ;;  %v3461_v4 = vld [vmem:[%s5637_s0 + $0x270] sm:$0x1f]  }
  0xcd   :  { %v1833_v41 = vmax.f32 %v1831_v34, %v1832_v10  ;;  %v1853_v22 = vmax.f32 %v1851_v56, %v1852_v26  ;;  %v1824_v55 = vmax.f32 %v1822_v27, %v1823_v42  ;;  %v1862_v3 = vunpack.i.l.bf16 %v1861_v39 }
  0xce   :  { %5766 = vst [vmem:[#allocation37_spill] sm:$0xff] %v4051_v62  ;;  %v1815_v1 = vmax.f32 %v1813_v24, %v1814_v43  ;;  %v1863_v19 = vunpack.i.h.bf16 %v1861_v39  ;;  %v1844_v0 = vmax.f32 %v1842_v37, %v1843_v52  ;;  %v1873_v8 = vunpack.i.l.bf16 %v1872_v30 }
  0xcf   :  { %v1834_v13 = vrot.slane %v1833_v41, 2  ;;  %v1854_v17 = vrot.slane %v1853_v22, 4  ;;  %v1825_v9 = vrot.slane %v1824_v55, 1  ;;  %v1874_v62 = vunpack.i.h.bf16 %v1872_v30 }
  0xd0   :  { %v4056_v58 = vpack.i.bf16 %v1815_v1, %v1815_v1  ;;  %v1864_v50 = vmax.f32 %v1862_v3, %v1863_v19  ;;  %v1845_v34 = vrot.slane %v1844_v0, 2  ;;  %v1883_v42 = vsel %vm3539_vm2, %v3460_v45, 4286644096  ;;  %v3462_v1 = vld [vmem:[%s5637_s0 + $0x278] sm:$0x1f]  }
  0xd1   :  { %v1835_v10 = vmax.f32 %v1833_v41, %v1834_v13  ;;  %v1855_v26 = vmax.f32 %v1853_v22, %v1854_v17  ;;  %v1826_v24 = vmax.f32 %v1824_v55, %v1825_v9  ;;  %v1875_v37 = vmax.f32 %v1873_v8, %v1874_v62  ;;  %v3463_v9 = vld [vmem:[%s5637_s0 + $0x280] sm:$0x1f]  }
  0xd2   :  { %5767 = vst [vmem:[#allocation38_spill] sm:$0xff] %v4056_v58  ;;  %v1865_v27 = vrot.slane %v1864_v50, 4  ;;  %v1884_v56 = vunpack.i.l.bf16 %v1883_v42  ;;  %v1846_v39 = vmax.f32 %v1844_v0, %v1845_v34  ;;  %v1885_v54 = vunpack.i.h.bf16 %v1883_v42 }
  0xd3   :  { %v1836_v43 = vrot.slane %v1835_v10, 1  ;;  %v1856_v52 = vrot.slane %v1855_v26, 2  ;;  %v4063_v3 = vpack.i.bf16 %v1826_v24, %v1826_v24  ;;  %v1876_v41 = vrot.slane %v1875_v37, 4 }
  0xd4   :  { %v1866_v30 = vmax.f32 %v1864_v50, %v1865_v27  ;;  %v1894_v22 = vsel %vm3539_vm2, %v3461_v4, 4286644096  ;;  %v1847_v55 = vrot.slane %v1846_v39, 1  ;;  %v1886_v62 = vmax.f32 %v1884_v56, %v1885_v54  ;;  %v3464_v50 = vld [vmem:[%s5637_s0 + $0x288] sm:$0x1f]  }
  0xd5   :  { %5768 = vst [vmem:[#allocation39_spill] sm:$0xff] %v4063_v3  ;;  %v1837_v45 = vmax.f32 %v1835_v10, %v1836_v43  ;;  %v1857_v19 = vmax.f32 %v1855_v26, %v1856_v52  ;;  %v1877_v17 = vmax.f32 %v1875_v37, %v1876_v41  ;;  %v1895_v0 = vunpack.i.l.bf16 %v1894_v22  ;;  %v3465_v41 = vld [vmem:[%s5637_s0 + $0x290] sm:$0x1f]  }
  0xd6   :  { %v1867_v13 = vrot.slane %v1866_v30, 2  ;;  %v1896_v8 = vunpack.i.h.bf16 %v1894_v22  ;;  %v1848_v42 = vmax.f32 %v1846_v39, %v1847_v55  ;;  %v1887_v10 = vrot.slane %v1886_v62, 4 }
  0xd7   :  { %v4073_v34 = vpack.i.bf16 %v1837_v45, %v1837_v45  ;;  %v1858_v4 = vrot.slane %v1857_v19, 1  ;;  %v1878_v26 = vrot.slane %v1877_v17, 2  ;;  %v1905_v27 = vsel %vm3539_vm2, %v3462_v1, 4286644096 }
  0xd8   :  { %v1868_v24 = vmax.f32 %v1866_v30, %v1867_v13  ;;  %v1897_v54 = vmax.f32 %v1895_v0, %v1896_v8  ;;  %v4077_v37 = vpack.i.bf16 %v1848_v42, %v1848_v42  ;;  %v1888_v43 = vmax.f32 %v1886_v62, %v1887_v10 }
  0xd9   :  { %5769 = vst [vmem:[#allocation40_spill] sm:$0xff] %v4073_v34  ;;  %v1859_v56 = vmax.f32 %v1857_v19, %v1858_v4  ;;  %v1906_v52 = vunpack.i.l.bf16 %v1905_v27  ;;  %v1879_v45 = vmax.f32 %v1877_v17, %v1878_v26  ;;  %v1907_v55 = vunpack.i.h.bf16 %v1905_v27  ;;  %v3466_v17 = vld [vmem:[%s5637_s0 + $0x298] sm:$0x1f]   ;;  %v3467_v26 = vld [vmem:[%s5637_s0 + $0x2a0] sm:$0x1f]  }
  0xda   :  { %5770 = vst [vmem:[#allocation41_spill] sm:$0xff] %v4077_v37  ;;  %v1869_v22 = vrot.slane %v1868_v24, 1  ;;  %v1898_v39 = vrot.slane %v1897_v54, 4  ;;  %v1889_v30 = vrot.slane %v1888_v43, 2  ;;  %v1916_v13 = vsel %vm3539_vm2, %v3463_v9, 4286644096 }
  0xdb   :  { %v4082_v34 = vpack.i.bf16 %v1859_v56, %v1859_v56  ;;  %v1927_v1 = vsel %vm3539_vm2, %v3464_v50, 4286644096  ;;  %v1880_v62 = vrot.slane %v1879_v45, 1  ;;  %v1908_v8 = vmax.f32 %v1906_v52, %v1907_v55 }
  0xdc   :  { %v1870_v19 = vmax.f32 %v1868_v24, %v1869_v22  ;;  %v1899_v0 = vmax.f32 %v1897_v54, %v1898_v39  ;;  %v1890_v42 = vmax.f32 %v1888_v43, %v1889_v30  ;;  %v1917_v4 = vunpack.i.l.bf16 %v1916_v13 }
  0xdd   :  { %5771 = vst [vmem:[#allocation42_spill] sm:$0xff] %v4082_v34  ;;  %v1918_v10 = vunpack.i.h.bf16 %v1916_v13  ;;  %v1928_v37 = vunpack.i.l.bf16 %v1927_v1  ;;  %v1881_v27 = vmax.f32 %v1879_v45, %v1880_v62  ;;  %v1909_v24 = vrot.slane %v1908_v8, 4 }
  0xde   :  { %v4094_v9 = vpack.i.bf16 %v1870_v19, %v1870_v19  ;;  %v1900_v50 = vrot.slane %v1899_v0, 2  ;;  %v1891_v56 = vrot.slane %v1890_v42, 1  ;;  %v1929_v52 = vunpack.i.h.bf16 %v1927_v1 }
  0xdf   :  { %v1919_v54 = vmax.f32 %v1917_v4, %v1918_v10  ;;  %v1938_v43 = vsel %vm3539_vm2, %v3465_v41, 4286644096  ;;  %v4098_v22 = vpack.i.bf16 %v1881_v27, %v1881_v27  ;;  %v1910_v55 = vmax.f32 %v1908_v8, %v1909_v24  ;;  %v3468_v41 = vld [vmem:[%s5637_s0 + $0x2a8] sm:$0x1f]  }
  0xe0   :  { %5772 = vst [vmem:[#allocation43_spill] sm:$0xff] %v4094_v9  ;;  %v1901_v39 = vmax.f32 %v1899_v0, %v1900_v50  ;;  %v1939_v30 = vunpack.i.l.bf16 %v1938_v43  ;;  %v1892_v13 = vmax.f32 %v1890_v42, %v1891_v56  ;;  %v1930_v3 = vmax.f32 %v1928_v37, %v1929_v52 }
  0xe1   :  { %5773 = vst [vmem:[#allocation44_spill] sm:$0xff] %v4098_v22  ;;  %v1920_v34 = vrot.slane %v1919_v54, 4  ;;  %v1940_v58 = vunpack.i.h.bf16 %v1938_v43  ;;  %v1911_v9 = vrot.slane %v1910_v55, 2  ;;  %v1949_v45 = vsel %vm3539_vm2, %v3466_v17, 4286644096 }
  0xe2   :  { %v1902_v19 = vrot.slane %v1901_v39, 1  ;;  %v1960_v1 = vsel %vm3539_vm2, %v3467_v26, 4286644096  ;;  %v4107_v62 = vpack.i.bf16 %v1892_v13, %v1892_v13  ;;  %v1931_v8 = vrot.slane %v1930_v3, 4  ;;  %v3469_v26 = vld [vmem:[%s5637_s0 + $0x2b0] sm:$0x1f]  }
  0xe3   :  { %v1921_v0 = vmax.f32 %v1919_v54, %v1920_v34  ;;  %v1941_v42 = vmax.f32 %v1939_v30, %v1940_v58  ;;  %v1912_v37 = vmax.f32 %v1910_v55, %v1911_v9  ;;  %v1950_v10 = vunpack.i.l.bf16 %v1949_v45 }
  0xe4   :  { %5774 = vst [vmem:[#allocation45_spill] sm:$0xff] %v4107_v62  ;;  %v1903_v4 = vmax.f32 %v1901_v39, %v1902_v19  ;;  %v1951_v27 = vunpack.i.h.bf16 %v1949_v45  ;;  %v1932_v24 = vmax.f32 %v1930_v3, %v1931_v8  ;;  %v1961_v17 = vunpack.i.l.bf16 %v1960_v1 }
  0xe5   :  { %v1922_v50 = vrot.slane %v1921_v0, 2  ;;  %v1942_v56 = vrot.slane %v1941_v42, 4  ;;  %v1913_v43 = vrot.slane %v1912_v37, 1  ;;  %v1962_v62 = vunpack.i.h.bf16 %v1960_v1 }
  0xe6   :  { %v4112_v52 = vpack.i.bf16 %v1903_v4, %v1903_v4  ;;  %v1952_v13 = vmax.f32 %v1950_v10, %v1951_v27  ;;  %v1933_v54 = vrot.slane %v1932_v24, 2  ;;  %v1971_v9 = vsel %vm3539_vm2, %v3468_v41, 4286644096  ;;  %v3470_v4 = vld [vmem:[%s5637_s0 + $0x2b8] sm:$0x1f]  }
  0xe7   :  { %v1923_v34 = vmax.f32 %v1921_v0, %v1922_v50  ;;  %v1943_v58 = vmax.f32 %v1941_v42, %v1942_v56  ;;  %v1914_v39 = vmax.f32 %v1912_v37, %v1913_v43  ;;  %v1963_v3 = vmax.f32 %v1961_v17, %v1962_v62  ;;  %v3471_v43 = vld [vmem:[%s5637_s0 + $0x2c0] sm:$0x1f]  }
  0xe8   :  { %5775 = vst [vmem:[#allocation46_spill] sm:$0xff] %v4112_v52  ;;  %v1953_v55 = vrot.slane %v1952_v13, 4  ;;  %v1972_v30 = vunpack.i.l.bf16 %v1971_v9  ;;  %v1934_v45 = vmax.f32 %v1932_v24, %v1933_v54  ;;  %v1973_v22 = vunpack.i.h.bf16 %v1971_v9 }
  0xe9   :  { %v1924_v19 = vrot.slane %v1923_v34, 1  ;;  %v1944_v8 = vrot.slane %v1943_v58, 2  ;;  %v4119_v10 = vpack.i.bf16 %v1914_v39, %v1914_v39  ;;  %v1964_v0 = vrot.slane %v1963_v3, 4 }
  0xea   :  { %v1954_v1 = vmax.f32 %v1952_v13, %v1953_v55  ;;  %v1982_v42 = vsel %vm3539_vm2, %v3469_v26, 4286644096  ;;  %v1935_v37 = vrot.slane %v1934_v45, 1  ;;  %v1974_v62 = vmax.f32 %v1972_v30, %v1973_v22  ;;  %v3472_v13 = vld [vmem:[%s5637_s0 + $0x2c8] sm:$0x1f]  }
  0xeb   :  { %5776 = vst [vmem:[#allocation47_spill] sm:$0xff] %v4119_v10  ;;  %v1925_v41 = vmax.f32 %v1923_v34, %v1924_v19  ;;  %v1945_v27 = vmax.f32 %v1943_v58, %v1944_v8  ;;  %v1965_v56 = vmax.f32 %v1963_v3, %v1964_v0  ;;  %v1983_v24 = vunpack.i.l.bf16 %v1982_v42  ;;  %v3473_v0 = vld [vmem:[%s5637_s0 + $0x2d0] sm:$0x1f]  }
  0xec   :  { %v1955_v50 = vrot.slane %v1954_v1, 2  ;;  %v1984_v17 = vunpack.i.h.bf16 %v1982_v42  ;;  %v1936_v9 = vmax.f32 %v1934_v45, %v1935_v37  ;;  %v1975_v34 = vrot.slane %v1974_v62, 4 }
  0xed   :  { %v4129_v54 = vpack.i.bf16 %v1925_v41, %v1925_v41  ;;  %v1946_v26 = vrot.slane %v1945_v27, 1  ;;  %v1966_v58 = vrot.slane %v1965_v56, 2  ;;  %v1993_v55 = vsel %vm3539_vm2, %v3470_v4, 4286644096 }
  0xee   :  { %v1956_v39 = vmax.f32 %v1954_v1, %v1955_v50  ;;  %v1985_v22 = vmax.f32 %v1983_v24, %v1984_v17  ;;  %v4133_v3 = vpack.i.bf16 %v1936_v9, %v1936_v9  ;;  %v1976_v19 = vmax.f32 %v1974_v62, %v1975_v34 }
  0xef   :  { %5777 = vst [vmem:[#allocation48_spill] sm:$0xff] %v4129_v54  ;;  %v1947_v30 = vmax.f32 %v1945_v27, %v1946_v26  ;;  %v1994_v8 = vunpack.i.l.bf16 %v1993_v55  ;;  %v1967_v41 = vmax.f32 %v1965_v56, %v1966_v58  ;;  %v1995_v37 = vunpack.i.h.bf16 %v1993_v55  ;;  %v3474_v56 = vld [vmem:[%s5637_s0 + $0x2d8] sm:$0x1f]   ;;  %v3475_v58 = vld [vmem:[%s5637_s0 + $0x2e0] sm:$0x1f]  }
  0xf0   :  { %5778 = vst [vmem:[#allocation49_spill] sm:$0xff] %v4133_v3  ;;  %v1957_v42 = vrot.slane %v1956_v39, 1  ;;  %v1986_v45 = vrot.slane %v1985_v22, 4  ;;  %v1977_v1 = vrot.slane %v1976_v19, 2  ;;  %v2004_v50 = vsel %vm3539_vm2, %v3471_v43, 4286644096 }
  0xf1   :  { %v4138_v54 = vpack.i.bf16 %v1947_v30, %v1947_v30  ;;  %v2015_v4 = vsel %vm3539_vm2, %v3472_v13, 4286644096  ;;  %v1968_v62 = vrot.slane %v1967_v41, 1  ;;  %v1996_v17 = vmax.f32 %v1994_v8, %v1995_v37 }
  0xf2   :  { %v1958_v27 = vmax.f32 %v1956_v39, %v1957_v42  ;;  %v1987_v24 = vmax.f32 %v1985_v22, %v1986_v45  ;;  %v1978_v9 = vmax.f32 %v1976_v19, %v1977_v1  ;;  %v2005_v26 = vunpack.i.l.bf16 %v2004_v50 }
  0xf3   :  { %5779 = vst [vmem:[#allocation50_spill] sm:$0xff] %v4138_v54  ;;  %v2006_v34 = vunpack.i.h.bf16 %v2004_v50  ;;  %v2016_v3 = vunpack.i.l.bf16 %v2015_v4  ;;  %v1969_v55 = vmax.f32 %v1967_v41, %v1968_v62  ;;  %v1997_v39 = vrot.slane %v1996_v17, 4 }
  0xf4   :  { %v4150_v43 = vpack.i.bf16 %v1958_v27, %v1958_v27  ;;  %v1988_v13 = vrot.slane %v1987_v24, 2  ;;  %v1979_v30 = vrot.slane %v1978_v9, 1  ;;  %v2017_v8 = vunpack.i.h.bf16 %v2015_v4 }
  0xf5   :  { %v2007_v22 = vmax.f32 %v2005_v26, %v2006_v34  ;;  %v2026_v19 = vsel %vm3539_vm2, %v3473_v0, 4286644096  ;;  %v4154_v42 = vpack.i.bf16 %v1969_v55, %v1969_v55  ;;  %v1998_v37 = vmax.f32 %v1996_v17, %v1997_v39  ;;  %v3476_v0 = vld [vmem:[%s5637_s0 + $0x2e8] sm:$0x1f]  }
  0xf6   :  { %5780 = vst [vmem:[#allocation51_spill] sm:$0xff] %v4150_v43  ;;  %v1989_v45 = vmax.f32 %v1987_v24, %v1988_v13  ;;  %v2027_v1 = vunpack.i.l.bf16 %v2026_v19  ;;  %v1980_v50 = vmax.f32 %v1978_v9, %v1979_v30  ;;  %v2018_v10 = vmax.f32 %v2016_v3, %v2017_v8 }
  0xf7   :  { %5781 = vst [vmem:[#allocation52_spill] sm:$0xff] %v4154_v42  ;;  %v2008_v54 = vrot.slane %v2007_v22, 4  ;;  %v2028_v52 = vunpack.i.h.bf16 %v2026_v19  ;;  %v1999_v43 = vrot.slane %v1998_v37, 2  ;;  %v2037_v41 = vsel %vm3539_vm2, %v3474_v56, 4286644096 }
  0xf8   :  { %v1990_v27 = vrot.slane %v1989_v45, 1  ;;  %v2048_v4 = vsel %vm3539_vm2, %v3475_v58, 4286644096  ;;  %v4163_v62 = vpack.i.bf16 %v1980_v50, %v1980_v50  ;;  %v2019_v17 = vrot.slane %v2018_v10, 4  ;;  %v3477_v58 = vld [vmem:[%s5637_s0 + $0x2f0] sm:$0x1f]  }
  0xf9   :  { %v2009_v24 = vmax.f32 %v2007_v22, %v2008_v54  ;;  %v2029_v9 = vmax.f32 %v2027_v1, %v2028_v52  ;;  %v2000_v3 = vmax.f32 %v1998_v37, %v1999_v43  ;;  %v2038_v34 = vunpack.i.l.bf16 %v2037_v41 }
  0xfa   :  { %5782 = vst [vmem:[#allocation53_spill] sm:$0xff] %v4163_v62  ;;  %v1991_v26 = vmax.f32 %v1989_v45, %v1990_v27  ;;  %v2039_v55 = vunpack.i.h.bf16 %v2037_v41  ;;  %v2020_v39 = vmax.f32 %v2018_v10, %v2019_v17  ;;  %v2049_v56 = vunpack.i.l.bf16 %v2048_v4 }
  0xfb   :  { %v2010_v13 = vrot.slane %v2009_v24, 2  ;;  %v2030_v30 = vrot.slane %v2029_v9, 4  ;;  %v2001_v19 = vrot.slane %v2000_v3, 1  ;;  %v2050_v62 = vunpack.i.h.bf16 %v2048_v4 }
  0xfc   :  { %v4168_v8 = vpack.i.bf16 %v1991_v26, %v1991_v26  ;;  %v2040_v50 = vmax.f32 %v2038_v34, %v2039_v55  ;;  %v2021_v22 = vrot.slane %v2020_v39, 2  ;;  %v2059_v43 = vsel %vm3539_vm2, %v3476_v0, 4286644096  ;;  %v3478_v26 = vld [vmem:[%s5637_s0 + $0x2f8] sm:$0x1f]  }
  0xfd   :  { %v2011_v54 = vmax.f32 %v2009_v24, %v2010_v13  ;;  %v2031_v52 = vmax.f32 %v2029_v9, %v2030_v30  ;;  %v2002_v45 = vmax.f32 %v2000_v3, %v2001_v19  ;;  %v2051_v10 = vmax.f32 %v2049_v56, %v2050_v62  ;;  %v3479_v19 = vld [vmem:[%s5637_s0 + $0x300] sm:$0x1f]  }
  0xfe   :  { %5783 = vst [vmem:[#allocation54_spill] sm:$0xff] %v4168_v8  ;;  %v2041_v37 = vrot.slane %v2040_v50, 4  ;;  %v2060_v1 = vunpack.i.l.bf16 %v2059_v43  ;;  %v2022_v41 = vmax.f32 %v2020_v39, %v2021_v22  ;;  %v2061_v42 = vunpack.i.h.bf16 %v2059_v43 }
  0xff   :  { %v2012_v27 = vrot.slane %v2011_v54, 1  ;;  %v2032_v17 = vrot.slane %v2031_v52, 2  ;;  %v4175_v34 = vpack.i.bf16 %v2002_v45, %v2002_v45  ;;  %v2052_v24 = vrot.slane %v2051_v10, 4 }
 0x100   :  { %v2042_v4 = vmax.f32 %v2040_v50, %v2041_v37  ;;  %v2070_v9 = vsel %vm3539_vm2, %v3477_v58, 4286644096  ;;  %v2023_v3 = vrot.slane %v2022_v41, 1  ;;  %v2062_v62 = vmax.f32 %v2060_v1, %v2061_v42  ;;  %v3480_v50 = vld [vmem:[%s5637_s0 + $0x308] sm:$0x1f]  }
 0x101   :  { %5784 = vst [vmem:[#allocation55_spill] sm:$0xff] %v4175_v34  ;;  %v2013_v0 = vmax.f32 %v2011_v54, %v2012_v27  ;;  %v2033_v55 = vmax.f32 %v2031_v52, %v2032_v17  ;;  %v2053_v30 = vmax.f32 %v2051_v10, %v2052_v24  ;;  %v2071_v39 = vunpack.i.l.bf16 %v2070_v9  ;;  %v3481_v24 = vld [vmem:[%s5637_s0 + $0x310] sm:$0x1f]  }
 0x102   :  { %v2043_v13 = vrot.slane %v2042_v4, 2  ;;  %v2072_v56 = vunpack.i.h.bf16 %v2070_v9  ;;  %v2024_v43 = vmax.f32 %v2022_v41, %v2023_v3  ;;  %v2063_v54 = vrot.slane %v2062_v62, 4 }
 0x103   :  { %v4185_v22 = vpack.i.bf16 %v2013_v0, %v2013_v0  ;;  %v2034_v58 = vrot.slane %v2033_v55, 1  ;;  %v2054_v52 = vrot.slane %v2053_v30, 2  ;;  %v2081_v37 = vsel %vm3539_vm2, %v3478_v26, 4286644096 }
 0x104   :  { %v2044_v45 = vmax.f32 %v2042_v4, %v2043_v13  ;;  %v2073_v42 = vmax.f32 %v2071_v39, %v2072_v56  ;;  %v4189_v10 = vpack.i.bf16 %v2024_v43, %v2024_v43  ;;  %v2064_v27 = vmax.f32 %v2062_v62, %v2063_v54 }
 0x105   :  { %5785 = vst [vmem:[#allocation56_spill] sm:$0xff] %v4185_v22  ;;  %v2035_v1 = vmax.f32 %v2033_v55, %v2034_v58  ;;  %v2082_v17 = vunpack.i.l.bf16 %v2081_v37  ;;  %v2055_v0 = vmax.f32 %v2053_v30, %v2054_v52  ;;  %v2083_v3 = vunpack.i.h.bf16 %v2081_v37  ;;  %v3482_v30 = vld [vmem:[%s5637_s0 + $0x318] sm:$0x1f]   ;;  %v3483_v52 = vld [vmem:[%s5637_s0 + $0x320] sm:$0x1f]  }
 0x106   :  { %5786 = vst [vmem:[#allocation57_spill] sm:$0xff] %v4189_v10  ;;  %v2045_v9 = vrot.slane %v2044_v45, 1  ;;  %v2074_v41 = vrot.slane %v2073_v42, 4  ;;  %v2065_v4 = vrot.slane %v2064_v27, 2  ;;  %v2092_v13 = vsel %vm3539_vm2, %v3479_v19, 4286644096 }
 0x107   :  { %v4194_v22 = vpack.i.bf16 %v2035_v1, %v2035_v1  ;;  %v2103_v26 = vsel %vm3539_vm2, %v3480_v50, 4286644096  ;;  %v2056_v62 = vrot.slane %v2055_v0, 1  ;;  %v2084_v56 = vmax.f32 %v2082_v17, %v2083_v3 }
 0x108   :  { %v2046_v55 = vmax.f32 %v2044_v45, %v2045_v9  ;;  %v2075_v39 = vmax.f32 %v2073_v42, %v2074_v41  ;;  %v2066_v43 = vmax.f32 %v2064_v27, %v2065_v4  ;;  %v2093_v58 = vunpack.i.l.bf16 %v2092_v13 }
 0x109   :  { %5787 = vst [vmem:[#allocation58_spill] sm:$0xff] %v4194_v22  ;;  %v2094_v54 = vunpack.i.h.bf16 %v2092_v13  ;;  %v2104_v10 = vunpack.i.l.bf16 %v2103_v26  ;;  %v2057_v37 = vmax.f32 %v2055_v0, %v2056_v62  ;;  %v2085_v45 = vrot.slane %v2084_v56, 4 }
 0x10a   :  { %v4206_v19 = vpack.i.bf16 %v2046_v55, %v2046_v55  ;;  %v2076_v50 = vrot.slane %v2075_v39, 2  ;;  %v2067_v1 = vrot.slane %v2066_v43, 1  ;;  %v2105_v17 = vunpack.i.h.bf16 %v2103_v26 }
 0x10b   :  { %v2095_v42 = vmax.f32 %v2093_v58, %v2094_v54  ;;  %v2114_v27 = vsel %vm3539_vm2, %v3481_v24, 4286644096  ;;  %v4210_v9 = vpack.i.bf16 %v2057_v37, %v2057_v37  ;;  %v2086_v3 = vmax.f32 %v2084_v56, %v2085_v45  ;;  %v3484_v24 = vld [vmem:[%s5637_s0 + $0x328] sm:$0x1f]  }
 0x10c   :  { %5788 = vst [vmem:[#allocation59_spill] sm:$0xff] %v4206_v19  ;;  %v2077_v41 = vmax.f32 %v2075_v39, %v2076_v50  ;;  %v2115_v4 = vunpack.i.l.bf16 %v2114_v27  ;;  %v2068_v13 = vmax.f32 %v2066_v43, %v2067_v1  ;;  %v2106_v34 = vmax.f32 %v2104_v10, %v2105_v17 }
 0x10d   :  { %5789 = vst [vmem:[#allocation60_spill] sm:$0xff] %v4210_v9  ;;  %v2096_v22 = vrot.slane %v2095_v42, 4  ;;  %v2116_v8 = vunpack.i.h.bf16 %v2114_v27  ;;  %v2087_v19 = vrot.slane %v2086_v3, 2  ;;  %v2125_v0 = vsel %vm3539_vm2, %v3482_v30, 4286644096 }
 0x10e   :  { %v2078_v55 = vrot.slane %v2077_v41, 1  ;;  %v2136_v26 = vsel %vm3539_vm2, %v3483_v52, 4286644096  ;;  %v4219_v62 = vpack.i.bf16 %v2068_v13, %v2068_v13  ;;  %v2107_v56 = vrot.slane %v2106_v34, 4  ;;  %v3485_v52 = vld [vmem:[%s5637_s0 + $0x330] sm:$0x1f]  }
 0x10f   :  { %v2097_v39 = vmax.f32 %v2095_v42, %v2096_v22  ;;  %v2117_v43 = vmax.f32 %v2115_v4, %v2116_v8  ;;  %v2088_v10 = vmax.f32 %v2086_v3, %v2087_v19  ;;  %v2126_v54 = vunpack.i.l.bf16 %v2125_v0 }
 0x110   :  { %5790 = vst [vmem:[#allocation61_spill] sm:$0xff] %v4219_v62  ;;  %v2079_v58 = vmax.f32 %v2077_v41, %v2078_v55  ;;  %v2127_v37 = vunpack.i.h.bf16 %v2125_v0  ;;  %v2108_v45 = vmax.f32 %v2106_v34, %v2107_v56  ;;  %v2137_v30 = vunpack.i.l.bf16 %v2136_v26 }
 0x111   :  { %v2098_v50 = vrot.slane %v2097_v39, 2  ;;  %v2118_v1 = vrot.slane %v2117_v43, 4  ;;  %v2089_v27 = vrot.slane %v2088_v10, 1  ;;  %v2138_v62 = vunpack.i.h.bf16 %v2136_v26 }
 0x112   :  { %v4224_v17 = vpack.i.bf16 %v2079_v58, %v2079_v58  ;;  %v2128_v13 = vmax.f32 %v2126_v54, %v2127_v37  ;;  %v2109_v42 = vrot.slane %v2108_v45, 2  ;;  %v2147_v19 = vsel %vm3539_vm2, %v3484_v24, 4286644096  ;;  %v3486_v58 = vld [vmem:[%s5637_s0 + $0x338] sm:$0x1f]  }
 0x113   :  { %v2099_v22 = vmax.f32 %v2097_v39, %v2098_v50  ;;  %v2119_v8 = vmax.f32 %v2117_v43, %v2118_v1  ;;  %v2090_v41 = vmax.f32 %v2088_v10, %v2089_v27  ;;  %v2139_v34 = vmax.f32 %v2137_v30, %v2138_v62  ;;  %v3487_v27 = vld [vmem:[%s5637_s0 + $0x340] sm:$0x1f]  }
 0x114   :  { %5791 = vst [vmem:[#allocation62_spill] sm:$0xff] %v4224_v17  ;;  %v2129_v3 = vrot.slane %v2128_v13, 4  ;;  %v2148_v4 = vunpack.i.l.bf16 %v2147_v19  ;;  %v2110_v0 = vmax.f32 %v2108_v45, %v2109_v42  ;;  %v2149_v9 = vunpack.i.h.bf16 %v2147_v19 }
 0x115   :  { %v2100_v55 = vrot.slane %v2099_v22, 1  ;;  %v2120_v56 = vrot.slane %v2119_v8, 2  ;;  %v4231_v54 = vpack.i.bf16 %v2090_v41, %v2090_v41  ;;  %v2140_v39 = vrot.slane %v2139_v34, 4 }
 0x116   :  { %v2130_v26 = vmax.f32 %v2128_v13, %v2129_v3  ;;  %v2158_v43 = vsel %vm3539_vm2, %v3485_v52, 4286644096  ;;  %v2111_v10 = vrot.slane %v2110_v0, 1  ;;  %v2150_v62 = vmax.f32 %v2148_v4, %v2149_v9  ;;  %v3488_v13 = vld [vmem:[%s5637_s0 + $0x348] sm:$0x1f]  }
 0x117   :  { %5792 = vst [vmem:[#allocation63_spill] sm:$0xff] %v4231_v54  ;;  %v2101_v24 = vmax.f32 %v2099_v22, %v2100_v55  ;;  %v2121_v37 = vmax.f32 %v2119_v8, %v2120_v56  ;;  %v2141_v1 = vmax.f32 %v2139_v34, %v2140_v39  ;;  %v2159_v45 = vunpack.i.l.bf16 %v2158_v43  ;;  %v3489_v39 = vld [vmem:[%s5637_s0 + $0x350] sm:$0x1f]  }
 0x118   :  { %v2131_v50 = vrot.slane %v2130_v26, 2  ;;  %v2160_v30 = vunpack.i.h.bf16 %v2158_v43  ;;  %v2112_v19 = vmax.f32 %v2110_v0, %v2111_v10  ;;  %v2151_v22 = vrot.slane %v2150_v62, 4 }
 0x119   :  { %v4241_v42 = vpack.i.bf16 %v2101_v24, %v2101_v24  ;;  %v2122_v52 = vrot.slane %v2121_v37, 1  ;;  %v2142_v8 = vrot.slane %v2141_v1, 2  ;;  %v2169_v3 = vsel %vm3539_vm2, %v3486_v58, 4286644096 }
 0x11a   :  { %v2132_v41 = vmax.f32 %v2130_v26, %v2131_v50  ;;  %v2161_v9 = vmax.f32 %v2159_v45, %v2160_v30  ;;  %v4245_v34 = vpack.i.bf16 %v2112_v19, %v2112_v19  ;;  %v2152_v55 = vmax.f32 %v2150_v62, %v2151_v22 }
 0x11b   :  { %5793 = vst [vmem:[#allocation64_spill] sm:$0xff] %v4241_v42  ;;  %v2123_v4 = vmax.f32 %v2121_v37, %v2122_v52  ;;  %v2170_v56 = vunpack.i.l.bf16 %v2169_v3  ;;  %v2143_v24 = vmax.f32 %v2141_v1, %v2142_v8  ;;  %v2171_v10 = vunpack.i.h.bf16 %v2169_v3  ;;  %v3490_v1 = vld [vmem:[%s5637_s0 + $0x358] sm:$0x1f]   ;;  %v3491_v8 = vld [vmem:[%s5637_s0 + $0x360] sm:$0x1f]  }
 0x11c   :  { %5794 = vst [vmem:[#allocation65_spill] sm:$0xff] %v4245_v34  ;;  %v2133_v43 = vrot.slane %v2132_v41, 1  ;;  %v2162_v0 = vrot.slane %v2161_v9, 4  ;;  %v2153_v26 = vrot.slane %v2152_v55, 2  ;;  %v2180_v50 = vsel %vm3539_vm2, %v3487_v27, 4286644096 }
 0x11d   :  { %v4250_v42 = vpack.i.bf16 %v2123_v4, %v2123_v4  ;;  %v2191_v58 = vsel %vm3539_vm2, %v3488_v13, 4286644096  ;;  %v2144_v62 = vrot.slane %v2143_v24, 1  ;;  %v2172_v30 = vmax.f32 %v2170_v56, %v2171_v10 }
 0x11e   :  { %v2134_v37 = vmax.f32 %v2132_v41, %v2133_v43  ;;  %v2163_v45 = vmax.f32 %v2161_v9, %v2162_v0  ;;  %v2154_v19 = vmax.f32 %v2152_v55, %v2153_v26  ;;  %v2181_v52 = vunpack.i.l.bf16 %v2180_v50 }
 0x11f   :  { %5795 = vst [vmem:[#allocation66_spill] sm:$0xff] %v4250_v42  ;;  %v2182_v22 = vunpack.i.h.bf16 %v2180_v50  ;;  %v2192_v34 = vunpack.i.l.bf16 %v2191_v58  ;;  %v2145_v3 = vmax.f32 %v2143_v24, %v2144_v62  ;;  %v2173_v41 = vrot.slane %v2172_v30, 4 }
 0x120   :  { %v4262_v27 = vpack.i.bf16 %v2134_v37, %v2134_v37  ;;  %v2164_v13 = vrot.slane %v2163_v45, 2  ;;  %v2155_v4 = vrot.slane %v2154_v19, 1  ;;  %v2193_v56 = vunpack.i.h.bf16 %v2191_v58 }
 0x121   :  { %v2183_v9 = vmax.f32 %v2181_v52, %v2182_v22  ;;  %v2202_v55 = vsel %vm3539_vm2, %v3489_v39, 4286644096  ;;  %v4266_v43 = vpack.i.bf16 %v2145_v3, %v2145_v3  ;;  %v2174_v10 = vmax.f32 %v2172_v30, %v2173_v41  ;;  %v3492_v39 = vld [vmem:[%s5637_s0 + $0x368] sm:$0x1f]  }
 0x122   :  { %5796 = vst [vmem:[#allocation67_spill] sm:$0xff] %v4262_v27  ;;  %v2165_v0 = vmax.f32 %v2163_v45, %v2164_v13  ;;  %v2203_v26 = vunpack.i.l.bf16 %v2202_v55  ;;  %v2156_v50 = vmax.f32 %v2154_v19, %v2155_v4  ;;  %v2194_v54 = vmax.f32 %v2192_v34, %v2193_v56 }
 0x123   :  { %5797 = vst [vmem:[#allocation68_spill] sm:$0xff] %v4266_v43  ;;  %v2184_v42 = vrot.slane %v2183_v9, 4  ;;  %v2204_v17 = vunpack.i.h.bf16 %v2202_v55  ;;  %v2175_v27 = vrot.slane %v2174_v10, 2  ;;  %v2213_v24 = vsel %vm3539_vm2, %v3490_v1, 4286644096 }
 0x124   :  { %v2166_v37 = vrot.slane %v2165_v0, 1  ;;  %v2224_v58 = vsel %vm3539_vm2, %v3491_v8, 4286644096  ;;  %v4275_v62 = vpack.i.bf16 %v2156_v50, %v2156_v50  ;;  %v2195_v30 = vrot.slane %v2194_v54, 4  ;;  %v3493_v8 = vld [vmem:[%s5637_s0 + $0x370] sm:$0x1f]  }
 0x125   :  { %v2185_v45 = vmax.f32 %v2183_v9, %v2184_v42  ;;  %v2205_v19 = vmax.f32 %v2203_v26, %v2204_v17  ;;  %v2176_v34 = vmax.f32 %v2174_v10, %v2175_v27  ;;  %v2214_v22 = vunpack.i.l.bf16 %v2213_v24 }
 0x126   :  { %5798 = vst [vmem:[#allocation69_spill] sm:$0xff] %v4275_v62  ;;  %v2167_v52 = vmax.f32 %v2165_v0, %v2166_v37  ;;  %v2215_v3 = vunpack.i.h.bf16 %v2213_v24  ;;  %v2196_v41 = vmax.f32 %v2194_v54, %v2195_v30  ;;  %v2225_v1 = vunpack.i.l.bf16 %v2224_v58 }
 0x127   :  { %v2186_v13 = vrot.slane %v2185_v45, 2  ;;  %v2206_v4 = vrot.slane %v2205_v19, 4  ;;  %v2177_v55 = vrot.slane %v2176_v34, 1  ;;  %v2226_v62 = vunpack.i.h.bf16 %v2224_v58 }
 0x128   :  { %v4280_v56 = vpack.i.bf16 %v2167_v52, %v2167_v52  ;;  %v2216_v50 = vmax.f32 %v2214_v22, %v2215_v3  ;;  %v2197_v9 = vrot.slane %v2196_v41, 2  ;;  %v2235_v27 = vsel %vm3539_vm2, %v3492_v39, 4286644096  ;;  %v3494_v52 = vld [vmem:[%s5637_s0 + $0x378] sm:$0x1f]  }
 0x129   :  { %v2187_v42 = vmax.f32 %v2185_v45, %v2186_v13  ;;  %v2207_v17 = vmax.f32 %v2205_v19, %v2206_v4  ;;  %v2178_v0 = vmax.f32 %v2176_v34, %v2177_v55  ;;  %v2227_v54 = vmax.f32 %v2225_v1, %v2226_v62  ;;  %v3495_v55 = vld [vmem:[%s5637_s0 + $0x380] sm:$0x1f]  }
 0x12a   :  { %5799 = vst [vmem:[#allocation70_spill] sm:$0xff] %v4280_v56  ;;  %v2217_v10 = vrot.slane %v2216_v50, 4  ;;  %v2236_v26 = vunpack.i.l.bf16 %v2235_v27  ;;  %v2198_v24 = vmax.f32 %v2196_v41, %v2197_v9  ;;  %v2237_v43 = vunpack.i.h.bf16 %v2235_v27 }
 0x12b   :  { %v2188_v37 = vrot.slane %v2187_v42, 1  ;;  %v2208_v30 = vrot.slane %v2207_v17, 2  ;;  %v4287_v22 = vpack.i.bf16 %v2178_v0, %v2178_v0  ;;  %v2228_v45 = vrot.slane %v2227_v54, 4 }
 0x12c   :  { %v2218_v58 = vmax.f32 %v2216_v50, %v2217_v10  ;;  %v2246_v19 = vsel %vm3539_vm2, %v3493_v8, 4286644096  ;;  %v2199_v34 = vrot.slane %v2198_v24, 1  ;;  %v2238_v62 = vmax.f32 %v2236_v26, %v2237_v43  ;;  %v3496_v50 = vld [vmem:[%s5637_s0 + $0x388] sm:$0x1f]  }
 0x12d   :  { %5800 = vst [vmem:[#allocation71_spill] sm:$0xff] %v4287_v22  ;;  %v2189_v39 = vmax.f32 %v2187_v42, %v2188_v37  ;;  %v2209_v3 = vmax.f32 %v2207_v17, %v2208_v30  ;;  %v2229_v4 = vmax.f32 %v2227_v54, %v2228_v45  ;;  %v2247_v41 = vunpack.i.l.bf16 %v2246_v19  ;;  %v3497_v45 = vld [vmem:[%s5637_s0 + $0x390] sm:$0x1f]  }
 0x12e   :  { %v2219_v13 = vrot.slane %v2218_v58, 2  ;;  %v2248_v1 = vunpack.i.h.bf16 %v2246_v19  ;;  %v2200_v27 = vmax.f32 %v2198_v24, %v2199_v34  ;;  %v2239_v42 = vrot.slane %v2238_v62, 4 }
 0x12f   :  { %v4297_v9 = vpack.i.bf16 %v2189_v39, %v2189_v39  ;;  %v2210_v8 = vrot.slane %v2209_v3, 1  ;;  %v2230_v17 = vrot.slane %v2229_v4, 2  ;;  %v2257_v10 = vsel %vm3539_vm2, %v3494_v52, 4286644096 }
 0x130   :  { %v2220_v0 = vmax.f32 %v2218_v58, %v2219_v13  ;;  %v2249_v43 = vmax.f32 %v2247_v41, %v2248_v1  ;;  %v4301_v54 = vpack.i.bf16 %v2200_v27, %v2200_v27  ;;  %v2240_v37 = vmax.f32 %v2238_v62, %v2239_v42 }
 0x131   :  { %5801 = vst [vmem:[#allocation72_spill] sm:$0xff] %v4297_v9  ;;  %v2211_v26 = vmax.f32 %v2209_v3, %v2210_v8  ;;  %v2258_v30 = vunpack.i.l.bf16 %v2257_v10  ;;  %v2231_v39 = vmax.f32 %v2229_v4, %v2230_v17  ;;  %v2259_v34 = vunpack.i.h.bf16 %v2257_v10  ;;  %v3498_v4 = vld [vmem:[%s5637_s0 + $0x398] sm:$0x1f]   ;;  %v3499_v17 = vld [vmem:[%s5637_s0 + $0x3a0] sm:$0x1f]  }
 0x132   :  { %5802 = vst [vmem:[#allocation73_spill] sm:$0xff] %v4301_v54  ;;  %v2221_v19 = vrot.slane %v2220_v0, 1  ;;  %v2250_v24 = vrot.slane %v2249_v43, 4  ;;  %v2241_v58 = vrot.slane %v2240_v37, 2  ;;  %v2268_v13 = vsel %vm3539_vm2, %v3495_v55, 4286644096 }
 0x133   :  { %v4306_v9 = vpack.i.bf16 %v2211_v26, %v2211_v26  ;;  %v2279_v52 = vsel %vm3539_vm2, %v3496_v50, 4286644096  ;;  %v2232_v62 = vrot.slane %v2231_v39, 1  ;;  %v2260_v1 = vmax.f32 %v2258_v30, %v2259_v34 }
 0x134   :  { %v2222_v3 = vmax.f32 %v2220_v0, %v2221_v19  ;;  %v2251_v41 = vmax.f32 %v2249_v43, %v2250_v24  ;;  %v2242_v27 = vmax.f32 %v2240_v37, %v2241_v58  ;;  %v2269_v8 = vunpack.i.l.bf16 %v2268_v13 }
 0x135   :  { %5803 = vst [vmem:[#allocation74_spill] sm:$0xff] %v4306_v9  ;;  %v2270_v42 = vunpack.i.h.bf16 %v2268_v13  ;;  %v2280_v54 = vunpack.i.l.bf16 %v2279_v52  ;;  %v2233_v10 = vmax.f32 %v2231_v39, %v2232_v62  ;;  %v2261_v0 = vrot.slane %v2260_v1, 4 }
 0x136   :  { %v4318_v55 = vpack.i.bf16 %v2222_v3, %v2222_v3  ;;  %v2252_v50 = vrot.slane %v2251_v41, 2  ;;  %v2243_v26 = vrot.slane %v2242_v27, 1  ;;  %v2281_v30 = vunpack.i.h.bf16 %v2279_v52 }
 0x137   :  { %v2271_v43 = vmax.f32 %v2269_v8, %v2270_v42  ;;  %v2290_v37 = vsel %vm3539_vm2, %v3497_v45, 4286644096  ;;  %v4322_v19 = vpack.i.bf16 %v2233_v10, %v2233_v10  ;;  %v2262_v34 = vmax.f32 %v2260_v1, %v2261_v0  ;;  %v3500_v45 = vld [vmem:[%s5637_s0 + $0x3a8] sm:$0x1f]  }
 0x138   :  { %5804 = vst [vmem:[#allocation75_spill] sm:$0xff] %v4318_v55  ;;  %v2253_v24 = vmax.f32 %v2251_v41, %v2252_v50  ;;  %v2291_v58 = vunpack.i.l.bf16 %v2290_v37  ;;  %v2244_v13 = vmax.f32 %v2242_v27, %v2243_v26  ;;  %v2282_v22 = vmax.f32 %v2280_v54, %v2281_v30 }
 0x139   :  { %5805 = vst [vmem:[#allocation76_spill] sm:$0xff] %v4322_v19  ;;  %v2272_v9 = vrot.slane %v2271_v43, 4  ;;  %v2292_v56 = vunpack.i.h.bf16 %v2290_v37  ;;  %v2263_v55 = vrot.slane %v2262_v34, 2  ;;  %v2301_v39 = vsel %vm3539_vm2, %v3498_v4, 4286644096 }
 0x13a   :  { %v2254_v3 = vrot.slane %v2253_v24, 1  ;;  %v2312_v52 = vsel %vm3539_vm2, %v3499_v17, 4286644096  ;;  %v4331_v62 = vpack.i.bf16 %v2244_v13, %v2244_v13  ;;  %v2283_v1 = vrot.slane %v2282_v22, 4  ;;  %v3501_v17 = vld [vmem:[%s5637_s0 + $0x3b0] sm:$0x1f]  }
 0x13b   :  { %v2273_v41 = vmax.f32 %v2271_v43, %v2272_v9  ;;  %v2293_v27 = vmax.f32 %v2291_v58, %v2292_v56  ;;  %v2264_v54 = vmax.f32 %v2262_v34, %v2263_v55  ;;  %v2302_v42 = vunpack.i.l.bf16 %v2301_v39 }
 0x13c   :  { %5806 = vst [vmem:[#allocation77_spill] sm:$0xff] %v4331_v62  ;;  %v2255_v8 = vmax.f32 %v2253_v24, %v2254_v3  ;;  %v2303_v10 = vunpack.i.h.bf16 %v2301_v39  ;;  %v2284_v0 = vmax.f32 %v2282_v22, %v2283_v1  ;;  %v2313_v4 = vunpack.i.l.bf16 %v2312_v52 }
 0x13d   :  { %v2274_v50 = vrot.slane %v2273_v41, 2  ;;  %v2294_v26 = vrot.slane %v2293_v27, 4  ;;  %v2265_v37 = vrot.slane %v2264_v54, 1  ;;  %v2314_v62 = vunpack.i.h.bf16 %v2312_v52 }
 0x13e   :  { %v4336_v30 = vpack.i.bf16 %v2255_v8, %v2255_v8  ;;  %v2304_v13 = vmax.f32 %v2302_v42, %v2303_v10  ;;  %v2285_v43 = vrot.slane %v2284_v0, 2  ;;  %v2323_v55 = vsel %vm3539_vm2, %v3500_v45, 4286644096  ;;  %v3502_v8 = vld [vmem:[%s5637_s0 + $0x3b8] sm:$0x1f]  }
 0x13f   :  { %v2275_v9 = vmax.f32 %v2273_v41, %v2274_v50  ;;  %v2295_v56 = vmax.f32 %v2293_v27, %v2294_v26  ;;  %v2266_v24 = vmax.f32 %v2264_v54, %v2265_v37  ;;  %v2315_v22 = vmax.f32 %v2313_v4, %v2314_v62  ;;  %v3503_v37 = vld [vmem:[%s5637_s0 + $0x3c0] sm:$0x1f]  }
 0x140   :  { %5807 = vst [vmem:[#allocation78_spill] sm:$0xff] %v4336_v30  ;;  %v2305_v34 = vrot.slane %v2304_v13, 4  ;;  %v2324_v58 = vunpack.i.l.bf16 %v2323_v55  ;;  %v2286_v39 = vmax.f32 %v2284_v0, %v2285_v43  ;;  %v2325_v19 = vunpack.i.h.bf16 %v2323_v55 }
 0x141   :  { %v2276_v3 = vrot.slane %v2275_v9, 1  ;;  %v2296_v1 = vrot.slane %v2295_v56, 2  ;;  %v4343_v42 = vpack.i.bf16 %v2266_v24, %v2266_v24  ;;  %v2316_v41 = vrot.slane %v2315_v22, 4 }
 0x142   :  { %v2306_v52 = vmax.f32 %v2304_v13, %v2305_v34  ;;  %v2334_v27 = vsel %vm3539_vm2, %v3501_v17, 4286644096  ;;  %v2287_v54 = vrot.slane %v2286_v39, 1  ;;  %v2326_v62 = vmax.f32 %v2324_v58, %v2325_v19  ;;  %v3504_v13 = vld [vmem:[%s5637_s0 + $0x3c8] sm:$0x1f]  }
 0x143   :  { %5808 = vst [vmem:[#allocation79_spill] sm:$0xff] %v4343_v42  ;;  %v2277_v45 = vmax.f32 %v2275_v9, %v2276_v3  ;;  %v2297_v10 = vmax.f32 %v2295_v56, %v2296_v1  ;;  %v2317_v26 = vmax.f32 %v2315_v22, %v2316_v41  ;;  %v2335_v0 = vunpack.i.l.bf16 %v2334_v27  ;;  %v3505_v41 = vld [vmem:[%s5637_s0 + $0x3d0] sm:$0x1f]  }
 0x144   :  { %v2307_v50 = vrot.slane %v2306_v52, 2  ;;  %v2336_v4 = vunpack.i.h.bf16 %v2334_v27  ;;  %v2288_v55 = vmax.f32 %v2286_v39, %v2287_v54  ;;  %v2327_v9 = vrot.slane %v2326_v62, 4 }
 0x145   :  { %v4353_v43 = vpack.i.bf16 %v2277_v45, %v2277_v45  ;;  %v2298_v17 = vrot.slane %v2297_v10, 1  ;;  %v2318_v56 = vrot.slane %v2317_v26, 2  ;;  %v2345_v34 = vsel %vm3539_vm2, %v3502_v8, 4286644096 }
 0x146   :  { %v2308_v24 = vmax.f32 %v2306_v52, %v2307_v50  ;;  %v2337_v19 = vmax.f32 %v2335_v0, %v2336_v4  ;;  %v4357_v22 = vpack.i.bf16 %v2288_v55, %v2288_v55  ;;  %v2328_v3 = vmax.f32 %v2326_v62, %v2327_v9 }
 0x147   :  { %5809 = vst [vmem:[#allocation80_spill] sm:$0xff] %v4353_v43  ;;  %v2299_v58 = vmax.f32 %v2297_v10, %v2298_v17  ;;  %v2346_v1 = vunpack.i.l.bf16 %v2345_v34  ;;  %v2319_v45 = vmax.f32 %v2317_v26, %v2318_v56  ;;  %v2347_v54 = vunpack.i.h.bf16 %v2345_v34  ;;  %v3506_v26 = vld [vmem:[%s5637_s0 + $0x3d8] sm:$0x1f]   ;;  %v3507_v56 = vld [vmem:[%s5637_s0 + $0x3e0] sm:$0x1f]  }
 0x148   :  { %5810 = vst [vmem:[#allocation81_spill] sm:$0xff] %v4357_v22  ;;  %v2309_v27 = vrot.slane %v2308_v24, 1  ;;  %v2338_v39 = vrot.slane %v2337_v19, 4  ;;  %v2329_v52 = vrot.slane %v2328_v3, 2  ;;  %v2356_v50 = vsel %vm3539_vm2, %v3503_v37, 4286644096 }
 0x149   :  { %v4362_v43 = vpack.i.bf16 %v2299_v58, %v2299_v58  ;;  %v2367_v8 = vsel %vm3539_vm2, %v3504_v13, 4286644096  ;;  %v2320_v62 = vrot.slane %v2319_v45, 1  ;;  %v2348_v4 = vmax.f32 %v2346_v1, %v2347_v54 }
 0x14a   :  { %v2310_v10 = vmax.f32 %v2308_v24, %v2309_v27  ;;  %v2339_v0 = vmax.f32 %v2337_v19, %v2338_v39  ;;  %v2330_v55 = vmax.f32 %v2328_v3, %v2329_v52  ;;  %v2357_v17 = vunpack.i.l.bf16 %v2356_v50 }
 0x14b   :  { %5811 = vst [vmem:[#allocation82_spill] sm:$0xff] %v4362_v43  ;;  %v2358_v9 = vunpack.i.h.bf16 %v2356_v50  ;;  %v2368_v22 = vunpack.i.l.bf16 %v2367_v8  ;;  %v2321_v34 = vmax.f32 %v2319_v45, %v2320_v62  ;;  %v2349_v24 = vrot.slane %v2348_v4, 4 }
 0x14c   :  { %v4374_v37 = vpack.i.bf16 %v2310_v10, %v2310_v10  ;;  %v2340_v13 = vrot.slane %v2339_v0, 2  ;;  %v2331_v58 = vrot.slane %v2330_v55, 1  ;;  %v2369_v1 = vunpack.i.h.bf16 %v2367_v8 }
 0x14d   :  { %v2359_v19 = vmax.f32 %v2357_v17, %v2358_v9  ;;  %v2378_v3 = vsel %vm3539_vm2, %v3505_v41, 4286644096  ;;  %v4378_v27 = vpack.i.bf16 %v2321_v34, %v2321_v34  ;;  %v2350_v54 = vmax.f32 %v2348_v4, %v2349_v24  ;;  %v3508_v41 = vld [vmem:[%s5637_s0 + $0x3e8] sm:$0x1f]  }
 0x14e   :  { %5812 = vst [vmem:[#allocation83_spill] sm:$0xff] %v4374_v37  ;;  %v2341_v39 = vmax.f32 %v2339_v0, %v2340_v13  ;;  %v2379_v52 = vunpack.i.l.bf16 %v2378_v3  ;;  %v2332_v50 = vmax.f32 %v2330_v55, %v2331_v58  ;;  %v2370_v42 = vmax.f32 %v2368_v22, %v2369_v1 }
 0x14f   :  { %5813 = vst [vmem:[#allocation84_spill] sm:$0xff] %v4378_v27  ;;  %v2360_v43 = vrot.slane %v2359_v19, 4  ;;  %v2380_v30 = vunpack.i.h.bf16 %v2378_v3  ;;  %v2351_v37 = vrot.slane %v2350_v54, 2  ;;  %v2389_v45 = vsel %vm3539_vm2, %v3506_v26, 4286644096 }
 0x150   :  { %v2342_v10 = vrot.slane %v2341_v39, 1  ;;  %v2400_v8 = vsel %vm3539_vm2, %v3507_v56, 4286644096  ;;  %v4387_v62 = vpack.i.bf16 %v2332_v50, %v2332_v50  ;;  %v2371_v4 = vrot.slane %v2370_v42, 4  ;;  %v3509_v56 = vld [vmem:[%s5637_s0 + $0x3f0] sm:$0x1f]  }
 0x151   :  { %v2361_v0 = vmax.f32 %v2359_v19, %v2360_v43  ;;  %v2381_v55 = vmax.f32 %v2379_v52, %v2380_v30  ;;  %v2352_v22 = vmax.f32 %v2350_v54, %v2351_v37  ;;  %v2390_v9 = vunpack.i.l.bf16 %v2389_v45 }
 0x152   :  { %5814 = vst [vmem:[#allocation85_spill] sm:$0xff] %v4387_v62  ;;  %v2343_v17 = vmax.f32 %v2341_v39, %v2342_v10  ;;  %v2391_v34 = vunpack.i.h.bf16 %v2389_v45  ;;  %v2372_v24 = vmax.f32 %v2370_v42, %v2371_v4  ;;  %v2401_v26 = vunpack.i.l.bf16 %v2400_v8 }
 0x153   :  { %v2362_v13 = vrot.slane %v2361_v0, 2  ;;  %v2382_v58 = vrot.slane %v2381_v55, 4  ;;  %v2353_v3 = vrot.slane %v2352_v22, 1  ;;  %v2402_v62 = vunpack.i.h.bf16 %v2400_v8 }
 0x154   :  { %v4392_v1 = vpack.i.bf16 %v2343_v17, %v2343_v17  ;;  %v2392_v50 = vmax.f32 %v2390_v9, %v2391_v34  ;;  %v2373_v19 = vrot.slane %v2372_v24, 2  ;;  %v2411_v37 = vsel %vm3539_vm2, %v3508_v41, 4286644096  ;;  %v3510_v17 = vld [vmem:[%s5637_s0 + $0x3f8] sm:$0x1f]  }
 0x155   :  { %v2363_v43 = vmax.f32 %v2361_v0, %v2362_v13  ;;  %v2383_v30 = vmax.f32 %v2381_v55, %v2382_v58  ;;  %v2354_v39 = vmax.f32 %v2352_v22, %v2353_v3  ;;  %v2403_v42 = vmax.f32 %v2401_v26, %v2402_v62 }
 0x156   :  { %5815 = vst [vmem:[#allocation86_spill] sm:$0xff] %v4392_v1  ;;  %v2393_v54 = vrot.slane %v2392_v50, 4  ;;  %v2412_v52 = vunpack.i.l.bf16 %v2411_v37  ;;  %v2374_v45 = vmax.f32 %v2372_v24, %v2373_v19  ;;  %v2413_v27 = vunpack.i.h.bf16 %v2411_v37 }
 0x157   :  { %v2364_v10 = vrot.slane %v2363_v43, 1  ;;  %v2384_v4 = vrot.slane %v2383_v30, 2  ;;  %v4399_v9 = vpack.i.bf16 %v2354_v39, %v2354_v39  ;;  %v2404_v0 = vrot.slane %v2403_v42, 4 }
 0x158   :  { %v2394_v8 = vmax.f32 %v2392_v50, %v2393_v54  ;;  %v2422_v55 = vsel %vm3539_vm2, %v3509_v56, 4286644096  ;;  %v2375_v22 = vrot.slane %v2374_v45, 1  ;;  %v2414_v62 = vmax.f32 %v2412_v52, %v2413_v27 }
 0x159   :  { %5816 = vst [vmem:[#allocation87_spill] sm:$0xff] %v4399_v9  ;;  %v2365_v41 = vmax.f32 %v2363_v43, %v2364_v10  ;;  %v2385_v34 = vmax.f32 %v2383_v30, %v2384_v4  ;;  %v2405_v58 = vmax.f32 %v2403_v42, %v2404_v0  ;;  %v2423_v24 = vunpack.i.l.bf16 %v2422_v55 }
 0x15a   :  { %v2395_v13 = vrot.slane %v2394_v8, 2  ;;  %v2424_v26 = vunpack.i.h.bf16 %v2422_v55  ;;  %v2376_v19 = vmax.f32 %v2374_v45, %v2375_v22  ;;  %v2415_v1 = vrot.slane %v2414_v62, 4 }
 0x15b   :  { %v4403_v3 = vpack.i.bf16 %v2365_v41, %v2365_v41  ;;  %v2386_v37 = vrot.slane %v2385_v34, 1  ;;  %v2406_v9 = vrot.slane %v2405_v58, 2  ;;  %v2433_v54 = vsel %vm3539_vm2, %v3510_v17, 4286644096 }
 0x15c   :  { %v2396_v39 = vmax.f32 %v2394_v8, %v2395_v13  ;;  %v2425_v50 = vmax.f32 %v2423_v24, %v2424_v26  ;;  %v4407_v56 = vpack.i.bf16 %v2376_v19, %v2376_v19  ;;  %v2416_v30 = vmax.f32 %v2414_v62, %v2415_v1  ;;  %v5897_v8 = vld [vmem:[#allocation80_spill] sm:$0xff] }
 0x15d   :  { %v2387_v43 = vmax.f32 %v2385_v34, %v2386_v37  ;;  %v2434_v27 = vunpack.i.l.bf16 %v2433_v54  ;;  %v2407_v42 = vmax.f32 %v2405_v58, %v2406_v9  ;;  %v2435_v4 = vunpack.i.h.bf16 %v2433_v54  ;;  %v5900_v37 = vld [vmem:[#allocation83_spill] sm:$0xff]  ;;  %v5901_v62 = vld [vmem:[#allocation84_spill] sm:$0xff]  ;;  %v5902_v9 = vld [vmem:[#allocation85_spill] sm:$0xff] }
 0x15e   :  { %5817 = vst [vmem:[#allocation88_spill] sm:$0xff] %v4407_v56  ;;  %v2397_v52 = vrot.slane %v2396_v39, 1  ;;  %v2426_v10 = vrot.slane %v2425_v50, 4  ;;  %v2417_v45 = vrot.slane %v2416_v30, 2  ;;  %v5903_v1 = vld [vmem:[#allocation86_spill] sm:$0xff]  ;;  %vm2968_vm9 = vcmask 1047559  }
 0x15f   :  { %v4409_v0 = vpack.i.bf16 %v2387_v43, %v2387_v43  ;;  %v2408_v17 = vrot.slane %v2407_v42, 1  ;;  %v2436_v22 = vmax.f32 %v2434_v27, %v2435_v4  ;;  %v5825_v27 = vld [vmem:[#allocation8_spill] sm:$0xff]  ;;  %v5907_v4 = vcombine.low %v3581_v21, %v3581_v21 }
 0x160   :  { %v2398_v6 = vmax.f32 %v2396_v39, %v2397_v52  ;;  %v2427_v41 = vmax.f32 %v2425_v50, %v2426_v10  ;;  %v2418_v34 = vmax.f32 %v2416_v30, %v2417_v45  ;;  %v5823_v10 = vld [vmem:[#allocation6_spill] sm:$0xff]  ;;  %v5898_v50 = vld [vmem:[#allocation81_spill] sm:$0xff]  ;;  %v5904_v55 = vld [vmem:[#allocation87_spill] sm:$0xff]  ;;  %v5908_v39 = vcombine.low %v3583_v25, %v3583_v25 }
 0x161   :  { %v2409_v58 = vmax.f32 %v2407_v42, %v2408_v17  ;;  %v2437_v26 = vrot.slane %v2436_v22, 4  ;;  %v5821_v17 = vld [vmem:[#allocation4_spill] sm:$0xff]  ;;  %v5824_v42 = vld [vmem:[#allocation7_spill] sm:$0xff]  ;;  %v5911_v21 = vcombine.low %v3603_v47, %v3603_v47  ;;  %v5912_v25 = vcombine.low %v3615_v5, %v3615_v5 }
 0x162   :  { %v4421_v13 = vpack.i.bf16 %v2398_v6, %v2398_v6  ;;  %v2428_v24 = vrot.slane %v2427_v41, 2  ;;  %v2419_v19 = vrot.slane %v2418_v34, 1  ;;  %v5915_v47 = vcombine.low %v3638_v60, %v3638_v60 }
 0x163   :  { %v4429_v54 = vpack.i.bf16 %v2409_v58, %v2409_v58  ;;  %v2438_v30 = vmax.f32 %v2436_v22, %v2437_v26  ;;  %v5819_v58 = vld [vmem:[#allocation2_spill] sm:$0xff]  ;;  %v5916_v5 = vcombine.low %v3640_v61, %v3640_v61  ;;  %v5919_v60 = vcombine.low %v3664_v40, %v3664_v40 }
 0x164   :  { %v2429_v43 = vmax.f32 %v2427_v41, %v2428_v24  ;;  %v2420_v52 = vmax.f32 %v2418_v34, %v2419_v19  ;;  %v5822_v41 = vld [vmem:[#allocation5_spill] sm:$0xff]  ;;  %v5906_v34 = vcombine.low %v3573_v16, %v3573_v16  ;;  %v5910_v16 = vcombine.low %v3594_v38, %v3594_v38 }
 0x165   :  { %v2439_v6 = vrot.slane %v2438_v30, 2  ;;  %v5914_v38 = vcombine.low %v3629_v48, %v3629_v48  ;;  %v5918_v48 = vcombine.low %v3652_v23, %v3652_v23  ;;  %v5920_v61 = vcombine.low %v3673_v2, %v3673_v2 }
 0x166   :  { %v2430_v45 = vrot.slane %v2429_v43, 1  ;;  %v4443_v22 = vpack.i.bf16 %v2420_v52, %v2420_v52  ;;  %v4685_v52 = vunpack.c.l.b16 %v5906_v34  ;;  %v4705_v34 = vunpack.c.l.b16 %v5910_v16 }
 0x167   :  { %v2440_v19 = vmax.f32 %v2438_v30, %v2439_v6  ;;  %v5905_v6 = vcombine.low %v3571_v15, %v3571_v15  ;;  %v5909_v15 = vcombine.low %v3589_v29, %v3589_v29  ;;  %v5913_v29 = vcombine.low %v3627_v46, %v3627_v46 }
 0x168   :  { %v2431_v26 = vmax.f32 %v2429_v43, %v2430_v45  ;;  %v4725_v16 = vunpack.c.l.b16 %v5914_v38  ;;  %v5917_v46 = vcombine.low %v3645_v7, %v3645_v7  ;;  %v4745_v38 = vunpack.c.l.b16 %v5918_v48  ;;  %v5951_v45 = vld [vmem:[#allocation9_spill] sm:$0xff] }
 0x169   :  { %v2441_v30 = vrot.slane %v2440_v19, 1  ;;  %v4680_v56 = vunpack.c.l.b16 %v5905_v6  ;;  %v4700_v6 = vunpack.c.l.b16 %v5909_v15  ;;  %v4720_v15 = vunpack.c.l.b16 %v5913_v29 }
 0x16a   :  { %v4463_v43 = vpack.i.bf16 %v2431_v26, %v2431_v26  ;;  %v5820_v26 = vld [vmem:[#allocation3_spill] sm:$0xff]  ;;  %v4740_v29 = vunpack.c.l.b16 %v5917_v46  ;;  %v5921_v7 = vcombine.low %v3683_v28, %v3683_v28  ;;  %v5922_v23 = vcombine.low %v3685_v33, %v3685_v33 }
 0x16b   :  { %v2442_v24 = vmax.f32 %v2440_v19, %v2441_v30  ;;  %v4690_v19 = vunpack.c.l.b16 %v5907_v4  ;;  %v4710_v4 = vunpack.c.l.b16 %v5911_v21  ;;  %v4730_v21 = vunpack.c.l.b16 %v5915_v47 }
 0x16c   :  { %5818 = vst [vmem:[#allocation89_spill] sm:$0xff] %v4463_v43  ;;  %v4695_v43 = vunpack.c.l.b16 %v5908_v39  ;;  %v4715_v39 = vunpack.c.l.b16 %v5912_v25  ;;  %v4735_v25 = vunpack.c.l.b16 %v5916_v5  ;;  %v4750_v47 = vunpack.c.l.b16 %v5919_v60 }
 0x16d   :  { %v4491_v30 = vpack.i.bf16 %v2442_v24, %v2442_v24  ;;  %v5899_v24 = vld [vmem:[#allocation82_spill] sm:$0xff]  ;;  %v4755_v5 = vunpack.c.l.b16 %v5920_v61  ;;  %v4760_v46 = vunpack.c.l.b16 %v5921_v7  ;;  %v4765_v48 = vunpack.c.l.b16 %v5922_v23 }
 0x16e   :  { %v5923_v40 = vcombine.low %v3690_v44, %v3690_v44  ;;  %v5924_v2 = vcombine.low %v3702_v63, %v3702_v63  ;;  %v5925_v28 = vcombine.low %v3706_v11, %v3706_v11  ;;  %v5926_v33 = vcombine.low %v3715_v31, %v3715_v31 }
 0x16f   :  { %v5927_v44 = vcombine.low %v3720_v51, %v3720_v51  ;;  %v5928_v63 = vcombine.low %v3727_v12, %v3727_v12  ;;  %v5929_v11 = vcombine.low %v3737_v35, %v3737_v35  ;;  %v5930_v31 = vcombine.low %v3741_v49, %v3741_v49 }
 0x170   :  { %v4770_v60 = vunpack.c.l.b16 %v5923_v40  ;;  %v4775_v61 = vunpack.c.l.b16 %v5924_v2  ;;  %v4780_v7 = vunpack.c.l.b16 %v5925_v28  ;;  %v4785_v23 = vunpack.c.l.b16 %v5926_v33 }
 0x171   :  { %v4790_v40 = vunpack.c.l.b16 %v5927_v44  ;;  %v4795_v2 = vunpack.c.l.b16 %v5928_v63  ;;  %v4800_v28 = vunpack.c.l.b16 %v5929_v11  ;;  %v4805_v33 = vunpack.c.l.b16 %v5930_v31 }
 0x172   :  { %v5931_v51 = vcombine.low %v3746_v59, %v3746_v59  ;;  %v5932_v12 = vcombine.low %v3758_v20, %v3758_v20  ;;  %v5933_v35 = vcombine.low %v3762_v36, %v3762_v36  ;;  %v5934_v49 = vcombine.low %v3771_v57, %v3771_v57 }
 0x173   :  { %v5935_v59 = vcombine.low %v3776_v18, %v3776_v18  ;;  %v5936_v20 = vcombine.low %v3783_v53, %v3783_v53  ;;  %v5937_v36 = vcombine.low %v3793_v14, %v3793_v14  ;;  %v5938_v57 = vcombine.low %v3797_v32, %v3797_v32 }
 0x174   :  { %v4810_v44 = vunpack.c.l.b16 %v5931_v51  ;;  %v4815_v63 = vunpack.c.l.b16 %v5932_v12  ;;  %v4820_v11 = vunpack.c.l.b16 %v5933_v35  ;;  %v4825_v31 = vunpack.c.l.b16 %v5934_v49 }
 0x175   :  { %v4830_v51 = vunpack.c.l.b16 %v5935_v59  ;;  %v4835_v12 = vunpack.c.l.b16 %v5936_v20  ;;  %v4840_v35 = vunpack.c.l.b16 %v5937_v36  ;;  %v4845_v49 = vunpack.c.l.b16 %v5938_v57 }
 0x176   :  { %v5939_v18 = vcombine.low %v5819_v58, %v5819_v58  ;;  %v5940_v53 = vcombine.low %v5820_v26, %v5820_v26  ;;  %v5942_v14 = vcombine.low %v5821_v17, %v5821_v17  ;;  %v5944_v32 = vcombine.low %v5822_v41, %v5822_v41 }
 0x177   :  { %v5946_v58 = vcombine.low %v5823_v10, %v5823_v10  ;;  %v5948_v26 = vcombine.low %v5824_v42, %v5824_v42  ;;  %v5950_v17 = vcombine.low %v5825_v27, %v5825_v27  ;;  %v5952_v41 = vcombine.low %v5951_v45, %v5951_v45 }
 0x178   :  { %v4850_v59 = vunpack.c.l.b16 %v5939_v18  ;;  %v4855_v20 = vunpack.c.l.b16 %v5940_v53  ;;  %v4860_v36 = vunpack.c.l.b16 %v5942_v14  ;;  %v4865_v57 = vunpack.c.l.b16 %v5944_v32 }
 0x179   :  { %v4870_v18 = vunpack.c.l.b16 %v5946_v58  ;;  %v4875_v53 = vunpack.c.l.b16 %v5948_v26  ;;  %v4880_v14 = vunpack.c.l.b16 %v5950_v17  ;;  %v4885_v32 = vunpack.c.l.b16 %v5952_v41 }
 0x17a   :  { %5941 = vst [vmem:[#allocation2_spill] sm:$0xff] %v4855_v20  ;;  %5943 = vst [vmem:[#allocation3_spill] sm:$0xff] %v4860_v36  ;;  %v5962_v36 = vld [vmem:[#allocation13_spill] sm:$0xff]  ;;  %v5965_v20 = vld [vmem:[#allocation14_spill] sm:$0xff] }
 0x17b   :  { %5945 = vst [vmem:[#allocation4_spill] sm:$0xff] %v4865_v57  ;;  %5947 = vst [vmem:[#allocation5_spill] sm:$0xff] %v4870_v18  ;;  %v5953_v57 = vld [vmem:[#allocation10_spill] sm:$0xff]  ;;  %v5956_v18 = vld [vmem:[#allocation11_spill] sm:$0xff]  ;;  %v5963_v45 = vcombine.low %v5962_v36, %v5962_v36 }
 0x17c   :  { %5949 = vst [vmem:[#allocation6_spill] sm:$0xff] %v4875_v53  ;;  %v5954_v10 = vcombine.low %v5953_v57, %v5953_v57  ;;  %v5957_v42 = vcombine.low %v5956_v18, %v5956_v18  ;;  %v5959_v53 = vld [vmem:[#allocation12_spill] sm:$0xff]  ;;  %v5966_v57 = vcombine.low %v5965_v20, %v5965_v20 }
 0x17d   :  { %v5960_v27 = vcombine.low %v5959_v53, %v5959_v53  ;;  %v4905_v41 = vunpack.c.l.b16 %v5963_v45 }
 0x17e   :  { %v4890_v58 = vunpack.c.l.b16 %v5954_v10  ;;  %v4895_v26 = vunpack.c.l.b16 %v5957_v42  ;;  %v4910_v10 = vunpack.c.l.b16 %v5966_v57 }
 0x17f   :  { %v4900_v17 = vunpack.c.l.b16 %v5960_v27  ;;  %5964 = vst [vmem:[#allocation81_spill] sm:$0xff] %v4905_v41  ;;  %v5977_v41 = vld [vmem:[#allocation18_spill] sm:$0xff] }
 0x180   :  { %5955 = vst [vmem:[#allocation7_spill] sm:$0xff] %v4890_v58  ;;  %5958 = vst [vmem:[#allocation8_spill] sm:$0xff] %v4895_v26  ;;  %v5968_v58 = vld [vmem:[#allocation15_spill] sm:$0xff]  ;;  %v5971_v26 = vld [vmem:[#allocation16_spill] sm:$0xff]  ;;  %v5978_v20 = vcombine.low %v5977_v41, %v5977_v41 }
 0x181   :  { %5961 = vst [vmem:[#allocation80_spill] sm:$0xff] %v4900_v17  ;;  %5967 = vst [vmem:[#allocation82_spill] sm:$0xff] %v4910_v10  ;;  %v5969_v18 = vcombine.low %v5968_v58, %v5968_v58  ;;  %v5972_v53 = vcombine.low %v5971_v26, %v5971_v26  ;;  %v5974_v17 = vld [vmem:[#allocation17_spill] sm:$0xff]  ;;  %v5980_v10 = vld [vmem:[#allocation19_spill] sm:$0xff] }
 0x182   :  { %v5975_v36 = vcombine.low %v5974_v17, %v5974_v17  ;;  %v4930_v57 = vunpack.c.l.b16 %v5978_v20  ;;  %v5981_v58 = vcombine.low %v5980_v10, %v5980_v10 }
 0x183   :  { %v4915_v42 = vunpack.c.l.b16 %v5969_v18  ;;  %v4920_v27 = vunpack.c.l.b16 %v5972_v53 }
 0x184   :  { %v4925_v45 = vunpack.c.l.b16 %v5975_v36  ;;  %5979 = vst [vmem:[#allocation86_spill] sm:$0xff] %v4930_v57  ;;  %v4935_v18 = vunpack.c.l.b16 %v5981_v58  ;;  %v5992_v57 = vld [vmem:[#allocation23_spill] sm:$0xff] }
 0x185   :  { %5970 = vst [vmem:[#allocation83_spill] sm:$0xff] %v4915_v42  ;;  %5973 = vst [vmem:[#allocation84_spill] sm:$0xff] %v4920_v27  ;;  %v5983_v42 = vld [vmem:[#allocation20_spill] sm:$0xff]  ;;  %v5986_v27 = vld [vmem:[#allocation21_spill] sm:$0xff]  ;;  %v5993_v10 = vcombine.low %v5992_v57, %v5992_v57 }
 0x186   :  { %5976 = vst [vmem:[#allocation85_spill] sm:$0xff] %v4925_v45  ;;  %5982 = vst [vmem:[#allocation87_spill] sm:$0xff] %v4935_v18  ;;  %v5984_v26 = vcombine.low %v5983_v42, %v5983_v42  ;;  %v5987_v17 = vcombine.low %v5986_v27, %v5986_v27  ;;  %v5989_v45 = vld [vmem:[#allocation22_spill] sm:$0xff]  ;;  %v5995_v18 = vld [vmem:[#allocation24_spill] sm:$0xff] }
 0x187   :  { %v5990_v41 = vcombine.low %v5989_v45, %v5989_v45  ;;  %v4955_v58 = vunpack.c.l.b16 %v5993_v10  ;;  %v5996_v42 = vcombine.low %v5995_v18, %v5995_v18 }
 0x188   :  { %v4940_v53 = vunpack.c.l.b16 %v5984_v26  ;;  %v4945_v36 = vunpack.c.l.b16 %v5987_v17 }
 0x189   :  { %v4950_v20 = vunpack.c.l.b16 %v5990_v41  ;;  %5994 = vst [vmem:[#allocation12_spill] sm:$0xff] %v4955_v58  ;;  %v4960_v26 = vunpack.c.l.b16 %v5996_v42  ;;  %v6007_v58 = vld [vmem:[#allocation28_spill] sm:$0xff] }
 0x18a   :  { %5985 = vst [vmem:[#allocation9_spill] sm:$0xff] %v4940_v53  ;;  %5988 = vst [vmem:[#allocation10_spill] sm:$0xff] %v4945_v36  ;;  %v5998_v53 = vld [vmem:[#allocation25_spill] sm:$0xff]  ;;  %v6001_v36 = vld [vmem:[#allocation26_spill] sm:$0xff]  ;;  %v6008_v18 = vcombine.low %v6007_v58, %v6007_v58 }
 0x18b   :  { %5991 = vst [vmem:[#allocation11_spill] sm:$0xff] %v4950_v20  ;;  %5997 = vst [vmem:[#allocation13_spill] sm:$0xff] %v4960_v26  ;;  %v5999_v27 = vcombine.low %v5998_v53, %v5998_v53  ;;  %v6002_v45 = vcombine.low %v6001_v36, %v6001_v36  ;;  %v6004_v20 = vld [vmem:[#allocation27_spill] sm:$0xff]  ;;  %v6010_v26 = vld [vmem:[#allocation29_spill] sm:$0xff] }
 0x18c   :  { %v6005_v57 = vcombine.low %v6004_v20, %v6004_v20  ;;  %v4980_v42 = vunpack.c.l.b16 %v6008_v18  ;;  %v6011_v53 = vcombine.low %v6010_v26, %v6010_v26 }
 0x18d   :  { %v4965_v17 = vunpack.c.l.b16 %v5999_v27  ;;  %v4970_v41 = vunpack.c.l.b16 %v6002_v45 }
 0x18e   :  { %v4975_v10 = vunpack.c.l.b16 %v6005_v57  ;;  %6009 = vst [vmem:[#allocation17_spill] sm:$0xff] %v4980_v42  ;;  %v4985_v27 = vunpack.c.l.b16 %v6011_v53  ;;  %v6022_v42 = vld [vmem:[#allocation33_spill] sm:$0xff] }
 0x18f   :  { %6000 = vst [vmem:[#allocation14_spill] sm:$0xff] %v4965_v17  ;;  %6003 = vst [vmem:[#allocation15_spill] sm:$0xff] %v4970_v41  ;;  %v6013_v17 = vld [vmem:[#allocation30_spill] sm:$0xff]  ;;  %v6016_v41 = vld [vmem:[#allocation31_spill] sm:$0xff]  ;;  %v6023_v26 = vcombine.low %v6022_v42, %v6022_v42 }
 0x190   :  { %6006 = vst [vmem:[#allocation16_spill] sm:$0xff] %v4975_v10  ;;  %6012 = vst [vmem:[#allocation18_spill] sm:$0xff] %v4985_v27  ;;  %v6014_v36 = vcombine.low %v6013_v17, %v6013_v17  ;;  %v6017_v20 = vcombine.low %v6016_v41, %v6016_v41  ;;  %v6019_v10 = vld [vmem:[#allocation32_spill] sm:$0xff]  ;;  %v6025_v27 = vld [vmem:[#allocation34_spill] sm:$0xff] }
 0x191   :  { %v6020_v58 = vcombine.low %v6019_v10, %v6019_v10  ;;  %v5005_v53 = vunpack.c.l.b16 %v6023_v26  ;;  %v6026_v17 = vcombine.low %v6025_v27, %v6025_v27 }
 0x192   :  { %v4990_v45 = vunpack.c.l.b16 %v6014_v36  ;;  %v4995_v57 = vunpack.c.l.b16 %v6017_v20 }
 0x193   :  { %v5000_v18 = vunpack.c.l.b16 %v6020_v58  ;;  %6024 = vst [vmem:[#allocation22_spill] sm:$0xff] %v5005_v53  ;;  %v5010_v36 = vunpack.c.l.b16 %v6026_v17  ;;  %v6037_v53 = vld [vmem:[#allocation38_spill] sm:$0xff] }
 0x194   :  { %6015 = vst [vmem:[#allocation19_spill] sm:$0xff] %v4990_v45  ;;  %6018 = vst [vmem:[#allocation20_spill] sm:$0xff] %v4995_v57  ;;  %v6028_v45 = vld [vmem:[#allocation35_spill] sm:$0xff]  ;;  %v6031_v57 = vld [vmem:[#allocation36_spill] sm:$0xff]  ;;  %v6038_v27 = vcombine.low %v6037_v53, %v6037_v53 }
 0x195   :  { %6021 = vst [vmem:[#allocation21_spill] sm:$0xff] %v5000_v18  ;;  %6027 = vst [vmem:[#allocation23_spill] sm:$0xff] %v5010_v36  ;;  %v6029_v41 = vcombine.low %v6028_v45, %v6028_v45  ;;  %v6032_v10 = vcombine.low %v6031_v57, %v6031_v57  ;;  %v6034_v18 = vld [vmem:[#allocation37_spill] sm:$0xff]  ;;  %v6040_v36 = vld [vmem:[#allocation39_spill] sm:$0xff] }
 0x196   :  { %v6035_v42 = vcombine.low %v6034_v18, %v6034_v18  ;;  %v5030_v17 = vunpack.c.l.b16 %v6038_v27  ;;  %v6041_v45 = vcombine.low %v6040_v36, %v6040_v36 }
 0x197   :  { %v5015_v20 = vunpack.c.l.b16 %v6029_v41  ;;  %v5020_v58 = vunpack.c.l.b16 %v6032_v10 }
 0x198   :  { %v5025_v26 = vunpack.c.l.b16 %v6035_v42  ;;  %6039 = vst [vmem:[#allocation27_spill] sm:$0xff] %v5030_v17  ;;  %v5035_v41 = vunpack.c.l.b16 %v6041_v45  ;;  %v6052_v17 = vld [vmem:[#allocation43_spill] sm:$0xff] }
 0x199   :  { %6030 = vst [vmem:[#allocation24_spill] sm:$0xff] %v5015_v20  ;;  %6033 = vst [vmem:[#allocation25_spill] sm:$0xff] %v5020_v58  ;;  %v6043_v20 = vld [vmem:[#allocation40_spill] sm:$0xff]  ;;  %v6046_v58 = vld [vmem:[#allocation41_spill] sm:$0xff]  ;;  %v6053_v36 = vcombine.low %v6052_v17, %v6052_v17 }
 0x19a   :  { %6036 = vst [vmem:[#allocation26_spill] sm:$0xff] %v5025_v26  ;;  %6042 = vst [vmem:[#allocation28_spill] sm:$0xff] %v5035_v41  ;;  %v6044_v57 = vcombine.low %v6043_v20, %v6043_v20  ;;  %v6047_v18 = vcombine.low %v6046_v58, %v6046_v58  ;;  %v6049_v26 = vld [vmem:[#allocation42_spill] sm:$0xff]  ;;  %v6055_v41 = vld [vmem:[#allocation44_spill] sm:$0xff] }
 0x19b   :  { %v6050_v53 = vcombine.low %v6049_v26, %v6049_v26  ;;  %v5055_v45 = vunpack.c.l.b16 %v6053_v36  ;;  %v6056_v20 = vcombine.low %v6055_v41, %v6055_v41 }
 0x19c   :  { %v5040_v10 = vunpack.c.l.b16 %v6044_v57  ;;  %v5045_v42 = vunpack.c.l.b16 %v6047_v18 }
 0x19d   :  { %v5050_v27 = vunpack.c.l.b16 %v6050_v53  ;;  %6054 = vst [vmem:[#allocation32_spill] sm:$0xff] %v5055_v45  ;;  %v5060_v57 = vunpack.c.l.b16 %v6056_v20  ;;  %v6067_v45 = vld [vmem:[#allocation48_spill] sm:$0xff] }
 0x19e   :  { %6045 = vst [vmem:[#allocation29_spill] sm:$0xff] %v5040_v10  ;;  %6048 = vst [vmem:[#allocation30_spill] sm:$0xff] %v5045_v42  ;;  %v6058_v10 = vld [vmem:[#allocation45_spill] sm:$0xff]  ;;  %v6061_v42 = vld [vmem:[#allocation46_spill] sm:$0xff]  ;;  %v6068_v41 = vcombine.low %v6067_v45, %v6067_v45 }
 0x19f   :  { %6051 = vst [vmem:[#allocation31_spill] sm:$0xff] %v5050_v27  ;;  %6057 = vst [vmem:[#allocation33_spill] sm:$0xff] %v5060_v57  ;;  %v6059_v58 = vcombine.low %v6058_v10, %v6058_v10  ;;  %v6062_v26 = vcombine.low %v6061_v42, %v6061_v42  ;;  %v6064_v27 = vld [vmem:[#allocation47_spill] sm:$0xff]  ;;  %v6070_v57 = vld [vmem:[#allocation49_spill] sm:$0xff] }
 0x1a0   :  { %v6065_v17 = vcombine.low %v6064_v27, %v6064_v27  ;;  %v5080_v20 = vunpack.c.l.b16 %v6068_v41  ;;  %v6071_v10 = vcombine.low %v6070_v57, %v6070_v57 }
 0x1a1   :  { %v5065_v18 = vunpack.c.l.b16 %v6059_v58  ;;  %v5070_v53 = vunpack.c.l.b16 %v6062_v26 }
 0x1a2   :  { %v5075_v36 = vunpack.c.l.b16 %v6065_v17  ;;  %6069 = vst [vmem:[#allocation37_spill] sm:$0xff] %v5080_v20  ;;  %v5085_v58 = vunpack.c.l.b16 %v6071_v10  ;;  %v6082_v20 = vld [vmem:[#allocation53_spill] sm:$0xff] }
 0x1a3   :  { %6060 = vst [vmem:[#allocation34_spill] sm:$0xff] %v5065_v18  ;;  %6063 = vst [vmem:[#allocation35_spill] sm:$0xff] %v5070_v53  ;;  %v6073_v18 = vld [vmem:[#allocation50_spill] sm:$0xff]  ;;  %v6076_v53 = vld [vmem:[#allocation51_spill] sm:$0xff]  ;;  %v6083_v57 = vcombine.low %v6082_v20, %v6082_v20 }
 0x1a4   :  { %6066 = vst [vmem:[#allocation36_spill] sm:$0xff] %v5075_v36  ;;  %6072 = vst [vmem:[#allocation38_spill] sm:$0xff] %v5085_v58  ;;  %v6074_v42 = vcombine.low %v6073_v18, %v6073_v18  ;;  %v6077_v27 = vcombine.low %v6076_v53, %v6076_v53  ;;  %v6079_v36 = vld [vmem:[#allocation52_spill] sm:$0xff]  ;;  %v6085_v58 = vld [vmem:[#allocation54_spill] sm:$0xff] }
 0x1a5   :  { %v6080_v45 = vcombine.low %v6079_v36, %v6079_v36  ;;  %v5105_v10 = vunpack.c.l.b16 %v6083_v57  ;;  %v6086_v18 = vcombine.low %v6085_v58, %v6085_v58 }
 0x1a6   :  { %v5090_v26 = vunpack.c.l.b16 %v6074_v42  ;;  %v5095_v17 = vunpack.c.l.b16 %v6077_v27 }
 0x1a7   :  { %v5100_v41 = vunpack.c.l.b16 %v6080_v45  ;;  %6084 = vst [vmem:[#allocation42_spill] sm:$0xff] %v5105_v10  ;;  %v5110_v42 = vunpack.c.l.b16 %v6086_v18  ;;  %v6097_v10 = vld [vmem:[#allocation58_spill] sm:$0xff] }
 0x1a8   :  { %6075 = vst [vmem:[#allocation39_spill] sm:$0xff] %v5090_v26  ;;  %6078 = vst [vmem:[#allocation40_spill] sm:$0xff] %v5095_v17  ;;  %v6088_v26 = vld [vmem:[#allocation55_spill] sm:$0xff]  ;;  %v6091_v17 = vld [vmem:[#allocation56_spill] sm:$0xff]  ;;  %v6098_v58 = vcombine.low %v6097_v10, %v6097_v10 }
 0x1a9   :  { %6081 = vst [vmem:[#allocation41_spill] sm:$0xff] %v5100_v41  ;;  %6087 = vst [vmem:[#allocation43_spill] sm:$0xff] %v5110_v42  ;;  %v6089_v53 = vcombine.low %v6088_v26, %v6088_v26  ;;  %v6092_v36 = vcombine.low %v6091_v17, %v6091_v17  ;;  %v6094_v41 = vld [vmem:[#allocation57_spill] sm:$0xff]  ;;  %v6100_v42 = vld [vmem:[#allocation59_spill] sm:$0xff] }
 0x1aa   :  { %v6095_v20 = vcombine.low %v6094_v41, %v6094_v41  ;;  %v5130_v18 = vunpack.c.l.b16 %v6098_v58  ;;  %v6101_v26 = vcombine.low %v6100_v42, %v6100_v42 }
 0x1ab   :  { %v5115_v27 = vunpack.c.l.b16 %v6089_v53  ;;  %v5120_v45 = vunpack.c.l.b16 %v6092_v36 }
 0x1ac   :  { %v5125_v57 = vunpack.c.l.b16 %v6095_v20  ;;  %6099 = vst [vmem:[#allocation47_spill] sm:$0xff] %v5130_v18  ;;  %v5135_v53 = vunpack.c.l.b16 %v6101_v26  ;;  %v6112_v18 = vld [vmem:[#allocation63_spill] sm:$0xff] }
 0x1ad   :  { %6090 = vst [vmem:[#allocation44_spill] sm:$0xff] %v5115_v27  ;;  %6093 = vst [vmem:[#allocation45_spill] sm:$0xff] %v5120_v45  ;;  %v6103_v27 = vld [vmem:[#allocation60_spill] sm:$0xff]  ;;  %v6106_v45 = vld [vmem:[#allocation61_spill] sm:$0xff]  ;;  %v6113_v42 = vcombine.low %v6112_v18, %v6112_v18 }
 0x1ae   :  { %6096 = vst [vmem:[#allocation46_spill] sm:$0xff] %v5125_v57  ;;  %6102 = vst [vmem:[#allocation48_spill] sm:$0xff] %v5135_v53  ;;  %v6104_v17 = vcombine.low %v6103_v27, %v6103_v27  ;;  %v6107_v41 = vcombine.low %v6106_v45, %v6106_v45  ;;  %v6109_v57 = vld [vmem:[#allocation62_spill] sm:$0xff]  ;;  %v6115_v53 = vld [vmem:[#allocation64_spill] sm:$0xff] }
 0x1af   :  { %v6110_v10 = vcombine.low %v6109_v57, %v6109_v57  ;;  %v5155_v26 = vunpack.c.l.b16 %v6113_v42  ;;  %v6116_v27 = vcombine.low %v6115_v53, %v6115_v53 }
 0x1b0   :  { %v5140_v36 = vunpack.c.l.b16 %v6104_v17  ;;  %v5145_v20 = vunpack.c.l.b16 %v6107_v41 }
 0x1b1   :  { %v5150_v58 = vunpack.c.l.b16 %v6110_v10  ;;  %6114 = vst [vmem:[#allocation52_spill] sm:$0xff] %v5155_v26  ;;  %v5160_v17 = vunpack.c.l.b16 %v6116_v27  ;;  %v6127_v26 = vld [vmem:[#allocation68_spill] sm:$0xff] }
 0x1b2   :  { %6105 = vst [vmem:[#allocation49_spill] sm:$0xff] %v5140_v36  ;;  %6108 = vst [vmem:[#allocation50_spill] sm:$0xff] %v5145_v20  ;;  %v6118_v36 = vld [vmem:[#allocation65_spill] sm:$0xff]  ;;  %v6121_v20 = vld [vmem:[#allocation66_spill] sm:$0xff]  ;;  %v6128_v53 = vcombine.low %v6127_v26, %v6127_v26 }
 0x1b3   :  { %6111 = vst [vmem:[#allocation51_spill] sm:$0xff] %v5150_v58  ;;  %6117 = vst [vmem:[#allocation53_spill] sm:$0xff] %v5160_v17  ;;  %v6119_v45 = vcombine.low %v6118_v36, %v6118_v36  ;;  %v6122_v57 = vcombine.low %v6121_v20, %v6121_v20  ;;  %v6124_v58 = vld [vmem:[#allocation67_spill] sm:$0xff]  ;;  %v6130_v17 = vld [vmem:[#allocation69_spill] sm:$0xff] }
 0x1b4   :  { %v6125_v18 = vcombine.low %v6124_v58, %v6124_v58  ;;  %v5180_v27 = vunpack.c.l.b16 %v6128_v53  ;;  %v6131_v36 = vcombine.low %v6130_v17, %v6130_v17 }
 0x1b5   :  { %v5165_v41 = vunpack.c.l.b16 %v6119_v45  ;;  %v5170_v10 = vunpack.c.l.b16 %v6122_v57 }
 0x1b6   :  { %v5175_v42 = vunpack.c.l.b16 %v6125_v18  ;;  %6129 = vst [vmem:[#allocation57_spill] sm:$0xff] %v5180_v27  ;;  %v5185_v45 = vunpack.c.l.b16 %v6131_v36  ;;  %v6142_v27 = vld [vmem:[#allocation73_spill] sm:$0xff] }
 0x1b7   :  { %6120 = vst [vmem:[#allocation54_spill] sm:$0xff] %v5165_v41  ;;  %6123 = vst [vmem:[#allocation55_spill] sm:$0xff] %v5170_v10  ;;  %v6133_v41 = vld [vmem:[#allocation70_spill] sm:$0xff]  ;;  %v6136_v10 = vld [vmem:[#allocation71_spill] sm:$0xff]  ;;  %v6143_v17 = vcombine.low %v6142_v27, %v6142_v27 }
 0x1b8   :  { %6126 = vst [vmem:[#allocation56_spill] sm:$0xff] %v5175_v42  ;;  %6132 = vst [vmem:[#allocation58_spill] sm:$0xff] %v5185_v45  ;;  %v6134_v20 = vcombine.low %v6133_v41, %v6133_v41  ;;  %v6137_v58 = vcombine.low %v6136_v10, %v6136_v10  ;;  %v6139_v42 = vld [vmem:[#allocation72_spill] sm:$0xff]  ;;  %v6145_v45 = vld [vmem:[#allocation74_spill] sm:$0xff] }
 0x1b9   :  { %v6140_v26 = vcombine.low %v6139_v42, %v6139_v42  ;;  %v5205_v36 = vunpack.c.l.b16 %v6143_v17  ;;  %v6146_v41 = vcombine.low %v6145_v45, %v6145_v45 }
 0x1ba   :  { %v5190_v57 = vunpack.c.l.b16 %v6134_v20  ;;  %v5195_v18 = vunpack.c.l.b16 %v6137_v58 }
 0x1bb   :  { %v5200_v53 = vunpack.c.l.b16 %v6140_v26  ;;  %6144 = vst [vmem:[#allocation62_spill] sm:$0xff] %v5205_v36  ;;  %v5210_v20 = vunpack.c.l.b16 %v6146_v41  ;;  %v6154_v36 = vld [vmem:[#allocation78_spill] sm:$0xff] }
 0x1bc   :  { %6135 = vst [vmem:[#allocation59_spill] sm:$0xff] %v5190_v57  ;;  %6138 = vst [vmem:[#allocation60_spill] sm:$0xff] %v5195_v18  ;;  %v6148_v57 = vld [vmem:[#allocation75_spill] sm:$0xff]  ;;  %v6150_v18 = vld [vmem:[#allocation76_spill] sm:$0xff]  ;;  %v6155_v45 = vcombine.low %v6154_v36, %v6154_v36  ;;  %v6161_v36 = vcombine.low %v5899_v24, %v5899_v24  ;;  %v6165_v24 = vcombine.low %v5903_v1, %v5903_v1 }
 0x1bd   :  { %6141 = vst [vmem:[#allocation61_spill] sm:$0xff] %v5200_v53  ;;  %6147 = vst [vmem:[#allocation63_spill] sm:$0xff] %v5210_v20  ;;  %v6149_v10 = vcombine.low %v6148_v57, %v6148_v57  ;;  %v6151_v42 = vcombine.low %v6150_v18, %v6150_v18  ;;  %v6152_v53 = vld [vmem:[#allocation77_spill] sm:$0xff]  ;;  %v6156_v20 = vld [vmem:[#allocation79_spill] sm:$0xff]  ;;  %v6159_v18 = vcombine.low %v5897_v8, %v5897_v8 }
 0x1be   :  { %v6153_v27 = vcombine.low %v6152_v53, %v6152_v53  ;;  %v5230_v41 = vunpack.c.l.b16 %v6155_v45  ;;  %v6157_v57 = vcombine.low %v6156_v20, %v6156_v20  ;;  %v6160_v53 = vcombine.low %v5898_v50, %v5898_v50 }
 0x1bf   :  { %v5215_v58 = vunpack.c.l.b16 %v6149_v10  ;;  %v5220_v26 = vunpack.c.l.b16 %v6151_v42  ;;  %v5240_v42 = vunpack.c.l.b16 %v6159_v18  ;;  %v5250_v45 = vunpack.c.l.b16 %v6161_v36 }
 0x1c0   :  { %v5225_v17 = vunpack.c.l.b16 %v6153_v27  ;;  %v5235_v10 = vunpack.c.l.b16 %v6157_v57  ;;  %v5245_v27 = vunpack.c.l.b16 %v6160_v53  ;;  %v6162_v20 = vcombine.low %v5900_v37, %v5900_v37 }
 0x1c1   :  { %v6163_v8 = vcombine.low %v5901_v62, %v5901_v62  ;;  %v6164_v50 = vcombine.low %v5902_v9, %v5902_v9  ;;  %v5270_v36 = vunpack.c.l.b16 %v6165_v24  ;;  %v6166_v37 = vcombine.low %v5904_v55, %v5904_v55 }
 0x1c2   :  { %6158 = vst [vmem:[#allocation64_spill] sm:$0xff] %v5235_v10  ;;  %v5255_v57 = vunpack.c.l.b16 %v6162_v20  ;;  %v6168_v62 = vcombine.low %v4403_v3, %v4403_v3  ;;  %v6169_v10 = vld [vmem:[#allocation88_spill] sm:$0xff]  ;;  %v6171_v1 = vcombine.low %v4409_v0, %v4409_v0  ;;  %v6172_v55 = vcombine.low %v4421_v13, %v4421_v13 }
 0x1c3   :  { %v5260_v18 = vunpack.c.l.b16 %v6163_v8  ;;  %v5265_v53 = vunpack.c.l.b16 %v6164_v50  ;;  %v5275_v20 = vunpack.c.l.b16 %v6166_v37  ;;  %v6170_v9 = vcombine.low %v6169_v10, %v6169_v10 }
 0x1c4   :  { %v5280_v8 = vunpack.c.l.b16 %v6168_v62  ;;  %v5290_v24 = vunpack.c.l.b16 %v6171_v1  ;;  %v5295_v37 = vunpack.c.l.b16 %v6172_v55  ;;  %v6173_v3 = vcombine.low %v4429_v54, %v4429_v54 }
 0x1c5   :  { %6167 = vst [vmem:[#allocation65_spill] sm:$0xff] %v5275_v20  ;;  %v5285_v50 = vunpack.c.l.b16 %v6170_v9  ;;  %v6174_v10 = vcombine.low %v4443_v22, %v4443_v22  ;;  %v6175_v20 = vld [vmem:[#allocation89_spill] sm:$0xff]  ;;  %v6177_v13 = vcombine.low %v4491_v30, %v4491_v30  ;;  %v2957_v54 = vsel %vm2956_vm3, %v4685_v52, %v4680_v56 }
 0x1c6   :  { %v5300_v62 = vunpack.c.l.b16 %v6173_v3  ;;  %v6176_v0 = vcombine.low %v6175_v20, %v6175_v20  ;;  %v2959_v22 = vsel %vm2958_vm4, %v4690_v19, %v2957_v54  ;;  %v2970_v30 = vsel %vm2956_vm3, %v4725_v16, %v4720_v15  ;;  %v6185_v54 = vld [vmem:[#allocation3_spill] sm:$0xff] }
 0x1c7   :  { %v5305_v9 = vunpack.c.l.b16 %v6174_v10  ;;  %v5315_v55 = vunpack.c.l.b16 %v6177_v13  ;;  %v2977_v20 = vsel %vm2956_vm3, %v4765_v48, %v4760_v46  ;;  %v2961_v3 = vsel %vm2960_vm5, %v4695_v43, %v2959_v22  ;;  %v6181_v10 = vld [vmem:[#allocation7_spill] sm:$0xff]  ;;  %v6184_v13 = vld [vmem:[#allocation14_spill] sm:$0xff] }
 0x1c8   :  { %v5310_v1 = vunpack.c.l.b16 %v6176_v0  ;;  %v2971_v56 = vsel %vm2958_vm4, %v4730_v21, %v2970_v30  ;;  %v2978_v52 = vsel %vm2958_vm4, %v4770_v60, %v2977_v20  ;;  %v2984_v19 = vsel %vm2956_vm3, %v4805_v33, %v4800_v28  ;;  %v6183_v0 = vld [vmem:[#allocation13_spill] sm:$0xff]  ;;  %v6187_v30 = vld [vmem:[#allocation87_spill] sm:$0xff] }
 0x1c9   :  { %v2963_v15 = vsel %vm2962_vm6, %v4700_v6, %v2961_v3  ;;  %v2972_v16 = vsel %vm2960_vm5, %v4735_v25, %v2971_v56  ;;  %v2979_v46 = vsel %vm2960_vm5, %v4775_v61, %v2978_v52  ;;  %v2985_v43 = vsel %vm2958_vm4, %v4810_v44, %v2984_v19  ;;  %v6188_v3 = vld [vmem:[#allocation15_spill] sm:$0xff]  ;;  %v6189_v52 = vld [vmem:[#allocation4_spill] sm:$0xff] }
 0x1ca   :  { %v2965_v21 = vsel %vm2964_vm7, %v4705_v34, %v2963_v15  ;;  %v2973_v48 = vsel %vm2962_vm6, %v4740_v29, %v2972_v16  ;;  %v2980_v60 = vsel %vm2962_vm6, %v4780_v7, %v2979_v46  ;;  %v2986_v6 = vsel %vm2960_vm5, %v4815_v63, %v2985_v43  ;;  %v6179_v63 = vld [vmem:[#allocation85_spill] sm:$0xff]  ;;  %v6190_v15 = vld [vmem:[#allocation80_spill] sm:$0xff] }
 0x1cb   :  { %v2967_v25 = vsel %vm2966_vm8, %v4710_v4, %v2965_v21  ;;  %v2974_v61 = vsel %vm2964_vm7, %v4745_v38, %v2973_v48  ;;  %v2981_v28 = vsel %vm2964_vm7, %v4785_v23, %v2980_v60  ;;  %v2987_v34 = vsel %vm2962_vm6, %v4820_v11, %v2986_v6  ;;  %v6191_v46 = vld [vmem:[#allocation9_spill] sm:$0xff]  ;;  %v6192_v21 = vld [vmem:[#allocation16_spill] sm:$0xff] }
 0x1cc   :  { %v5363_v29 = vsel %vm2968_vm9, %v4715_v39, %v2967_v25  ;;  %v2975_v7 = vsel %vm2966_vm8, %v4750_v47, %v2974_v61  ;;  %v2982_v33 = vsel %vm2966_vm8, %v4790_v40, %v2981_v28  ;;  %v2988_v4 = vsel %vm2964_vm7, %v4825_v31, %v2987_v34  ;;  %v6180_v31 = vld [vmem:[#allocation2_spill] sm:$0xff]  ;;  %v6193_v60 = vld [vmem:[#allocation5_spill] sm:$0xff] }
 0x1cd   :  { %v5373_v38 = vsel %vm2968_vm9, %v4755_v5, %v2975_v7  ;;  %v5377_v23 = vsel %vm2968_vm9, %v4795_v2, %v2982_v33  ;;  %v2989_v39 = vsel %vm2966_vm8, %v4830_v51, %v2988_v4  ;;  %v2991_v47 = vsel %vm2956_vm3, %v4845_v49, %v4840_v35  ;;  %v6178_v2 = vld [vmem:[#allocation84_spill] sm:$0xff]  ;;  %v6182_v49 = vld [vmem:[#allocation86_spill] sm:$0xff]  ;;  %v6194_v25 = vld [vmem:[#allocation81_spill] sm:$0xff] }
 0x1ce   :  { %v5386_v40 = vsel %vm2968_vm9, %v4835_v12, %v2989_v39  ;;  %v2992_v44 = vsel %vm2958_vm4, %v4850_v59, %v2991_v47  ;;  %v2998_v5 = vsel %vm2956_vm3, %v4885_v32, %v4880_v14  ;;  %v3005_v11 = vsel %vm2956_vm3, %v6179_v63, %v6178_v2  ;;  %v6186_v32 = vld [vmem:[#allocation8_spill] sm:$0xff]  ;;  %v6195_v28 = vld [vmem:[#allocation10_spill] sm:$0xff]  ;;  %v6196_v7 = vld [vmem:[#allocation17_spill] sm:$0xff] }
 0x1cf   :  { %v2993_v51 = vsel %vm2960_vm5, %v6180_v31, %v2992_v44  ;;  %v2999_v35 = vsel %vm2958_vm4, %v6181_v10, %v2998_v5  ;;  %v3006_v12 = vsel %vm2958_vm4, %v6182_v49, %v3005_v11  ;;  %v3012_v59 = vsel %vm2956_vm3, %v6184_v13, %v6183_v0  ;;  %v6197_v4 = vld [vmem:[#allocation6_spill] sm:$0xff]  ;;  %v6199_v5 = vld [vmem:[#allocation11_spill] sm:$0xff]  ;;  %v6202_v10 = vld [vmem:[#allocation12_spill] sm:$0xff] }
 0x1d0   :  { %v2994_v14 = vsel %vm2962_vm6, %v6185_v54, %v2993_v51  ;;  %v3000_v22 = vsel %vm2960_vm5, %v6186_v32, %v2999_v35  ;;  %v3007_v20 = vsel %vm2960_vm5, %v6187_v30, %v3006_v12  ;;  %v3013_v56 = vsel %vm2958_vm4, %v6188_v3, %v3012_v59  ;;  %v6198_v47 = vld [vmem:[#allocation82_spill] sm:$0xff]  ;;  %v6201_v31 = vld [vmem:[#allocation83_spill] sm:$0xff]  ;;  %v6204_v0 = vld [vmem:[#allocation21_spill] sm:$0xff] }
 0x1d1   :  { %v2995_v19 = vsel %vm2964_vm7, %v6189_v52, %v2994_v14  ;;  %v3001_v16 = vsel %vm2962_vm6, %v6190_v15, %v3000_v22  ;;  %v3008_v43 = vsel %vm2962_vm6, %v6191_v46, %v3007_v20  ;;  %v3014_v48 = vsel %vm2960_vm5, %v6192_v21, %v3013_v56  ;;  %v6200_v63 = vld [vmem:[#allocation18_spill] sm:$0xff]  ;;  %v6203_v49 = vld [vmem:[#allocation19_spill] sm:$0xff]  ;;  %v6206_v54 = vld [vmem:[#allocation20_spill] sm:$0xff] }
 0x1d2   :  { %v2996_v6 = vsel %vm2966_vm8, %v6193_v60, %v2995_v19  ;;  %v3002_v61 = vsel %vm2964_vm7, %v6194_v25, %v3001_v16  ;;  %v3009_v34 = vsel %vm2964_vm7, %v6195_v28, %v3008_v43  ;;  %v3015_v33 = vsel %vm2962_vm6, %v6196_v7, %v3014_v48  ;;  %v6205_v13 = vld [vmem:[#allocation22_spill] sm:$0xff]  ;;  %v6207_v32 = vld [vmem:[#allocation23_spill] sm:$0xff]  ;;  %v6208_v30 = vld [vmem:[#allocation29_spill] sm:$0xff] }
 0x1d3   :  { %v5431_v39 = vsel %vm2968_vm9, %v6197_v4, %v2996_v6  ;;  %v3003_v44 = vsel %vm2966_vm8, %v6198_v47, %v3002_v61  ;;  %v3010_v2 = vsel %vm2966_vm8, %v6199_v5, %v3009_v34  ;;  %v3016_v11 = vsel %vm2964_vm7, %v6200_v63, %v3015_v33  ;;  %v6209_v20 = vld [vmem:[#allocation30_spill] sm:$0xff]  ;;  %v6210_v56 = vld [vmem:[#allocation37_spill] sm:$0xff]  ;;  %v6212_v15 = vld [vmem:[#allocation24_spill] sm:$0xff] }
 0x1d4   :  { %v5441_v51 = vsel %vm2968_vm9, %v6201_v31, %v3003_v44  ;;  %v5445_v35 = vsel %vm2968_vm9, %v6202_v10, %v3010_v2  ;;  %v3017_v12 = vsel %vm2966_vm8, %v6203_v49, %v3016_v11  ;;  %v3019_v59 = vsel %vm2956_vm3, %v6205_v13, %v6204_v0  ;;  %v6211_v52 = vld [vmem:[#allocation38_spill] sm:$0xff]  ;;  %v6213_v46 = vld [vmem:[#allocation31_spill] sm:$0xff]  ;;  %v6215_v60 = vld [vmem:[#allocation45_spill] sm:$0xff] }
 0x1d5   :  { %v5454_v14 = vsel %vm2968_vm9, %v6206_v54, %v3017_v12  ;;  %v3020_v22 = vsel %vm2958_vm4, %v6207_v32, %v3019_v59  ;;  %v3026_v3 = vsel %vm2956_vm3, %v6209_v20, %v6208_v30  ;;  %v3033_v19 = vsel %vm2956_vm3, %v6211_v52, %v6210_v56  ;;  %v6214_v21 = vld [vmem:[#allocation39_spill] sm:$0xff]  ;;  %v6216_v6 = vld [vmem:[#allocation46_spill] sm:$0xff]  ;;  %v6217_v61 = vld [vmem:[#allocation25_spill] sm:$0xff] }
 0x1d6   :  { %v3021_v16 = vsel %vm2960_vm5, %v6212_v15, %v3020_v22  ;;  %v3027_v43 = vsel %vm2958_vm4, %v6213_v46, %v3026_v3  ;;  %v3034_v48 = vsel %vm2958_vm4, %v6214_v21, %v3033_v19  ;;  %v3040_v25 = vsel %vm2956_vm3, %v6216_v6, %v6215_v60  ;;  %v6218_v34 = vld [vmem:[#allocation32_spill] sm:$0xff]  ;;  %v6220_v47 = vld [vmem:[#allocation47_spill] sm:$0xff]  ;;  %v6221_v5 = vld [vmem:[#allocation26_spill] sm:$0xff] }
 0x1d7   :  { %v3022_v28 = vsel %vm2962_vm6, %v6217_v61, %v3021_v16  ;;  %v3028_v7 = vsel %vm2960_vm5, %v6218_v34, %v3027_v43  ;;  %v6219_v33 = vld [vmem:[#allocation40_spill] sm:$0xff]  ;;  %v3041_v44 = vsel %vm2958_vm4, %v6220_v47, %v3040_v25  ;;  %v6222_v63 = vld [vmem:[#allocation33_spill] sm:$0xff]  ;;  %v6225_v0 = vld [vmem:[#allocation27_spill] sm:$0xff] }
 0x1d8   :  { %v3035_v4 = vsel %vm2960_vm5, %v6219_v33, %v3034_v48  ;;  %v3023_v2 = vsel %vm2964_vm7, %v6221_v5, %v3022_v28  ;;  %v3029_v11 = vsel %vm2962_vm6, %v6222_v63, %v3028_v7  ;;  %v6223_v31 = vld [vmem:[#allocation41_spill] sm:$0xff]  ;;  %v6224_v49 = vld [vmem:[#allocation48_spill] sm:$0xff]  ;;  %v6226_v59 = vld [vmem:[#allocation34_spill] sm:$0xff] }
 0x1d9   :  { %v3036_v10 = vsel %vm2962_vm6, %v6223_v31, %v3035_v4  ;;  %v3042_v12 = vsel %vm2960_vm5, %v6224_v49, %v3041_v44  ;;  %v3024_v13 = vsel %vm2966_vm8, %v6225_v0, %v3023_v2  ;;  %v3030_v54 = vsel %vm2964_vm7, %v6226_v59, %v3029_v11  ;;  %v6227_v32 = vld [vmem:[#allocation42_spill] sm:$0xff]  ;;  %v6228_v30 = vld [vmem:[#allocation49_spill] sm:$0xff]  ;;  %v6229_v3 = vld [vmem:[#allocation28_spill] sm:$0xff] }
 0x1da   :  { %v3037_v22 = vsel %vm2964_vm7, %v6227_v32, %v3036_v10  ;;  %v3043_v20 = vsel %vm2962_vm6, %v6228_v30, %v3042_v12  ;;  %v3025_v56 = vsel %vm2968_vm9, %v6229_v3, %v3024_v13  ;;  %v6230_v52 = vld [vmem:[#allocation35_spill] sm:$0xff]  ;;  %v6232_v46 = vld [vmem:[#allocation50_spill] sm:$0xff]  ;;  %v6233_v21 = vld [vmem:[#allocation36_spill] sm:$0xff]  ;;  %v3061_v11 = vsel %vm2956_vm3, %v5245_v27, %v5240_v42 }
 0x1db   :  { %v3031_v19 = vsel %vm2966_vm8, %v6230_v52, %v3030_v54  ;;  %v6231_v15 = vld [vmem:[#allocation43_spill] sm:$0xff]  ;;  %v3044_v43 = vsel %vm2964_vm7, %v6232_v46, %v3043_v20  ;;  %v6234_v60 = vld [vmem:[#allocation44_spill] sm:$0xff]  ;;  %v6236_v28 = vld [vmem:[#allocation53_spill] sm:$0xff]  ;;  %v3062_v0 = vsel %vm2958_vm4, %v5250_v45, %v3061_v11  ;;  %v3068_v13 = vsel %vm2956_vm3, %v5285_v50, %v5280_v8 }
 0x1dc   :  { %v3038_v16 = vsel %vm2966_vm8, %v6231_v15, %v3037_v22  ;;  %v3032_v48 = vsel %vm2968_vm9, %v6233_v21, %v3031_v19  ;;  %v6235_v25 = vld [vmem:[#allocation51_spill] sm:$0xff]  ;;  %v6237_v34 = vld [vmem:[#allocation54_spill] sm:$0xff]  ;;  %v6238_v33 = vld [vmem:[#allocation52_spill] sm:$0xff]  ;;  %v3063_v42 = vsel %vm2960_vm5, %v5255_v57, %v3062_v0  ;;  %v3069_v27 = vsel %vm2958_vm4, %v5290_v24, %v3068_v13 }
 0x1dd   :  { %v3039_v6 = vsel %vm2968_vm9, %v6234_v60, %v3038_v16  ;;  %v3045_v61 = vsel %vm2966_vm8, %v6235_v25, %v3044_v43  ;;  %v3047_v7 = vsel %vm2956_vm3, %v6237_v34, %v6236_v28  ;;  %v6239_v47 = vld [vmem:[#allocation55_spill] sm:$0xff]  ;;  %v6240_v5 = vld [vmem:[#allocation61_spill] sm:$0xff]  ;;  %v6241_v2 = vld [vmem:[#allocation62_spill] sm:$0xff]  ;;  %v3064_v8 = vsel %vm2962_vm6, %v5260_v18, %v3063_v42 }
 0x1de   :  { %v3046_v4 = vsel %vm2968_vm9, %v6238_v33, %v3045_v61  ;;  %v3048_v44 = vsel %vm2958_vm4, %v6239_v47, %v3047_v7  ;;  %v3054_v63 = vsel %vm2956_vm3, %v6241_v2, %v6240_v5  ;;  %v6242_v31 = vld [vmem:[#allocation56_spill] sm:$0xff]  ;;  %v6243_v49 = vld [vmem:[#allocation63_spill] sm:$0xff]  ;;  %v6244_v59 = vld [vmem:[#allocation57_spill] sm:$0xff]  ;;  %v3070_v50 = vsel %vm2960_vm5, %v5295_v37, %v3069_v27 }
 0x1df   :  { %v3049_v10 = vsel %vm2960_vm5, %v6242_v31, %v3048_v44  ;;  %v3055_v12 = vsel %vm2958_vm4, %v6243_v49, %v3054_v63  ;;  %v6245_v22 = vld [vmem:[#allocation58_spill] sm:$0xff]  ;;  %v6246_v20 = vld [vmem:[#allocation59_spill] sm:$0xff]  ;;  %v3065_v24 = vsel %vm2964_vm7, %v5265_v53, %v3064_v8  ;;  %v3071_v3 = vsel %vm2962_vm6, %v5300_v62, %v3070_v50  ;;  %v6247_v52 = vld [vmem:[#allocation60_spill] sm:$0xff] }
 0x1e0   :  { %v3050_v54 = vsel %vm2962_vm6, %v6244_v59, %v3049_v10  ;;  %v3056_v32 = vsel %vm2960_vm5, %v5215_v58, %v3055_v12  ;;  %v3066_v37 = vsel %vm2966_vm8, %v5270_v36, %v3065_v24  ;;  %v3072_v19 = vsel %vm2964_vm7, %v5305_v9, %v3071_v3  ;;  %v6248_v15 = vld [vmem:[#allocation64_spill] sm:$0xff]  ;;  %v6249_v16 = vld [vmem:[#allocation65_spill] sm:$0xff] }
 0x1e1   :  { %v3051_v30 = vsel %vm2964_vm7, %v6245_v22, %v3050_v54  ;;  %v3057_v45 = vsel %vm2962_vm6, %v5220_v26, %v3056_v32  ;;  %v3067_v53 = vsel %vm2968_vm9, %v6249_v16, %v3066_v37  ;;  %v3073_v62 = vsel %vm2966_vm8, %v5310_v1, %v3072_v19 }
 0x1e2   :  { %v3052_v58 = vsel %vm2966_vm8, %v6246_v20, %v3051_v30  ;;  %v3058_v57 = vsel %vm2964_vm7, %v5225_v17, %v3057_v45  ;;  %v3075_v46 = vpack.c.b16 %v5363_v29, %v5363_v29  ;;  %v3076_v36 = vpack.c.b16 %v5373_v38, %v5373_v38 }
 0x1e3   :  { %v3053_v26 = vsel %vm2968_vm9, %v6247_v52, %v3052_v58  ;;  %v3059_v18 = vsel %vm2966_vm8, %v5230_v41, %v3058_v57  ;;  %v3074_v41 = vsel %vm2968_vm9, %v5315_v55, %v3073_v62  ;;  %v3077_v9 = vpack.c.b16 %v5377_v23, %v5377_v23 }
 0x1e4   :  { %v3060_v17 = vsel %vm2968_vm9, %v6248_v15, %v3059_v18  ;;  %v3078_v43 = vpack.c.b16 %v5386_v40, %v5386_v40  ;;  %v3079_v21 = vpack.c.b16 %v5431_v39, %v5431_v39  ;;  %v3080_v1 = vpack.c.b16 %v5441_v51, %v5441_v51  ;;  %3107 = vst [vmem:[%s5638_s1] sm:$0xf] %v3075_v46 }
 0x1e5   :  { %v3081_v29 = vpack.c.b16 %v5445_v35, %v5445_v35  ;;  %v3082_v55 = vpack.c.b16 %v5454_v14, %v5454_v14  ;;  %v3083_v38 = vpack.c.b16 %v3025_v56, %v3025_v56  ;;  %v3084_v23 = vpack.c.b16 %v3032_v48, %v3032_v48  ;;  %3108 = vst [vmem:[%s5638_s1 + $0x4] sm:$0xf] %v3076_v36 }
 0x1e6   :  { %v3085_v60 = vpack.c.b16 %v3039_v6, %v3039_v6  ;;  %v3086_v40 = vpack.c.b16 %v3046_v4, %v3046_v4  ;;  %3109 = vst [vmem:[%s5638_s1 + $0x8] sm:$0xf] %v3077_v9  ;;  %3110 = vst [vmem:[%s5638_s1 + $0xc] sm:$0xf] %v3078_v43  ;;  %v3087_v39 = vpack.c.b16 %v3053_v26, %v3053_v26 }
 0x1e7   :  { %v3088_v51 = vpack.c.b16 %v3060_v17, %v3060_v17  ;;  %v3089_v35 = vpack.c.b16 %v3067_v53, %v3067_v53  ;;  %v3090_v14 = vpack.c.b16 %v3074_v41, %v3074_v41  ;;  %3111 = vst [vmem:[%s5638_s1 + $0x10] sm:$0xf] %v3079_v21  ;;  %3112 = vst [vmem:[%s5638_s1 + $0x14] sm:$0xf] %v3080_v1 }
 0x1e8   :  { %3113 = vst [vmem:[%s5638_s1 + $0x18] sm:$0xf] %v3081_v29  ;;  %3114 = vst [vmem:[%s5638_s1 + $0x1c] sm:$0xf] %v3082_v55 }
 0x1e9   :  { %3115 = vst [vmem:[%s5638_s1 + $0x20] sm:$0xf] %v3083_v38  ;;  %3116 = vst [vmem:[%s5638_s1 + $0x24] sm:$0xf] %v3084_v23 }
 0x1ea   :  { %3117 = vst [vmem:[%s5638_s1 + $0x28] sm:$0xf] %v3085_v60  ;;  %3118 = vst [vmem:[%s5638_s1 + $0x2c] sm:$0xf] %v3086_v40 }
 0x1eb   :  { %3119 = vst [vmem:[%s5638_s1 + $0x30] sm:$0xf] %v3087_v39  ;;  %3120 = vst [vmem:[%s5638_s1 + $0x34] sm:$0xf] %v3088_v51 }
 0x1ec   :  { %3121 = vst [vmem:[%s5638_s1 + $0x38] sm:$0xf] %v3089_v35  ;;  %3122 = vst [vmem:[%s5638_s1 + $0x3c] sm:$0xf] %v3090_v14 }

// kernel: forward.61
= control target key start
LH: loop header
LB: loop body
LE: loop exit
PB: predicated region body
PF: predicated region fallthrough
CT: control target
= control target key end

     0   :  { %s2002_s9 = smov 0   ;;  %s2004_s10 = smov 0   ;;  %s2299_s0 = inlined_call_operand.vmem [shape: bf16[128,1152], index: 0, kind: input, shape index: {}]   ;;  %s2300_s1 = inlined_call_operand.vmem [shape: bf16[1152,128], index: 1, kind: input, shape index: {}]   ;;  %s2301_s2 = inlined_call_operand.vmem [shape: bf16[128,128], index: 2, kind: output, shape index: {}]  }
   0x1   :  { %s2006_s11 = smov 0  }
   0x2 LB: > { %s24_s12 = sadd.s32 1, %s1981_s10  ;;  %p1448_p0 = scmp.ge.s32.totalorder %s1985_s11, 1  ;;  %s1985_s11 = sphi %s2006_s11, %s12_s11   ;;  %s1981_s10 = sphi %s2004_s10, %s2303_s10   ;;  %s1977_s9 = sphi %s2002_s9, %s2302_s9  }
   0x3   : > { %p26_p1 = scmp.ge.s32.totalorder %s24_s12, 2  ;;  %p137_p2 = scmp.lt.s32.totalorder %s1985_s11, 3 }
   0x5   : > { %s2305_s12 = smov (%p26_p1, %s24_s12), 0  ;;  %p138_p3 = pnand %p1448_p0, %p137_p2 }
   0x6   : > { %v1839_v0 = vld [vmem:[%s2300_s1 + $0x40] sm:$0xff] (!%p138_p3)   ;;  %v1843_v4 = vld [vmem:[%s2300_s1 + $0x48] sm:$0xff] (!%p138_p3)   ;;  %v1847_v8 = vld [vmem:[%s2300_s1 + $0x50] sm:$0xff] (!%p138_p3)   ;;  %s1449_s19 = sshll.u32 (!%p138_p3), %s1977_s9, 3 }
   0x7   : > { %141 = sbr.rel (%p138_p3) target bundleno = 326 (0x146), region = 28  ;;  %v1840_v1 = vld [vmem:[%s2300_s1 + $0xc0] sm:$0xff] (!%p138_p3)   ;;  %1602 = vmatprep.subr.bf16.mxu0 (!%p138_p3), %v1839_v0  ;;  %v1844_v5 = vld [vmem:[%s2300_s1 + $0xc8] sm:$0xff] (!%p138_p3)   ;;  %v1848_v9 = vld [vmem:[%s2300_s1 + $0xd0] sm:$0xff] (!%p138_p3)   ;;  %p168_p4 = scmp.lt.s32.totalorder (!%p138_p3), %s1449_s19, 15 }
   0x8   : > { %v1841_v2 = vld [vmem:[%s2300_s1] sm:$0xff] (!%p138_p3)   ;;  %1642 = vmatprep.subr.bf16.mxu1 (!%p138_p3), %v1840_v1  ;;  %v1845_v6 = vld [vmem:[%s2300_s1 + $0x8] sm:$0xff] (!%p138_p3)   ;;  %v1849_v10 = vld [vmem:[%s2300_s1 + $0x10] sm:$0xff] (!%p138_p3)  }
   0x9   : > { %v1842_v3 = vld [vmem:[%s2300_s1 + $0x80] sm:$0xff] (!%p138_p3)   ;;  %1603 = vmatpush3.bf16.msra.mxu0 (!%p138_p3), %v1841_v2  ;;  %v1846_v7 = vld [vmem:[%s2300_s1 + $0x88] sm:$0xff] (!%p138_p3)   ;;  %v1850_v11 = vld [vmem:[%s2300_s1 + $0x90] sm:$0xff] (!%p138_p3)  }
   0xa   : > { %1643 = vmatpush3.bf16.msra.mxu1 (!%p138_p3), %v1842_v3  ;;  %1604 = vmatprep.subr.bf16.mxu0 (!%p138_p3), %v1843_v4  ;;  %v1851_v12 = vld [vmem:[%s2300_s1 + $0x58] sm:$0xff] (!%p138_p3)   ;;  %v1855_v16 = vld [vmem:[%s2300_s1 + $0x60] sm:$0xff] (!%p138_p3)   ;;  %v1859_v20 = vld [vmem:[%s2300_s1 + $0x68] sm:$0xff] (!%p138_p3)  }
   0xb   : > { %1644 = vmatprep.subr.bf16.mxu1 (!%p138_p3), %v1844_v5  ;;  %v1852_v13 = vld [vmem:[%s2300_s1 + $0xd8] sm:$0xff] (!%p138_p3)   ;;  %v1856_v17 = vld [vmem:[%s2300_s1 + $0xe0] sm:$0xff] (!%p138_p3)   ;;  %v1860_v21 = vld [vmem:[%s2300_s1 + $0xe8] sm:$0xff] (!%p138_p3)  }
   0xc   : > { %v1853_v14 = vld [vmem:[%s2300_s1 + $0x18] sm:$0xff] (!%p138_p3)   ;;  %v1857_v18 = vld [vmem:[%s2300_s1 + $0x20] sm:$0xff] (!%p138_p3)   ;;  %v1861_v22 = vld [vmem:[%s2300_s1 + $0x28] sm:$0xff] (!%p138_p3)  }
   0xd   : > { %1605 = vmatpush3.bf16.msra.mxu0 (!%p138_p3), %v1845_v6  ;;  %v1854_v15 = vld [vmem:[%s2300_s1 + $0x98] sm:$0xff] (!%p138_p3)   ;;  %v1858_v19 = vld [vmem:[%s2300_s1 + $0xa0] sm:$0xff] (!%p138_p3)   ;;  %v1862_v23 = vld [vmem:[%s2300_s1 + $0xa8] sm:$0xff] (!%p138_p3)  }
   0xe   : > { %1645 = vmatpush3.bf16.msra.mxu1 %v1846_v7  ;;  %1606 = vmatprep.subr.bf16.mxu0 %v1847_v8  ;;  %s2307_s19 = smov (!%p168_p4, %s1449_s19), 15  ;;  %v1863_v24 = vld [vmem:[%s2300_s1 + $0x70] sm:$0xff]   ;;  %v1867_v28 = vld [vmem:[%s2300_s1 + $0x78] sm:$0xff]   ;;  %v1877_v36 = vld [vmem:[%s2300_s1 + $0x140] sm:$0xff]  }
   0xf   : > { %1646 = vmatprep.subr.bf16.mxu1 %v1848_v9  ;;  %v1864_v25 = vld [vmem:[%s2300_s1 + $0xf0] sm:$0xff]   ;;  %s1814_s17 = smul.u32 36, %s2307_s19  ;;  %v1868_v29 = vld [vmem:[%s2300_s1 + $0xf8] sm:$0xff]   ;;  %v1878_v37 = vld [vmem:[%s2300_s1 + $0x1c0] sm:$0xff]  }
  0x10   : > { %v1865_v26 = vld [vmem:[%s2300_s1 + $0x30] sm:$0xff]   ;;  %v1869_v30 = vld [vmem:[%s2300_s1 + $0x38] sm:$0xff]   ;;  %v1879_v38 = vld [vmem:[%s2300_s1 + $0x100] sm:$0xff]  }
  0x11   : > { %1607 = vmatpush3.bf16.msra.mxu0 %v1849_v10  ;;  %v1866_v27 = vld [vmem:[%s2300_s1 + $0xb0] sm:$0xff]   ;;  %s2119_s28 = scalar_lea.vmem %s2299_s0, %s1814_s17  ;;  %v1870_v31 = vld [vmem:[%s2300_s1 + $0xb8] sm:$0xff]   ;;  %v1880_v39 = vld [vmem:[%s2300_s1 + $0x180] sm:$0xff]  }
  0x12   : > { %1647 = vmatpush3.bf16.msra.mxu1 %v1850_v11  ;;  %1608 = vmatprep.subr.bf16.mxu0 %v1851_v12  ;;  %v1871_v32 = vld [vmem:[%s2119_s28] ss:$36 sps:$4 sm:$0xff]   ;;  %v1874_v34 = vld [vmem:[%s2119_s28 + $0x8] ss:$36 sps:$4 sm:$0xff]   ;;  %v1887_v45 = vld [vmem:[%s2119_s28 + $0x54] ss:$36 sps:$4 sm:$0xff]  }
  0x13   : > { %1648 = vmatprep.subr.bf16.mxu1 %v1852_v13  ;;  %v1873_v33 = vld [vmem:[%s2119_s28 + $0x4] ss:$36 sps:$4 sm:$0xff]   ;;  %v1876_v35 = vld [vmem:[%s2119_s28 + $0xc] ss:$36 sps:$4 sm:$0xff]   ;;  %v1895_v52 = vld [vmem:[%s2300_s1 + $0x158] sm:$0xff]  }
  0x14   : > { %1020 = vmatprep.mubr.bf16.mxu0 %v1873_v33  ;;  %1085 = vmatprep.mubr.bf16.mxu1 %v1876_v35  ;;  %v1881_v40 = vld [vmem:[%s2300_s1 + $0x148] sm:$0xff]   ;;  %v1890_v47 = vld [vmem:[%s2119_s28 + $0x50] ss:$36 sps:$4 sm:$0xff]   ;;  %v1896_v53 = vld [vmem:[%s2300_s1 + $0x1d8] sm:$0xff]  }
  0x15   : > { %1609 = vmatpush3.bf16.msra.mxu0 %v1853_v14  ;;  %v1882_v41 = vld [vmem:[%s2300_s1 + $0x1c8] sm:$0xff]   ;;  %v1891_v48 = vld [vmem:[%s2300_s1 + $0x150] sm:$0xff]   ;;  %v1897_v54 = vld [vmem:[%s2300_s1 + $0x118] sm:$0xff]  }
  0x16   : > { %1649 = vmatpush3.bf16.msra.mxu1 %v1854_v15  ;;  %1610 = vmatprep.subr.bf16.mxu0 %v1855_v16  ;;  %v1883_v42 = vld [vmem:[%s2300_s1 + $0x108] sm:$0xff]   ;;  %v1892_v49 = vld [vmem:[%s2300_s1 + $0x1d0] sm:$0xff]   ;;  %v1898_v55 = vld [vmem:[%s2300_s1 + $0x198] sm:$0xff]  }
  0x17   : > { %1650 = vmatprep.subr.bf16.mxu1 %v1856_v17  ;;  %v1884_v43 = vld [vmem:[%s2300_s1 + $0x188] sm:$0xff]   ;;  %v1893_v50 = vld [vmem:[%s2300_s1 + $0x110] sm:$0xff]   ;;  %v1901_v57 = vld [vmem:[%s2119_s28 + $0x9c] ss:$36 sps:$4 sm:$0xff]  }
  0x18   : > { %v1885_v44 = vld [vmem:[%s2119_s28 + $0x4c] ss:$36 sps:$4 sm:$0xff]   ;;  %v1899_v56 = vld [vmem:[%s2119_s28 + $0x94] ss:$36 sps:$4 sm:$0xff]   ;;  %v1905_v60 = vld [vmem:[%s2300_s1 + $0x160] sm:$0xff]  }
  0x19   : > { %1611 = vmatpush3.bf16.msra.mxu0 %v1857_v18  ;;  %v1889_v46 = vld [vmem:[%s2119_s28 + $0x48] ss:$36 sps:$4 sm:$0xff]   ;;  %v1894_v51 = vld [vmem:[%s2300_s1 + $0x190] sm:$0xff]   ;;  %v1904_v59 = vld [vmem:[%s2119_s28 + $0x98] ss:$36 sps:$4 sm:$0xff]  }
  0x1a   : > { %1651 = vmatpush3.bf16.msra.mxu1 %v1858_v19  ;;  %1612 = vmatprep.subr.bf16.mxu0 %v1859_v20  ;;  %v1903_v58 = vld [vmem:[%s2119_s28 + $0x90] ss:$36 sps:$4 sm:$0xff]   ;;  %v1906_v61 = vld [vmem:[%s2300_s1 + $0x1e0] sm:$0xff]   ;;  %v1909_v0 = vld [vmem:[%s2300_s1 + $0x168] sm:$0xff]  }
  0x1b   : > { %1652 = vmatprep.subr.bf16.mxu1 %v1860_v21  ;;  %v1907_v62 = vld [vmem:[%s2300_s1 + $0x120] sm:$0xff]   ;;  %v1910_v1 = vld [vmem:[%s2300_s1 + $0x1e8] sm:$0xff]   ;;  %v1917_v6 = vld [vmem:[%s2119_s28 + $0xd8] ss:$36 sps:$4 sm:$0xff]  }
  0x1c   : > { %v1908_v63 = vld [vmem:[%s2300_s1 + $0x1a0] sm:$0xff]   ;;  %v1911_v2 = vld [vmem:[%s2300_s1 + $0x128] sm:$0xff]   ;;  %v1919_v8 = vld [vmem:[%s2300_s1 + $0x170] sm:$0xff]  }
  0x1d   : > { %1613 = vmatpush3.bf16.msra.mxu0 %v1861_v22  ;;  %v1912_v3 = vld [vmem:[%s2300_s1 + $0x1a8] sm:$0xff]   ;;  %v1913_v4 = vld [vmem:[%s2119_s28 + $0xdc] ss:$36 sps:$4 sm:$0xff]   ;;  %v1920_v9 = vld [vmem:[%s2300_s1 + $0x1f0] sm:$0xff]  }
  0x1e   : > { %1653 = vmatpush3.bf16.msra.mxu1 %v1862_v23  ;;  %1614 = vmatprep.subr.bf16.mxu0 %v1863_v24  ;;  %v1915_v5 = vld [vmem:[%s2119_s28 + $0xe4] ss:$36 sps:$4 sm:$0xff]   ;;  %v1921_v10 = vld [vmem:[%s2300_s1 + $0x130] sm:$0xff]   ;;  %v1923_v12 = vld [vmem:[%s2300_s1 + $0x178] sm:$0xff]  }
  0x1f   : > { %1654 = vmatprep.subr.bf16.mxu1 %v1864_v25  ;;  %v1918_v7 = vld [vmem:[%s2119_s28 + $0xe0] ss:$36 sps:$4 sm:$0xff]   ;;  %v1922_v11 = vld [vmem:[%s2300_s1 + $0x1b0] sm:$0xff]   ;;  %v1924_v13 = vld [vmem:[%s2300_s1 + $0x1f8] sm:$0xff]  }
  0x20   : > { %v1925_v14 = vld [vmem:[%s2300_s1 + $0x138] sm:$0xff]   ;;  %v1927_v16 = vld [vmem:[%s2119_s28 + $0x10] ss:$36 sps:$4 sm:$0xff]   ;;  %v1933_v20 = vld [vmem:[%s2300_s1 + $0x200] sm:$0xff]  }
  0x21   : > { %1615 = vmatpush3.bf16.msra.mxu0 %v1865_v26  ;;  %v1926_v15 = vld [vmem:[%s2300_s1 + $0x1b8] sm:$0xff]   ;;  %v1934_v21 = vld [vmem:[%s2300_s1 + $0x208] sm:$0xff]   ;;  %v1940_v25 = vld [vmem:[%s2119_s28 + $0x60] ss:$36 sps:$4 sm:$0xff]  }
  0x22   : > { %1655 = vmatpush3.bf16.msra.mxu1 %v1866_v27  ;;  %1616 = vmatprep.subr.bf16.mxu0 %v1867_v28  ;;  %v1929_v17 = vld [vmem:[%s2119_s28 + $0x14] ss:$36 sps:$4 sm:$0xff]   ;;  %v1932_v19 = vld [vmem:[%s2119_s28 + $0x1c] ss:$36 sps:$4 sm:$0xff]   ;;  %v1937_v23 = vld [vmem:[%s2119_s28 + $0x64] ss:$36 sps:$4 sm:$0xff]  }
  0x23   : > { %1656 = vmatprep.subr.bf16.mxu1 %v1868_v29  ;;  %v1930_v18 = vld [vmem:[%s2119_s28 + $0x18] ss:$36 sps:$4 sm:$0xff]   ;;  %v1941_v26 = vld [vmem:[%s2300_s1 + $0x210] sm:$0xff]   ;;  %v1943_v27 = vld [vmem:[%s2119_s28 + $0xa4] ss:$36 sps:$4 sm:$0xff]  }
  0x24   : > { %v1935_v22 = vld [vmem:[%s2119_s28 + $0x5c] ss:$36 sps:$4 sm:$0xff]   ;;  %v1945_v28 = vld [vmem:[%s2119_s28 + $0xac] ss:$36 sps:$4 sm:$0xff]  }
  0x25   : > { %1617 = vmatpush3.bf16.msra.mxu0 %v1869_v30  ;;  %v1939_v24 = vld [vmem:[%s2119_s28 + $0x58] ss:$36 sps:$4 sm:$0xff]   ;;  %v1947_v30 = vld [vmem:[%s2119_s28 + $0xa0] ss:$36 sps:$4 sm:$0xff]   ;;  %v1951_v33 = vld [vmem:[%s2119_s28 + $0xec] ss:$36 sps:$4 sm:$0xff]  }
  0x26   : > { %1657 = vmatpush3.bf16.msra.mxu1 %v1870_v31  ;;  %1682 = vmatprep.subr.bf16.mxu0 %v1877_v36  ;;  %v1942_v29 = vld [vmem:[%s2300_s1 + $0x218] sm:$0xff]   ;;  %v1948_v31 = vld [vmem:[%s2119_s28 + $0xa8] ss:$36 sps:$4 sm:$0xff]  }
  0x27   : > { %1722 = vmatprep.subr.bf16.mxu1 %v1878_v37  ;;  %v1950_v35 = vld [vmem:[%s2300_s1 + $0x228] sm:$0xff]   ;;  %v1957_v37 = vld [vmem:[%s2300_s1 + $0x230] sm:$0xff]  }
  0x28   : > { %1021 = vmatmul.mubr.bf16.vlgmr.msra.gmra.mrb[0].mxu0 %v1871_v32  ;;  %v1949_v32 = vld [vmem:[%s2300_s1 + $0x220] sm:$0xff]   ;;  %v1955_v36 = vld [vmem:[%s2119_s28 + $0xe8] ss:$36 sps:$4 sm:$0xff]  }
  0x29   : > { %1086 = vmatmul.mubr.bf16.vlgmr.msra.gmra.mrb[0].mxu1 %v1874_v34  ;;  %1683 = vmatpush3.bf16.msra.mxu0 %v1879_v38  ;;  %v1953_v34 = vld [vmem:[%s2119_s28 + $0xf4] ss:$36 sps:$4 sm:$0xff]  }
  0x2a   : > { %1723 = vmatpush3.bf16.msra.mxu1 %v1880_v39  ;;  %1684 = vmatprep.subr.bf16.mxu0 %v1881_v40  ;;  %v1956_v38 = vld [vmem:[%s2119_s28 + $0xf0] ss:$36 sps:$4 sm:$0xff]   ;;  %v1959_v39 = vld [vmem:[%s2119_s28 + $0x20] ss:$36 sps:$4 sm:$0xff]  }
  0x2b   : > { %1724 = vmatprep.subr.bf16.mxu1 %v1882_v41  ;;  %1028 = vmatprep.mubr.bf16.mxu0 %v1885_v44  ;;  %v1960_v40 = vld [vmem:[%s2119_s28 + $0xb0] ss:$36 sps:$4 sm:$0xff]   ;;  %v1958_v41 = vld [vmem:[%s2300_s1 + $0x238] sm:$0xff]  }
  0x2c   : > { %1093 = vmatprep.mubr.bf16.mxu1 %v1887_v45 }
  0x2d   : > { %1685 = vmatpush3.bf16.msra.mxu0 %v1883_v42  ;;  %v1961_v42 = vld [vmem:[%s2119_s28 + $0x68] ss:$36 sps:$4 sm:$0xff]  }
  0x2e   : > { %1725 = vmatpush3.bf16.msra.mxu1 %v1884_v43  ;;  %1686 = vmatprep.subr.bf16.mxu0 %v1891_v48  ;;  %v1962_v43 = vld [vmem:[%s2119_s28 + $0xf8] ss:$36 sps:$4 sm:$0xff]   ;;  %s1452_s28 = sshll.u32 %s2307_s19, 2 }
  0x2f   : > { %1726 = vmatprep.subr.bf16.mxu1 %v1892_v49  ;;  %s185_s23 = scalar_lea.vmem %s2301_s2, %s1452_s28 }
  0x30   : > { %1029 = vmatmul.mubr.bf16.gmra.mrb[4].mxu0 %v1889_v46 }
  0x31   : > { %1094 = vmatmul.mubr.bf16.gmra.mrb[4].mxu1 %v1890_v47  ;;  %1687 = vmatpush3.bf16.msra.mxu0 %v1893_v50 }
  0x32   : > { %1727 = vmatpush3.bf16.msra.mxu1 %v1894_v51  ;;  %1688 = vmatprep.subr.bf16.mxu0 %v1895_v52 }
  0x33   : > { %1728 = vmatprep.subr.bf16.mxu1 %v1896_v53  ;;  %1036 = vmatprep.mubr.bf16.mxu0 %v1899_v56 }
  0x34   : > { %1101 = vmatprep.mubr.bf16.mxu1 %v1901_v57 }
  0x35   : > { %1689 = vmatpush3.bf16.msra.mxu0 %v1897_v54 }
  0x36   : > { %1729 = vmatpush3.bf16.msra.mxu1 %v1898_v55  ;;  %1690 = vmatprep.subr.bf16.mxu0 %v1905_v60 }
  0x37   : > { %1730 = vmatprep.subr.bf16.mxu1 %v1906_v61 }
  0x38   : > { %1037 = vmatmul.mubr.bf16.gmra.mrb[8].mxu0 %v1903_v58 }
  0x39   : > { %1102 = vmatmul.mubr.bf16.gmra.mrb[8].mxu1 %v1904_v59  ;;  %1691 = vmatpush3.bf16.msra.mxu0 %v1907_v62 }
  0x3a   : > { %1731 = vmatpush3.bf16.msra.mxu1 %v1908_v63  ;;  %1692 = vmatprep.subr.bf16.mxu0 %v1909_v0 }
  0x3b   : > { %1732 = vmatprep.subr.bf16.mxu1 %v1910_v1  ;;  %1044 = vmatprep.mubr.bf16.mxu0 %v1913_v4 }
  0x3c   : > { %1109 = vmatprep.mubr.bf16.mxu1 %v1915_v5 }
  0x3d   : > { %1693 = vmatpush3.bf16.msra.mxu0 %v1911_v2 }
  0x3e   : > { %1733 = vmatpush3.bf16.msra.mxu1 %v1912_v3  ;;  %1694 = vmatprep.subr.bf16.mxu0 %v1919_v8 }
  0x3f   : > { %1734 = vmatprep.subr.bf16.mxu1 %v1920_v9 }
  0x40   : > { %1045 = vmatmul.mubr.bf16.gmra.mrb[12].mxu0 %v1917_v6 }
  0x41   : > { %1110 = vmatmul.mubr.bf16.gmra.mrb[12].mxu1 %v1918_v7  ;;  %1695 = vmatpush3.bf16.msra.mxu0 %v1921_v10 }
  0x42   : > { %1735 = vmatpush3.bf16.msra.mxu1 %v1922_v11  ;;  %1696 = vmatprep.subr.bf16.mxu0 %v1923_v12 }
  0x43   : > { %1736 = vmatprep.subr.bf16.mxu1 %v1924_v13  ;;  %1150 = vmatprep.mubr.bf16.mxu0 %v1929_v17 }
  0x44   : > { %1215 = vmatprep.mubr.bf16.mxu1 %v1932_v19 }
  0x45   : > { %1697 = vmatpush3.bf16.msra.mxu0 %v1925_v14 }
  0x46   : > { %1737 = vmatpush3.bf16.msra.mxu1 %v1926_v15  ;;  %1774 = vmatprep.subr.bf16.mxu0 %v1933_v20 }
  0x47   : > { %1798 = vmatprep.subr.bf16.mxu1 %v1933_v20 }
  0x48   : > { %1151 = vmatmul.mubr.bf16.vlgmr.msra.gmra.mrb[16].mxu0 %v1927_v16 }
  0x49   : > { %1216 = vmatmul.mubr.bf16.vlgmr.msra.gmra.mrb[16].mxu1 %v1930_v18  ;;  %1775 = vmatpush3.bf16.msra.mxu0 %v1933_v20 }
  0x4a   : > { %1806 = vmatpush3.bf16.msra.mxu1 %v1933_v20  ;;  %1776 = vmatprep.subr.bf16.mxu0 %v1934_v21 }
  0x4b   : > { %1799 = vmatprep.subr.bf16.mxu1 %v1934_v21  ;;  %1158 = vmatprep.mubr.bf16.mxu0 %v1935_v22 }
  0x4c   : > { %1223 = vmatprep.mubr.bf16.mxu1 %v1937_v23 }
  0x4d   : > { %1777 = vmatpush3.bf16.msra.mxu0 %v1934_v21 }
  0x4e   : > { %1807 = vmatpush3.bf16.msra.mxu1 %v1934_v21  ;;  %1778 = vmatprep.subr.bf16.mxu0 %v1941_v26 }
  0x4f   : > { %1800 = vmatprep.subr.bf16.mxu1 %v1941_v26 }
  0x50   : > { %1159 = vmatmul.mubr.bf16.gmra.mrb[20].mxu0 %v1939_v24 }
  0x51   : > { %1224 = vmatmul.mubr.bf16.gmra.mrb[20].mxu1 %v1940_v25  ;;  %1166 = vmatprep.mubr.bf16.mxu0 %v1943_v27 }
  0x52   : > { %1779 = vmatpush3.bf16.msra.mxu0 %v1941_v26  ;;  %1231 = vmatprep.mubr.bf16.mxu1 %v1945_v28 }
  0x53   : > { %1808 = vmatpush3.bf16.msra.mxu1 %v1941_v26  ;;  %1780 = vmatprep.subr.bf16.mxu0 %v1942_v29 }
  0x54   : > { %1801 = vmatprep.subr.bf16.mxu1 %v1942_v29 }
  0x56   : > { %1781 = vmatpush3.bf16.msra.mxu0 %v1942_v29 }
  0x57   : > { %1809 = vmatpush3.bf16.msra.mxu1 %v1942_v29  ;;  %1782 = vmatprep.subr.bf16.mxu0 %v1949_v32 }
  0x58   : > { %1167 = vmatmul.mubr.bf16.gmra.mrb[24].mxu0 %v1947_v30  ;;  %1802 = vmatprep.subr.bf16.mxu1 %v1949_v32 }
  0x59   : > { %1232 = vmatmul.mubr.bf16.gmra.mrb[24].mxu1 %v1948_v31  ;;  %1174 = vmatprep.mubr.bf16.mxu0 %v1951_v33 }
  0x5a   : > { %1783 = vmatpush3.bf16.msra.mxu0 %v1949_v32  ;;  %1239 = vmatprep.mubr.bf16.mxu1 %v1953_v34 }
  0x5b   : > { %1810 = vmatpush3.bf16.msra.mxu1 %v1949_v32  ;;  %1784 = vmatprep.subr.bf16.mxu0 %v1950_v35 }
  0x5c   : > { %1803 = vmatprep.subr.bf16.mxu1 %v1950_v35 }
  0x5e   : > { %1785 = vmatpush3.bf16.msra.mxu0 %v1950_v35 }
  0x5f   : > { %1811 = vmatpush3.bf16.msra.mxu1 %v1950_v35  ;;  %1786 = vmatprep.subr.bf16.mxu0 %v1957_v37 }
  0x60   : > { %1175 = vmatmul.mubr.bf16.gmra.mrb[28].mxu0 %v1955_v36  ;;  %1804 = vmatprep.subr.bf16.mxu1 %v1957_v37 }
  0x61   : > { %1240 = vmatmul.mubr.bf16.gmra.mrb[28].mxu1 %v1956_v38  ;;  %1790 = vmatprep.mubr.bf16.mxu0 %v1959_v39 }
  0x62   : > { %1787 = vmatpush3.bf16.msra.mxu0 %v1957_v37  ;;  %1794 = vmatprep.mubr.bf16.mxu1 %v1960_v40 }
  0x63   : > { %1812 = vmatpush3.bf16.msra.mxu1 %v1957_v37  ;;  %1788 = vmatprep.subr.bf16.mxu0 %v1958_v41 }
  0x64   : > { %1805 = vmatprep.subr.bf16.mxu1 %v1958_v41 }
  0x66   : > { %1789 = vmatpush3.bf16.msra.mxu0 %v1958_v41 }
  0x67   : > { %1813 = vmatpush3.bf16.msra.mxu1 %v1958_v41 }
  0x69   : > { %1791 = vmatmul.mubr.bf16.vlgmr.msra.gmra.mrb[32].mxu0 %v1961_v42 }
  0x6a   : > { %1795 = vmatmul.mubr.bf16.vlgmr.msra.gmra.mrb[32].mxu1 %v1962_v43 }
  0xfb   : > { %v1618_v44 = vpop.f32.mrb[0].mxu0 }
  0xfc   : > { %v1658_v45 = vpop.f32.mrb[0].mxu1  ;;  %v1619_v46 = vpop.f32.mrb[1].mxu0 }
  0xfd   : > { %v1620_v47 = vadd.f32 %v1619_v46, %v1618_v44  ;;  %v1659_v48 = vpop.f32.mrb[1].mxu1  ;;  %v1621_v49 = vpop.f32.mrb[2].mxu0 }
  0xfe   : > { %v1660_v50 = vadd.f32 %v1659_v48, %v1658_v45  ;;  %v1661_v51 = vpop.f32.mrb[2].mxu1  ;;  %v1622_v52 = vpop.f32.mrb[3].mxu0 }
  0xff   : > { %v1623_v53 = vadd.f32 %v1622_v52, %v1621_v49  ;;  %v1662_v54 = vpop.f32.mrb[3].mxu1 }
 0x100   : > { %v1088_v55 = vadd.f32 %v1660_v50, %v1620_v47  ;;  %v1663_v56 = vadd.f32 %v1662_v54, %v1661_v51 }
 0x102   : > { %v1091_v57 = vadd.f32 %v1663_v56, %v1623_v53 }
 0x103   : > { %v1624_v58 = vpop.f32.mrb[4].mxu0 }
 0x104   : > { %v1664_v59 = vpop.f32.mrb[4].mxu1  ;;  %v1625_v60 = vpop.f32.mrb[5].mxu0 }
 0x105   : > { %v1626_v61 = vadd.f32 %v1625_v60, %v1624_v58  ;;  %v1665_v62 = vpop.f32.mrb[5].mxu1  ;;  %v1627_v63 = vpop.f32.mrb[6].mxu0 }
 0x106   : > { %v1666_v0 = vadd.f32 %v1665_v62, %v1664_v59  ;;  %v1667_v1 = vpop.f32.mrb[6].mxu1  ;;  %v1628_v2 = vpop.f32.mrb[7].mxu0 }
 0x107   : > { %v1629_v3 = vadd.f32 %v1628_v2, %v1627_v63  ;;  %v1668_v4 = vpop.f32.mrb[7].mxu1 }
 0x108   : > { %v1096_v5 = vadd.f32 %v1666_v0, %v1626_v61  ;;  %v1669_v6 = vadd.f32 %v1668_v4, %v1667_v1 }
 0x10a   : > { %v1099_v7 = vadd.f32 %v1669_v6, %v1629_v3 }
 0x10b   : > { %v1630_v8 = vpop.f32.mrb[8].mxu0 }
 0x10c   : > { %v1670_v9 = vpop.f32.mrb[8].mxu1  ;;  %v1631_v10 = vpop.f32.mrb[9].mxu0 }
 0x10d   : > { %v1632_v11 = vadd.f32 %v1631_v10, %v1630_v8  ;;  %v1671_v12 = vpop.f32.mrb[9].mxu1  ;;  %v1633_v13 = vpop.f32.mrb[10].mxu0 }
 0x10e   : > { %v1672_v14 = vadd.f32 %v1671_v12, %v1670_v9  ;;  %v1673_v15 = vpop.f32.mrb[10].mxu1  ;;  %v1634_v16 = vpop.f32.mrb[11].mxu0 }
 0x10f   : > { %v1635_v17 = vadd.f32 %v1634_v16, %v1633_v13  ;;  %v1674_v18 = vpop.f32.mrb[11].mxu1 }
 0x110   : > { %v1104_v19 = vadd.f32 %v1672_v14, %v1632_v11  ;;  %v1675_v20 = vadd.f32 %v1674_v18, %v1673_v15 }
 0x112   : > { %v1107_v21 = vadd.f32 %v1675_v20, %v1635_v17 }
 0x113   : > { %v1636_v22 = vpop.f32.mrb[12].mxu0 }
 0x114   : > { %v1676_v23 = vpop.f32.mrb[12].mxu1  ;;  %v1637_v24 = vpop.f32.mrb[13].mxu0 }
 0x115   : > { %v1677_v25 = vpop.f32.mrb[13].mxu1  ;;  %v1638_v26 = vadd.f32 %v1637_v24, %v1636_v22  ;;  %v1639_v28 = vpop.f32.mrb[14].mxu0 }
 0x116   : > { %v1678_v27 = vadd.f32 %v1677_v25, %v1676_v23  ;;  %v1679_v29 = vpop.f32.mrb[14].mxu1  ;;  %v1640_v30 = vpop.f32.mrb[15].mxu0 }
 0x117   : > { %v1680_v31 = vpop.f32.mrb[15].mxu1  ;;  %v1641_v33 = vadd.f32 %v1640_v30, %v1639_v28 }
 0x118   : > { %v1112_v32 = vadd.f32 %v1678_v27, %v1638_v26  ;;  %v1681_v34 = vadd.f32 %v1680_v31, %v1679_v29 }
 0x11a   : > { %v1115_v35 = vadd.f32 %v1681_v34, %v1641_v33 }
 0x11b   : > { %v1698_v36 = vpop.f32.mrb[16].mxu0 }
 0x11c   : > { %v1699_v37 = vpop.f32.mrb[17].mxu0  ;;  %v1738_v38 = vpop.f32.mrb[16].mxu1 }
 0x11d   : > { %v1700_v39 = vadd.f32 %v1699_v37, %v1698_v36  ;;  %v1701_v40 = vpop.f32.mrb[18].mxu0  ;;  %v1739_v41 = vpop.f32.mrb[17].mxu1 }
 0x11e   : > { %v1702_v42 = vpop.f32.mrb[19].mxu0  ;;  %v1740_v44 = vadd.f32 %v1739_v41, %v1738_v38  ;;  %v1741_v45 = vpop.f32.mrb[18].mxu1 }
 0x11f   : > { %v1153_v43 = vadd.f32 %v1700_v39, %v1088_v55  ;;  %v1703_v46 = vadd.f32 %v1702_v42, %v1701_v40  ;;  %v1742_v47 = vpop.f32.mrb[19].mxu1 }
 0x120   : > { %v1743_v49 = vadd.f32 %v1742_v47, %v1741_v45 }
 0x121   : > { %v1156_v48 = vadd.f32 %v1703_v46, %v1091_v57  ;;  %v1218_v50 = vadd.f32 %v1740_v44, %v1153_v43 }
 0x123   : > { %v1704_v51 = vpop.f32.mrb[20].mxu0  ;;  %v2283_v52 = vadd.f32 %v1743_v49, %v1156_v48 }
 0x124   : > { %v1705_v53 = vpop.f32.mrb[21].mxu0  ;;  %v1744_v54 = vpop.f32.mrb[20].mxu1 }
 0x125   : > { %v1706_v56 = vadd.f32 %v1705_v53, %v1704_v51  ;;  %v1707_v58 = vpop.f32.mrb[22].mxu0  ;;  %v1745_v59 = vpop.f32.mrb[21].mxu1 }
 0x126   : > { %v1708_v60 = vpop.f32.mrb[23].mxu0  ;;  %v1746_v62 = vadd.f32 %v1745_v59, %v1744_v54  ;;  %v1747_v63 = vpop.f32.mrb[22].mxu1 }
 0x127   : > { %v1161_v61 = vadd.f32 %v1706_v56, %v1096_v5  ;;  %v1709_v55 = vadd.f32 %v1708_v60, %v1707_v58  ;;  %v1748_v0 = vpop.f32.mrb[23].mxu1 }
 0x128   : > { %v1749_v2 = vadd.f32 %v1748_v0, %v1747_v63 }
 0x129   : > { %v1164_v1 = vadd.f32 %v1709_v55, %v1099_v7  ;;  %v1226_v3 = vadd.f32 %v1746_v62, %v1161_v61 }
 0x12b   : > { %v1710_v57 = vpop.f32.mrb[24].mxu0  ;;  %v1229_v4 = vadd.f32 %v1749_v2, %v1164_v1 }
 0x12c   : > { %v1711_v6 = vpop.f32.mrb[25].mxu0  ;;  %v1750_v8 = vpop.f32.mrb[24].mxu1 }
 0x12d   : > { %v1712_v9 = vadd.f32 %v1711_v6, %v1710_v57  ;;  %v1713_v10 = vpop.f32.mrb[26].mxu0  ;;  %v1751_v11 = vpop.f32.mrb[25].mxu1 }
 0x12e   : > { %v1714_v12 = vpop.f32.mrb[27].mxu0  ;;  %v1752_v14 = vadd.f32 %v1751_v11, %v1750_v8  ;;  %v1753_v15 = vpop.f32.mrb[26].mxu1 }
 0x12f   : > { %v1169_v13 = vadd.f32 %v1712_v9, %v1104_v19  ;;  %v1715_v16 = vadd.f32 %v1714_v12, %v1713_v10  ;;  %v1754_v5 = vpop.f32.mrb[27].mxu1 }
 0x130   : > { %v1755_v18 = vadd.f32 %v1754_v5, %v1753_v15 }
 0x131   : > { %v1172_v17 = vadd.f32 %v1715_v16, %v1107_v21  ;;  %v1234_v20 = vadd.f32 %v1752_v14, %v1169_v13 }
 0x133   : > { %v1716_v22 = vpop.f32.mrb[28].mxu0  ;;  %v1237_v7 = vadd.f32 %v1755_v18, %v1172_v17 }
 0x134   : > { %v1717_v23 = vpop.f32.mrb[29].mxu0  ;;  %v1756_v24 = vpop.f32.mrb[28].mxu1 }
 0x135   : > { %v1718_v25 = vadd.f32 %v1717_v23, %v1716_v22  ;;  %v1719_v26 = vpop.f32.mrb[30].mxu0  ;;  %v1757_v27 = vpop.f32.mrb[29].mxu1 }
 0x136   : > { %v1720_v28 = vpop.f32.mrb[31].mxu0  ;;  %v1758_v30 = vadd.f32 %v1757_v27, %v1756_v24  ;;  %v1759_v31 = vpop.f32.mrb[30].mxu1 }
 0x137   : > { %v1177_v29 = vadd.f32 %v1718_v25, %v1112_v32  ;;  %v1721_v19 = vadd.f32 %v1720_v28, %v1719_v26  ;;  %v1760_v33 = vpop.f32.mrb[31].mxu1 }
 0x138   : > { %v1761_v36 = vadd.f32 %v1760_v33, %v1759_v31 }
 0x139   : > { %v1180_v34 = vadd.f32 %v1721_v19, %v1115_v35  ;;  %v1242_v37 = vadd.f32 %v1758_v30, %v1177_v29 }
 0x13b   : > { %v1245_v21 = vadd.f32 %v1761_v36, %v1180_v34 }
 0x13c   : > { %v1792_v38 = vpop.f32.mrb[32].mxu0 }
 0x13d   : > { %v1291_v39 = vadd.f32 %v1792_v38, %v1226_v3  ;;  %v1796_v40 = vpop.f32.mrb[32].mxu1  ;;  %v1282_v41 = vpop.f32.mrb[33].mxu0 }
 0x13e   : > { %v1307_v42 = vadd.f32 %v1796_v40, %v1242_v37  ;;  %v1283_v43 = vadd.f32 %v1282_v41, %v1218_v50  ;;  %v1298_v44 = vpop.f32.mrb[33].mxu1  ;;  %v1793_v45 = vpop.f32.mrb[34].mxu0 }
 0x13f   : > { %v1299_v46 = vadd.f32 %v1298_v44, %v1234_v20  ;;  %v1294_v47 = vadd.f32 %v1793_v45, %v1229_v4  ;;  %v1797_v32 = vpop.f32.mrb[34].mxu1  ;;  %v1285_v48 = vpop.f32.mrb[35].mxu0 }
 0x140   : > { %v1310_v35 = vadd.f32 %v1797_v32, %v1245_v21  ;;  %v1286_v49 = vadd.f32 %v1285_v48, %v2283_v52  ;;  %v1301_v51 = vpop.f32.mrb[35].mxu1 }
 0x141   : > { %v1587_v53 = vpack.c.bf16 %v1294_v47, %v1291_v39  ;;  %v1302_v54 = vadd.f32 %v1301_v51, %v1237_v7 }
 0x142   : > { %v1597_v56 = vpack.c.bf16 %v1310_v35, %v1307_v42  ;;  %v1582_v58 = vpack.c.bf16 %v1286_v49, %v1283_v43 }
 0x143   : > { %1599 = vst [vmem:[%s185_s23 + $0x8] sm:$0xff] %v1587_v53   ;;  %v1592_v50 = vpack.c.bf16 %v1302_v54, %v1299_v46 }
 0x144   : > { %1601 = vst [vmem:[%s185_s23 + $0x18] sm:$0xff] %v1597_v56   ;;  %1583 = vst [vmem:[%s185_s23] sm:$0xff] %v1582_v58  }
 0x145   : > { %1600 = vst [vmem:[%s185_s23 + $0x10] sm:$0xff] %v1592_v50  }
 0x146 PF: > { %s12_s11 = sadd.s32 1, %s1985_s11   ;;  %s2302_s9 = smov %s1981_s10 }
 0x147   : > { %p9_p5 = scmp.ge.s32.totalorder %s12_s11, 4   ;;  %s2303_s10 = smov %s2305_s12 }
 0x149   :  { %11 = sbr.rel (!%p9_p5) target bundleno = 2 (0x2), region = 61 }

// kernel: forward.72
= control target key start
LH: loop header
LB: loop body
LE: loop exit
PB: predicated region body
PF: predicated region fallthrough
CT: control target
= control target key end

     0   :  { %s941_s15 = smov 0   ;;  %s943_s16 = smov 0   ;;  %s1042_s0 = inlined_call_operand.vmem [shape: bf16[128,256], index: 0, kind: input, shape index: {}]   ;;  %s1043_s1 = inlined_call_operand.vmem [shape: bf16[256,128], index: 1, kind: input, shape index: {}]   ;;  %s1044_s2 = inlined_call_operand.vmem [shape: f32[1,128], index: 2, kind: input, shape index: {}]   ;;  %s1045_s3 = inlined_call_operand.vmem [shape: f32[1,128], index: 3, kind: input, shape index: {}]   ;;  %s1046_s4 = inlined_call_operand.vmem [shape: bf16[128,128], index: 4, kind: output, shape index: {}]  }
   0x1   :  { %s945_s17 = smov 0  }
   0x2 LB: > { %s26_s18 = sadd.s32 1, %s910_s16  ;;  %p710_p0 = scmp.ge.s32.totalorder %s914_s17, 1  ;;  %s914_s17 = sphi %s945_s17, %s14_s17   ;;  %s910_s16 = sphi %s943_s16, %s1048_s16   ;;  %s906_s15 = sphi %s941_s15, %s1047_s15  }
   0x3   : > { %p28_p1 = scmp.ge.s32.totalorder %s26_s18, 2  ;;  %p203_p2 = scmp.lt.s32.totalorder %s914_s17, 3 }
   0x5   : > { %s1050_s18 = smov (%p28_p1, %s26_s18), 0  ;;  %p204_p3 = pnand %p710_p0, %p203_p2 }
   0x6   : > { %v864_v0 = vld [vmem:[%s1043_s1 + $0x40] sm:$0xff] (!%p204_p3)   ;;  %s711_s21 = sshll.u32 (!%p204_p3), %s906_s15, 3  ;;  %v866_v2 = vld [vmem:[%s1043_s1 + $0x48] sm:$0xff] (!%p204_p3)   ;;  %v868_v4 = vld [vmem:[%s1043_s1 + $0x50] sm:$0xff] (!%p204_p3)  }
   0x7   : > { %207 = sbr.rel (%p204_p3) target bundleno = 274 (0x112), region = 36  ;;  %v865_v1 = vld [vmem:[%s1043_s1] sm:$0xff] (!%p204_p3)   ;;  %784 = vmatprep.subr.bf16.mxu0 (!%p204_p3), %v864_v0  ;;  %824 = vmatprep.subr.bf16.mxu1 (!%p204_p3), %v864_v0  ;;  %v867_v3 = vld [vmem:[%s1043_s1 + $0x8] sm:$0xff] (!%p204_p3)   ;;  %p244_p4 = scmp.lt.s32.totalorder (!%p204_p3), %s711_s21, 15  ;;  %v869_v5 = vld [vmem:[%s1043_s1 + $0x10] sm:$0xff] (!%p204_p3)  }
   0x8   : > { %785 = vmatpush3.bf16.msra.mxu0 (!%p204_p3), %v865_v1  ;;  %832 = vmatpush3.bf16.msra.mxu1 (!%p204_p3), %v865_v1  ;;  %v870_v6 = vld [vmem:[%s1043_s1 + $0x58] sm:$0xff] (!%p204_p3)   ;;  %v872_v8 = vld [vmem:[%s1043_s1 + $0x60] sm:$0xff] (!%p204_p3)   ;;  %v874_v10 = vld [vmem:[%s1043_s1 + $0x68] sm:$0xff] (!%p204_p3)  }
   0x9   : > { %786 = vmatprep.subr.bf16.mxu0 (!%p204_p3), %v866_v2  ;;  %825 = vmatprep.subr.bf16.mxu1 (!%p204_p3), %v866_v2  ;;  %v871_v7 = vld [vmem:[%s1043_s1 + $0x18] sm:$0xff] (!%p204_p3)   ;;  %v873_v9 = vld [vmem:[%s1043_s1 + $0x20] sm:$0xff] (!%p204_p3)   ;;  %v875_v13 = vld [vmem:[%s1043_s1 + $0x28] sm:$0xff] (!%p204_p3)  }
   0xa   : > { %v876_v14 = vld [vmem:[%s1043_s1 + $0x70] sm:$0xff] (!%p204_p3)   ;;  %v878_v16 = vld [vmem:[%s1043_s1 + $0x78] sm:$0xff] (!%p204_p3)   ;;  %v740_v27 = vld [vmem:[%s1044_s2] ss:$0 sm:$0xff] (!%p204_p3) }
   0xb   : > { %v877_v15 = vld [vmem:[%s1043_s1 + $0x30] sm:$0xff] (!%p204_p3)   ;;  %v879_v17 = vld [vmem:[%s1043_s1 + $0x38] sm:$0xff] (!%p204_p3)   ;;  %v741_v33 = vld [vmem:[%s1045_s3] ss:$0 sm:$0xff] (!%p204_p3) }
   0xc   : > { %787 = vmatpush3.bf16.msra.mxu0 (!%p204_p3), %v867_v3  ;;  %833 = vmatpush3.bf16.msra.mxu1 (!%p204_p3), %v867_v3 }
   0xd   : > { %788 = vmatprep.subr.bf16.mxu0 (!%p204_p3), %v868_v4  ;;  %826 = vmatprep.subr.bf16.mxu1 (!%p204_p3), %v868_v4 }
   0xe   : > { %s1052_s21 = smov (!%p244_p4, %s711_s21), 15 }
   0xf   : > { %s752_s10 = sshll.u32 %s1052_s21, 3  ;;  %s715_s12 = sshll.u32 %s1052_s21, 2 }
  0x10   : > { %789 = vmatpush3.bf16.msra.mxu0 %v869_v5  ;;  %834 = vmatpush3.bf16.msra.mxu1 %v869_v5  ;;  %s992_s15 = scalar_lea.vmem %s1042_s0, %s752_s10 }
  0x11   : > { %790 = vmatprep.subr.bf16.mxu0 %v870_v6  ;;  %827 = vmatprep.subr.bf16.mxu1 %v870_v6  ;;  %v882_v11 = vld [vmem:[%s992_s15 + $0x4] ss:$8 sps:$4 sm:$0xff]   ;;  %v880_v18 = vld [vmem:[%s992_s15] ss:$8 sps:$4 sm:$0xff]   ;;  %v886_v20 = vld [vmem:[%s992_s15 + $0x14] ss:$8 sps:$4 sm:$0xff]  }
  0x12   : > { %v885_v12 = vld [vmem:[%s992_s15 + $0x24] ss:$8 sps:$4 sm:$0xff]   ;;  %478 = vmatprep.mubr.bf16.mxu0 %v882_v11  ;;  %v883_v19 = vld [vmem:[%s992_s15 + $0x20] ss:$8 sps:$4 sm:$0xff]   ;;  %v888_v21 = vld [vmem:[%s992_s15 + $0x34] ss:$8 sps:$4 sm:$0xff]  }
  0x13   : > { %494 = vmatprep.mubr.bf16.mxu1 %v885_v12  ;;  %v890_v22 = vld [vmem:[%s992_s15 + $0x10] ss:$8 sps:$4 sm:$0xff]  }
  0x14   : > { %791 = vmatpush3.bf16.msra.mxu0 %v871_v7  ;;  %835 = vmatpush3.bf16.msra.mxu1 %v871_v7  ;;  %v891_v23 = vld [vmem:[%s992_s15 + $0x30] ss:$8 sps:$4 sm:$0xff]   ;;  %s267_s15 = scalar_lea.vmem %s1046_s4, %s715_s12 }
  0x15   : > { %792 = vmatprep.subr.bf16.mxu0 %v872_v8  ;;  %828 = vmatprep.subr.bf16.mxu1 %v872_v8 }
  0x18   : > { %793 = vmatpush3.bf16.msra.mxu0 %v873_v9  ;;  %836 = vmatpush3.bf16.msra.mxu1 %v873_v9 }
  0x19   : > { %794 = vmatprep.subr.bf16.mxu0 %v874_v10  ;;  %829 = vmatprep.subr.bf16.mxu1 %v874_v10 }
  0x1c   : > { %795 = vmatpush3.bf16.msra.mxu0 %v875_v13  ;;  %837 = vmatpush3.bf16.msra.mxu1 %v875_v13 }
  0x1d   : > { %796 = vmatprep.subr.bf16.mxu0 %v876_v14  ;;  %830 = vmatprep.subr.bf16.mxu1 %v876_v14 }
  0x20   : > { %797 = vmatpush3.bf16.msra.mxu0 %v877_v15  ;;  %838 = vmatpush3.bf16.msra.mxu1 %v877_v15 }
  0x21   : > { %798 = vmatprep.subr.bf16.mxu0 %v878_v16  ;;  %831 = vmatprep.subr.bf16.mxu1 %v878_v16 }
  0x24   : > { %799 = vmatpush3.bf16.msra.mxu0 %v879_v17  ;;  %839 = vmatpush3.bf16.msra.mxu1 %v879_v17 }
  0x27   : > { %479 = vmatmul.mubr.bf16.vlgmr.msra.gmra.mrb[0].mxu0 %v880_v18  ;;  %495 = vmatmul.mubr.bf16.vlgmr.msra.gmra.mrb[0].mxu1 %v883_v19 }
  0x28   : > { %486 = vmatprep.mubr.bf16.mxu0 %v886_v20  ;;  %502 = vmatprep.mubr.bf16.mxu1 %v888_v21 }
  0x2f   : > { %487 = vmatmul.mubr.bf16.gmra.mrb[4].mxu0 %v890_v22  ;;  %503 = vmatmul.mubr.bf16.gmra.mrb[4].mxu1 %v891_v23 }
  0xfa   : > { %v800_v24 = vpop.f32.mrb[0].mxu0  ;;  %v812_v25 = vpop.f32.mrb[0].mxu1 }
  0xfb   : > { %v801_v26 = vpop.f32.mrb[1].mxu0  ;;  %v813_v28 = vpop.f32.mrb[1].mxu1 }
  0xfc   : > { %v802_v29 = vadd.f32 %v801_v26, %v800_v24  ;;  %v814_v30 = vadd.f32 %v813_v28, %v812_v25  ;;  %v803_v31 = vpop.f32.mrb[2].mxu0  ;;  %v815_v32 = vpop.f32.mrb[2].mxu1 }
  0xfd   : > { %v804_v34 = vpop.f32.mrb[3].mxu0  ;;  %v816_v35 = vpop.f32.mrb[3].mxu1 }
  0xfe   : > { %v518_v36 = vmul.f32 %v802_v29, %v740_v27  ;;  %v522_v37 = vmul.f32 %v814_v30, %v740_v27  ;;  %v805_v38 = vadd.f32 %v804_v34, %v803_v31  ;;  %v817_v39 = vadd.f32 %v816_v35, %v815_v32 }
 0x100   : > { %v533_v40 = vadd.f32 %v741_v33, %v518_v36  ;;  %v537_v41 = vadd.f32 %v741_v33, %v522_v37  ;;  %v519_v42 = vmul.f32 %v805_v38, %v740_v27  ;;  %v523_v43 = vmul.f32 %v817_v39, %v740_v27 }
 0x102   : > { %v534_v44 = vadd.f32 %v741_v33, %v519_v42  ;;  %v538_v45 = vadd.f32 %v741_v33, %v523_v43  ;;  %v806_v46 = vpop.f32.mrb[4].mxu0  ;;  %v818_v47 = vpop.f32.mrb[4].mxu1  ;;  %v541_v48 = vmax.f32 %v533_v40, 0.0  ;;  %v545_v49 = vmax.f32 %v537_v41, 0.0 }
 0x103   : > { %v807_v50 = vpop.f32.mrb[5].mxu0  ;;  %v819_v51 = vpop.f32.mrb[5].mxu1 }
 0x104   : > { %v542_v52 = vmax.f32 %v534_v44, 0.0  ;;  %v546_v53 = vmax.f32 %v538_v45, 0.0  ;;  %v808_v54 = vadd.f32 %v807_v50, %v806_v46  ;;  %v820_v55 = vadd.f32 %v819_v51, %v818_v47  ;;  %v809_v56 = vpop.f32.mrb[6].mxu0  ;;  %v821_v57 = vpop.f32.mrb[6].mxu1 }
 0x105   : > { %v810_v58 = vpop.f32.mrb[7].mxu0  ;;  %v822_v59 = vpop.f32.mrb[7].mxu1 }
 0x106   : > { %v764_v60 = vpack.c.bf16 %v542_v52, %v541_v48  ;;  %v774_v61 = vpack.c.bf16 %v546_v53, %v545_v49  ;;  %v520_v62 = vmul.f32 %v808_v54, %v740_v27  ;;  %v524_v63 = vmul.f32 %v820_v55, %v740_v27 }
 0x107   : > { %v811_v0 = vadd.f32 %v810_v58, %v809_v56  ;;  %v823_v1 = vadd.f32 %v822_v59, %v821_v57 }
 0x108   : > { %765 = vst [vmem:[%s267_s15] sm:$0xff] %v764_v60   ;;  %782 = vst [vmem:[%s267_s15 + $0x10] sm:$0xff] %v774_v61   ;;  %v535_v2 = vadd.f32 %v741_v33, %v520_v62  ;;  %v539_v3 = vadd.f32 %v741_v33, %v524_v63 }
 0x109   : > { %v521_v4 = vmul.f32 %v811_v0, %v740_v27  ;;  %v525_v5 = vmul.f32 %v823_v1, %v740_v27 }
 0x10a   : > { %v543_v8 = vmax.f32 %v535_v2, 0.0  ;;  %v547_v9 = vmax.f32 %v539_v3, 0.0 }
 0x10b   : > { %v536_v6 = vadd.f32 %v741_v33, %v521_v4  ;;  %v540_v7 = vadd.f32 %v741_v33, %v525_v5 }
 0x10d   : > { %v544_v10 = vmax.f32 %v536_v6, 0.0  ;;  %v548_v11 = vmax.f32 %v540_v7, 0.0 }
 0x10f   : > { %v769_v12 = vpack.c.bf16 %v544_v10, %v543_v8  ;;  %v779_v13 = vpack.c.bf16 %v548_v11, %v547_v9 }
 0x111   : > { %781 = vst [vmem:[%s267_s15 + $0x8] sm:$0xff] %v769_v12   ;;  %783 = vst [vmem:[%s267_s15 + $0x18] sm:$0xff] %v779_v13  }
 0x112 PF: > { %s14_s17 = sadd.s32 1, %s914_s17   ;;  %s1047_s15 = smov %s910_s16 }
 0x113   : > { %p11_p5 = scmp.ge.s32.totalorder %s14_s17, 4   ;;  %s1048_s16 = smov %s1050_s18 }
 0x115   :  { %13 = sbr.rel (!%p11_p5) target bundleno = 2 (0x2), region = 75 }

// kernel: forward.73
= control target key start
LH: loop header
LB: loop body
LE: loop exit
PB: predicated region body
PF: predicated region fallthrough
CT: control target
= control target key end

     0   :  { %v50_v23 = vlaneseq  ;;  %s872_s1 = inlined_call_operand.vmem [shape: bf16[512,128], index: 1, kind: input, shape index: {}]   ;;  %s873_s0 = inlined_call_operand.vmem [shape: bf16[32,512], index: 0, kind: input, shape index: {}]   ;;  %s874_s2 = inlined_call_operand.vmem [shape: f32[1,512], index: 2, kind: input, shape index: {}]   ;;  %s875_s3 = inlined_call_operand.vmem [shape: f32[1,512], index: 3, kind: input, shape index: {}]   ;;  %s876_s4 = inlined_call_operand.vmem [shape: f32[1,128], index: 4, kind: input, shape index: {}]   ;;  %s877_s5 = inlined_call_operand.vmem [shape: f32[1,128], index: 5, kind: input, shape index: {}]   ;;  %s878_s6 = inlined_call_operand.vmem [shape: bf16[32,128], index: 6, kind: output, shape index: {}]  }
   0x1   :  { %v661_v0 = vld [vmem:[%s872_s1 + $0x40] sm:$0xff]   ;;  %v665_v4 = vld [vmem:[%s872_s1 + $0x48] sm:$0xff]   ;;  %v669_v8 = vld [vmem:[%s872_s1 + $0x50] sm:$0xff]  }
   0x2   :  { %v662_v1 = vld [vmem:[%s872_s1 + $0xc0] sm:$0xff]   ;;  %605 = vmatprep.subr.bf16.mxu0 %v661_v0  ;;  %v666_v5 = vld [vmem:[%s872_s1 + $0xc8] sm:$0xff]   ;;  %v670_v9 = vld [vmem:[%s872_s1 + $0xd0] sm:$0xff]   ;;  %v51_v28 = vshrl.u32 %v50_v23, 7 }
   0x3   :  { %v663_v2 = vld [vmem:[%s872_s1] sm:$0xff]   ;;  %633 = vmatprep.subr.bf16.mxu1 %v662_v1  ;;  %v667_v6 = vld [vmem:[%s872_s1 + $0x8] sm:$0xff]   ;;  %v671_v10 = vld [vmem:[%s872_s1 + $0x10] sm:$0xff]  }
   0x4   :  { %v664_v3 = vld [vmem:[%s872_s1 + $0x80] sm:$0xff]   ;;  %606 = vmatpush3.bf16.msra.mxu0 %v663_v2  ;;  %v668_v7 = vld [vmem:[%s872_s1 + $0x88] sm:$0xff]   ;;  %v672_v11 = vld [vmem:[%s872_s1 + $0x90] sm:$0xff]   ;;  %v56_v33 = vsub.s32 1, %v51_v28  ;;  %v64_v35 = vsub.s32 3, %v51_v28  ;;  %v52_v39 = vsub.s32 0, %v51_v28 }
   0x5   :  { %634 = vmatpush3.bf16.msra.mxu1 %v664_v3  ;;  %607 = vmatprep.subr.bf16.mxu0 %v665_v4  ;;  %v673_v12 = vld [vmem:[%s872_s1 + $0x58] sm:$0xff]   ;;  %v677_v16 = vld [vmem:[%s872_s1 + $0x60] sm:$0xff]   ;;  %v681_v20 = vld [vmem:[%s872_s1 + $0x68] sm:$0xff]   ;;  %v60_v40 = vsub.s32 2, %v51_v28 }
   0x6   :  { %635 = vmatprep.subr.bf16.mxu1 %v666_v5  ;;  %v674_v13 = vld [vmem:[%s872_s1 + $0xd8] sm:$0xff]   ;;  %v678_v17 = vld [vmem:[%s872_s1 + $0xe0] sm:$0xff]   ;;  %v682_v21 = vld [vmem:[%s872_s1 + $0xe8] sm:$0xff]  }
   0x7   :  { %v675_v14 = vld [vmem:[%s872_s1 + $0x18] sm:$0xff]   ;;  %v679_v18 = vld [vmem:[%s872_s1 + $0x20] sm:$0xff]   ;;  %v683_v22 = vld [vmem:[%s872_s1 + $0x28] sm:$0xff]  }
   0x8   :  { %608 = vmatpush3.bf16.msra.mxu0 %v667_v6  ;;  %v676_v15 = vld [vmem:[%s872_s1 + $0x98] sm:$0xff]   ;;  %v680_v19 = vld [vmem:[%s872_s1 + $0xa0] sm:$0xff]   ;;  %v684_v24 = vld [vmem:[%s872_s1 + $0xa8] sm:$0xff]  }
   0x9   :  { %636 = vmatpush3.bf16.msra.mxu1 %v668_v7  ;;  %609 = vmatprep.subr.bf16.mxu0 %v669_v8  ;;  %v685_v25 = vld [vmem:[%s872_s1 + $0x70] sm:$0xff]   ;;  %v689_v30 = vld [vmem:[%s872_s1 + $0x78] sm:$0xff]   ;;  %v24_v36 = vld [vmem:[%s873_s0] sm:$0xff] }
   0xa   :  { %637 = vmatprep.subr.bf16.mxu1 %v670_v9  ;;  %v686_v26 = vld [vmem:[%s872_s1 + $0xf0] sm:$0xff]   ;;  %v690_v31 = vld [vmem:[%s872_s1 + $0xf8] sm:$0xff]   ;;  %v48_v38 = vld [vmem:[%s874_s2] sm:$0xf]  ;;  %v32_v41 = vunpack.c.l.bf16 %v24_v36  ;;  %v33_v42 = vunpack.c.h.bf16 %v24_v36 }
   0xb   :  { %v687_v27 = vld [vmem:[%s872_s1 + $0x30] sm:$0xff]   ;;  %v691_v32 = vld [vmem:[%s872_s1 + $0x38] sm:$0xff]   ;;  %v86_v45 = vld [vmem:[%s875_s3] sm:$0xf]  ;;  %v57_v48 = vrot.slane %v48_v38, %v56_v33  ;;  %v65_v54 = vrot.slane %v48_v38, %v64_v35  ;;  %v53_v58 = vrot.slane %v48_v38, %v52_v39  ;;  %v61_v62 = vrot.slane %v48_v38, %v60_v40 }
   0xc   :  { %610 = vmatpush3.bf16.msra.mxu0 %v671_v10  ;;  %v688_v29 = vld [vmem:[%s872_s1 + $0xb0] sm:$0xff]   ;;  %v692_v34 = vld [vmem:[%s872_s1 + $0xb8] sm:$0xff]   ;;  %v25_v46 = vld [vmem:[%s873_s0 + $0x8] sm:$0xff]  ;;  %v95_v49 = vrot.slane %v86_v45, %v56_v33  ;;  %v103_v55 = vrot.slane %v86_v45, %v64_v35  ;;  %v91_v59 = vrot.slane %v86_v45, %v52_v39  ;;  %v842_v63 = vrot.slane %v86_v45, %v60_v40 }
   0xd   :  { %638 = vmatpush3.bf16.msra.mxu1 %v672_v11  ;;  %611 = vmatprep.subr.bf16.mxu0 %v673_v12  ;;  %v26_v37 = vld [vmem:[%s873_s0 + $0x10] sm:$0xff]  ;;  %v27_v47 = vld [vmem:[%s873_s0 + $0x18] sm:$0xff]  ;;  %v34_v50 = vunpack.c.l.bf16 %v25_v46  ;;  %v35_v51 = vunpack.c.h.bf16 %v25_v46  ;;  %v71_v56 = vmul.f32 %v57_v48, %v33_v42  ;;  %v70_v2 = vmul.f32 %v53_v58, %v32_v41  ;;  %v28_v8 = vld [vmem:[%s873_s0 + $0x20] sm:$0xff] }
   0xe   :  { %639 = vmatprep.subr.bf16.mxu1 %v674_v13  ;;  %v36_v43 = vunpack.c.l.bf16 %v26_v37  ;;  %v37_v44 = vunpack.c.h.bf16 %v26_v37  ;;  %v38_v52 = vunpack.c.l.bf16 %v27_v47  ;;  %v39_v53 = vunpack.c.h.bf16 %v27_v47  ;;  %v30_v13 = vld [vmem:[%s873_s0 + $0x30] sm:$0xff] }
   0xf   :  { %v73_v60 = vmul.f32 %v65_v54, %v35_v51  ;;  %v109_v0 = vadd.f32 %v95_v49, %v71_v56  ;;  %v72_v6 = vmul.f32 %v61_v62, %v34_v50  ;;  %v108_v11 = vadd.f32 %v91_v59, %v70_v2 }
  0x10   :  { %612 = vmatpush3.bf16.msra.mxu0 %v675_v14  ;;  %v75_v57 = vmul.f32 %v57_v48, %v37_v44  ;;  %v77_v61 = vmul.f32 %v65_v54, %v39_v53  ;;  %v74_v3 = vmul.f32 %v53_v58, %v36_v43  ;;  %v76_v7 = vmul.f32 %v61_v62, %v38_v52 }
  0x11   :  { %640 = vmatpush3.bf16.msra.mxu1 %v676_v15  ;;  %613 = vmatprep.subr.bf16.mxu0 %v677_v16  ;;  %v111_v4 = vadd.f32 %v103_v55, %v73_v60  ;;  %v125_v9 = vmax.f32 %v109_v0, 0.0  ;;  %v110_v16 = vadd.f32 %v842_v63, %v72_v6  ;;  %v41_v23 = vunpack.c.h.bf16 %v28_v8 }
  0x12   :  { %641 = vmatprep.subr.bf16.mxu1 %v678_v17  ;;  %v113_v1 = vadd.f32 %v95_v49, %v75_v57  ;;  %v115_v5 = vadd.f32 %v103_v55, %v77_v61  ;;  %v112_v12 = vadd.f32 %v91_v59, %v74_v3  ;;  %v114_v17 = vadd.f32 %v842_v63, %v76_v7 }
  0x13   :  { %v127_v14 = vmax.f32 %v111_v4, 0.0  ;;  %v44_v35 = vunpack.c.l.bf16 %v30_v13 }
  0x14   :  { %614 = vmatpush3.bf16.msra.mxu0 %v679_v18  ;;  %v129_v10 = vmax.f32 %v113_v1, 0.0  ;;  %v131_v15 = vmax.f32 %v115_v5, 0.0  ;;  %v29_v18 = vld [vmem:[%s873_s0 + $0x28] sm:$0xff] }
  0x15   :  { %642 = vmatpush3.bf16.msra.mxu1 %v680_v19  ;;  %615 = vmatprep.subr.bf16.mxu0 %v681_v20  ;;  %v31_v19 = vld [vmem:[%s873_s0 + $0x38] sm:$0xff]  ;;  %v42_v39 = vunpack.c.l.bf16 %v29_v18  ;;  %v82_v42 = vmul.f32 %v53_v58, %v44_v35 }
  0x16   :  { %643 = vmatprep.subr.bf16.mxu1 %v682_v21  ;;  %v141_v20 = vpack.c.bf16 %v129_v10, %v125_v9  ;;  %v124_v21 = vmax.f32 %v108_v11, 0.0  ;;  %v46_v43 = vunpack.c.l.bf16 %v31_v19 }
  0x17   :  { %v80_v47 = vmul.f32 %v61_v62, %v42_v39  ;;  %v120_v52 = vadd.f32 %v91_v59, %v82_v42 }
  0x18   :  { %616 = vmatpush3.bf16.msra.mxu0 %v683_v22  ;;  %v128_v22 = vmax.f32 %v112_v12, 0.0  ;;  %436 = vmatprep.mubr.bf16.mxu0 %v141_v20 }
  0x19   :  { %644 = vmatpush3.bf16.msra.mxu1 %v684_v24  ;;  %617 = vmatprep.subr.bf16.mxu0 %v685_v25  ;;  %v143_v24 = vpack.c.bf16 %v131_v15, %v127_v14  ;;  %v126_v25 = vmax.f32 %v110_v16, 0.0  ;;  %v118_v57 = vadd.f32 %v842_v63, %v80_v47  ;;  %v136_v61 = vmax.f32 %v120_v52, 0.0  ;;  %v585_v14 = vld [vmem:[%s877_s5] ss:$0 sm:$0xff] }
  0x1a   :  { %645 = vmatprep.subr.bf16.mxu1 %v686_v26  ;;  %v130_v26 = vmax.f32 %v114_v17, 0.0  ;;  %v140_v28 = vpack.c.bf16 %v128_v22, %v124_v21 }
  0x1b   :  { %485 = vmatprep.mubr.bf16.mxu1 %v143_v24 }
  0x1c   :  { %618 = vmatpush3.bf16.msra.mxu0 %v687_v27  ;;  %v45_v27 = vunpack.c.h.bf16 %v30_v13 }
  0x1d   :  { %646 = vmatpush3.bf16.msra.mxu1 %v688_v29  ;;  %619 = vmatprep.subr.bf16.mxu0 %v689_v30  ;;  %v79_v29 = vmul.f32 %v57_v48, %v41_v23  ;;  %v43_v30 = vunpack.c.h.bf16 %v29_v18 }
  0x1e   :  { %647 = vmatprep.subr.bf16.mxu1 %v690_v31  ;;  %v47_v31 = vunpack.c.h.bf16 %v31_v19  ;;  %v83_v33 = vmul.f32 %v57_v48, %v45_v27  ;;  %v84_v48 = vmul.f32 %v61_v62, %v46_v43 }
  0x1f   :  { %v117_v36 = vadd.f32 %v95_v49, %v79_v29  ;;  %v81_v37 = vmul.f32 %v65_v54, %v43_v30 }
  0x20   :  { %620 = vmatpush3.bf16.msra.mxu0 %v691_v32  ;;  %v142_v32 = vpack.c.bf16 %v130_v26, %v126_v25  ;;  %v85_v38 = vmul.f32 %v65_v54, %v47_v31  ;;  %v121_v40 = vadd.f32 %v95_v49, %v83_v33  ;;  %v122_v49 = vadd.f32 %v842_v63, %v84_v48  ;;  %v584_v63 = vld [vmem:[%s876_s4] ss:$0 sm:$0xff] }
  0x21   :  { %648 = vmatpush3.bf16.msra.mxu1 %v692_v34  ;;  %v40_v34 = vunpack.c.l.bf16 %v28_v8  ;;  %v133_v44 = vmax.f32 %v117_v36, 0.0  ;;  %v119_v45 = vadd.f32 %v103_v55, %v81_v37 }
  0x22   :  { %v123_v46 = vadd.f32 %v103_v55, %v85_v38  ;;  %v137_v50 = vmax.f32 %v121_v40, 0.0  ;;  %v138_v2 = vmax.f32 %v122_v49, 0.0 }
  0x23   :  { %437 = vmatmul.mubr.bf16.vlgmr.msra.gmra.mrb[0].mxu0 %v140_v28  ;;  %v78_v41 = vmul.f32 %v53_v58, %v40_v34  ;;  %v135_v53 = vmax.f32 %v119_v45, 0.0  ;;  %v134_v58 = vmax.f32 %v118_v57, 0.0 }
  0x24   :  { %486 = vmatmul.mubr.bf16.vlgmr.msra.gmra.mrb[0].mxu1 %v142_v32  ;;  %v139_v56 = vmax.f32 %v123_v46, 0.0  ;;  %v145_v60 = vpack.c.bf16 %v137_v50, %v133_v44 }
  0x25   :  { %v116_v51 = vadd.f32 %v91_v59, %v78_v41  ;;  %v146_v55 = vpack.c.bf16 %v138_v2, %v134_v58 }
  0x26   :  { %v147_v0 = vpack.c.bf16 %v139_v56, %v135_v53  ;;  %444 = vmatprep.mubr.bf16.mxu0 %v145_v60 }
  0x27   :  { %v132_v54 = vmax.f32 %v116_v51, 0.0 }
  0x28   :  { %493 = vmatprep.mubr.bf16.mxu1 %v147_v0 }
  0x29   :  { %v144_v1 = vpack.c.bf16 %v136_v61, %v132_v54 }
  0x2b   :  { %445 = vmatmul.mubr.bf16.gmra.mrb[4].mxu0 %v144_v1 }
  0x2c   :  { %494 = vmatmul.mubr.bf16.gmra.mrb[4].mxu1 %v146_v55 }
  0xf6   :  { %v621_v59 = vpop.f32.mrb[0].mxu0 }
  0xf7   :  { %v649_v62 = vpop.f32.mrb[0].mxu1  ;;  %v622_v3 = vpop.f32.mrb[1].mxu0 }
  0xf8   :  { %v623_v4 = vadd.f32 %v622_v3, %v621_v59  ;;  %v650_v5 = vpop.f32.mrb[1].mxu1  ;;  %v624_v6 = vpop.f32.mrb[2].mxu0 }
  0xf9   :  { %v651_v7 = vadd.f32 %v650_v5, %v649_v62  ;;  %v652_v8 = vpop.f32.mrb[2].mxu1  ;;  %v625_v9 = vpop.f32.mrb[3].mxu0 }
  0xfa   :  { %v626_v10 = vadd.f32 %v625_v9, %v624_v6  ;;  %v653_v11 = vpop.f32.mrb[3].mxu1 }
  0xfb   :  { %v488_v12 = vadd.f32 %v651_v7, %v623_v4  ;;  %v654_v13 = vadd.f32 %v653_v11, %v652_v8 }
  0xfd   :  { %v509_v15 = vmul.f32 %v584_v63, %v488_v12  ;;  %v491_v16 = vadd.f32 %v654_v13, %v626_v10 }
  0xfe   :  { %v627_v19 = vpop.f32.mrb[4].mxu0 }
  0xff   :  { %v520_v17 = vadd.f32 %v585_v14, %v509_v15  ;;  %v510_v18 = vmul.f32 %v584_v63, %v491_v16  ;;  %v628_v20 = vpop.f32.mrb[5].mxu0  ;;  %v655_v22 = vpop.f32.mrb[4].mxu1 }
 0x100   :  { %v629_v23 = vadd.f32 %v628_v20, %v627_v19  ;;  %v630_v24 = vpop.f32.mrb[6].mxu0  ;;  %v656_v25 = vpop.f32.mrb[5].mxu1 }
 0x101   :  { %v521_v21 = vadd.f32 %v585_v14, %v510_v18  ;;  %v631_v26 = vpop.f32.mrb[7].mxu0  ;;  %v524_v27 = vmax.f32 %v520_v17, 0.0  ;;  %v657_v29 = vadd.f32 %v656_v25, %v655_v22  ;;  %v658_v30 = vpop.f32.mrb[6].mxu1 }
 0x102   :  { %v632_v31 = vadd.f32 %v631_v26, %v630_v24  ;;  %v659_v32 = vpop.f32.mrb[7].mxu1 }
 0x103   :  { %v525_v28 = vmax.f32 %v521_v21, 0.0  ;;  %v496_v34 = vadd.f32 %v657_v29, %v629_v23  ;;  %v660_v35 = vadd.f32 %v659_v32, %v658_v30 }
 0x105   :  { %v597_v33 = vpack.c.bf16 %v525_v28, %v524_v27  ;;  %v511_v36 = vmul.f32 %v584_v63, %v496_v34  ;;  %v499_v37 = vadd.f32 %v660_v35, %v632_v31 }
 0x107   :  { %598 = vst [vmem:[%s878_s6] sm:$0xff] %v597_v33   ;;  %v522_v38 = vadd.f32 %v585_v14, %v511_v36  ;;  %v512_v39 = vmul.f32 %v584_v63, %v499_v37 }
 0x109   :  { %v523_v40 = vadd.f32 %v585_v14, %v512_v39  ;;  %v526_v41 = vmax.f32 %v522_v38, 0.0 }
 0x10b   :  { %v527_v42 = vmax.f32 %v523_v40, 0.0 }
 0x10d   :  { %v602_v43 = vpack.c.bf16 %v527_v42, %v526_v41 }
 0x10f   :  { %604 = vst [vmem:[%s878_s6 + $0x8] sm:$0xff] %v602_v43  }

// kernel: forward.74
= control target key start
LH: loop header
LB: loop body
LE: loop exit
PB: predicated region body
PF: predicated region fallthrough
CT: control target
= control target key end

     0   :  { %s1609_s1 = inlined_call_operand.vmem [shape: bf16[1152,128], index: 1, kind: input, shape index: {}]   ;;  %s1610_s0 = inlined_call_operand.vmem [shape: bf16[32,1152], index: 0, kind: input, shape index: {}]   ;;  %s1611_s2 = inlined_call_operand.vmem [shape: bf16[32,128], index: 2, kind: output, shape index: {}]  }
   0x1   :  { %v1220_v0 = vld [vmem:[%s1609_s1 + $0x40] sm:$0xff]   ;;  %v1224_v4 = vld [vmem:[%s1609_s1 + $0x48] sm:$0xff]   ;;  %v1228_v8 = vld [vmem:[%s1609_s1 + $0x50] sm:$0xff]  }
   0x2   :  { %v1221_v1 = vld [vmem:[%s1609_s1 + $0xc0] sm:$0xff]   ;;  %1078 = vmatprep.subr.bf16.mxu0 %v1220_v0  ;;  %v1225_v5 = vld [vmem:[%s1609_s1 + $0xc8] sm:$0xff]   ;;  %v1229_v9 = vld [vmem:[%s1609_s1 + $0xd0] sm:$0xff]  }
   0x3   :  { %v1222_v2 = vld [vmem:[%s1609_s1] sm:$0xff]   ;;  %1106 = vmatprep.subr.bf16.mxu1 %v1221_v1  ;;  %v1226_v6 = vld [vmem:[%s1609_s1 + $0x8] sm:$0xff]   ;;  %v1230_v10 = vld [vmem:[%s1609_s1 + $0x10] sm:$0xff]  }
   0x4   :  { %v1223_v3 = vld [vmem:[%s1609_s1 + $0x80] sm:$0xff]   ;;  %1079 = vmatpush3.bf16.msra.mxu0 %v1222_v2  ;;  %v1227_v7 = vld [vmem:[%s1609_s1 + $0x88] sm:$0xff]   ;;  %v1231_v11 = vld [vmem:[%s1609_s1 + $0x90] sm:$0xff]  }
   0x5   :  { %1107 = vmatpush3.bf16.msra.mxu1 %v1223_v3  ;;  %1080 = vmatprep.subr.bf16.mxu0 %v1224_v4  ;;  %v1232_v12 = vld [vmem:[%s1609_s1 + $0x58] sm:$0xff]   ;;  %v1236_v16 = vld [vmem:[%s1609_s1 + $0x60] sm:$0xff]   ;;  %v1240_v20 = vld [vmem:[%s1609_s1 + $0x68] sm:$0xff]  }
   0x6   :  { %1108 = vmatprep.subr.bf16.mxu1 %v1225_v5  ;;  %v1233_v13 = vld [vmem:[%s1609_s1 + $0xd8] sm:$0xff]   ;;  %v1237_v17 = vld [vmem:[%s1609_s1 + $0xe0] sm:$0xff]   ;;  %v1241_v21 = vld [vmem:[%s1609_s1 + $0xe8] sm:$0xff]  }
   0x7   :  { %v1234_v14 = vld [vmem:[%s1609_s1 + $0x18] sm:$0xff]   ;;  %v1238_v18 = vld [vmem:[%s1609_s1 + $0x20] sm:$0xff]   ;;  %v1242_v22 = vld [vmem:[%s1609_s1 + $0x28] sm:$0xff]  }
   0x8   :  { %1081 = vmatpush3.bf16.msra.mxu0 %v1226_v6  ;;  %v1235_v15 = vld [vmem:[%s1609_s1 + $0x98] sm:$0xff]   ;;  %v1239_v19 = vld [vmem:[%s1609_s1 + $0xa0] sm:$0xff]   ;;  %v1243_v23 = vld [vmem:[%s1609_s1 + $0xa8] sm:$0xff]  }
   0x9   :  { %1109 = vmatpush3.bf16.msra.mxu1 %v1227_v7  ;;  %1082 = vmatprep.subr.bf16.mxu0 %v1228_v8  ;;  %v1244_v24 = vld [vmem:[%s1609_s1 + $0x70] sm:$0xff]   ;;  %v1248_v28 = vld [vmem:[%s1609_s1 + $0x78] sm:$0xff]   ;;  %v1252_v32 = vld [vmem:[%s1610_s0] ss:$36 sps:$4 sm:$0xff]  }
   0xa   :  { %1110 = vmatprep.subr.bf16.mxu1 %v1229_v9  ;;  %v1245_v25 = vld [vmem:[%s1609_s1 + $0xf0] sm:$0xff]   ;;  %v1249_v29 = vld [vmem:[%s1609_s1 + $0xf8] sm:$0xff]   ;;  %v1254_v33 = vld [vmem:[%s1610_s0 + $0x4] ss:$36 sps:$4 sm:$0xff]  }
   0xb   :  { %v1246_v26 = vld [vmem:[%s1609_s1 + $0x30] sm:$0xff]   ;;  %v1250_v30 = vld [vmem:[%s1609_s1 + $0x38] sm:$0xff]   ;;  %v1255_v34 = vld [vmem:[%s1610_s0 + $0x8] ss:$36 sps:$4 sm:$0xff]   ;;  %732 = vmatprep.mubr.bf16.mxu0 %v1254_v33 }
   0xc   :  { %1083 = vmatpush3.bf16.msra.mxu0 %v1230_v10  ;;  %v1247_v27 = vld [vmem:[%s1609_s1 + $0xb0] sm:$0xff]   ;;  %v1251_v31 = vld [vmem:[%s1609_s1 + $0xb8] sm:$0xff]   ;;  %v1258_v36 = vld [vmem:[%s1609_s1 + $0x140] sm:$0xff]  }
   0xd   :  { %1111 = vmatpush3.bf16.msra.mxu1 %v1231_v11  ;;  %1084 = vmatprep.subr.bf16.mxu0 %v1232_v12  ;;  %v1257_v35 = vld [vmem:[%s1610_s0 + $0xc] ss:$36 sps:$4 sm:$0xff]   ;;  %v1259_v37 = vld [vmem:[%s1609_s1 + $0x100] sm:$0xff]   ;;  %v1270_v48 = vld [vmem:[%s1609_s1 + $0x158] sm:$0xff]  }
   0xe   :  { %1112 = vmatprep.subr.bf16.mxu1 %v1233_v13  ;;  %781 = vmatprep.mubr.bf16.mxu1 %v1257_v35  ;;  %v1260_v38 = vld [vmem:[%s1609_s1 + $0x1c0] sm:$0xff]   ;;  %v1262_v40 = vld [vmem:[%s1609_s1 + $0x148] sm:$0xff]   ;;  %v1266_v44 = vld [vmem:[%s1609_s1 + $0x150] sm:$0xff]  }
   0xf   :  { %v1261_v39 = vld [vmem:[%s1609_s1 + $0x180] sm:$0xff]   ;;  %v1263_v41 = vld [vmem:[%s1609_s1 + $0x108] sm:$0xff]   ;;  %v1267_v45 = vld [vmem:[%s1609_s1 + $0x110] sm:$0xff]  }
  0x10   :  { %1085 = vmatpush3.bf16.msra.mxu0 %v1234_v14  ;;  %v1264_v42 = vld [vmem:[%s1609_s1 + $0x1c8] sm:$0xff]   ;;  %v1268_v46 = vld [vmem:[%s1609_s1 + $0x1d0] sm:$0xff]   ;;  %v1271_v49 = vld [vmem:[%s1609_s1 + $0x118] sm:$0xff]  }
  0x11   :  { %1113 = vmatpush3.bf16.msra.mxu1 %v1235_v15  ;;  %1086 = vmatprep.subr.bf16.mxu0 %v1236_v16  ;;  %v1265_v43 = vld [vmem:[%s1609_s1 + $0x188] sm:$0xff]   ;;  %v1269_v47 = vld [vmem:[%s1609_s1 + $0x190] sm:$0xff]   ;;  %v1272_v50 = vld [vmem:[%s1609_s1 + $0x1d8] sm:$0xff]  }
  0x12   :  { %1114 = vmatprep.subr.bf16.mxu1 %v1237_v17  ;;  %v1273_v51 = vld [vmem:[%s1609_s1 + $0x198] sm:$0xff]   ;;  %v1274_v52 = vld [vmem:[%s1609_s1 + $0x160] sm:$0xff]   ;;  %v1278_v56 = vld [vmem:[%s1609_s1 + $0x168] sm:$0xff]  }
  0x13   :  { %v1275_v53 = vld [vmem:[%s1609_s1 + $0x120] sm:$0xff]   ;;  %v1279_v57 = vld [vmem:[%s1610_s0 + $0x4c] ss:$36 sps:$4 sm:$0xff]   ;;  %v1281_v58 = vld [vmem:[%s1610_s0 + $0x54] ss:$36 sps:$4 sm:$0xff]  }
  0x14   :  { %1087 = vmatpush3.bf16.msra.mxu0 %v1238_v18  ;;  %v1276_v54 = vld [vmem:[%s1609_s1 + $0x1e0] sm:$0xff]   ;;  %v1283_v59 = vld [vmem:[%s1609_s1 + $0x128] sm:$0xff]   ;;  %v1285_v61 = vld [vmem:[%s1610_s0 + $0x50] ss:$36 sps:$4 sm:$0xff]  }
  0x15   :  { %1115 = vmatpush3.bf16.msra.mxu1 %v1239_v19  ;;  %1088 = vmatprep.subr.bf16.mxu0 %v1240_v20  ;;  %v1277_v55 = vld [vmem:[%s1609_s1 + $0x1a0] sm:$0xff]   ;;  %v1284_v60 = vld [vmem:[%s1610_s0 + $0x48] ss:$36 sps:$4 sm:$0xff]   ;;  %v1288_v0 = vld [vmem:[%s1609_s1 + $0x170] sm:$0xff]  }
  0x16   :  { %1116 = vmatprep.subr.bf16.mxu1 %v1241_v21  ;;  %v1286_v62 = vld [vmem:[%s1609_s1 + $0x1e8] sm:$0xff]   ;;  %v1289_v1 = vld [vmem:[%s1609_s1 + $0x130] sm:$0xff]   ;;  %v1292_v4 = vld [vmem:[%s1609_s1 + $0x178] sm:$0xff]  }
  0x17   :  { %v1287_v63 = vld [vmem:[%s1609_s1 + $0x1a8] sm:$0xff]   ;;  %v1290_v2 = vld [vmem:[%s1609_s1 + $0x1f0] sm:$0xff]   ;;  %v1293_v5 = vld [vmem:[%s1609_s1 + $0x138] sm:$0xff]  }
  0x18   :  { %1089 = vmatpush3.bf16.msra.mxu0 %v1242_v22  ;;  %v1291_v3 = vld [vmem:[%s1609_s1 + $0x1b0] sm:$0xff]   ;;  %v1294_v6 = vld [vmem:[%s1609_s1 + $0x1f8] sm:$0xff]   ;;  %v1299_v10 = vld [vmem:[%s1609_s1 + $0x200] sm:$0xff]  }
  0x19   :  { %1117 = vmatpush3.bf16.msra.mxu1 %v1243_v23  ;;  %1090 = vmatprep.subr.bf16.mxu0 %v1244_v24  ;;  %v1295_v7 = vld [vmem:[%s1610_s0 + $0x10] ss:$36 sps:$4 sm:$0xff]   ;;  %v1298_v9 = vld [vmem:[%s1609_s1 + $0x1b8] sm:$0xff]   ;;  %v1303_v13 = vld [vmem:[%s1609_s1 + $0x208] sm:$0xff]  }
  0x1a   :  { %1118 = vmatprep.subr.bf16.mxu1 %v1245_v25  ;;  %v1297_v8 = vld [vmem:[%s1610_s0 + $0x14] ss:$36 sps:$4 sm:$0xff]   ;;  %v1302_v12 = vld [vmem:[%s1610_s0 + $0x1c] ss:$36 sps:$4 sm:$0xff]   ;;  %v1308_v17 = vld [vmem:[%s1610_s0 + $0x64] ss:$36 sps:$4 sm:$0xff]  }
  0x1b   :  { %v1300_v11 = vld [vmem:[%s1610_s0 + $0x18] ss:$36 sps:$4 sm:$0xff]   ;;  %v1307_v16 = vld [vmem:[%s1609_s1 + $0x210] sm:$0xff]   ;;  %v1310_v18 = vld [vmem:[%s1610_s0 + $0x60] ss:$36 sps:$4 sm:$0xff]  }
  0x1c   :  { %1091 = vmatpush3.bf16.msra.mxu0 %v1246_v26  ;;  %v1304_v14 = vld [vmem:[%s1610_s0 + $0x5c] ss:$36 sps:$4 sm:$0xff]   ;;  %v1313_v22 = vld [vmem:[%s1609_s1 + $0x228] sm:$0xff]   ;;  %v1314_v23 = vld [vmem:[%s1609_s1 + $0x230] sm:$0xff]  }
  0x1d   :  { %1119 = vmatpush3.bf16.msra.mxu1 %v1247_v27  ;;  %1092 = vmatprep.subr.bf16.mxu0 %v1248_v28  ;;  %v1306_v15 = vld [vmem:[%s1610_s0 + $0x58] ss:$36 sps:$4 sm:$0xff]   ;;  %v1312_v20 = vld [vmem:[%s1609_s1 + $0x220] sm:$0xff]   ;;  %v1317_v25 = vld [vmem:[%s1610_s0 + $0x68] ss:$36 sps:$4 sm:$0xff]  }
  0x1e   :  { %1120 = vmatprep.subr.bf16.mxu1 %v1249_v29  ;;  %v1311_v19 = vld [vmem:[%s1609_s1 + $0x218] sm:$0xff]   ;;  %v1316_v21 = vld [vmem:[%s1610_s0 + $0x20] ss:$36 sps:$4 sm:$0xff]  }
  0x1f   :  { %v1315_v24 = vld [vmem:[%s1609_s1 + $0x238] sm:$0xff]  }
  0x20   :  { %1093 = vmatpush3.bf16.msra.mxu0 %v1250_v30 }
  0x21   :  { %1121 = vmatpush3.bf16.msra.mxu1 %v1251_v31  ;;  %1134 = vmatprep.subr.bf16.mxu0 %v1258_v36 }
  0x22   :  { %1162 = vmatprep.subr.bf16.mxu1 %v1260_v38 }
  0x23   :  { %733 = vmatmul.mubr.bf16.vlgmr.msra.gmra.mrb[0].mxu0 %v1252_v32 }
  0x24   :  { %782 = vmatmul.mubr.bf16.vlgmr.msra.gmra.mrb[0].mxu1 %v1255_v34  ;;  %1135 = vmatpush3.bf16.msra.mxu0 %v1259_v37 }
  0x25   :  { %1163 = vmatpush3.bf16.msra.mxu1 %v1261_v39  ;;  %1136 = vmatprep.subr.bf16.mxu0 %v1262_v40 }
  0x26   :  { %1164 = vmatprep.subr.bf16.mxu1 %v1264_v42  ;;  %740 = vmatprep.mubr.bf16.mxu0 %v1279_v57 }
  0x27   :  { %789 = vmatprep.mubr.bf16.mxu1 %v1281_v58 }
  0x28   :  { %1137 = vmatpush3.bf16.msra.mxu0 %v1263_v41 }
  0x29   :  { %1165 = vmatpush3.bf16.msra.mxu1 %v1265_v43  ;;  %1138 = vmatprep.subr.bf16.mxu0 %v1266_v44 }
  0x2a   :  { %1166 = vmatprep.subr.bf16.mxu1 %v1268_v46 }
  0x2b   :  { %741 = vmatmul.mubr.bf16.gmra.mrb[4].mxu0 %v1284_v60 }
  0x2c   :  { %1139 = vmatpush3.bf16.msra.mxu0 %v1267_v45  ;;  %790 = vmatmul.mubr.bf16.gmra.mrb[4].mxu1 %v1285_v61 }
  0x2d   :  { %1167 = vmatpush3.bf16.msra.mxu1 %v1269_v47  ;;  %1140 = vmatprep.subr.bf16.mxu0 %v1270_v48 }
  0x2e   :  { %1168 = vmatprep.subr.bf16.mxu1 %v1272_v50  ;;  %830 = vmatprep.mubr.bf16.mxu0 %v1297_v8 }
  0x2f   :  { %879 = vmatprep.mubr.bf16.mxu1 %v1302_v12 }
  0x30   :  { %1141 = vmatpush3.bf16.msra.mxu0 %v1271_v49 }
  0x31   :  { %1169 = vmatpush3.bf16.msra.mxu1 %v1273_v51  ;;  %1142 = vmatprep.subr.bf16.mxu0 %v1274_v52 }
  0x32   :  { %1170 = vmatprep.subr.bf16.mxu1 %v1276_v54 }
  0x34   :  { %1143 = vmatpush3.bf16.msra.mxu0 %v1275_v53 }
  0x35   :  { %1171 = vmatpush3.bf16.msra.mxu1 %v1277_v55  ;;  %1144 = vmatprep.subr.bf16.mxu0 %v1278_v56 }
  0x36   :  { %1172 = vmatprep.subr.bf16.mxu1 %v1286_v62 }
  0x38   :  { %1145 = vmatpush3.bf16.msra.mxu0 %v1283_v59 }
  0x39   :  { %1173 = vmatpush3.bf16.msra.mxu1 %v1287_v63  ;;  %1146 = vmatprep.subr.bf16.mxu0 %v1288_v0 }
  0x3a   :  { %1174 = vmatprep.subr.bf16.mxu1 %v1290_v2 }
  0x3c   :  { %1147 = vmatpush3.bf16.msra.mxu0 %v1289_v1 }
  0x3d   :  { %1175 = vmatpush3.bf16.msra.mxu1 %v1291_v3  ;;  %1148 = vmatprep.subr.bf16.mxu0 %v1292_v4 }
  0x3e   :  { %1176 = vmatprep.subr.bf16.mxu1 %v1294_v6 }
  0x40   :  { %1149 = vmatpush3.bf16.msra.mxu0 %v1293_v5 }
  0x41   :  { %1177 = vmatpush3.bf16.msra.mxu1 %v1298_v9  ;;  %1200 = vmatprep.subr.bf16.mxu0 %v1299_v10 }
  0x43   :  { %831 = vmatmul.mubr.bf16.vlgmr.msra.gmra.mrb[8].mxu0 %v1295_v7 }
  0x44   :  { %1201 = vmatpush3.bf16.msra.mxu0 %v1299_v10  ;;  %880 = vmatmul.mubr.bf16.vlgmr.msra.gmra.mrb[8].mxu1 %v1300_v11 }
  0x45   :  { %1202 = vmatprep.subr.bf16.mxu0 %v1303_v13  ;;  %838 = vmatprep.mubr.bf16.mxu0 %v1304_v14 }
  0x46   :  { %887 = vmatprep.mubr.bf16.mxu1 %v1308_v17 }
  0x48   :  { %1203 = vmatpush3.bf16.msra.mxu0 %v1303_v13 }
  0x49   :  { %1204 = vmatprep.subr.bf16.mxu0 %v1307_v16 }
  0x4b   :  { %839 = vmatmul.mubr.bf16.gmra.mrb[12].mxu0 %v1306_v15 }
  0x4c   :  { %1205 = vmatpush3.bf16.msra.mxu0 %v1307_v16  ;;  %888 = vmatmul.mubr.bf16.gmra.mrb[12].mxu1 %v1310_v18 }
  0x4d   :  { %1206 = vmatprep.subr.bf16.mxu0 %v1311_v19  ;;  %1216 = vmatprep.mubr.bf16.mxu0 %v1316_v21 }
  0x50   :  { %1207 = vmatpush3.bf16.msra.mxu0 %v1311_v19 }
  0x51   :  { %1208 = vmatprep.subr.bf16.mxu0 %v1312_v20 }
  0x54   :  { %1209 = vmatpush3.bf16.msra.mxu0 %v1312_v20 }
  0x55   :  { %1210 = vmatprep.subr.bf16.mxu0 %v1313_v22 }
  0x58   :  { %1211 = vmatpush3.bf16.msra.mxu0 %v1313_v22 }
  0x59   :  { %1212 = vmatprep.subr.bf16.mxu0 %v1314_v23 }
  0x5c   :  { %1213 = vmatpush3.bf16.msra.mxu0 %v1314_v23 }
  0x5d   :  { %1214 = vmatprep.subr.bf16.mxu0 %v1315_v24 }
  0x60   :  { %1215 = vmatpush3.bf16.msra.mxu0 %v1315_v24 }
  0x63   :  { %1217 = vmatmul.mubr.bf16.vlgmr.msra.gmra.mrb[16].mxu0 %v1317_v25 }
  0xf6   :  { %v1094_v26 = vpop.f32.mrb[0].mxu0 }
  0xf7   :  { %v1122_v27 = vpop.f32.mrb[0].mxu1  ;;  %v1095_v28 = vpop.f32.mrb[1].mxu0 }
  0xf8   :  { %v1096_v29 = vadd.f32 %v1095_v28, %v1094_v26  ;;  %v1123_v30 = vpop.f32.mrb[1].mxu1  ;;  %v1097_v31 = vpop.f32.mrb[2].mxu0 }
  0xf9   :  { %v1124_v32 = vadd.f32 %v1123_v30, %v1122_v27  ;;  %v1125_v33 = vpop.f32.mrb[2].mxu1  ;;  %v1098_v34 = vpop.f32.mrb[3].mxu0 }
  0xfa   :  { %v1099_v35 = vadd.f32 %v1098_v34, %v1097_v31  ;;  %v1126_v36 = vpop.f32.mrb[3].mxu1 }
  0xfb   :  { %v784_v37 = vadd.f32 %v1124_v32, %v1096_v29  ;;  %v1127_v38 = vadd.f32 %v1126_v36, %v1125_v33 }
  0xfd   :  { %v787_v39 = vadd.f32 %v1127_v38, %v1099_v35 }
  0xfe   :  { %v1100_v40 = vpop.f32.mrb[4].mxu0 }
  0xff   :  { %v1128_v41 = vpop.f32.mrb[4].mxu1  ;;  %v1101_v42 = vpop.f32.mrb[5].mxu0 }
 0x100   :  { %v1129_v43 = vpop.f32.mrb[5].mxu1  ;;  %v1102_v44 = vadd.f32 %v1101_v42, %v1100_v40  ;;  %v1103_v46 = vpop.f32.mrb[6].mxu0 }
 0x101   :  { %v1130_v45 = vadd.f32 %v1129_v43, %v1128_v41  ;;  %v1131_v47 = vpop.f32.mrb[6].mxu1  ;;  %v1104_v48 = vpop.f32.mrb[7].mxu0 }
 0x102   :  { %v1132_v49 = vpop.f32.mrb[7].mxu1  ;;  %v1105_v51 = vadd.f32 %v1104_v48, %v1103_v46 }
 0x103   :  { %v792_v50 = vadd.f32 %v1130_v45, %v1102_v44  ;;  %v1133_v52 = vadd.f32 %v1132_v49, %v1131_v47 }
 0x105   :  { %v795_v53 = vadd.f32 %v1133_v52, %v1105_v51 }
 0x116   :  { %v1150_v54 = vpop.f32.mrb[8].mxu0 }
 0x117   :  { %v1151_v55 = vpop.f32.mrb[9].mxu0  ;;  %v1178_v58 = vpop.f32.mrb[8].mxu1 }
 0x118   :  { %v1152_v56 = vadd.f32 %v1151_v55, %v1150_v54  ;;  %v1153_v57 = vpop.f32.mrb[10].mxu0  ;;  %v1179_v62 = vpop.f32.mrb[9].mxu1 }
 0x119   :  { %v1154_v59 = vpop.f32.mrb[11].mxu0  ;;  %v1180_v63 = vadd.f32 %v1179_v62, %v1178_v58  ;;  %v1181_v0 = vpop.f32.mrb[10].mxu1 }
 0x11a   :  { %v833_v60 = vadd.f32 %v1152_v56, %v784_v37  ;;  %v1155_v61 = vadd.f32 %v1154_v59, %v1153_v57  ;;  %v1182_v2 = vpop.f32.mrb[11].mxu1 }
 0x11b   :  { %v1183_v3 = vadd.f32 %v1182_v2, %v1181_v0 }
 0x11c   :  { %v836_v1 = vadd.f32 %v1155_v61, %v787_v39  ;;  %v882_v4 = vadd.f32 %v1180_v63, %v833_v60 }
 0x11e   :  { %v1156_v5 = vpop.f32.mrb[12].mxu0  ;;  %v885_v7 = vadd.f32 %v1183_v3, %v836_v1 }
 0x11f   :  { %v1157_v6 = vpop.f32.mrb[13].mxu0  ;;  %v1184_v10 = vpop.f32.mrb[12].mxu1 }
 0x120   :  { %v1158_v8 = vadd.f32 %v1157_v6, %v1156_v5  ;;  %v1159_v9 = vpop.f32.mrb[14].mxu0  ;;  %v1185_v14 = vpop.f32.mrb[13].mxu1 }
 0x121   :  { %v1160_v11 = vpop.f32.mrb[15].mxu0  ;;  %v1186_v15 = vadd.f32 %v1185_v14, %v1184_v10  ;;  %v1187_v16 = vpop.f32.mrb[14].mxu1 }
 0x122   :  { %v841_v12 = vadd.f32 %v1158_v8, %v792_v50  ;;  %v1161_v13 = vadd.f32 %v1160_v11, %v1159_v9  ;;  %v1188_v18 = vpop.f32.mrb[15].mxu1 }
 0x123   :  { %v1189_v19 = vadd.f32 %v1188_v18, %v1187_v16 }
 0x124   :  { %v844_v17 = vadd.f32 %v1161_v13, %v795_v53  ;;  %v890_v20 = vadd.f32 %v1186_v15, %v841_v12 }
 0x126   :  { %v893_v21 = vadd.f32 %v1189_v19, %v844_v17 }
 0x136   :  { %v1218_v22 = vpop.f32.mrb[16].mxu0 }
 0x137   :  { %v939_v23 = vadd.f32 %v1218_v22, %v890_v20  ;;  %v930_v24 = vpop.f32.mrb[17].mxu0 }
 0x138   :  { %v931_v25 = vadd.f32 %v930_v24, %v882_v4  ;;  %v1219_v26 = vpop.f32.mrb[18].mxu0 }
 0x139   :  { %v942_v27 = vadd.f32 %v1219_v26, %v893_v21  ;;  %v933_v28 = vpop.f32.mrb[19].mxu0 }
 0x13a   :  { %v934_v29 = vadd.f32 %v933_v28, %v885_v7 }
 0x13b   :  { %v1075_v30 = vpack.c.bf16 %v942_v27, %v939_v23 }
 0x13c   :  { %v1070_v31 = vpack.c.bf16 %v934_v29, %v931_v25 }
 0x13d   :  { %1077 = vst [vmem:[%s1611_s2 + $0x8] sm:$0xff] %v1075_v30  }
 0x13e   :  { %1071 = vst [vmem:[%s1611_s2] sm:$0xff] %v1070_v31  }

// kernel: forward.97
= control target key start
LH: loop header
LB: loop body
LE: loop exit
PB: predicated region body
PF: predicated region fallthrough
CT: control target
= control target key end

     0   :  { %s1090_s1 = inlined_call_operand.vmem [shape: bf16[512,256], index: 1, kind: input, shape index: {}]   ;;  %s1091_s0 = inlined_call_operand.vmem [shape: bf16[32,512], index: 0, kind: input, shape index: {}]   ;;  %s1092_s2 = inlined_call_operand.vmem [shape: f32[1,256], index: 2, kind: input, shape index: {}]   ;;  %s1093_s3 = inlined_call_operand.vmem [shape: f32[1,256], index: 3, kind: input, shape index: {}]   ;;  %s1094_s4 = inlined_call_operand.vmem [shape: bf16[32,256], index: 4, kind: output, shape index: {}]  }
   0x1   :  { %v723_v0 = vld [vmem:[%s1090_s1 + $0x4] ss:$8 sps:$4 sm:$0xff]   ;;  %v727_v2 = vld [vmem:[%s1090_s1] ss:$8 sps:$4 sm:$0xff]   ;;  %v729_v4 = vld [vmem:[%s1090_s1 + $0x14] ss:$8 sps:$4 sm:$0xff]  }
   0x2   :  { %v725_v1 = vld [vmem:[%s1090_s1 + $0x104] ss:$8 sps:$4 sm:$0xff]   ;;  %449 = vmatprep.subr.bf16.mxu1 %v723_v0  ;;  %v728_v3 = vld [vmem:[%s1090_s1 + $0x100] ss:$8 sps:$4 sm:$0xff]   ;;  %v731_v5 = vld [vmem:[%s1090_s1 + $0x114] ss:$8 sps:$4 sm:$0xff]  }
   0x3   :  { %502 = vmatprep.subr.bf16.mxu0 %v725_v1  ;;  %450 = vmatpush1.bf16.msra.mxu1 %v727_v2  ;;  %v733_v6 = vld [vmem:[%s1090_s1 + $0x10] ss:$8 sps:$4 sm:$0xff]   ;;  %v735_v8 = vld [vmem:[%s1090_s1 + $0x24] ss:$8 sps:$4 sm:$0xff]   ;;  %v739_v10 = vld [vmem:[%s1090_s1 + $0x20] ss:$8 sps:$4 sm:$0xff]  }
   0x4   :  { %503 = vmatpush1.bf16.msra.mxu0 %v728_v3  ;;  %451 = vmatprep.subr.bf16.mxu1 %v729_v4  ;;  %v734_v7 = vld [vmem:[%s1090_s1 + $0x110] ss:$8 sps:$4 sm:$0xff]   ;;  %v737_v9 = vld [vmem:[%s1090_s1 + $0x124] ss:$8 sps:$4 sm:$0xff]   ;;  %v740_v11 = vld [vmem:[%s1090_s1 + $0x120] ss:$8 sps:$4 sm:$0xff]  }
   0x5   :  { %504 = vmatprep.subr.bf16.mxu0 %v731_v5  ;;  %v741_v12 = vld [vmem:[%s1090_s1 + $0x34] ss:$8 sps:$4 sm:$0xff]   ;;  %v745_v14 = vld [vmem:[%s1090_s1 + $0x30] ss:$8 sps:$4 sm:$0xff]   ;;  %v747_v16 = vld [vmem:[%s1090_s1 + $0x44] ss:$8 sps:$4 sm:$0xff]  }
   0x6   :  { %v743_v13 = vld [vmem:[%s1090_s1 + $0x134] ss:$8 sps:$4 sm:$0xff]   ;;  %v746_v15 = vld [vmem:[%s1090_s1 + $0x130] ss:$8 sps:$4 sm:$0xff]   ;;  %v749_v17 = vld [vmem:[%s1090_s1 + $0x144] ss:$8 sps:$4 sm:$0xff]  }
   0x7   :  { %452 = vmatpush1.bf16.msra.mxu1 %v733_v6  ;;  %v751_v18 = vld [vmem:[%s1090_s1 + $0x40] ss:$8 sps:$4 sm:$0xff]   ;;  %v753_v20 = vld [vmem:[%s1090_s1 + $0x54] ss:$8 sps:$4 sm:$0xff]   ;;  %v757_v22 = vld [vmem:[%s1090_s1 + $0x50] ss:$8 sps:$4 sm:$0xff]  }
   0x8   :  { %505 = vmatpush1.bf16.msra.mxu0 %v734_v7  ;;  %453 = vmatprep.subr.bf16.mxu1 %v735_v8  ;;  %v752_v19 = vld [vmem:[%s1090_s1 + $0x140] ss:$8 sps:$4 sm:$0xff]   ;;  %v755_v21 = vld [vmem:[%s1090_s1 + $0x154] ss:$8 sps:$4 sm:$0xff]   ;;  %v758_v23 = vld [vmem:[%s1090_s1 + $0x150] ss:$8 sps:$4 sm:$0xff]   ;;  %v557_v8 = vlaneseq }
   0x9   :  { %506 = vmatprep.subr.bf16.mxu0 %v737_v9  ;;  %v759_v24 = vld [vmem:[%s1090_s1 + $0x64] ss:$8 sps:$4 sm:$0xff]   ;;  %v763_v26 = vld [vmem:[%s1090_s1 + $0x60] ss:$8 sps:$4 sm:$0xff]   ;;  %v765_v28 = vld [vmem:[%s1090_s1 + $0x74] ss:$8 sps:$4 sm:$0xff]  }
   0xa   :  { %v761_v25 = vld [vmem:[%s1090_s1 + $0x164] ss:$8 sps:$4 sm:$0xff]   ;;  %v764_v27 = vld [vmem:[%s1090_s1 + $0x160] ss:$8 sps:$4 sm:$0xff]   ;;  %v767_v29 = vld [vmem:[%s1090_s1 + $0x174] ss:$8 sps:$4 sm:$0xff]  }
   0xb   :  { %454 = vmatpush1.bf16.msra.mxu1 %v739_v10  ;;  %v769_v30 = vld [vmem:[%s1090_s1 + $0x70] ss:$8 sps:$4 sm:$0xff]   ;;  %v771_v32 = vld [vmem:[%s1090_s1 + $0x84] ss:$8 sps:$4 sm:$0xff]   ;;  %v775_v34 = vld [vmem:[%s1090_s1 + $0x80] ss:$8 sps:$4 sm:$0xff]  }
   0xc   :  { %507 = vmatpush1.bf16.msra.mxu0 %v740_v11  ;;  %455 = vmatprep.subr.bf16.mxu1 %v741_v12  ;;  %v770_v31 = vld [vmem:[%s1090_s1 + $0x170] ss:$8 sps:$4 sm:$0xff]   ;;  %v773_v33 = vld [vmem:[%s1090_s1 + $0x184] ss:$8 sps:$4 sm:$0xff]   ;;  %v776_v35 = vld [vmem:[%s1090_s1 + $0x180] ss:$8 sps:$4 sm:$0xff]  }
   0xd   :  { %508 = vmatprep.subr.bf16.mxu0 %v743_v13  ;;  %v777_v36 = vld [vmem:[%s1090_s1 + $0x94] ss:$8 sps:$4 sm:$0xff]   ;;  %v781_v38 = vld [vmem:[%s1090_s1 + $0x90] ss:$8 sps:$4 sm:$0xff]   ;;  %v783_v40 = vld [vmem:[%s1090_s1 + $0xa4] ss:$8 sps:$4 sm:$0xff]  }
   0xe   :  { %v779_v37 = vld [vmem:[%s1090_s1 + $0x194] ss:$8 sps:$4 sm:$0xff]   ;;  %v782_v39 = vld [vmem:[%s1090_s1 + $0x190] ss:$8 sps:$4 sm:$0xff]   ;;  %v785_v41 = vld [vmem:[%s1090_s1 + $0x1a4] ss:$8 sps:$4 sm:$0xff]  }
   0xf   :  { %456 = vmatpush1.bf16.msra.mxu1 %v745_v14  ;;  %v787_v42 = vld [vmem:[%s1090_s1 + $0xa0] ss:$8 sps:$4 sm:$0xff]   ;;  %v789_v44 = vld [vmem:[%s1090_s1 + $0xb4] ss:$8 sps:$4 sm:$0xff]   ;;  %v793_v46 = vld [vmem:[%s1090_s1 + $0xb0] ss:$8 sps:$4 sm:$0xff]  }
  0x10   :  { %509 = vmatpush1.bf16.msra.mxu0 %v746_v15  ;;  %457 = vmatprep.subr.bf16.mxu1 %v747_v16  ;;  %v788_v43 = vld [vmem:[%s1090_s1 + $0x1a0] ss:$8 sps:$4 sm:$0xff]   ;;  %v791_v45 = vld [vmem:[%s1090_s1 + $0x1b4] ss:$8 sps:$4 sm:$0xff]   ;;  %v794_v47 = vld [vmem:[%s1090_s1 + $0x1b0] ss:$8 sps:$4 sm:$0xff]  }
  0x11   :  { %510 = vmatprep.subr.bf16.mxu0 %v749_v17  ;;  %v795_v48 = vld [vmem:[%s1090_s1 + $0xc4] ss:$8 sps:$4 sm:$0xff]   ;;  %v799_v52 = vld [vmem:[%s1090_s1 + $0xc0] ss:$8 sps:$4 sm:$0xff]   ;;  %v801_v54 = vld [vmem:[%s1090_s1 + $0xd4] ss:$8 sps:$4 sm:$0xff]  }
  0x12   :  { %v821_v49 = vld [vmem:[%s1091_s0 + $0x4] ss:$16 sps:$4 sm:$0xff]   ;;  %v824_v51 = vld [vmem:[%s1091_s0 + $0xc] ss:$16 sps:$4 sm:$0xff]   ;;  %v800_v53 = vld [vmem:[%s1090_s1 + $0x1c0] ss:$8 sps:$4 sm:$0xff]  }
  0x13   :  { %458 = vmatpush1.bf16.msra.mxu1 %v751_v18  ;;  %v797_v50 = vld [vmem:[%s1090_s1 + $0x1c4] ss:$8 sps:$4 sm:$0xff]   ;;  %481 = vmatprep.mubr.bf16.mxu1 %v821_v49  ;;  %v803_v55 = vld [vmem:[%s1090_s1 + $0x1d4] ss:$8 sps:$4 sm:$0xff]   ;;  %v805_v56 = vld [vmem:[%s1090_s1 + $0xd0] ss:$8 sps:$4 sm:$0xff]  }
  0x14   :  { %511 = vmatpush1.bf16.msra.mxu0 %v752_v19  ;;  %459 = vmatprep.subr.bf16.mxu1 %v753_v20  ;;  %v806_v57 = vld [vmem:[%s1090_s1 + $0x1d0] ss:$8 sps:$4 sm:$0xff]   ;;  %v807_v58 = vld [vmem:[%s1090_s1 + $0xe4] ss:$8 sps:$4 sm:$0xff]   ;;  %v811_v60 = vld [vmem:[%s1090_s1 + $0xe0] ss:$8 sps:$4 sm:$0xff]  }
  0x15   :  { %512 = vmatprep.subr.bf16.mxu0 %v755_v21  ;;  %534 = vmatprep.mubr.bf16.mxu0 %v824_v51  ;;  %v809_v59 = vld [vmem:[%s1090_s1 + $0x1e4] ss:$8 sps:$4 sm:$0xff]   ;;  %v812_v61 = vld [vmem:[%s1090_s1 + $0x1e0] ss:$8 sps:$4 sm:$0xff]   ;;  %v813_v62 = vld [vmem:[%s1090_s1 + $0xf4] ss:$8 sps:$4 sm:$0xff]  }
  0x16   :  { %v815_v63 = vld [vmem:[%s1090_s1 + $0x1f4] ss:$8 sps:$4 sm:$0xff]   ;;  %v817_v0 = vld [vmem:[%s1090_s1 + $0xf0] ss:$8 sps:$4 sm:$0xff]   ;;  %v558_v9 = vshrl.u32 %v557_v8, 7 }
  0x17   :  { %460 = vmatpush1.bf16.msra.mxu1 %v757_v22  ;;  %v818_v1 = vld [vmem:[%s1090_s1 + $0x1f0] ss:$8 sps:$4 sm:$0xff]   ;;  %v825_v4 = vld [vmem:[%s1091_s0 + $0x24] ss:$16 sps:$4 sm:$0xff]   ;;  %v827_v5 = vld [vmem:[%s1091_s0 + $0x2c] ss:$16 sps:$4 sm:$0xff]  }
  0x18   :  { %513 = vmatpush1.bf16.msra.mxu0 %v758_v23  ;;  %461 = vmatprep.subr.bf16.mxu1 %v759_v24  ;;  %v819_v2 = vld [vmem:[%s1091_s0] ss:$16 sps:$4 sm:$0xff]   ;;  %v822_v3 = vld [vmem:[%s1091_s0 + $0x8] ss:$16 sps:$4 sm:$0xff]   ;;  %v559_v10 = vsub.s32 0, %v558_v9  ;;  %v563_v12 = vsub.s32 1, %v558_v9 }
  0x19   :  { %514 = vmatprep.subr.bf16.mxu0 %v761_v25  ;;  %v829_v6 = vld [vmem:[%s1091_s0 + $0x20] ss:$16 sps:$4 sm:$0xff]   ;;  %v830_v7 = vld [vmem:[%s1091_s0 + $0x28] ss:$16 sps:$4 sm:$0xff]  }
  0x1a   :  { %v555_v11 = vld [vmem:[%s1092_s2] sm:$0x3] }
  0x1b   :  { %462 = vmatpush1.bf16.msra.mxu1 %v763_v26  ;;  %v575_v13 = vld [vmem:[%s1093_s3] sm:$0x3]  ;;  %v560_v14 = vrot.slane %v555_v11, %v559_v10  ;;  %v564_v17 = vrot.slane %v555_v11, %v563_v12 }
  0x1c   :  { %515 = vmatpush1.bf16.msra.mxu0 %v764_v27  ;;  %463 = vmatprep.subr.bf16.mxu1 %v765_v28  ;;  %v580_v19 = vrot.slane %v575_v13, %v559_v10  ;;  %v584_v23 = vrot.slane %v575_v13, %v563_v12 }
  0x1d   :  { %516 = vmatprep.subr.bf16.mxu0 %v767_v29 }
  0x1f   :  { %464 = vmatpush1.bf16.msra.mxu1 %v769_v30 }
  0x20   :  { %517 = vmatpush1.bf16.msra.mxu0 %v770_v31  ;;  %465 = vmatprep.subr.bf16.mxu1 %v771_v32 }
  0x21   :  { %518 = vmatprep.subr.bf16.mxu0 %v773_v33 }
  0x23   :  { %466 = vmatpush1.bf16.msra.mxu1 %v775_v34 }
  0x24   :  { %519 = vmatpush1.bf16.msra.mxu0 %v776_v35  ;;  %467 = vmatprep.subr.bf16.mxu1 %v777_v36 }
  0x25   :  { %520 = vmatprep.subr.bf16.mxu0 %v779_v37 }
  0x27   :  { %468 = vmatpush1.bf16.msra.mxu1 %v781_v38 }
  0x28   :  { %521 = vmatpush1.bf16.msra.mxu0 %v782_v39  ;;  %469 = vmatprep.subr.bf16.mxu1 %v783_v40 }
  0x29   :  { %522 = vmatprep.subr.bf16.mxu0 %v785_v41 }
  0x2b   :  { %470 = vmatpush1.bf16.msra.mxu1 %v787_v42 }
  0x2c   :  { %523 = vmatpush1.bf16.msra.mxu0 %v788_v43  ;;  %471 = vmatprep.subr.bf16.mxu1 %v789_v44 }
  0x2d   :  { %524 = vmatprep.subr.bf16.mxu0 %v791_v45 }
  0x2f   :  { %472 = vmatpush1.bf16.msra.mxu1 %v793_v46 }
  0x30   :  { %525 = vmatpush1.bf16.msra.mxu0 %v794_v47  ;;  %473 = vmatprep.subr.bf16.mxu1 %v795_v48 }
  0x31   :  { %526 = vmatprep.subr.bf16.mxu0 %v797_v50 }
  0x33   :  { %474 = vmatpush1.bf16.msra.mxu1 %v799_v52 }
  0x34   :  { %527 = vmatpush1.bf16.msra.mxu0 %v800_v53  ;;  %475 = vmatprep.subr.bf16.mxu1 %v801_v54 }
  0x35   :  { %528 = vmatprep.subr.bf16.mxu0 %v803_v55 }
  0x37   :  { %476 = vmatpush1.bf16.msra.mxu1 %v805_v56 }
  0x38   :  { %529 = vmatpush1.bf16.msra.mxu0 %v806_v57  ;;  %477 = vmatprep.subr.bf16.mxu1 %v807_v58 }
  0x39   :  { %530 = vmatprep.subr.bf16.mxu0 %v809_v59 }
  0x3b   :  { %478 = vmatpush1.bf16.msra.mxu1 %v811_v60 }
  0x3c   :  { %531 = vmatpush1.bf16.msra.mxu0 %v812_v61  ;;  %479 = vmatprep.subr.bf16.mxu1 %v813_v62 }
  0x3d   :  { %532 = vmatprep.subr.bf16.mxu0 %v815_v63 }
  0x3f   :  { %480 = vmatpush1.bf16.msra.mxu1 %v817_v0 }
  0x40   :  { %533 = vmatpush1.bf16.msra.mxu0 %v818_v1 }
  0x42   :  { %482 = vmatmul.mubr.bf16.vlgmr.msra.gmra.mrb[0].mxu1 %v819_v2 }
  0x43   :  { %535 = vmatmul.mubr.bf16.vlgmr.msra.gmra.mrb[0].mxu0 %v822_v3  ;;  %491 = vmatprep.mubr.bf16.mxu1 %v825_v4 }
  0x44   :  { %544 = vmatprep.mubr.bf16.mxu0 %v827_v5 }
  0x4a   :  { %492 = vmatmul.mubr.bf16.gmra.mrb[4].mxu1 %v829_v6 }
  0x4b   :  { %545 = vmatmul.mubr.bf16.gmra.mrb[4].mxu0 %v830_v7 }
 0x115   :  { %v483_v15 = vpop.f32.mrb[0].mxu1 }
 0x116   :  { %v536_v16 = vpop.f32.mrb[0].mxu0  ;;  %v485_v20 = vpop.f32.mrb[1].mxu1 }
 0x117   :  { %v537_v18 = vadd.f32 %v536_v16, %v483_v15  ;;  %v538_v21 = vpop.f32.mrb[1].mxu0  ;;  %v487_v24 = vpop.f32.mrb[2].mxu1 }
 0x118   :  { %v539_v22 = vadd.f32 %v538_v21, %v485_v20  ;;  %v540_v25 = vpop.f32.mrb[2].mxu0  ;;  %v489_v28 = vpop.f32.mrb[3].mxu1 }
 0x119   :  { %v567_v26 = vmul.f32 %v560_v14, %v537_v18  ;;  %v541_v27 = vadd.f32 %v540_v25, %v487_v24  ;;  %v542_v29 = vpop.f32.mrb[3].mxu0 }
 0x11a   :  { %v568_v30 = vmul.f32 %v564_v17, %v539_v22  ;;  %v543_v31 = vadd.f32 %v542_v29, %v489_v28 }
 0x11b   :  { %v587_v32 = vadd.f32 %v580_v19, %v567_v26  ;;  %v569_v33 = vmul.f32 %v560_v14, %v541_v27 }
 0x11c   :  { %v588_v34 = vadd.f32 %v584_v23, %v568_v30  ;;  %v570_v35 = vmul.f32 %v564_v17, %v543_v31 }
 0x11d   :  { %v595_v36 = vmax.f32 %v587_v32, 0.0  ;;  %v589_v37 = vadd.f32 %v580_v19, %v569_v33  ;;  %v493_v40 = vpop.f32.mrb[4].mxu1 }
 0x11e   :  { %v596_v38 = vmax.f32 %v588_v34, 0.0  ;;  %v590_v39 = vadd.f32 %v584_v23, %v570_v35  ;;  %v546_v41 = vpop.f32.mrb[4].mxu0  ;;  %v495_v44 = vpop.f32.mrb[5].mxu1 }
 0x11f   :  { %v597_v42 = vmax.f32 %v589_v37, 0.0  ;;  %v547_v43 = vadd.f32 %v546_v41, %v493_v40  ;;  %v548_v45 = vpop.f32.mrb[5].mxu0  ;;  %v497_v49 = vpop.f32.mrb[6].mxu1 }
 0x120   :  { %v711_v46 = vpack.c.bf16 %v596_v38, %v595_v36  ;;  %v598_v47 = vmax.f32 %v590_v39, 0.0  ;;  %v549_v48 = vadd.f32 %v548_v45, %v495_v44  ;;  %v550_v50 = vpop.f32.mrb[6].mxu0  ;;  %v499_v53 = vpop.f32.mrb[7].mxu1 }
 0x121   :  { %v571_v51 = vmul.f32 %v560_v14, %v547_v43  ;;  %v551_v52 = vadd.f32 %v550_v50, %v497_v49  ;;  %v552_v54 = vpop.f32.mrb[7].mxu0 }
 0x122   :  { %627 = vst [vmem:[%s1094_s4] sm:$0xff] %v711_v46  ;;  %v712_v55 = vpack.c.bf16 %v598_v47, %v597_v42  ;;  %v572_v56 = vmul.f32 %v564_v17, %v549_v48  ;;  %v553_v57 = vadd.f32 %v552_v54, %v499_v53 }
 0x123   :  { %v591_v58 = vadd.f32 %v580_v19, %v571_v51  ;;  %v573_v59 = vmul.f32 %v560_v14, %v551_v52 }
 0x124   :  { %628 = vst [vmem:[%s1094_s4 + $0x8] sm:$0xff] %v712_v55  ;;  %v592_v60 = vadd.f32 %v584_v23, %v572_v56  ;;  %v574_v61 = vmul.f32 %v564_v17, %v553_v57 }
 0x125   :  { %v599_v62 = vmax.f32 %v591_v58, 0.0  ;;  %v593_v63 = vadd.f32 %v580_v19, %v573_v59 }
 0x126   :  { %v600_v0 = vmax.f32 %v592_v60, 0.0  ;;  %v594_v1 = vadd.f32 %v584_v23, %v574_v61 }
 0x127   :  { %v601_v2 = vmax.f32 %v593_v63, 0.0 }
 0x128   :  { %v713_v3 = vpack.c.bf16 %v600_v0, %v599_v62  ;;  %v602_v4 = vmax.f32 %v594_v1, 0.0 }
 0x12a   :  { %629 = vst [vmem:[%s1094_s4 + $0x10] sm:$0xff] %v713_v3  ;;  %v714_v5 = vpack.c.bf16 %v602_v4, %v601_v2 }
 0x12c   :  { %630 = vst [vmem:[%s1094_s4 + $0x18] sm:$0xff] %v714_v5 }

// kernel: forward.98
= control target key start
LH: loop header
LB: loop body
LE: loop exit
PB: predicated region body
PF: predicated region fallthrough
CT: control target
= control target key end

     0   :  { %v473_v1 = vmov 0.0   ;;  %vm474_vm0 = vmmov 0   ;;  %v31_v14 = vlaneseq  ;;  %s612_s1 = inlined_call_operand.vmem [shape: bf16[384,128], index: 1, kind: input, shape index: {}]   ;;  %s613_s0 = inlined_call_operand.vmem [shape: bf16[8,384], index: 0, kind: input, shape index: {}]   ;;  %s614_s2 = inlined_call_operand.vmem [shape: f32[1,384], index: 2, kind: input, shape index: {}]   ;;  %s615_s3 = inlined_call_operand.vmem [shape: f32[1,384], index: 3, kind: input, shape index: {}]   ;;  %s616_s4 = inlined_call_operand.vmem [shape: f32[1,128], index: 4, kind: input, shape index: {}]   ;;  %s617_s5 = inlined_call_operand.vmem [shape: f32[1,128], index: 5, kind: input, shape index: {}]   ;;  %s618_s6 = inlined_call_operand.vmem [shape: bf16[8,128], index: 6, kind: output, shape index: {}]  }
   0x1   :  { %v449_v0 = vld [vmem:[%s612_s1 + $0x40] sm:$0xff]   ;;  %427 = vmatprep.subr.bf16.mxu1 %v473_v1  ;;  %443 = vmatprep.mubr.msk.bf16.mxu1 %vm474_vm0, %v473_v1  ;;  %v452_v4 = vld [vmem:[%s612_s1 + $0x48] sm:$0xff]   ;;  %v455_v7 = vld [vmem:[%s612_s1 + $0x50] sm:$0xff]  }
   0x2   :  { %v450_v2 = vld [vmem:[%s612_s1] sm:$0xff]   ;;  %396 = vmatprep.subr.bf16.mxu0 %v449_v0  ;;  %v453_v5 = vld [vmem:[%s612_s1 + $0x8] sm:$0xff]   ;;  %v456_v8 = vld [vmem:[%s612_s1 + $0x10] sm:$0xff]   ;;  %v32_v18 = vshrl.u32 %v31_v14, 7 }
   0x3   :  { %v451_v3 = vld [vmem:[%s612_s1 + $0x80] sm:$0xff]   ;;  %397 = vmatpush3.bf16.msra.mxu0 %v450_v2  ;;  %v454_v6 = vld [vmem:[%s612_s1 + $0x88] sm:$0xff]   ;;  %v457_v9 = vld [vmem:[%s612_s1 + $0x90] sm:$0xff]  }
   0x4   :  { %428 = vmatpush3.bf16.msra.mxu1 %v451_v3  ;;  %398 = vmatprep.subr.bf16.mxu0 %v452_v4  ;;  %v458_v10 = vld [vmem:[%s612_s1 + $0x58] sm:$0xff]   ;;  %v461_v13 = vld [vmem:[%s612_s1 + $0x60] sm:$0xff]   ;;  %v464_v17 = vld [vmem:[%s612_s1 + $0x68] sm:$0xff]   ;;  %v37_v22 = vsub.s32 1, %v32_v18  ;;  %v33_v24 = vsub.s32 0, %v32_v18  ;;  %v41_v26 = vsub.s32 2, %v32_v18 }
   0x5   :  { %429 = vmatprep.subr.bf16.mxu1 %v473_v1  ;;  %v459_v11 = vld [vmem:[%s612_s1 + $0x18] sm:$0xff]   ;;  %v462_v15 = vld [vmem:[%s612_s1 + $0x20] sm:$0xff]   ;;  %v465_v19 = vld [vmem:[%s612_s1 + $0x28] sm:$0xff]  }
   0x6   :  { %v460_v12 = vld [vmem:[%s612_s1 + $0x98] sm:$0xff]   ;;  %v463_v16 = vld [vmem:[%s612_s1 + $0xa0] sm:$0xff]   ;;  %v466_v20 = vld [vmem:[%s612_s1 + $0xa8] sm:$0xff]  }
   0x7   :  { %399 = vmatpush3.bf16.msra.mxu0 %v453_v5  ;;  %v467_v21 = vld [vmem:[%s612_s1 + $0x70] sm:$0xff]   ;;  %v470_v27 = vld [vmem:[%s612_s1 + $0x78] sm:$0xff]   ;;  %v24_v28 = vld [vmem:[%s613_s0] sm:$0xff] }
   0x8   :  { %430 = vmatpush3.bf16.msra.mxu1 %v454_v6  ;;  %400 = vmatprep.subr.bf16.mxu0 %v455_v7  ;;  %v468_v23 = vld [vmem:[%s612_s1 + $0x30] sm:$0xff]   ;;  %v25_v29 = vld [vmem:[%s613_s0 + $0x8] sm:$0xf]  ;;  %v29_v30 = vld [vmem:[%s614_s2] sm:$0x7]  ;;  %v26_v31 = vunpack.c.l.bf16 %v24_v28  ;;  %v27_v32 = vunpack.c.h.bf16 %v24_v28 }
   0x9   :  { %431 = vmatprep.subr.bf16.mxu1 %v473_v1  ;;  %v469_v25 = vld [vmem:[%s612_s1 + $0xb0] sm:$0xff]   ;;  %v28_v33 = vunpack.c.l.bf16 %v25_v29  ;;  %v38_v34 = vrot.slane %v29_v30, %v37_v22  ;;  %v49_v35 = vld [vmem:[%s615_s3] sm:$0x7]  ;;  %v34_v37 = vrot.slane %v29_v30, %v33_v24  ;;  %v42_v39 = vrot.slane %v29_v30, %v41_v26  ;;  %v471_v40 = vld [vmem:[%s612_s1 + $0x38] sm:$0xff]  }
   0xa   :  { %v58_v36 = vrot.slane %v49_v35, %v37_v22  ;;  %v54_v38 = vrot.slane %v49_v35, %v33_v24  ;;  %v62_v42 = vrot.slane %v49_v35, %v41_v26  ;;  %v472_v43 = vld [vmem:[%s612_s1 + $0xb8] sm:$0xff]   ;;  %v394_v62 = vld [vmem:[%s616_s4] ss:$0 sm:$0xff] }
   0xb   :  { %401 = vmatpush3.bf16.msra.mxu0 %v456_v8  ;;  %v47_v41 = vmul.f32 %v38_v34, %v27_v32  ;;  %v46_v44 = vmul.f32 %v34_v37, %v26_v31  ;;  %v48_v45 = vmul.f32 %v42_v39, %v28_v33  ;;  %v395_v2 = vld [vmem:[%s617_s5] ss:$0 sm:$0xff] }
   0xc   :  { %432 = vmatpush3.bf16.msra.mxu1 %v457_v9  ;;  %402 = vmatprep.subr.bf16.mxu0 %v458_v10 }
   0xd   :  { %433 = vmatprep.subr.bf16.mxu1 %v473_v1  ;;  %v67_v46 = vadd.f32 %v58_v36, %v47_v41  ;;  %v66_v47 = vadd.f32 %v54_v38, %v46_v44  ;;  %v68_v48 = vadd.f32 %v62_v42, %v48_v45 }
   0xf   :  { %403 = vmatpush3.bf16.msra.mxu0 %v459_v11  ;;  %v70_v49 = vmax.f32 %v67_v46, 0.0  ;;  %v69_v50 = vmax.f32 %v66_v47, 0.0  ;;  %v71_v51 = vmax.f32 %v68_v48, 0.0 }
  0x10   :  { %434 = vmatpush3.bf16.msra.mxu1 %v460_v12  ;;  %404 = vmatprep.subr.bf16.mxu0 %v461_v13 }
  0x11   :  { %435 = vmatprep.subr.bf16.mxu1 %v473_v1  ;;  %v73_v52 = vpack.c.bf16 %v70_v49, %v70_v49  ;;  %v72_v53 = vpack.c.bf16 %v69_v50, %v69_v50  ;;  %v74_v54 = vpack.c.bf16 %v71_v51, %v71_v51 }
  0x13   :  { %405 = vmatpush3.bf16.msra.mxu0 %v462_v15  ;;  %299 = vmatprep.mubr.bf16.mxu0 %v73_v52 }
  0x14   :  { %436 = vmatpush3.bf16.msra.mxu1 %v463_v16  ;;  %406 = vmatprep.subr.bf16.mxu0 %v464_v17 }
  0x15   :  { %437 = vmatprep.subr.bf16.mxu1 %v473_v1 }
  0x17   :  { %407 = vmatpush3.bf16.msra.mxu0 %v465_v19 }
  0x18   :  { %438 = vmatpush3.bf16.msra.mxu1 %v466_v20  ;;  %408 = vmatprep.subr.bf16.mxu0 %v467_v21 }
  0x19   :  { %439 = vmatprep.subr.bf16.mxu1 %v473_v1 }
  0x1b   :  { %409 = vmatpush3.bf16.msra.mxu0 %v468_v23 }
  0x1c   :  { %440 = vmatpush3.bf16.msra.mxu1 %v469_v25  ;;  %410 = vmatprep.subr.bf16.mxu0 %v470_v27 }
  0x1d   :  { %441 = vmatprep.subr.bf16.mxu1 %v473_v1 }
  0x1f   :  { %411 = vmatpush3.bf16.msra.mxu0 %v471_v40 }
  0x20   :  { %442 = vmatpush3.bf16.msra.mxu1 %v472_v43 }
  0x22   :  { %300 = vmatmul.mubr.bf16.vlgmr.msra.gmra.mrb[0].mxu0 %v72_v53 }
  0x23   :  { %444 = vmatmul.mubr.bf16.vlgmr.msra.gmra.mrb[0].mxu1 %v74_v54 }
  0xf5   :  { %v412_v55 = vpop.f32.mrb[0].mxu0 }
  0xf6   :  { %v341_v56 = vpop.f32.mrb[0].mxu1  ;;  %v413_v57 = vpop.f32.mrb[1].mxu0 }
  0xf7   :  { %v445_v58 = vpop.f32.mrb[1].mxu1  ;;  %v414_v59 = vadd.f32 %v413_v57, %v412_v55  ;;  %v415_v60 = vpop.f32.mrb[2].mxu0 }
  0xf8   :  { %v344_v61 = vpop.f32.mrb[2].mxu1  ;;  %v416_v63 = vpop.f32.mrb[3].mxu0 }
  0xf9   :  { %v446_v0 = vpop.f32.mrb[3].mxu1  ;;  %v342_v1 = vadd.f32 %v414_v59, %v341_v56 }
  0xfb   :  { %v354_v3 = vmul.f32 %v394_v62, %v342_v1 }
  0xfd   :  { %v362_v4 = vadd.f32 %v395_v2, %v354_v3 }
  0xff   :  { %v363_v5 = vmax.f32 %v362_v4, 0.0 }
 0x101   :  { %v364_v6 = vpack.c.bf16 %v363_v5, %v363_v5 }
 0x103   :  { %365 = vst [vmem:[%s618_s6] sm:$0xf] %v364_v6 }

// kernel: forward.99
= control target key start
LH: loop header
LB: loop body
LE: loop exit
PB: predicated region body
PF: predicated region fallthrough
CT: control target
= control target key end

     0   :  { %vm1113_vm0 = vmmov 0   ;;  %s1363_s1 = inlined_call_operand.vmem [shape: bf16[1152,128], index: 1, kind: input, shape index: {}]   ;;  %s1364_s0 = inlined_call_operand.vmem [shape: bf16[8,1152], index: 0, kind: input, shape index: {}]   ;;  %s1365_s2 = inlined_call_operand.vmem [shape: bf16[8,128], index: 2, kind: output, shape index: {}]  }
   0x1   :  { %v1031_v0 = vld [vmem:[%s1363_s1 + $0x40] sm:$0xff]   ;;  %v1035_v4 = vld [vmem:[%s1363_s1 + $0x48] sm:$0xff]   ;;  %v1039_v8 = vld [vmem:[%s1363_s1 + $0x50] sm:$0xff]  }
   0x2   :  { %v1032_v1 = vld [vmem:[%s1363_s1 + $0xc0] sm:$0xff]   ;;  %912 = vmatprep.subr.bf16.mxu0 %v1031_v0  ;;  %v1036_v5 = vld [vmem:[%s1363_s1 + $0xc8] sm:$0xff]   ;;  %v1040_v9 = vld [vmem:[%s1363_s1 + $0xd0] sm:$0xff]  }
   0x3   :  { %v1033_v2 = vld [vmem:[%s1363_s1] sm:$0xff]   ;;  %934 = vmatprep.subr.bf16.mxu1 %v1032_v1  ;;  %v1037_v6 = vld [vmem:[%s1363_s1 + $0x8] sm:$0xff]   ;;  %v1041_v10 = vld [vmem:[%s1363_s1 + $0x10] sm:$0xff]  }
   0x4   :  { %v1034_v3 = vld [vmem:[%s1363_s1 + $0x80] sm:$0xff]   ;;  %913 = vmatpush3.bf16.msra.mxu0 %v1033_v2  ;;  %v1038_v7 = vld [vmem:[%s1363_s1 + $0x88] sm:$0xff]   ;;  %v1042_v11 = vld [vmem:[%s1363_s1 + $0x90] sm:$0xff]  }
   0x5   :  { %935 = vmatpush3.bf16.msra.mxu1 %v1034_v3  ;;  %914 = vmatprep.subr.bf16.mxu0 %v1035_v4  ;;  %v1043_v12 = vld [vmem:[%s1363_s1 + $0x58] sm:$0xff]   ;;  %v1047_v16 = vld [vmem:[%s1363_s1 + $0x60] sm:$0xff]   ;;  %v1051_v20 = vld [vmem:[%s1363_s1 + $0x68] sm:$0xff]  }
   0x6   :  { %936 = vmatprep.subr.bf16.mxu1 %v1036_v5  ;;  %v1044_v13 = vld [vmem:[%s1363_s1 + $0xd8] sm:$0xff]   ;;  %v1048_v17 = vld [vmem:[%s1363_s1 + $0xe0] sm:$0xff]   ;;  %v1052_v21 = vld [vmem:[%s1363_s1 + $0xe8] sm:$0xff]  }
   0x7   :  { %v1045_v14 = vld [vmem:[%s1363_s1 + $0x18] sm:$0xff]   ;;  %v1049_v18 = vld [vmem:[%s1363_s1 + $0x20] sm:$0xff]   ;;  %v1053_v22 = vld [vmem:[%s1363_s1 + $0x28] sm:$0xff]  }
   0x8   :  { %915 = vmatpush3.bf16.msra.mxu0 %v1037_v6  ;;  %v1046_v15 = vld [vmem:[%s1363_s1 + $0x98] sm:$0xff]   ;;  %v1050_v19 = vld [vmem:[%s1363_s1 + $0xa0] sm:$0xff]   ;;  %v1054_v23 = vld [vmem:[%s1363_s1 + $0xa8] sm:$0xff]  }
   0x9   :  { %937 = vmatpush3.bf16.msra.mxu1 %v1038_v7  ;;  %916 = vmatprep.subr.bf16.mxu0 %v1039_v8  ;;  %v1055_v24 = vld [vmem:[%s1363_s1 + $0x70] sm:$0xff]   ;;  %v1059_v28 = vld [vmem:[%s1363_s1 + $0x78] sm:$0xff]   ;;  %v12_v32 = vld [vmem:[%s1364_s0] sm:$0xff] }
   0xa   :  { %938 = vmatprep.subr.bf16.mxu1 %v1040_v9  ;;  %v1056_v25 = vld [vmem:[%s1363_s1 + $0xf0] sm:$0xff]   ;;  %v1060_v29 = vld [vmem:[%s1363_s1 + $0xf8] sm:$0xff]   ;;  %v13_v33 = vld [vmem:[%s1364_s0 + $0x8] sm:$0xff]  ;;  %v831_v34 = vcombine.low %v12_v32, %v12_v32  ;;  %v832_v35 = vcombine.high %v12_v32, %v12_v32 }
   0xb   :  { %v1057_v26 = vld [vmem:[%s1363_s1 + $0x30] sm:$0xff]   ;;  %v1061_v30 = vld [vmem:[%s1363_s1 + $0x38] sm:$0xff]   ;;  %v833_v36 = vcombine.low %v13_v33, %v13_v33  ;;  %v834_v37 = vcombine.high %v13_v33, %v13_v33  ;;  %v1067_v38 = vld [vmem:[%s1363_s1 + $0x140] sm:$0xff]  }
   0xc   :  { %917 = vmatpush3.bf16.msra.mxu0 %v1041_v10  ;;  %v1058_v27 = vld [vmem:[%s1363_s1 + $0xb0] sm:$0xff]   ;;  %v1062_v31 = vld [vmem:[%s1363_s1 + $0xb8] sm:$0xff]   ;;  %v1068_v39 = vld [vmem:[%s1363_s1 + $0x100] sm:$0xff]   ;;  %657 = vmatprep.mubr.bf16.mxu0 %v832_v35 }
   0xd   :  { %939 = vmatpush3.bf16.msra.mxu1 %v1042_v11  ;;  %918 = vmatprep.subr.bf16.mxu0 %v1043_v12  ;;  %v1069_v40 = vld [vmem:[%s1363_s1 + $0x1c0] sm:$0xff]   ;;  %v1071_v42 = vld [vmem:[%s1363_s1 + $0x148] sm:$0xff]   ;;  %v1075_v46 = vld [vmem:[%s1363_s1 + $0x150] sm:$0xff]  }
   0xe   :  { %940 = vmatprep.subr.bf16.mxu1 %v1044_v13  ;;  %697 = vmatprep.mubr.bf16.mxu1 %v834_v37  ;;  %v1070_v41 = vld [vmem:[%s1363_s1 + $0x180] sm:$0xff]   ;;  %v1072_v43 = vld [vmem:[%s1363_s1 + $0x108] sm:$0xff]   ;;  %v1076_v47 = vld [vmem:[%s1363_s1 + $0x110] sm:$0xff]   ;;  %v1112_v13 = vmov 0.0  }
   0xf   :  { %v1073_v44 = vld [vmem:[%s1363_s1 + $0x1c8] sm:$0xff]   ;;  %v1077_v48 = vld [vmem:[%s1363_s1 + $0x1d0] sm:$0xff]   ;;  %v1079_v50 = vld [vmem:[%s1363_s1 + $0x158] sm:$0xff]  }
  0x10   :  { %919 = vmatpush3.bf16.msra.mxu0 %v1045_v14  ;;  %v1074_v45 = vld [vmem:[%s1363_s1 + $0x188] sm:$0xff]   ;;  %v1078_v49 = vld [vmem:[%s1363_s1 + $0x190] sm:$0xff]   ;;  %v1080_v51 = vld [vmem:[%s1363_s1 + $0x118] sm:$0xff]  }
  0x11   :  { %941 = vmatpush3.bf16.msra.mxu1 %v1046_v15  ;;  %920 = vmatprep.subr.bf16.mxu0 %v1047_v16  ;;  %v1081_v52 = vld [vmem:[%s1363_s1 + $0x1d8] sm:$0xff]   ;;  %v1083_v54 = vld [vmem:[%s1363_s1 + $0x160] sm:$0xff]   ;;  %v1087_v58 = vld [vmem:[%s1363_s1 + $0x168] sm:$0xff]  }
  0x12   :  { %942 = vmatprep.subr.bf16.mxu1 %v1048_v17  ;;  %v1082_v53 = vld [vmem:[%s1363_s1 + $0x198] sm:$0xff]   ;;  %v1084_v55 = vld [vmem:[%s1363_s1 + $0x120] sm:$0xff]   ;;  %v1088_v59 = vld [vmem:[%s1363_s1 + $0x128] sm:$0xff]  }
  0x13   :  { %v1085_v56 = vld [vmem:[%s1363_s1 + $0x1e0] sm:$0xff]   ;;  %v1089_v60 = vld [vmem:[%s1363_s1 + $0x1e8] sm:$0xff]   ;;  %v1091_v62 = vld [vmem:[%s1363_s1 + $0x170] sm:$0xff]  }
  0x14   :  { %921 = vmatpush3.bf16.msra.mxu0 %v1049_v18  ;;  %v1086_v57 = vld [vmem:[%s1363_s1 + $0x1a0] sm:$0xff]   ;;  %v1090_v61 = vld [vmem:[%s1363_s1 + $0x1a8] sm:$0xff]   ;;  %v1092_v63 = vld [vmem:[%s1363_s1 + $0x130] sm:$0xff]  }
  0x15   :  { %943 = vmatpush3.bf16.msra.mxu1 %v1050_v19  ;;  %922 = vmatprep.subr.bf16.mxu0 %v1051_v20  ;;  %v1093_v0 = vld [vmem:[%s1363_s1 + $0x1f0] sm:$0xff]   ;;  %v1095_v2 = vld [vmem:[%s1363_s1 + $0x178] sm:$0xff]   ;;  %v1103_v12 = vld [vmem:[%s1363_s1 + $0x200] sm:$0xff]  }
  0x16   :  { %944 = vmatprep.subr.bf16.mxu1 %v1052_v21  ;;  %v1094_v1 = vld [vmem:[%s1363_s1 + $0x1b0] sm:$0xff]   ;;  %v1096_v3 = vld [vmem:[%s1363_s1 + $0x138] sm:$0xff]   ;;  %v1104_v14 = vld [vmem:[%s1363_s1 + $0x208] sm:$0xff]  }
  0x17   :  { %v1097_v4 = vld [vmem:[%s1363_s1 + $0x1f8] sm:$0xff]   ;;  %v14_v5 = vld [vmem:[%s1364_s0 + $0x10] sm:$0xff]  ;;  %v1107_v17 = vld [vmem:[%s1363_s1 + $0x220] sm:$0xff]  }
  0x18   :  { %923 = vmatpush3.bf16.msra.mxu0 %v1053_v22  ;;  %v836_v6 = vcombine.high %v14_v5, %v14_v5  ;;  %v1100_v7 = vld [vmem:[%s1363_s1 + $0x1b8] sm:$0xff]   ;;  %v835_v8 = vcombine.low %v14_v5, %v14_v5  ;;  %v1105_v15 = vld [vmem:[%s1363_s1 + $0x210] sm:$0xff]   ;;  %v1108_v18 = vld [vmem:[%s1363_s1 + $0x228] sm:$0xff]  }
  0x19   :  { %945 = vmatpush3.bf16.msra.mxu1 %v1054_v23  ;;  %924 = vmatprep.subr.bf16.mxu0 %v1055_v24  ;;  %v15_v9 = vld [vmem:[%s1364_s0 + $0x18] sm:$0xff]  ;;  %v1109_v19 = vld [vmem:[%s1363_s1 + $0x230] sm:$0xff]   ;;  %v1111_v21 = vld [vmem:[%s1364_s0 + $0x20] ss:$0 sps:$4 sm:$0xff]  }
  0x1a   :  { %946 = vmatprep.subr.bf16.mxu1 %v1056_v25  ;;  %v837_v10 = vcombine.low %v15_v9, %v15_v9  ;;  %v838_v11 = vcombine.high %v15_v9, %v15_v9  ;;  %v1106_v16 = vld [vmem:[%s1363_s1 + $0x218] sm:$0xff]  }
  0x1b   :  { %v1110_v20 = vld [vmem:[%s1363_s1 + $0x238] sm:$0xff]  }
  0x1c   :  { %925 = vmatpush3.bf16.msra.mxu0 %v1057_v26 }
  0x1d   :  { %947 = vmatpush3.bf16.msra.mxu1 %v1058_v27  ;;  %926 = vmatprep.subr.bf16.mxu0 %v1059_v28 }
  0x1e   :  { %948 = vmatprep.subr.bf16.mxu1 %v1060_v29 }
  0x20   :  { %927 = vmatpush3.bf16.msra.mxu0 %v1061_v30 }
  0x21   :  { %949 = vmatpush3.bf16.msra.mxu1 %v1062_v31  ;;  %956 = vmatprep.subr.bf16.mxu0 %v1067_v38 }
  0x22   :  { %978 = vmatprep.subr.bf16.mxu1 %v1069_v40 }
  0x23   :  { %658 = vmatmul.mubr.bf16.vlgmr.msra.gmra.mrb[0].mxu0 %v831_v34 }
  0x24   :  { %698 = vmatmul.mubr.bf16.vlgmr.msra.gmra.mrb[0].mxu1 %v833_v36  ;;  %957 = vmatpush3.bf16.msra.mxu0 %v1068_v39 }
  0x25   :  { %979 = vmatpush3.bf16.msra.mxu1 %v1070_v41  ;;  %958 = vmatprep.subr.bf16.mxu0 %v1071_v42 }
  0x26   :  { %980 = vmatprep.subr.bf16.mxu1 %v1073_v44  ;;  %737 = vmatprep.mubr.bf16.mxu0 %v836_v6 }
  0x27   :  { %777 = vmatprep.mubr.bf16.mxu1 %v838_v11 }
  0x28   :  { %959 = vmatpush3.bf16.msra.mxu0 %v1072_v43 }
  0x29   :  { %981 = vmatpush3.bf16.msra.mxu1 %v1074_v45  ;;  %960 = vmatprep.subr.bf16.mxu0 %v1075_v46 }
  0x2a   :  { %982 = vmatprep.subr.bf16.mxu1 %v1077_v48 }
  0x2c   :  { %961 = vmatpush3.bf16.msra.mxu0 %v1076_v47 }
  0x2d   :  { %983 = vmatpush3.bf16.msra.mxu1 %v1078_v49  ;;  %962 = vmatprep.subr.bf16.mxu0 %v1079_v50 }
  0x2e   :  { %984 = vmatprep.subr.bf16.mxu1 %v1081_v52 }
  0x30   :  { %963 = vmatpush3.bf16.msra.mxu0 %v1080_v51 }
  0x31   :  { %985 = vmatpush3.bf16.msra.mxu1 %v1082_v53  ;;  %964 = vmatprep.subr.bf16.mxu0 %v1083_v54 }
  0x32   :  { %986 = vmatprep.subr.bf16.mxu1 %v1085_v56 }
  0x34   :  { %965 = vmatpush3.bf16.msra.mxu0 %v1084_v55 }
  0x35   :  { %987 = vmatpush3.bf16.msra.mxu1 %v1086_v57  ;;  %966 = vmatprep.subr.bf16.mxu0 %v1087_v58 }
  0x36   :  { %988 = vmatprep.subr.bf16.mxu1 %v1089_v60 }
  0x38   :  { %967 = vmatpush3.bf16.msra.mxu0 %v1088_v59 }
  0x39   :  { %989 = vmatpush3.bf16.msra.mxu1 %v1090_v61  ;;  %968 = vmatprep.subr.bf16.mxu0 %v1091_v62 }
  0x3a   :  { %990 = vmatprep.subr.bf16.mxu1 %v1093_v0 }
  0x3c   :  { %969 = vmatpush3.bf16.msra.mxu0 %v1092_v63 }
  0x3d   :  { %991 = vmatpush3.bf16.msra.mxu1 %v1094_v1  ;;  %970 = vmatprep.subr.bf16.mxu0 %v1095_v2 }
  0x3e   :  { %992 = vmatprep.subr.bf16.mxu1 %v1097_v4 }
  0x40   :  { %971 = vmatpush3.bf16.msra.mxu0 %v1096_v3 }
  0x41   :  { %993 = vmatpush3.bf16.msra.mxu1 %v1100_v7  ;;  %1009 = vmatprep.subr.bf16.mxu0 %v1112_v13 }
  0x43   :  { %738 = vmatmul.mubr.bf16.vlgmr.msra.gmra.mrb[4].mxu0 %v835_v8 }
  0x44   :  { %1010 = vmatpush3.bf16.msra.mxu0 %v1103_v12  ;;  %778 = vmatmul.mubr.bf16.vlgmr.msra.gmra.mrb[4].mxu1 %v837_v10 }
  0x45   :  { %1011 = vmatprep.subr.bf16.mxu0 %v1112_v13  ;;  %1025 = vmatprep.mubr.msk.bf16.mxu0 %vm1113_vm0, %v1112_v13 }
  0x48   :  { %1012 = vmatpush3.bf16.msra.mxu0 %v1104_v14 }
  0x49   :  { %1013 = vmatprep.subr.bf16.mxu0 %v1112_v13 }
  0x4c   :  { %1014 = vmatpush3.bf16.msra.mxu0 %v1105_v15 }
  0x4d   :  { %1015 = vmatprep.subr.bf16.mxu0 %v1112_v13 }
  0x50   :  { %1016 = vmatpush3.bf16.msra.mxu0 %v1106_v16 }
  0x51   :  { %1017 = vmatprep.subr.bf16.mxu0 %v1112_v13 }
  0x54   :  { %1018 = vmatpush3.bf16.msra.mxu0 %v1107_v17 }
  0x55   :  { %1019 = vmatprep.subr.bf16.mxu0 %v1112_v13 }
  0x58   :  { %1020 = vmatpush3.bf16.msra.mxu0 %v1108_v18 }
  0x59   :  { %1021 = vmatprep.subr.bf16.mxu0 %v1112_v13 }
  0x5c   :  { %1022 = vmatpush3.bf16.msra.mxu0 %v1109_v19 }
  0x5d   :  { %1023 = vmatprep.subr.bf16.mxu0 %v1112_v13 }
  0x60   :  { %1024 = vmatpush3.bf16.msra.mxu0 %v1110_v20 }
  0x63   :  { %1026 = vmatmul.mubr.bf16.vlgmr.msra.gmra.mrb[8].mxu0 %v1111_v21 }
  0xf6   :  { %v928_v22 = vpop.f32.mrb[0].mxu0 }
  0xf7   :  { %v950_v23 = vpop.f32.mrb[0].mxu1  ;;  %v929_v24 = vpop.f32.mrb[1].mxu0 }
  0xf8   :  { %v951_v25 = vpop.f32.mrb[1].mxu1  ;;  %v930_v26 = vadd.f32 %v929_v24, %v928_v22  ;;  %v931_v28 = vpop.f32.mrb[2].mxu0 }
  0xf9   :  { %v952_v27 = vadd.f32 %v951_v25, %v950_v23  ;;  %v953_v29 = vpop.f32.mrb[2].mxu1  ;;  %v932_v30 = vpop.f32.mrb[3].mxu0 }
  0xfa   :  { %v954_v31 = vpop.f32.mrb[3].mxu1 }
  0xfb   :  { %v700_v32 = vadd.f32 %v952_v27, %v930_v26 }
 0x116   :  { %v972_v33 = vpop.f32.mrb[4].mxu0 }
 0x117   :  { %v973_v34 = vpop.f32.mrb[5].mxu0  ;;  %v994_v35 = vpop.f32.mrb[4].mxu1 }
 0x118   :  { %v974_v36 = vadd.f32 %v973_v34, %v972_v33  ;;  %v975_v37 = vpop.f32.mrb[6].mxu0  ;;  %v995_v38 = vpop.f32.mrb[5].mxu1 }
 0x119   :  { %v976_v39 = vpop.f32.mrb[7].mxu0  ;;  %v996_v40 = vadd.f32 %v995_v38, %v994_v35  ;;  %v997_v41 = vpop.f32.mrb[6].mxu1 }
 0x11a   :  { %v740_v42 = vadd.f32 %v974_v36, %v700_v32  ;;  %v998_v43 = vpop.f32.mrb[7].mxu1 }
 0x11c   :  { %v780_v44 = vadd.f32 %v996_v40, %v740_v42 }
 0x136   :  { %v819_v45 = vpop.f32.mrb[8].mxu0 }
 0x137   :  { %v820_v46 = vadd.f32 %v819_v45, %v780_v44  ;;  %v1027_v47 = vpop.f32.mrb[9].mxu0 }
 0x138   :  { %v822_v48 = vpop.f32.mrb[10].mxu0 }
 0x139   :  { %v825_v49 = vpack.c.bf16 %v820_v46, %v820_v46  ;;  %v1028_v50 = vpop.f32.mrb[11].mxu0 }
 0x13b   :  { %826 = vst [vmem:[%s1365_s2] sm:$0xf] %v825_v49 }

// kernel: forward.106
= control target key start
LH: loop header
LB: loop body
LE: loop exit
PB: predicated region body
PF: predicated region fallthrough
CT: control target
= control target key end

     0   :  { %v575_v1 = vmov 0   ;;  %v403_v57 = vlaneseq  ;;  %s760_s1 = inlined_call_operand.vmem [shape: bf16[384,256], index: 1, kind: input, shape index: {}]   ;;  %s761_s0 = inlined_call_operand.vmem [shape: bf16[8,384], index: 0, kind: input, shape index: {}]   ;;  %s762_s2 = inlined_call_operand.vmem [shape: f32[1,256], index: 2, kind: input, shape index: {}]   ;;  %s763_s3 = inlined_call_operand.vmem [shape: f32[1,256], index: 3, kind: input, shape index: {}]   ;;  %s764_s4 = inlined_call_operand.vmem [shape: bf16[8,256], index: 4, kind: output, shape index: {}]  }
   0x1   :  { %v500_v0 = vld [vmem:[%s760_s1 + $0x4] ss:$8 sps:$4 sm:$0xff]   ;;  %392 = vmatprep.mubr.bf16.mxu0 %v575_v1  ;;  %v502_v2 = vld [vmem:[%s760_s1] ss:$8 sps:$4 sm:$0xff]   ;;  %v503_v3 = vld [vmem:[%s760_s1 + $0x14] ss:$8 sps:$4 sm:$0xff]  }
   0x2   :  { %319 = vmatprep.subr.bf16.mxu1 %v500_v0  ;;  %v505_v4 = vld [vmem:[%s760_s1 + $0x10] ss:$8 sps:$4 sm:$0xff]   ;;  %v506_v5 = vld [vmem:[%s760_s1 + $0x24] ss:$8 sps:$4 sm:$0xff]   ;;  %v508_v6 = vld [vmem:[%s760_s1 + $0x20] ss:$8 sps:$4 sm:$0xff]  }
   0x3   :  { %320 = vmatpush1.bf16.msra.mxu1 %v502_v2  ;;  %v509_v7 = vld [vmem:[%s760_s1 + $0x34] ss:$8 sps:$4 sm:$0xff]   ;;  %v511_v8 = vld [vmem:[%s760_s1 + $0x30] ss:$8 sps:$4 sm:$0xff]   ;;  %v524_v9 = vld [vmem:[%s760_s1 + $0x104] ss:$8 sps:$4 sm:$0xff]  }
   0x4   :  { %321 = vmatprep.subr.bf16.mxu1 %v503_v3  ;;  %v526_v10 = vld [vmem:[%s760_s1 + $0x100] ss:$8 sps:$4 sm:$0xff]   ;;  %v512_v11 = vld [vmem:[%s760_s1 + $0x44] ss:$8 sps:$4 sm:$0xff]   ;;  %360 = vmatprep.subr.bf16.mxu0 %v524_v9  ;;  %v530_v12 = vld [vmem:[%s760_s1 + $0x114] ss:$8 sps:$4 sm:$0xff]  }
   0x5   :  { %361 = vmatpush1.bf16.msra.mxu0 %v526_v10  ;;  %v532_v13 = vld [vmem:[%s760_s1 + $0x110] ss:$8 sps:$4 sm:$0xff]   ;;  %v514_v14 = vld [vmem:[%s760_s1 + $0x40] ss:$8 sps:$4 sm:$0xff]   ;;  %v515_v15 = vld [vmem:[%s760_s1 + $0x54] ss:$8 sps:$4 sm:$0xff]  }
   0x6   :  { %362 = vmatprep.subr.bf16.mxu0 %v530_v12  ;;  %v536_v16 = vld [vmem:[%s760_s1 + $0x124] ss:$8 sps:$4 sm:$0xff]   ;;  %v538_v17 = vld [vmem:[%s760_s1 + $0x120] ss:$8 sps:$4 sm:$0xff]   ;;  %v517_v18 = vld [vmem:[%s760_s1 + $0x50] ss:$8 sps:$4 sm:$0xff]  }
   0x7   :  { %322 = vmatpush1.bf16.msra.mxu1 %v505_v4  ;;  %v542_v19 = vld [vmem:[%s760_s1 + $0x134] ss:$8 sps:$4 sm:$0xff]   ;;  %v518_v20 = vld [vmem:[%s760_s1 + $0x64] ss:$8 sps:$4 sm:$0xff]   ;;  %v544_v21 = vld [vmem:[%s760_s1 + $0x130] ss:$8 sps:$4 sm:$0xff]  }
   0x8   :  { %323 = vmatprep.subr.bf16.mxu1 %v506_v5  ;;  %v520_v22 = vld [vmem:[%s760_s1 + $0x60] ss:$8 sps:$4 sm:$0xff]   ;;  %v548_v23 = vld [vmem:[%s760_s1 + $0x144] ss:$8 sps:$4 sm:$0xff]   ;;  %v521_v24 = vld [vmem:[%s760_s1 + $0x74] ss:$8 sps:$4 sm:$0xff]  }
   0x9   :  { %363 = vmatpush1.bf16.msra.mxu0 %v532_v13  ;;  %v550_v25 = vld [vmem:[%s760_s1 + $0x140] ss:$8 sps:$4 sm:$0xff]   ;;  %v523_v26 = vld [vmem:[%s760_s1 + $0x70] ss:$8 sps:$4 sm:$0xff]   ;;  %v554_v27 = vld [vmem:[%s760_s1 + $0x154] ss:$8 sps:$4 sm:$0xff]  }
   0xa   :  { %364 = vmatprep.subr.bf16.mxu0 %v536_v16  ;;  %v527_v28 = vld [vmem:[%s760_s1 + $0x84] ss:$8 sps:$4 sm:$0xff]   ;;  %v556_v29 = vld [vmem:[%s760_s1 + $0x150] ss:$8 sps:$4 sm:$0xff]   ;;  %v529_v30 = vld [vmem:[%s760_s1 + $0x80] ss:$8 sps:$4 sm:$0xff]  }
   0xb   :  { %324 = vmatpush1.bf16.msra.mxu1 %v508_v6  ;;  %v560_v31 = vld [vmem:[%s760_s1 + $0x164] ss:$8 sps:$4 sm:$0xff]   ;;  %v533_v32 = vld [vmem:[%s760_s1 + $0x94] ss:$8 sps:$4 sm:$0xff]   ;;  %v562_v35 = vld [vmem:[%s760_s1 + $0x160] ss:$8 sps:$4 sm:$0xff]  }
   0xc   :  { %325 = vmatprep.subr.bf16.mxu1 %v509_v7  ;;  %v18_v33 = vld [vmem:[%s761_s0] sm:$0xff]  ;;  %v535_v36 = vld [vmem:[%s760_s1 + $0x90] ss:$8 sps:$4 sm:$0xff]   ;;  %v566_v37 = vld [vmem:[%s760_s1 + $0x174] ss:$8 sps:$4 sm:$0xff]   ;;  %v404_v58 = vshrl.u32 %v403_v57, 7 }
   0xd   :  { %365 = vmatpush1.bf16.msra.mxu0 %v538_v17  ;;  %v445_v34 = vcombine.high %v18_v33, %v18_v33  ;;  %v539_v38 = vld [vmem:[%s760_s1 + $0xa4] ss:$8 sps:$4 sm:$0xff]   ;;  %v568_v39 = vld [vmem:[%s760_s1 + $0x170] ss:$8 sps:$4 sm:$0xff]   ;;  %v541_v40 = vld [vmem:[%s760_s1 + $0xa0] ss:$8 sps:$4 sm:$0xff]   ;;  %v444_v52 = vcombine.low %v18_v33, %v18_v33 }
   0xe   :  { %366 = vmatprep.subr.bf16.mxu0 %v542_v19  ;;  %v545_v41 = vld [vmem:[%s760_s1 + $0xb4] ss:$8 sps:$4 sm:$0xff]   ;;  %v572_v42 = vld [vmem:[%s761_s0 + $0x8] ss:$0 sps:$4 sm:$0xff]   ;;  %v547_v43 = vld [vmem:[%s760_s1 + $0xb0] ss:$8 sps:$4 sm:$0xff]  }
   0xf   :  { %326 = vmatpush1.bf16.msra.mxu1 %v511_v8  ;;  %351 = vmatprep.mubr.bf16.mxu1 %v445_v34  ;;  %v551_v44 = vld [vmem:[%s760_s1 + $0xc4] ss:$8 sps:$4 sm:$0xff]   ;;  %v553_v45 = vld [vmem:[%s760_s1 + $0xc0] ss:$8 sps:$4 sm:$0xff]   ;;  %v557_v46 = vld [vmem:[%s760_s1 + $0xd4] ss:$8 sps:$4 sm:$0xff]  }
  0x10   :  { %327 = vmatprep.subr.bf16.mxu1 %v512_v11  ;;  %v559_v47 = vld [vmem:[%s760_s1 + $0xd0] ss:$8 sps:$4 sm:$0xff]   ;;  %v563_v48 = vld [vmem:[%s760_s1 + $0xe4] ss:$8 sps:$4 sm:$0xff]   ;;  %v565_v49 = vld [vmem:[%s760_s1 + $0xe0] ss:$8 sps:$4 sm:$0xff]  }
  0x11   :  { %367 = vmatpush1.bf16.msra.mxu0 %v544_v21  ;;  %v569_v50 = vld [vmem:[%s760_s1 + $0xf4] ss:$8 sps:$4 sm:$0xff]   ;;  %v571_v51 = vld [vmem:[%s760_s1 + $0xf0] ss:$8 sps:$4 sm:$0xff]   ;;  %v405_v59 = vsub.s32 0, %v404_v58  ;;  %v409_v61 = vsub.s32 1, %v404_v58 }
  0x12   :  { %368 = vmatprep.subr.bf16.mxu0 %v548_v23  ;;  %v401_v60 = vld [vmem:[%s762_s2] sm:$0x3] }
  0x13   :  { %328 = vmatpush1.bf16.msra.mxu1 %v514_v14  ;;  %v415_v62 = vld [vmem:[%s763_s3] sm:$0x3]  ;;  %v406_v63 = vrot.slane %v401_v60, %v405_v59  ;;  %v410_v1 = vrot.slane %v401_v60, %v409_v61 }
  0x14   :  { %329 = vmatprep.subr.bf16.mxu1 %v515_v15  ;;  %v420_v3 = vrot.slane %v415_v62, %v405_v59  ;;  %v424_v6 = vrot.slane %v415_v62, %v409_v61 }
  0x15   :  { %369 = vmatpush1.bf16.msra.mxu0 %v550_v25 }
  0x16   :  { %370 = vmatprep.subr.bf16.mxu0 %v554_v27 }
  0x17   :  { %330 = vmatpush1.bf16.msra.mxu1 %v517_v18 }
  0x18   :  { %331 = vmatprep.subr.bf16.mxu1 %v518_v20 }
  0x19   :  { %371 = vmatpush1.bf16.msra.mxu0 %v556_v29 }
  0x1a   :  { %372 = vmatprep.subr.bf16.mxu0 %v560_v31 }
  0x1b   :  { %332 = vmatpush1.bf16.msra.mxu1 %v520_v22 }
  0x1c   :  { %333 = vmatprep.subr.bf16.mxu1 %v521_v24 }
  0x1d   :  { %373 = vmatpush1.bf16.msra.mxu0 %v562_v35 }
  0x1e   :  { %374 = vmatprep.subr.bf16.mxu0 %v566_v37 }
  0x1f   :  { %334 = vmatpush1.bf16.msra.mxu1 %v523_v26 }
  0x20   :  { %335 = vmatprep.subr.bf16.mxu1 %v527_v28 }
  0x21   :  { %375 = vmatpush1.bf16.msra.mxu0 %v568_v39 }
  0x23   :  { %336 = vmatpush1.bf16.msra.mxu1 %v529_v30 }
  0x24   :  { %337 = vmatprep.subr.bf16.mxu1 %v533_v32  ;;  %393 = vmatmul.mubr.bf16.vlgmr.msra.gmra.mrb[0].mxu0 %v572_v42 }
  0x27   :  { %338 = vmatpush1.bf16.msra.mxu1 %v535_v36 }
  0x28   :  { %339 = vmatprep.subr.bf16.mxu1 %v539_v38 }
  0x2b   :  { %340 = vmatpush1.bf16.msra.mxu1 %v541_v40 }
  0x2c   :  { %341 = vmatprep.subr.bf16.mxu1 %v545_v41 }
  0x2f   :  { %342 = vmatpush1.bf16.msra.mxu1 %v547_v43 }
  0x30   :  { %343 = vmatprep.subr.bf16.mxu1 %v551_v44 }
  0x33   :  { %344 = vmatpush1.bf16.msra.mxu1 %v553_v45 }
  0x34   :  { %345 = vmatprep.subr.bf16.mxu1 %v557_v46 }
  0x37   :  { %346 = vmatpush1.bf16.msra.mxu1 %v559_v47 }
  0x38   :  { %347 = vmatprep.subr.bf16.mxu1 %v563_v48 }
  0x3b   :  { %348 = vmatpush1.bf16.msra.mxu1 %v565_v49 }
  0x3c   :  { %349 = vmatprep.subr.bf16.mxu1 %v569_v50 }
  0x3f   :  { %350 = vmatpush1.bf16.msra.mxu1 %v571_v51 }
  0x42   :  { %352 = vmatmul.mubr.bf16.vlgmr.msra.gmra.mrb[0].mxu1 %v444_v52 }
  0xf7   :  { %v394_v53 = vpop.f32.mrb[0].mxu0 }
  0xf8   :  { %v396_v54 = vpop.f32.mrb[1].mxu0 }
  0xf9   :  { %v398_v55 = vpop.f32.mrb[2].mxu0 }
  0xfa   :  { %v399_v56 = vpop.f32.mrb[3].mxu0 }
 0x115   :  { %v353_v0 = vpop.f32.mrb[0].mxu1 }
 0x116   :  { %v395_v2 = vadd.f32 %v394_v53, %v353_v0  ;;  %v355_v4 = vpop.f32.mrb[1].mxu1 }
 0x117   :  { %v397_v5 = vadd.f32 %v396_v54, %v355_v4  ;;  %v357_v7 = vpop.f32.mrb[2].mxu1 }
 0x118   :  { %v413_v8 = vmul.f32 %v406_v63, %v395_v2  ;;  %v358_v9 = vpop.f32.mrb[3].mxu1 }
 0x119   :  { %v414_v10 = vmul.f32 %v410_v1, %v397_v5 }
 0x11a   :  { %v427_v11 = vadd.f32 %v420_v3, %v413_v8 }
 0x11b   :  { %v428_v12 = vadd.f32 %v424_v6, %v414_v10 }
 0x11c   :  { %v429_v13 = vmax.f32 %v427_v11, 0.0 }
 0x11d   :  { %v430_v14 = vmax.f32 %v428_v12, 0.0 }
 0x11f   :  { %v496_v15 = vpack.c.bf16 %v430_v14, %v429_v13 }
 0x121   :  { %439 = vst [vmem:[%s764_s4] sm:$0xff] %v496_v15 }

// kernel: forward.115
= control target key start
LH: loop header
LB: loop body
LE: loop exit
PB: predicated region body
PF: predicated region fallthrough
CT: control target
= control target key end

     0   :  { %v420_v1 = vmov 0.0   ;;  %vm421_vm0 = vmmov 0   ;;  %s526_s1 = inlined_call_operand.vmem [shape: bf16[384,128], index: 1, kind: input, shape index: {}]   ;;  %s527_s0 = inlined_call_operand.vmem [shape: bf16[8,384], index: 0, kind: input, shape index: {}]   ;;  %s528_s2 = inlined_call_operand.vmem [shape: f32[1,128], index: 2, kind: input, shape index: {}]   ;;  %s529_s3 = inlined_call_operand.vmem [shape: f32[8,128], index: 3, kind: output, shape index: {}]  }
   0x1   :  { %v393_v0 = vld [vmem:[%s526_s1 + $0x40] sm:$0xff]   ;;  %371 = vmatprep.subr.bf16.mxu1 %v420_v1  ;;  %387 = vmatprep.mubr.msk.bf16.mxu1 %vm421_vm0, %v420_v1  ;;  %v396_v4 = vld [vmem:[%s526_s1 + $0x48] sm:$0xff]   ;;  %v399_v7 = vld [vmem:[%s526_s1 + $0x50] sm:$0xff]  }
   0x2   :  { %v394_v2 = vld [vmem:[%s526_s1] sm:$0xff]   ;;  %340 = vmatprep.subr.bf16.mxu0 %v393_v0  ;;  %v397_v5 = vld [vmem:[%s526_s1 + $0x8] sm:$0xff]   ;;  %v400_v8 = vld [vmem:[%s526_s1 + $0x10] sm:$0xff]  }
   0x3   :  { %v395_v3 = vld [vmem:[%s526_s1 + $0x80] sm:$0xff]   ;;  %341 = vmatpush3.bf16.msra.mxu0 %v394_v2  ;;  %v398_v6 = vld [vmem:[%s526_s1 + $0x88] sm:$0xff]   ;;  %v401_v9 = vld [vmem:[%s526_s1 + $0x90] sm:$0xff]  }
   0x4   :  { %372 = vmatpush3.bf16.msra.mxu1 %v395_v3  ;;  %342 = vmatprep.subr.bf16.mxu0 %v396_v4  ;;  %v402_v10 = vld [vmem:[%s526_s1 + $0x58] sm:$0xff]   ;;  %v405_v13 = vld [vmem:[%s526_s1 + $0x60] sm:$0xff]   ;;  %v408_v16 = vld [vmem:[%s526_s1 + $0x68] sm:$0xff]  }
   0x5   :  { %373 = vmatprep.subr.bf16.mxu1 %v420_v1  ;;  %v403_v11 = vld [vmem:[%s526_s1 + $0x18] sm:$0xff]   ;;  %v406_v14 = vld [vmem:[%s526_s1 + $0x20] sm:$0xff]   ;;  %v409_v17 = vld [vmem:[%s526_s1 + $0x28] sm:$0xff]  }
   0x6   :  { %v404_v12 = vld [vmem:[%s526_s1 + $0x98] sm:$0xff]   ;;  %v407_v15 = vld [vmem:[%s526_s1 + $0xa0] sm:$0xff]   ;;  %v410_v18 = vld [vmem:[%s526_s1 + $0xa8] sm:$0xff]  }
   0x7   :  { %343 = vmatpush3.bf16.msra.mxu0 %v397_v5  ;;  %v411_v19 = vld [vmem:[%s526_s1 + $0x70] sm:$0xff]   ;;  %v15_v22 = vld [vmem:[%s527_s0] sm:$0xff]  ;;  %v414_v23 = vld [vmem:[%s526_s1 + $0x78] sm:$0xff]  }
   0x8   :  { %374 = vmatpush3.bf16.msra.mxu1 %v398_v6  ;;  %344 = vmatprep.subr.bf16.mxu0 %v399_v7  ;;  %v412_v20 = vld [vmem:[%s526_s1 + $0x30] sm:$0xff]   ;;  %v314_v24 = vcombine.high %v15_v22, %v15_v22  ;;  %v415_v25 = vld [vmem:[%s526_s1 + $0x38] sm:$0xff]   ;;  %v313_v27 = vcombine.low %v15_v22, %v15_v22  ;;  %v418_v28 = vld [vmem:[%s527_s0 + $0x8] ss:$0 sps:$4 sm:$0xff]  }
   0x9   :  { %375 = vmatprep.subr.bf16.mxu1 %v420_v1  ;;  %v413_v21 = vld [vmem:[%s526_s1 + $0xb0] sm:$0xff]   ;;  %v419_v26 = vld [vmem:[%s526_s1 + $0xb8] sm:$0xff]   ;;  %v312_v31 = vld [vmem:[%s528_s2] ss:$0 sm:$0xff] }
   0xa   :  { %259 = vmatprep.mubr.bf16.mxu0 %v314_v24 }
   0xb   :  { %345 = vmatpush3.bf16.msra.mxu0 %v400_v8 }
   0xc   :  { %376 = vmatpush3.bf16.msra.mxu1 %v401_v9  ;;  %346 = vmatprep.subr.bf16.mxu0 %v402_v10 }
   0xd   :  { %377 = vmatprep.subr.bf16.mxu1 %v420_v1 }
   0xf   :  { %347 = vmatpush3.bf16.msra.mxu0 %v403_v11 }
  0x10   :  { %378 = vmatpush3.bf16.msra.mxu1 %v404_v12  ;;  %348 = vmatprep.subr.bf16.mxu0 %v405_v13 }
  0x11   :  { %379 = vmatprep.subr.bf16.mxu1 %v420_v1 }
  0x13   :  { %349 = vmatpush3.bf16.msra.mxu0 %v406_v14 }
  0x14   :  { %380 = vmatpush3.bf16.msra.mxu1 %v407_v15  ;;  %350 = vmatprep.subr.bf16.mxu0 %v408_v16 }
  0x15   :  { %381 = vmatprep.subr.bf16.mxu1 %v420_v1 }
  0x17   :  { %351 = vmatpush3.bf16.msra.mxu0 %v409_v17 }
  0x18   :  { %382 = vmatpush3.bf16.msra.mxu1 %v410_v18  ;;  %352 = vmatprep.subr.bf16.mxu0 %v411_v19 }
  0x19   :  { %383 = vmatprep.subr.bf16.mxu1 %v420_v1 }
  0x1b   :  { %353 = vmatpush3.bf16.msra.mxu0 %v412_v20 }
  0x1c   :  { %384 = vmatpush3.bf16.msra.mxu1 %v413_v21  ;;  %354 = vmatprep.subr.bf16.mxu0 %v414_v23 }
  0x1d   :  { %385 = vmatprep.subr.bf16.mxu1 %v420_v1 }
  0x1f   :  { %355 = vmatpush3.bf16.msra.mxu0 %v415_v25 }
  0x20   :  { %386 = vmatpush3.bf16.msra.mxu1 %v419_v26 }
  0x22   :  { %260 = vmatmul.mubr.bf16.vlgmr.msra.gmra.mrb[0].mxu0 %v313_v27 }
  0x23   :  { %388 = vmatmul.mubr.bf16.vlgmr.msra.gmra.mrb[0].mxu1 %v418_v28 }
  0xf5   :  { %v356_v29 = vpop.f32.mrb[0].mxu0 }
  0xf6   :  { %v357_v30 = vpop.f32.mrb[1].mxu0  ;;  %v301_v32 = vpop.f32.mrb[0].mxu1 }
  0xf7   :  { %v358_v33 = vadd.f32 %v357_v30, %v356_v29  ;;  %v359_v34 = vpop.f32.mrb[2].mxu0  ;;  %v389_v35 = vpop.f32.mrb[1].mxu1 }
  0xf8   :  { %v360_v36 = vpop.f32.mrb[3].mxu0  ;;  %v304_v37 = vpop.f32.mrb[2].mxu1 }
  0xf9   :  { %v262_v38 = vadd.f32 %v358_v33, %v312_v31  ;;  %v390_v39 = vpop.f32.mrb[3].mxu1 }
  0xfb   :  { %v302_v40 = vadd.f32 %v301_v32, %v262_v38 }
  0xfd   :  { %307 = vst [vmem:[%s529_s3] sm:$0xff] %v302_v40 }

</bundles_post_ra>
